<compile_context>
chip_gen: v5e
topology: v5e:2x2
jax: 0.10.0
libtpu: 0.0.40
codegen_flags: <defaults>
</compile_context>

<pallas_src>
import functools

import jax
import jax.numpy as jnp
from jax.experimental import pallas as pl
from jax.experimental.pallas import tpu as pltpu


def _additive_attention_kernel(q_ref, k_ref, v_ref,
                               wq_t_ref, wk_t_ref,
                               bias_ref, ws_ref, bs_ref,
                               ctx_ref, attn_ref,
                               qp_ref, m_ref, l_ref, acc_ref,
                               *, valid_len, mxu_dtype, approx_recip):
    # Per-grid-step shapes:
    #   q_ref:   (TB, D)        k_ref/v_ref: (TB, TL, D)
    #   wq_t/wk_t: (D, D) VMEM-resident, bias/ws: (1, D), bs: (1,) SMEM
    #   ctx_ref: (TB, D)        attn_ref: (TB, Lp)   (resident across L tiles)
    #   scratch: qp (TB, D), m (TB, 1), l (TB, 1), acc (TB, D)  -- all f32
    TB, TL, D = k_ref.shape
    Lp = attn_ref.shape[-1]
    li = pl.program_id(1)

    # ---- once per batch tile: query projection (+ additive bias) and init ----
    @pl.when(li == 0)
    def _():
        qp = jnp.dot(q_ref[...].astype(mxu_dtype),
                     wq_t_ref[...].astype(mxu_dtype),
                     preferred_element_type=jnp.float32)          # (TB, D)
        qp_ref[...] = qp + bias_ref[...].astype(jnp.float32)
        m_ref[...] = jnp.full(m_ref.shape, -jnp.inf, m_ref.dtype)
        l_ref[...] = jnp.zeros(l_ref.shape, l_ref.dtype)
        acc_ref[...] = jnp.zeros(acc_ref.shape, acc_ref.dtype)

    # ---- key projection for this L tile: one flattened MXU matmul ----
    k_flat = k_ref[...].reshape(TB * TL, D)
    kp = jnp.dot(k_flat.astype(mxu_dtype), wk_t_ref[...].astype(mxu_dtype),
                 preferred_element_type=jnp.float32)              # (TB*TL, D)
    h = jnp.tanh(kp.reshape(TB, TL, D) + qp_ref[...][:, None, :])  # f32

    # ---- additive score: VPU multiply by ws + lane reduction (2D, dense) ----
    score = jnp.sum(h * ws_ref[...].astype(jnp.float32), axis=-1) + bs_ref[0]

    # Mask padded key positions (L was rounded up to Lp).
    if valid_len < Lp:
        col = jax.lax.broadcasted_iota(jnp.int32, (TB, TL), 1) + li * TL
        score = jnp.where(col < valid_len, score, -1e30)

    # Stash raw scores into the VMEM-resident attn block; normalized at the end.
    start = pl.multiple_of(li * TL, 128)
    attn_ref[:, pl.ds(start, TL)] = score

    # ---- online softmax statistics + context accumulation ----
    m_prev = m_ref[...]                                            # (TB, 1)
    m_new = jnp.maximum(m_prev, jnp.max(score, axis=-1, keepdims=True))
    alpha = jnp.exp(m_prev - m_new)                                # (TB, 1)
    p = jnp.exp(score - m_new)                                     # (TB, TL)
    l_ref[...] = alpha * l_ref[...] + jnp.sum(p, axis=-1, keepdims=True)

    ctx_part = jnp.einsum("bqk,bkd->bqd",
                          p[:, None, :].astype(mxu_dtype),
                          v_ref[...].astype(mxu_dtype),
                          preferred_element_type=jnp.float32).reshape(TB, D)
    acc_ref[...] = alpha * acc_ref[...] + ctx_part
    m_ref[...] = m_new

    # ---- finalize: normalize attn from stored raw scores, emit context ----
    @pl.when(li == pl.num_programs(1) - 1)
    def _():
        if approx_recip:
            inv_l = pl.reciprocal(l_ref[...], approx=True)         # EUP
        else:
            inv_l = 1.0 / l_ref[...]                               # exact
        e_all = jnp.exp(attn_ref[...] - m_ref[...])                # (TB, Lp)
        attn_ref[...] = e_all * inv_l
        ctx = acc_ref[...] * inv_l + q_ref[...].astype(jnp.float32)
        ctx_ref[...] = ctx.astype(ctx_ref.dtype)


def _round_up(x, m):
    return ((x + m - 1) // m) * m


def additive_attention(query, key, value, wq, wk, bias, ws, bs,
                       *, block_b=128, block_l=512, compute_dtype=None,
                       approx_recip=True):
    """query (B,1,D), key/value (B,L,D); wq/wk (D,D) torch-layout (out,in);
    bias (D,), ws (1,D), bs (1,).  Returns (context (B,1,D), attn (B,L)).

    compute_dtype=jnp.bfloat16 enables the bf16 MXU/K-V path (f32 accumulate);
    approx_recip=False uses an exact softmax divide."""
    B, Q, D = query.shape
    assert Q == 1, "PyTorch module semantics require q_len == 1"
    _, L, _ = key.shape

    # ---- tile sizing: TB (batch) is the primary knob; TL decouples VMEM from L
    TB = max(8, (min(int(block_b), _round_up(B, 8)) // 8) * 8)
    TL = max(128, (min(int(block_l), _round_up(L, 128)) // 128) * 128)
    slab_budget = 4 * 2 ** 20              # one f32 (TB, TL, D) intermediate
    while TB * TL * D * 4 > slab_budget and TL > 128:
        TL -= 128
    while TB * TL * D * 4 > slab_budget and TB > 8:
        TB = max(8, ((TB // 2) // 8) * 8)
    Bp = _round_up(B, TB)
    Lp = _round_up(L, TL)

    # ---- glue: torch Linear stores (out, in); kernel computes x @ W^T ----
    wq_t = jnp.transpose(wq)
    wk_t = jnp.transpose(wk)
    bias2d = jnp.reshape(bias, (1, D)).astype(jnp.float32)
    ws2d = jnp.reshape(ws, (1, D)).astype(jnp.float32)
    bs1 = jnp.reshape(bs, (1,)).astype(jnp.float32)

    q2 = query[:, 0, :]
    key_p, value_p = key, value
    if Bp != B:
        q2 = jnp.pad(q2, ((0, Bp - B), (0, 0)))
    if (Bp != B) or (Lp != L):
        pads = ((0, Bp - B), (0, Lp - L), (0, 0))
        key_p = jnp.pad(key_p, pads)
        value_p = jnp.pad(value_p, pads)

    if compute_dtype is not None:
        mxu_dtype = jnp.dtype(compute_dtype)
        key_p = key_p.astype(mxu_dtype)      # halves dominant K/V HBM traffic
        value_p = value_p.astype(mxu_dtype)
        wq_t = wq_t.astype(mxu_dtype)
        wk_t = wk_t.astype(mxu_dtype)
    else:
        mxu_dtype = jnp.float32

    grid = (Bp // TB, Lp // TL)

    # ---- generation-aware scoped VMEM limit (v7x: 64 MiB per TensorCore) ----
    try:
        info = pltpu.get_tpu_info()
        vmem_cap = int(getattr(info, "vmem_capacity_bytes", 64 * 2 ** 20))
    except Exception:
        vmem_cap = 64 * 2 ** 20
    kv_item = jnp.dtype(key_p.dtype).itemsize
    w_item = jnp.dtype(wq_t.dtype).itemsize
    per_step = (4 * TB * TL * D * kv_item          # K + V, double-buffered
                + 2 * TB * D * 4                   # query block
                + 2 * TB * D * jnp.dtype(query.dtype).itemsize   # ctx out
                + 2 * TB * Lp * 4                  # attn out (resident)
                + 2 * D * D * w_item + 4 * D * 4   # single-buffered weights
                + 4 * TB * D * 4 + 2 * TB * 128 * 4          # scratch
                + 4 * TB * TL * D * 4)             # f32 intermediates headroom
    vmem_limit = int(min(max(vmem_cap - 16 * 2 ** 20, 32 * 2 ** 20),
                         max(48 * 2 ** 20, 2 * per_step)))

    kernel = functools.partial(_additive_attention_kernel,
                               valid_len=L, mxu_dtype=mxu_dtype,
                               approx_recip=approx_recip)

    grid_spec = pltpu.PrefetchScalarGridSpec(
        num_scalar_prefetch=0,
        grid=grid,
        in_specs=[
            pl.BlockSpec((TB, D), lambda b, l: (b, 0)),           # query rows
            pl.BlockSpec((TB, TL, D), lambda b, l: (b, l, 0)),    # key tile
            pl.BlockSpec((TB, TL, D), lambda b, l: (b, l, 0)),    # value tile
            pl.BlockSpec(memory_space=pltpu.MemorySpace.VMEM),    # wq_t resident
            pl.BlockSpec(memory_space=pltpu.MemorySpace.VMEM),    # wk_t resident
            pl.BlockSpec(memory_space=pltpu.MemorySpace.VMEM),    # bias resident
            pl.BlockSpec(memory_space=pltpu.MemorySpace.VMEM),    # ws resident
            pl.BlockSpec(memory_space=pltpu.MemorySpace.SMEM),    # bs scalar
        ],
        out_specs=[
            pl.BlockSpec((TB, D), lambda b, l: (b, 0)),           # context
            pl.BlockSpec((TB, Lp), lambda b, l: (b, 0)),          # attn
        ],
        scratch_shapes=[
            pltpu.VMEM((TB, D), jnp.float32),    # qp (+ bias)
            pltpu.VMEM((TB, 1), jnp.float32),    # running max
            pltpu.VMEM((TB, 1), jnp.float32),    # running denominator
            pltpu.VMEM((TB, D), jnp.float32),    # context accumulator
        ],
    )

    ctx_pad, attn_pad = pl.pallas_call(
        kernel,
        out_shape=(
            jax.ShapeDtypeStruct((Bp, D), query.dtype),
            jax.ShapeDtypeStruct((Bp, Lp), jnp.float32),
        ),
        grid_spec=grid_spec,
        compiler_params=pltpu.CompilerParams(
            dimension_semantics=("parallel", "arbitrary"),
            vmem_limit_bytes=vmem_limit),
    )(q2, key_p, value_p, wq_t, wk_t, bias2d, ws2d, bs1)

    context = ctx_pad[:B][:, None, :]            # (B, 1, D)
    attn = attn_pad[:B, :L]                      # (B, L)
    return context, attn


def additive_attention_ref(query, key, value, wq, wk, bias, ws, bs):
    # Pure-JAX reference matching the PyTorch forward exactly.
    kp = jnp.einsum("bld,od->blo", key, wk)
    qp = jnp.einsum("bqd,od->bqo", query, wq)
    h = jnp.tanh(kp + qp + bias)
    score = jnp.einsum("bld,od->blo", h, ws)[..., 0] + bs[0]     # (B, L)
    attn = jax.nn.softmax(score, axis=-1)
    context = jnp.einsum("bl,bld->bd", attn, value)[:, None, :] + query
    return context, attn


def _make_inputs(root, B, L, D):
    ks = jax.random.split(root, 8)
    query = jax.random.normal(ks[0], (B, 1, D), dtype=jnp.float32)
    key = jax.random.normal(ks[1], (B, L, D), dtype=jnp.float32)
    value = jax.random.normal(ks[2], (B, L, D), dtype=jnp.float32)
    wq = jax.random.uniform(ks[3], (D, D), minval=-0.1, maxval=0.1)
    wk = jax.random.uniform(ks[4], (D, D), minval=-0.1, maxval=0.1)
    bias = jax.random.uniform(ks[5], (D,), minval=-0.1, maxval=0.1)
    ws = jax.random.uniform(ks[6], (1, D), minval=-0.1, maxval=0.1)
    bs = jax.random.uniform(ks[7], (1,), minval=-0.1, maxval=0.1)
    return query, key, value, wq, wk, bias, ws, bs


if __name__ == "__main__":
    root = jax.random.PRNGKey(0)

    # --- Test 1: small shapes, single L tile, batch padding 12 -> 16 (f32) ---
    B, L, D = 12, 10, 32
    inputs = _make_inputs(root, B, L, D)
    ctx_ref_out, attn_ref_out = additive_attention_ref(*inputs)

    ctx, attn = additive_attention(*inputs)
    jax.block_until_ready((ctx, attn))
    assert ctx.shape == (B, 1, D) and attn.shape == (B, L)
    assert jnp.allclose(ctx, ctx_ref_out, atol=5e-3), "context mismatch (f32)"
    assert jnp.allclose(attn, attn_ref_out, atol=2e-3), "attn mismatch (f32)"

    # --- Test 2: multi L-tile online softmax + multi batch tiles, exact divide
    B2, L2, D2 = 20, 300, 64
    inputs2 = _make_inputs(jax.random.fold_in(root, 1), B2, L2, D2)
    ctx_ref2, attn_ref2 = additive_attention_ref(*inputs2)
    ctx2, attn2 = additive_attention(*inputs2, block_b=16, block_l=128,
                                     approx_recip=False)
    jax.block_until_ready((ctx2, attn2))
    assert ctx2.shape == (B2, 1, D2) and attn2.shape == (B2, L2)
    assert jnp.allclose(ctx2, ctx_ref2, atol=1e-3), "context mismatch (online)"
    assert jnp.allclose(attn2, attn_ref2, atol=1e-3), "attn mismatch (online)"

    # --- Test 3: bf16 K/V + weights fast path (all generations, incl. v5e) ---
    ctx_bf, attn_bf = additive_attention(*inputs, compute_dtype=jnp.bfloat16)
    jax.block_until_ready((ctx_bf, attn_bf))
    assert jnp.allclose(ctx_bf, ctx_ref_out, atol=7e-2), "context mismatch (bf16)"
    assert jnp.allclose(attn_bf, attn_ref_out, atol=5e-2), "attn mismatch (bf16)"

    print("KERNEL_OK")
</pallas_src>

<mosaic_0001>
module attributes {stable_mosaic.version = 11 : i64} {
  func.func @_additive_attention_kernel(%arg0: i32, %arg1: i32, %arg2: memref<16x32xf32, #tpu.memory_space<vmem>>, %arg3: memref<16x128x32xf32, #tpu.memory_space<vmem>>, %arg4: memref<16x128x32xf32, #tpu.memory_space<vmem>>, %arg5: memref<32x32xf32, #tpu.memory_space<vmem>>, %arg6: memref<32x32xf32, #tpu.memory_space<vmem>>, %arg7: memref<1x32xf32, #tpu.memory_space<vmem>>, %arg8: memref<1x32xf32, #tpu.memory_space<vmem>>, %arg9: memref<1xf32, #tpu.memory_space<smem>>, %arg10: memref<16x32xf32, #tpu.memory_space<vmem>>, %arg11: memref<16x128xf32, #tpu.memory_space<vmem>>, %arg12: memref<16x32xf32, #tpu.memory_space<vmem>>, %arg13: memref<16x1xf32, #tpu.memory_space<vmem>>, %arg14: memref<16x1xf32, #tpu.memory_space<vmem>>, %arg15: memref<16x32xf32, #tpu.memory_space<vmem>>) attributes {dimension_semantics = [#tpu.dimension_semantics<parallel>, #tpu.dimension_semantics<arbitrary>], iteration_bounds = array<i64: 1, 1>, scalar_prefetch = 0 : i64, scratch_operands = 4 : i64, tpu.core_type = #tpu.core_type<tc>, window_params = [{transform_indices = @transform_0, window_bounds = array<i64: 16, 32>}, {transform_indices = @transform_1, window_bounds = array<i64: 16, 128, 32>}, {transform_indices = @transform_2, window_bounds = array<i64: 16, 128, 32>}, {pipeline_mode = #tpu.pipeline_mode<synchronous>, transform_indices = @transform_3, window_bounds = array<i64: 32, 32>}, {pipeline_mode = #tpu.pipeline_mode<synchronous>, transform_indices = @transform_4, window_bounds = array<i64: 32, 32>}, {pipeline_mode = #tpu.pipeline_mode<synchronous>, transform_indices = @transform_5, window_bounds = array<i64: 1, 32>}, {pipeline_mode = #tpu.pipeline_mode<synchronous>, transform_indices = @transform_6, window_bounds = array<i64: 1, 32>}, {transform_indices = @transform_7, window_bounds = array<i64: 1>}, {transform_indices = @transform_8, window_bounds = array<i64: 16, 32>}, {transform_indices = @transform_9, window_bounds = array<i64: 16, 128>}]} {
    %c0_i32 = arith.constant 0 : i32
    %0 = arith.cmpi eq, %arg1, %c0_i32 : i32
    %1 = arith.extui %0 : i1 to i32
    %c0_i32_0 = arith.constant 0 : i32
    %2 = arith.cmpi ne, %1, %c0_i32_0 : i32
    scf.if %2 {
      %c0_34 = arith.constant 0 : index
      %c0_35 = arith.constant 0 : index
      %61 = vector.load %arg2[%c0_34, %c0_35] : memref<16x32xf32, #tpu.memory_space<vmem>>, vector<16x32xf32>
      %c0_36 = arith.constant 0 : index
      %c0_37 = arith.constant 0 : index
      %62 = vector.load %arg5[%c0_36, %c0_37] : memref<32x32xf32, #tpu.memory_space<vmem>>, vector<32x32xf32>
      %cst_38 = arith.constant dense<0.000000e+00> : vector<16x32xf32>
      %63 = tpu.matmul %61, %62, %cst_38 {dimension_numbers = #tpu.dot_dimension_numbers<[1], [0], [0], [1], [0, 0, 1, 1], [], []>} : vector<16x32xf32>, vector<32x32xf32>, vector<16x32xf32> -> vector<16x32xf32>
      %c0_39 = arith.constant 0 : index
      %c0_40 = arith.constant 0 : index
      %64 = vector.load %arg7[%c0_39, %c0_40] : memref<1x32xf32, #tpu.memory_space<vmem>>, vector<1x32xf32>
      %65 = vector.broadcast %64 : vector<1x32xf32> to vector<16x32xf32>
      %66 = arith.addf %63, %65 : vector<16x32xf32>
      %c0_41 = arith.constant 0 : index
      %c0_42 = arith.constant 0 : index
      %67 = vector.load %arg12[%c0_41, %c0_42] : memref<16x32xf32, #tpu.memory_space<vmem>>, vector<16x32xf32>
      tpu.vector_store %arg12[%c0_41, %c0_42], %66 {strides = array<i32>} : memref<16x32xf32, #tpu.memory_space<vmem>>, vector<16x32xf32>,
      %cst_43 = arith.constant 0xFF800000 : f32
      %68 = vector.broadcast %cst_43 : f32 to vector<16x1xf32>
      %c0_44 = arith.constant 0 : index
      %c0_45 = arith.constant 0 : index
      %69 = vector.load %arg13[%c0_44, %c0_45] : memref<16x1xf32, #tpu.memory_space<vmem>>, vector<16x1xf32>
      tpu.vector_store %arg13[%c0_44, %c0_45], %68 {strides = array<i32>} : memref<16x1xf32, #tpu.memory_space<vmem>>, vector<16x1xf32>,
      %cst_46 = arith.constant 0.000000e+00 : f32
      %70 = vector.broadcast %cst_46 : f32 to vector<16x1xf32>
      %c0_47 = arith.constant 0 : index
      %c0_48 = arith.constant 0 : index
      %71 = vector.load %arg14[%c0_47, %c0_48] : memref<16x1xf32, #tpu.memory_space<vmem>>, vector<16x1xf32>
      tpu.vector_store %arg14[%c0_47, %c0_48], %70 {strides = array<i32>} : memref<16x1xf32, #tpu.memory_space<vmem>>, vector<16x1xf32>,
      %cst_49 = arith.constant 0.000000e+00 : f32
      %72 = vector.broadcast %cst_49 : f32 to vector<16x32xf32>
      %c0_50 = arith.constant 0 : index
      %c0_51 = arith.constant 0 : index
      %73 = vector.load %arg15[%c0_50, %c0_51] : memref<16x32xf32, #tpu.memory_space<vmem>>, vector<16x32xf32>
      tpu.vector_store %arg15[%c0_50, %c0_51], %72 {strides = array<i32>} : memref<16x32xf32, #tpu.memory_space<vmem>>, vector<16x32xf32>,
    } else {
    }
    %c0 = arith.constant 0 : index
    %c0_1 = arith.constant 0 : index
    %c0_2 = arith.constant 0 : index
    %3 = vector.load %arg3[%c0, %c0_1, %c0_2] : memref<16x128x32xf32, #tpu.memory_space<vmem>>, vector<16x128x32xf32>
    %4 = vector.shape_cast %3 : vector<16x128x32xf32> to vector<2048x32xf32>
    %c0_3 = arith.constant 0 : index
    %c0_4 = arith.constant 0 : index
    %5 = vector.load %arg6[%c0_3, %c0_4] : memref<32x32xf32, #tpu.memory_space<vmem>>, vector<32x32xf32>
    %cst = arith.constant dense<0.000000e+00> : vector<2048x32xf32>
    %6 = tpu.matmul %4, %5, %cst {dimension_numbers = #tpu.dot_dimension_numbers<[1], [0], [0], [1], [0, 0, 1, 1], [], []>} : vector<2048x32xf32>, vector<32x32xf32>, vector<2048x32xf32> -> vector<2048x32xf32>
    %7 = vector.shape_cast %6 : vector<2048x32xf32> to vector<16x128x32xf32>
    %c0_5 = arith.constant 0 : index
    %c0_6 = arith.constant 0 : index
    %8 = vector.load %arg12[%c0_5, %c0_6] : memref<16x32xf32, #tpu.memory_space<vmem>>, vector<16x32xf32>
    %9 = vector.shape_cast %8 : vector<16x32xf32> to vector<16x1x32xf32>
    %10 = vector.broadcast %9 : vector<16x1x32xf32> to vector<16x128x32xf32>
    %11 = arith.addf %7, %10 : vector<16x128x32xf32>
    %12 = math.tanh %11 : vector<16x128x32xf32>
    %c0_7 = arith.constant 0 : index
    %c0_8 = arith.constant 0 : index
    %13 = vector.load %arg8[%c0_7, %c0_8] : memref<1x32xf32, #tpu.memory_space<vmem>>, vector<1x32xf32>
    %14 = vector.shape_cast %13 : vector<1x32xf32> to vector<1x1x32xf32>
    %15 = vector.broadcast %14 : vector<1x1x32xf32> to vector<16x128x32xf32>
    %16 = arith.mulf %12, %15 : vector<16x128x32xf32>
    %cst_9 = arith.constant dense<0.000000e+00> : vector<16x128xf32>
    %17 = vector.multi_reduction <add>, %16, %cst_9 [2] : vector<16x128x32xf32> to vector<16x128xf32>
    %c0_10 = arith.constant 0 : index
    %18 = memref.load %arg9[%c0_10] : memref<1xf32, #tpu.memory_space<smem>>
    %19 = vector.broadcast %18 : f32 to vector<16x128xf32>
    %20 = arith.addf %17, %19 : vector<16x128xf32>
    %21 = tpu.iota {dimensions = array<i32: 1>} : vector<16x128xi32>
    %c128_i32 = arith.constant 128 : i32
    %22 = arith.muli %arg1, %c128_i32 : i32
    %23 = vector.broadcast %22 : i32 to vector<16x128xi32>
    %24 = arith.addi %21, %23 : vector<16x128xi32>
    %c10_i32 = arith.constant 10 : i32
    %25 = vector.broadcast %c10_i32 : i32 to vector<16x128xi32>
    %26 = arith.cmpi slt, %24, %25 : vector<16x128xi32>
    %cst_11 = arith.constant -1.000000e+30 : f32
    %27 = vector.broadcast %cst_11 : f32 to vector<16x128xf32>
    %28 = arith.select %26, %20, %27 : vector<16x128xi1>, vector<16x128xf32>
    %c128_i32_12 = arith.constant 128 : i32
    %29 = arith.muli %arg1, %c128_i32_12 : i32
    %30 = tpu.assume_multiple %29, 128 : i32
    %c0_13 = arith.constant 0 : index
    %31 = arith.index_cast %30 : i32 to index
    %32 = vector.load %arg11[%c0_13, %31] : memref<16x128xf32, #tpu.memory_space<vmem>>, vector<16x128xf32>
    tpu.vector_store %arg11[%c0_13, %31], %28 {strides = array<i32>} : memref<16x128xf32, #tpu.memory_space<vmem>>, vector<16x128xf32>,
    %c0_14 = arith.constant 0 : index
    %c0_15 = arith.constant 0 : index
    %33 = vector.load %arg13[%c0_14, %c0_15] : memref<16x1xf32, #tpu.memory_space<vmem>>, vector<16x1xf32>
    %cst_16 = arith.constant dense<0xFF800000> : vector<16xf32>
    %34 = vector.multi_reduction <maximumf>, %28, %cst_16 [1] : vector<16x128xf32> to vector<16xf32>
    %35 = vector.shape_cast %34 : vector<16xf32> to vector<16x1xf32>
    %36 = arith.maximumf %33, %35 : vector<16x1xf32>
    %37 = arith.subf %33, %36 : vector<16x1xf32>
    %38 = math.exp %37 : vector<16x1xf32>
    %39 = vector.broadcast %36 : vector<16x1xf32> to vector<16x128xf32>
    %40 = arith.subf %28, %39 : vector<16x128xf32>
    %41 = math.exp %40 : vector<16x128xf32>
    %c0_17 = arith.constant 0 : index
    %c0_18 = arith.constant 0 : index
    %42 = vector.load %arg14[%c0_17, %c0_18] : memref<16x1xf32, #tpu.memory_space<vmem>>, vector<16x1xf32>
    %43 = arith.mulf %38, %42 : vector<16x1xf32>
    %cst_19 = arith.constant dense<0.000000e+00> : vector<16xf32>
    %44 = vector.multi_reduction <add>, %41, %cst_19 [1] : vector<16x128xf32> to vector<16xf32>
    %45 = vector.shape_cast %44 : vector<16xf32> to vector<16x1xf32>
    %46 = arith.addf %43, %45 : vector<16x1xf32>
    %c0_20 = arith.constant 0 : index
    %c0_21 = arith.constant 0 : index
    %47 = vector.load %arg14[%c0_20, %c0_21] : memref<16x1xf32, #tpu.memory_space<vmem>>, vector<16x1xf32>
    tpu.vector_store %arg14[%c0_20, %c0_21], %46 {strides = array<i32>} : memref<16x1xf32, #tpu.memory_space<vmem>>, vector<16x1xf32>,
    %48 = vector.shape_cast %41 : vector<16x128xf32> to vector<16x1x128xf32>
    %c0_22 = arith.constant 0 : index
    %c0_23 = arith.constant 0 : index
    %c0_24 = arith.constant 0 : index
    %49 = vector.load %arg4[%c0_22, %c0_23, %c0_24] : memref<16x128x32xf32, #tpu.memory_space<vmem>>, vector<16x128x32xf32>
    "tpu.trace_start"() <{level = 10 : i32, message = "bqk,bkd->bqd"}> : () -> ()
    %cst_25 = arith.constant dense<0.000000e+00> : vector<16x1x32xf32>
    %50 = tpu.matmul %48, %49, %cst_25 {dimension_numbers = #tpu.dot_dimension_numbers<[2], [1], [1], [2], [0, 0, 0, 1, 1, 2], [0], [0]>} : vector<16x1x128xf32>, vector<16x128x32xf32>, vector<16x1x32xf32> -> vector<16x1x32xf32>
    "tpu.trace_stop"() : () -> ()
    %51 = vector.shape_cast %50 : vector<16x1x32xf32> to vector<16x32xf32>
    %c0_26 = arith.constant 0 : index
    %c0_27 = arith.constant 0 : index
    %52 = vector.load %arg15[%c0_26, %c0_27] : memref<16x32xf32, #tpu.memory_space<vmem>>, vector<16x32xf32>
    %53 = vector.broadcast %38 : vector<16x1xf32> to vector<16x32xf32>
    %54 = arith.mulf %53, %52 : vector<16x32xf32>
    %55 = arith.addf %54, %51 : vector<16x32xf32>
    %c0_28 = arith.constant 0 : index
    %c0_29 = arith.constant 0 : index
    %56 = vector.load %arg15[%c0_28, %c0_29] : memref<16x32xf32, #tpu.memory_space<vmem>>, vector<16x32xf32>
    tpu.vector_store %arg15[%c0_28, %c0_29], %55 {strides = array<i32>} : memref<16x32xf32, #tpu.memory_space<vmem>>, vector<16x32xf32>,
    %c0_30 = arith.constant 0 : index
    %c0_31 = arith.constant 0 : index
    %57 = vector.load %arg13[%c0_30, %c0_31] : memref<16x1xf32, #tpu.memory_space<vmem>>, vector<16x1xf32>
    tpu.vector_store %arg13[%c0_30, %c0_31], %36 {strides = array<i32>} : memref<16x1xf32, #tpu.memory_space<vmem>>, vector<16x1xf32>,
    %c0_i32_32 = arith.constant 0 : i32
    %58 = arith.cmpi eq, %arg1, %c0_i32_32 : i32
    %59 = arith.extui %58 : i1 to i32
    %c0_i32_33 = arith.constant 0 : i32
    %60 = arith.cmpi ne, %59, %c0_i32_33 : i32
    scf.if %60 {
      %c0_34 = arith.constant 0 : index
      %c0_35 = arith.constant 0 : index
      %61 = vector.load %arg14[%c0_34, %c0_35] : memref<16x1xf32, #tpu.memory_space<vmem>>, vector<16x1xf32>
      %62 = tpu.reciprocal %61 {approx = true} : vector<16x1xf32> -> vector<16x1xf32>
      %c0_36 = arith.constant 0 : index
      %c0_37 = arith.constant 0 : index
      %63 = vector.load %arg11[%c0_36, %c0_37] : memref<16x128xf32, #tpu.memory_space<vmem>>, vector<16x128xf32>
      %c0_38 = arith.constant 0 : index
      %c0_39 = arith.constant 0 : index
      %64 = vector.load %arg13[%c0_38, %c0_39] : memref<16x1xf32, #tpu.memory_space<vmem>>, vector<16x1xf32>
      %65 = vector.broadcast %64 : vector<16x1xf32> to vector<16x128xf32>
      %66 = arith.subf %63, %65 : vector<16x128xf32>
      %67 = math.exp %66 : vector<16x128xf32>
      %68 = vector.broadcast %62 : vector<16x1xf32> to vector<16x128xf32>
      %69 = arith.mulf %67, %68 : vector<16x128xf32>
      %c0_40 = arith.constant 0 : index
      %c0_41 = arith.constant 0 : index
      %70 = vector.load %arg11[%c0_40, %c0_41] : memref<16x128xf32, #tpu.memory_space<vmem>>, vector<16x128xf32>
      tpu.vector_store %arg11[%c0_40, %c0_41], %69 {strides = array<i32>} : memref<16x128xf32, #tpu.memory_space<vmem>>, vector<16x128xf32>,
      %c0_42 = arith.constant 0 : index
      %c0_43 = arith.constant 0 : index
      %71 = vector.load %arg15[%c0_42, %c0_43] : memref<16x32xf32, #tpu.memory_space<vmem>>, vector<16x32xf32>
      %72 = vector.broadcast %62 : vector<16x1xf32> to vector<16x32xf32>
      %73 = arith.mulf %71, %72 : vector<16x32xf32>
      %c0_44 = arith.constant 0 : index
      %c0_45 = arith.constant 0 : index
      %74 = vector.load %arg2[%c0_44, %c0_45] : memref<16x32xf32, #tpu.memory_space<vmem>>, vector<16x32xf32>
      %75 = arith.addf %73, %74 : vector<16x32xf32>
      %c0_46 = arith.constant 0 : index
      %c0_47 = arith.constant 0 : index
      %76 = vector.load %arg10[%c0_46, %c0_47] : memref<16x32xf32, #tpu.memory_space<vmem>>, vector<16x32xf32>
      tpu.vector_store %arg10[%c0_46, %c0_47], %75 {strides = array<i32>} : memref<16x32xf32, #tpu.memory_space<vmem>>, vector<16x32xf32>,
    } else {
    }
    return
  }
  func.func @transform_0(%arg0: i32, %arg1: i32) -> (i32, i32) {
    %c0_i32 = arith.constant 0 : i32
    %c0_i32_0 = arith.constant 0 : i32
    return %arg0, %c0_i32 : i32, i32
  }
  func.func @transform_1(%arg0: i32, %arg1: i32) -> (i32, i32, i32) {
    %c0_i32 = arith.constant 0 : i32
    %c0_i32_0 = arith.constant 0 : i32
    return %arg0, %arg1, %c0_i32 : i32, i32, i32
  }
  func.func @transform_2(%arg0: i32, %arg1: i32) -> (i32, i32, i32) {
    %c0_i32 = arith.constant 0 : i32
    %c0_i32_0 = arith.constant 0 : i32
    return %arg0, %arg1, %c0_i32 : i32, i32, i32
  }
  func.func @transform_3(%arg0: i32, %arg1: i32) -> (i32, i32) {
    %c0_i32 = arith.constant 0 : i32
    %c0_i32_0 = arith.constant 0 : i32
    %c0_i32_1 = arith.constant 0 : i32
    return %c0_i32, %c0_i32_0 : i32, i32
  }
  func.func @transform_4(%arg0: i32, %arg1: i32) -> (i32, i32) {
    %c0_i32 = arith.constant 0 : i32
    %c0_i32_0 = arith.constant 0 : i32
    %c0_i32_1 = arith.constant 0 : i32
    return %c0_i32, %c0_i32_0 : i32, i32
  }
  func.func @transform_5(%arg0: i32, %arg1: i32) -> (i32, i32) {
    %c0_i32 = arith.constant 0 : i32
    %c0_i32_0 = arith.constant 0 : i32
    %c0_i32_1 = arith.constant 0 : i32
    return %c0_i32, %c0_i32_0 : i32, i32
  }
  func.func @transform_6(%arg0: i32, %arg1: i32) -> (i32, i32) {
    %c0_i32 = arith.constant 0 : i32
    %c0_i32_0 = arith.constant 0 : i32
    %c0_i32_1 = arith.constant 0 : i32
    return %c0_i32, %c0_i32_0 : i32, i32
  }
  func.func @transform_7(%arg0: i32, %arg1: i32) -> i32 {
    %c0_i32 = arith.constant 0 : i32
    %c0_i32_0 = arith.constant 0 : i32
    return %c0_i32 : i32
  }
  func.func @transform_8(%arg0: i32, %arg1: i32) -> (i32, i32) {
    %c0_i32 = arith.constant 0 : i32
    %c0_i32_0 = arith.constant 0 : i32
    return %arg0, %c0_i32 : i32, i32
  }
  func.func @transform_9(%arg0: i32, %arg1: i32) -> (i32, i32) {
    %c0_i32 = arith.constant 0 : i32
    %c0_i32_0 = arith.constant 0 : i32
    return %arg0, %c0_i32 : i32, i32
  }
}

</mosaic_0001>

<bundles_post_ra>
// kernel: tpu_custom_call.1
= control target key start
LH: loop header
LB: loop body
LE: loop exit
PB: predicated region body
PF: predicated region fallthrough
CT: control target
= control target key end

     0   :  { %16 = vsyncpa [#allocation8], 0  ;;  %vm11180_vm0 = vcmask 261120   ;;  %s11151_s0 = inlined_call_operand.vmem [shape: f32[16,32], index: 0, kind: input, shape index: {}]   ;;  %s11152_s1 = inlined_call_operand.vmem [shape: f32[16,128,32], index: 1, kind: input, shape index: {}]   ;;  %s11153_s2 = inlined_call_operand.vmem [shape: f32[16,128,32], index: 2, kind: input, shape index: {}]   ;;  %s11154_s3 = inlined_call_operand.vmem [shape: f32[32,32], index: 3, kind: input, shape index: {}]   ;;  %s11155_s4 = inlined_call_operand.vmem [shape: f32[32,32], index: 4, kind: input, shape index: {}]   ;;  %s11156_s5 = inlined_call_operand.vmem [shape: f32[1,32], index: 5, kind: input, shape index: {}]   ;;  %s11157_s6 = inlined_call_operand.vmem [shape: f32[1,32], index: 6, kind: input, shape index: {}]   ;;  %s11158_s7 = inlined_call_operand.<no memory space> [shape: f32[1], index: 7, kind: input, shape index: {}]   ;;  %s11159_s8 = inlined_call_operand.hbm [shape: f32[16,32], index: 8, kind: output, shape index: {0}]   ;;  %s11160_s9 = inlined_call_operand.hbm [shape: f32[16,128], index: 9, kind: output, shape index: {1}]  }
   0x1   :  { %v43_v0 = vld [vmem:[%s11154_s3 + $0x18] sm:$0xff]  ;;  %v42_v2 = vld [vmem:[%s11154_s3 + $0x10] sm:$0xff]  ;;  %v41_v4 = vld [vmem:[%s11154_s3 + $0x8] sm:$0xff] }
   0x2   :  { %v346_v1 = vld [vmem:[%s11155_s4 + $0x18] sm:$0xff]  ;;  %67 = vmatpush.msra.mxu0 %v43_v0  ;;  %v345_v3 = vld [vmem:[%s11155_s4 + $0x10] sm:$0xff]  ;;  %v344_v5 = vld [vmem:[%s11155_s4 + $0x8] sm:$0xff] }
   0x3   :  { %5628 = vmatpush.msra.mxu1 %v346_v1  ;;  %5629 = vmatpush.msra.mxu2 %v346_v1  ;;  %v40_v6 = vld [vmem:[%s11154_s3] sm:$0xff]  ;;  %v281_v11 = vld [vmem:[%s11152_s1 + $0x610] sm:$0xff] }
   0x4   :  { %5630 = vmatpush.msra.mxu3 %v346_v1  ;;  %68 = vmatpush.msra.mxu0 %v42_v2  ;;  %v343_v7 = vld [vmem:[%s11155_s4] sm:$0xff] }
   0x5   :  { %5631 = vmatpush.msra.mxu1 %v345_v3  ;;  %5632 = vmatpush.msra.mxu2 %v345_v3  ;;  %v38_v8 = vld [vmem:[%s11151_s0] sm:$0xff] }
   0x6   :  { %5633 = vmatpush.msra.mxu3 %v345_v3  ;;  %69 = vmatpush.msra.mxu0 %v41_v4  ;;  %v147_v9 = vld [vmem:[%s11152_s1 + $0x1e0] sm:$0xff] }
   0x7   :  { %5634 = vmatpush.msra.mxu1 %v344_v5  ;;  %5635 = vmatpush.msra.mxu2 %v344_v5  ;;  %v227_v10 = vld [vmem:[%s11152_s1 + $0x460] sm:$0xff] }
   0x8   :  { %5636 = vmatpush.msra.mxu3 %v344_v5  ;;  %70 = vmatpush.msra.mxu0 %v40_v6 }
   0x9   :  { %5637 = vmatpush.msra.mxu1 %v343_v7  ;;  %5638 = vmatpush.msra.mxu2 %v343_v7 }
   0xa   :  { %5639 = vmatpush.msra.mxu3 %v343_v7  ;;  %5370 = vmatmul.msk.f32.vlgmr.msra.gmra.mxu0 %vm11180_vm0, %v38_v8 }
   0xb   :  { %5432 = vmatmul.msk.f32.vlgmr.msra.gmra.mxu1 %vm11180_vm0, %v147_v9  ;;  %5512 = vmatmul.msk.f32.vlgmr.msra.gmra.mxu2 %vm11180_vm0, %v227_v10 }
   0xc   :  { %5566 = vmatmul.msk.f32.vlgmr.msra.gmra.mxu3 %vm11180_vm0, %v281_v11 }
   0xd   :  { %17 = vsyncpa [#allocation10], 0  ;;  %1128 = vmatpush.msrb.mxu0 %v346_v1  ;;  %v39_v12 = vld [vmem:[%s11151_s0 + $0x8] sm:$0xff]  ;;  %v282_v15 = vld [vmem:[%s11152_s1 + $0x618] sm:$0xff]  ;;  %vm4014_vm1 = vcmask 130112   ;;  %vm4018_vm2 = vcmask 195712  }
   0xe   :  { %v148_v13 = vld [vmem:[%s11152_s1 + $0x1e8] sm:$0xff]  ;;  %v87_v16 = vld [vmem:[%s11152_s1] sm:$0xff]  ;;  %v149_v17 = vld [vmem:[%s11152_s1 + $0x1f0] sm:$0xff]  ;;  %vm4022_vm3 = vcmask 261312   ;;  %vm4026_vm4 = vcmask 326912   ;;  %vm4030_vm5 = vcmask 392512  }
   0xf   :  { %1129 = vmatpush.msrb.mxu0 %v345_v3  ;;  %v228_v14 = vld [vmem:[%s11152_s1 + $0x468] sm:$0xff]  ;;  %v229_v18 = vld [vmem:[%s11152_s1 + $0x470] sm:$0xff]  ;;  %v283_v19 = vld [vmem:[%s11152_s1 + $0x620] sm:$0xff]  ;;  %vm4034_vm6 = vcmask 458112   ;;  %vm11183_vm7 = vcmask 523712   ;;  %vm4042_vm8 = vcmask 589312  }
  0x10   :  { %v88_v20 = vld [vmem:[%s11152_s1 + $0x8] sm:$0xff]  ;;  %v150_v21 = vld [vmem:[%s11152_s1 + $0x1f8] sm:$0xff]  ;;  %v89_v24 = vld [vmem:[%s11152_s1 + $0x10] sm:$0xff]  ;;  %vm4046_vm9 = vcmask 654912   ;;  %vm4050_vm10 = vcmask 720512   ;;  %vm11179_vm11 = vcmask 786112  }
  0x11   :  { %1130 = vmatpush.msrb.mxu0 %v344_v5  ;;  %v230_v22 = vld [vmem:[%s11152_s1 + $0x478] sm:$0xff]  ;;  %v284_v23 = vld [vmem:[%s11152_s1 + $0x628] sm:$0xff]  ;;  %v151_v25 = vld [vmem:[%s11152_s1 + $0x200] sm:$0xff]  ;;  %vm11178_vm12 = vcmask 851712   ;;  %vm4062_vm13 = vcmask 917312   ;;  %vm4066_vm14 = vcmask 982912  }
  0x12   :  { %5371 = vmatmul.msk.f32.gmra.mxu0 %vm11180_vm0, %v39_v12  ;;  %v231_v26 = vld [vmem:[%s11152_s1 + $0x480] sm:$0xff]  ;;  %v285_v27 = vld [vmem:[%s11152_s1 + $0x630] sm:$0xff]  ;;  %v90_v28 = vld [vmem:[%s11152_s1 + $0x18] sm:$0xff]  ;;  %vm4070_vm15 = vcmask 1048512   ;;  %s6246_s30 = smov [#allocation9]   ;;  %s5352_s13 = sshll.u32 %s11160_s9, 4  ;;  %s5353_s13 = int_to_ptr.hbm [resolvable:$true] %s5352_s13 }
  0x13   :  { %5433 = vmatmul.msk.f32.gmra.mxu1 %vm11180_vm0, %v148_v13  ;;  %5513 = vmatmul.msk.f32.gmra.mxu2 %vm11180_vm0, %v228_v14  ;;  %v152_v29 = vld [vmem:[%s11152_s1 + $0x208] sm:$0xff]  ;;  %v286_v31 = vld [vmem:[%s11152_s1 + $0x638] sm:$0xff]  ;;  %v91_v32 = vld [vmem:[%s11152_s1 + $0x20] sm:$0xff]  ;;  %s5350_s10 = sshll.u32 %s6246_s30, 4  ;;  %s6247_s14 = smov [#allocation7]   ;;  %s5351_s10 = int_to_ptr.vmem [resolvable:$true] %s5350_s10 }
  0x14   :  { %5567 = vmatmul.msk.f32.gmra.mxu3 %vm11180_vm0, %v282_v15  ;;  %1131 = vmatpush.msrb.mxu0 %v343_v7  ;;  %v232_v30 = vld [vmem:[%s11152_s1 + $0x488] sm:$0xff]  ;;  %v153_v33 = vld [vmem:[%s11152_s1 + $0x210] sm:$0xff]  ;;  %v287_v35 = vld [vmem:[%s11152_s1 + $0x640] sm:$0xff]  ;;  %s5339_s16 = sshll.u32 %s11159_s8, 4  ;;  %s6248_s9 = smov 128   ;;  %s5340_s16 = int_to_ptr.hbm [resolvable:$true] %s5339_s16 }
  0x15   :  { %v233_v34 = vld [vmem:[%s11152_s1 + $0x490] sm:$0xff]  ;;  %v92_v36 = vld [vmem:[%s11152_s1 + $0x28] sm:$0xff]  ;;  %v154_v37 = vld [vmem:[%s11152_s1 + $0x218] sm:$0xff]  ;;  %s6249_s19 = smov 8  }
  0x16   :  { %v234_v38 = vld [vmem:[%s11152_s1 + $0x498] sm:$0xff]  ;;  %v288_v39 = vld [vmem:[%s11152_s1 + $0x648] sm:$0xff]  ;;  %v93_v40 = vld [vmem:[%s11152_s1 + $0x30] sm:$0xff] }
  0x17   :  { %v155_v41 = vld [vmem:[%s11152_s1 + $0x220] sm:$0xff]  ;;  %v289_v43 = vld [vmem:[%s11152_s1 + $0x650] sm:$0xff]  ;;  %v94_v44 = vld [vmem:[%s11152_s1 + $0x38] sm:$0xff] }
  0x18   :  { %v235_v42 = vld [vmem:[%s11152_s1 + $0x4a0] sm:$0xff]  ;;  %v156_v45 = vld [vmem:[%s11152_s1 + $0x228] sm:$0xff]  ;;  %v290_v47 = vld [vmem:[%s11152_s1 + $0x658] sm:$0xff] }
  0x19   :  { %v236_v46 = vld [vmem:[%s11152_s1 + $0x4a8] sm:$0xff]  ;;  %v95_v48 = vld [vmem:[%s11152_s1 + $0x40] sm:$0xff]  ;;  %v157_v49 = vld [vmem:[%s11152_s1 + $0x230] sm:$0xff] }
  0x1a   :  { %5372 = vmatmul.msk.f32.vlgmr.msrb.gmra.mxu0 %vm11180_vm0, %v87_v16  ;;  %v237_v50 = vld [vmem:[%s11152_s1 + $0x4b0] sm:$0xff]  ;;  %v291_v51 = vld [vmem:[%s11152_s1 + $0x660] sm:$0xff]  ;;  %v96_v52 = vld [vmem:[%s11152_s1 + $0x48] sm:$0xff] }
  0x1b   :  { %5434 = vmatmul.msk.f32.gmra.mxu1 %vm11180_vm0, %v149_v17  ;;  %5514 = vmatmul.msk.f32.gmra.mxu2 %vm11180_vm0, %v229_v18  ;;  %v158_v53 = vld [vmem:[%s11152_s1 + $0x238] sm:$0xff]  ;;  %v292_v55 = vld [vmem:[%s11152_s1 + $0x668] sm:$0xff]  ;;  %v97_v56 = vld [vmem:[%s11152_s1 + $0x50] sm:$0xff] }
  0x1c   :  { %5568 = vmatmul.msk.f32.gmra.mxu3 %vm11180_vm0, %v283_v19  ;;  %v238_v54 = vld [vmem:[%s11152_s1 + $0x4b8] sm:$0xff]  ;;  %v159_v57 = vld [vmem:[%s11152_s1 + $0x240] sm:$0xff]  ;;  %v293_v59 = vld [vmem:[%s11152_s1 + $0x670] sm:$0xff] }
  0x1d   :  { %v239_v58 = vld [vmem:[%s11152_s1 + $0x4c0] sm:$0xff]  ;;  %v98_v60 = vld [vmem:[%s11152_s1 + $0x58] sm:$0xff]  ;;  %v160_v61 = vld [vmem:[%s11152_s1 + $0x248] sm:$0xff] }
  0x1e   :  { %v240_v62 = vld [vmem:[%s11152_s1 + $0x4c8] sm:$0xff]  ;;  %v294_v63 = vld [vmem:[%s11152_s1 + $0x678] sm:$0xff]  ;;  %v99_v0 = vld [vmem:[%s11152_s1 + $0x60] sm:$0xff] }
  0x1f   :  { %v161_v1 = vld [vmem:[%s11152_s1 + $0x250] sm:$0xff]  ;;  %v295_v3 = vld [vmem:[%s11152_s1 + $0x680] sm:$0xff]  ;;  %v100_v4 = vld [vmem:[%s11152_s1 + $0x68] sm:$0xff] }
  0x20   :  { %v241_v2 = vld [vmem:[%s11152_s1 + $0x4d0] sm:$0xff]  ;;  %v162_v5 = vld [vmem:[%s11152_s1 + $0x258] sm:$0xff]  ;;  %v296_v7 = vld [vmem:[%s11152_s1 + $0x688] sm:$0xff] }
  0x21   :  { %v242_v6 = vld [vmem:[%s11152_s1 + $0x4d8] sm:$0xff]  ;;  %v5650_v8 = vld [vmem:[%s11156_s5] ss:$0 sm:$0xff]  ;;  %v101_v11 = vld [vmem:[%s11152_s1 + $0x70] sm:$0xff] }
  0x22   :  { %5373 = vmatmul.msk.f32.gmra.mxu0 %vm11180_vm0, %v88_v20  ;;  %v163_v12 = vld [vmem:[%s11152_s1 + $0x260] sm:$0xff]  ;;  %v297_v15 = vld [vmem:[%s11152_s1 + $0x690] sm:$0xff]  ;;  %v102_v20 = vld [vmem:[%s11152_s1 + $0x78] sm:$0xff] }
  0x23   :  { %5435 = vmatmul.msk.f32.gmra.mxu1 %vm11180_vm0, %v150_v21  ;;  %5515 = vmatmul.msk.f32.gmra.mxu2 %vm11180_vm0, %v230_v22  ;;  %v243_v14 = vld [vmem:[%s11152_s1 + $0x4e0] sm:$0xff]  ;;  %v164_v21 = vld [vmem:[%s11152_s1 + $0x268] sm:$0xff] }
  0x24   :  { %5569 = vmatmul.msk.f32.gmra.mxu3 %vm11180_vm0, %v284_v23  ;;  %v244_v23 = vld [vmem:[%s11152_s1 + $0x4e8] sm:$0xff] }
  0x2a   :  { %5374 = vmatmul.msk.f32.gmra.mxu0 %vm11180_vm0, %v89_v24  ;;  %v298_v24 = vld [vmem:[%s11152_s1 + $0x698] sm:$0xff] }
  0x2b   :  { %5436 = vmatmul.msk.f32.gmra.mxu1 %vm11180_vm0, %v151_v25  ;;  %5516 = vmatmul.msk.f32.gmra.mxu2 %vm11180_vm0, %v231_v26 }
  0x2c   :  { %5570 = vmatmul.msk.f32.gmra.mxu3 %vm11180_vm0, %v285_v27 }
  0x32   :  { %5375 = vmatmul.msk.f32.gmra.mxu0 %vm11180_vm0, %v90_v28 }
  0x33   :  { %5437 = vmatmul.msk.f32.gmra.mxu1 %vm11180_vm0, %v152_v29  ;;  %5517 = vmatmul.msk.f32.gmra.mxu2 %vm11180_vm0, %v232_v30 }
  0x34   :  { %5571 = vmatmul.msk.f32.gmra.mxu3 %vm11180_vm0, %v286_v31 }
  0x3a   :  { %5376 = vmatmul.msk.f32.gmra.mxu0 %vm11180_vm0, %v91_v32 }
  0x3b   :  { %5438 = vmatmul.msk.f32.gmra.mxu1 %vm11180_vm0, %v153_v33  ;;  %5518 = vmatmul.msk.f32.gmra.mxu2 %vm11180_vm0, %v233_v34  ;;  %v103_v34 = vld [vmem:[%s11152_s1 + $0x80] sm:$0xff] }
  0x3c   :  { %5572 = vmatmul.msk.f32.gmra.mxu3 %vm11180_vm0, %v287_v35  ;;  %v165_v35 = vld [vmem:[%s11152_s1 + $0x270] sm:$0xff] }
  0x42   :  { %5377 = vmatmul.msk.f32.gmra.mxu0 %vm11180_vm0, %v92_v36  ;;  %v245_v36 = vld [vmem:[%s11152_s1 + $0x4f0] sm:$0xff] }
  0x43   :  { %5439 = vmatmul.msk.f32.gmra.mxu1 %vm11180_vm0, %v154_v37  ;;  %5519 = vmatmul.msk.f32.gmra.mxu2 %vm11180_vm0, %v234_v38  ;;  %v299_v37 = vld [vmem:[%s11152_s1 + $0x6a0] sm:$0xff] }
  0x44   :  { %5573 = vmatmul.msk.f32.gmra.mxu3 %vm11180_vm0, %v288_v39 }
  0x4a   :  { %5378 = vmatmul.msk.f32.gmra.mxu0 %vm11180_vm0, %v93_v40 }
  0x4b   :  { %5440 = vmatmul.msk.f32.gmra.mxu1 %vm11180_vm0, %v155_v41  ;;  %5520 = vmatmul.msk.f32.gmra.mxu2 %vm11180_vm0, %v235_v42  ;;  %v6654_v42 = vld [vmem:[%s11157_s6] ss:$0 sm:$0xff] }
  0x4c   :  { %5574 = vmatmul.msk.f32.gmra.mxu3 %vm11180_vm0, %v289_v43 }
  0x52   :  { %5379 = vmatmul.msk.f32.gmra.mxu0 %vm11180_vm0, %v94_v44 }
  0x53   :  { %5441 = vmatmul.msk.f32.gmra.mxu1 %vm11180_vm0, %v156_v45  ;;  %5521 = vmatmul.msk.f32.gmra.mxu2 %vm11180_vm0, %v236_v46 }
  0x54   :  { %5575 = vmatmul.msk.f32.gmra.mxu3 %vm11180_vm0, %v290_v47 }
  0x5a   :  { %5380 = vmatmul.msk.f32.gmra.mxu0 %vm11180_vm0, %v95_v48 }
  0x5b   :  { %5442 = vmatmul.msk.f32.gmra.mxu1 %vm11180_vm0, %v157_v49  ;;  %5522 = vmatmul.msk.f32.gmra.mxu2 %vm11180_vm0, %v237_v50 }
  0x5c   :  { %5576 = vmatmul.msk.f32.gmra.mxu3 %vm11180_vm0, %v291_v51 }
  0x62   :  { %5381 = vmatmul.msk.f32.gmra.mxu0 %vm11180_vm0, %v96_v52 }
  0x63   :  { %5443 = vmatmul.msk.f32.gmra.mxu1 %vm11180_vm0, %v158_v53  ;;  %5523 = vmatmul.msk.f32.gmra.mxu2 %vm11180_vm0, %v238_v54  ;;  %v104_v53 = vld [vmem:[%s11152_s1 + $0x88] sm:$0xff]  ;;  %v166_v54 = vld [vmem:[%s11152_s1 + $0x278] sm:$0xff] }
  0x64   :  { %5577 = vmatmul.msk.f32.gmra.mxu3 %vm11180_vm0, %v292_v55 }
  0x6a   :  { %5382 = vmatmul.msk.f32.gmra.mxu0 %vm11180_vm0, %v97_v56  ;;  %v246_v56 = vld [vmem:[%s11152_s1 + $0x4f8] sm:$0xff] }
  0x6b   :  { %5444 = vmatmul.msk.f32.gmra.mxu1 %vm11180_vm0, %v159_v57  ;;  %5524 = vmatmul.msk.f32.gmra.mxu2 %vm11180_vm0, %v239_v58  ;;  %v300_v57 = vld [vmem:[%s11152_s1 + $0x6a8] sm:$0xff] }
  0x6c   :  { %5578 = vmatmul.msk.f32.gmra.mxu3 %vm11180_vm0, %v293_v59 }
  0x72   :  { %5383 = vmatmul.msk.f32.gmra.mxu0 %vm11180_vm0, %v98_v60 }
  0x73   :  { %5445 = vmatmul.msk.f32.gmra.mxu1 %vm11180_vm0, %v160_v61  ;;  %5525 = vmatmul.msk.f32.gmra.mxu2 %vm11180_vm0, %v240_v62 }
  0x74   :  { %5579 = vmatmul.msk.f32.gmra.mxu3 %vm11180_vm0, %v294_v63 }
  0x7a   :  { %5384 = vmatmul.msk.f32.gmra.mxu0 %vm11180_vm0, %v99_v0 }
  0x7b   :  { %5446 = vmatmul.msk.f32.gmra.mxu1 %vm11180_vm0, %v161_v1  ;;  %5526 = vmatmul.msk.f32.gmra.mxu2 %vm11180_vm0, %v241_v2 }
  0x7c   :  { %5580 = vmatmul.msk.f32.gmra.mxu3 %vm11180_vm0, %v295_v3 }
  0x82   :  { %5385 = vmatmul.msk.f32.gmra.mxu0 %vm11180_vm0, %v100_v4 }
  0x83   :  { %5447 = vmatmul.msk.f32.gmra.mxu1 %vm11180_vm0, %v162_v5  ;;  %5527 = vmatmul.msk.f32.gmra.mxu2 %vm11180_vm0, %v242_v6  ;;  %v105_v6 = vld [vmem:[%s11152_s1 + $0x90] sm:$0xff] }
  0x84   :  { %5581 = vmatmul.msk.f32.gmra.mxu3 %vm11180_vm0, %v296_v7  ;;  %v167_v7 = vld [vmem:[%s11152_s1 + $0x280] sm:$0xff] }
  0x87   :  { %v72_v9 = vpop.f32.mrf.mxu0 }
  0x88   :  { %v1313_v10 = vpop.f32.mrf.mxu1  ;;  %v73_v13 = vadd.f32 %v5650_v8, %v72_v9 }
  0x8a   :  { %78 = vst.msk [vmem:[#allocation2] sm:$0xff] %vm11180_vm0, %v73_v13  ;;  %5386 = vmatmul.msk.f32.gmra.mxu0 %vm11180_vm0, %v101_v11  ;;  %v301_v13 = vld [vmem:[%s11152_s1 + $0x6b0] sm:$0xff] }
  0x8b   :  { %5448 = vmatmul.msk.f32.gmra.mxu1 %vm11180_vm0, %v163_v12  ;;  %5528 = vmatmul.msk.f32.gmra.mxu2 %vm11180_vm0, %v243_v14 }
  0x8c   :  { %5582 = vmatmul.msk.f32.gmra.mxu3 %vm11180_vm0, %v297_v15 }
  0x8e   :  { %v1553_v16 = vpop.f32.mrf.mxu2 }
  0x8f   :  { %v6600_v17 = vpop.f32.mrf.mxu3  ;;  %v75_v18 = vpop.f32.mrf.mxu0 }
  0x90   :  { %v1316_v19 = vpop.f32.mrf.mxu1  ;;  %v76_v22 = vadd.f32 %v5650_v8, %v75_v18 }
  0x91   :  { %v6614_v25 = vld [vmem:[#allocation2] sm:$0xff] }
  0x92   :  { %v1907_v26 = vrot.slane %v6614_v25, 3  ;;  %79 = vst.msk [vmem:[#allocation2 + $0x8] sm:$0xff] %vm11180_vm0, %v76_v22  ;;  %5387 = vmatmul.msk.f32.gmra.mxu0 %vm11180_vm0, %v102_v20  ;;  %v6641_v38 = vperm.slane %v6614_v25, 0 }
  0x93   :  { %5449 = vmatmul.msk.f32.gmra.mxu1 %vm11180_vm0, %v164_v21  ;;  %5529 = vmatmul.msk.f32.gmra.mxu2 %vm11180_vm0, %v244_v23 }
  0x94   :  { %5583 = vmatmul.msk.f32.gmra.mxu3 %vm11180_vm0, %v298_v24  ;;  %v6622_v27 = vperm.slane %v1907_v26, 0 }
  0x96   :  { %11187 = vst [vmem:[#allocation13_spill] sm:$0xff] %v6622_v27  ;;  %v2011_v28 = vadd.f32 %v6622_v27, %v1313_v10  ;;  %v2012_v29 = vadd.f32 %v6622_v27, %v1316_v19  ;;  %v1556_v30 = vpop.f32.mrf.mxu2  ;;  %v247_v10 = vld [vmem:[%s11152_s1 + $0x500] sm:$0xff] }
  0x97   :  { %v6626_v31 = vpop.f32.mrf.mxu3  ;;  %v1133_v32 = vpop.f32.mrf.mxu0 }
  0x98   :  { %v1319_v33 = vpop.f32.mrf.mxu1  ;;  %5652 = vtanh.f32 %v2011_v28  ;;  %v1951_v41 = vadd.f32 %v6641_v38, %v1133_v32 }
  0x99   :  { %v6643_v39 = vld [vmem:[#allocation2 + $0x8] sm:$0xff]  ;;  %5654 = vtanh.f32 %v2012_v29  ;;  %v2013_v44 = vadd.f32 %v6622_v27, %v1319_v33 }
  0x9a   :  { %5388 = vmatmul.msk.f32.gmra.mxu0 %vm11180_vm0, %v103_v34  ;;  %v1915_v40 = vrot.slane %v6643_v39, 4  ;;  %v6657_v43 = vperm.slane %v6643_v39, 0  ;;  %5656 = vtanh.f32 %v1951_v41  ;;  %v248_v33 = vld [vmem:[%s11152_s1 + $0x508] sm:$0xff] }
  0x9b   :  { %5450 = vmatmul.msk.f32.gmra.mxu1 %vm11180_vm0, %v165_v35  ;;  %5530 = vmatmul.msk.f32.gmra.mxu2 %vm11180_vm0, %v245_v36  ;;  %5658 = vtanh.f32 %v2013_v44  ;;  %v302_v36 = vld [vmem:[%s11152_s1 + $0x6b8] sm:$0xff]  ;;  %v1908_v44 = vrot.slane %v6614_v25, 4 }
  0x9c   :  { %5584 = vmatmul.msk.f32.gmra.mxu3 %vm11180_vm0, %v299_v37  ;;  %11188 = vst [vmem:[#allocation14_spill] sm:$0xff] %v6657_v43  ;;  %v6660_v49 = vperm.slane %v1915_v40, 0  ;;  %v2092_v59 = vadd.f32 %v6657_v43, %v1556_v30  ;;  %v2091_v62 = vadd.f32 %v6657_v43, %v1553_v16  ;;  %v106_v30 = vld [vmem:[%s11152_s1 + $0x98] sm:$0xff] }
  0x9e   :  { %v5653_v45 = vpop.eup %5652  ;;  %v1559_v46 = vpop.f32.mrf.mxu2  ;;  %11189 = vst [vmem:[#allocation15_spill] sm:$0xff] %v6660_v49  ;;  %v2145_v63 = vadd.f32 %v6660_v49, %v6600_v17  ;;  %v2146_v12 = vadd.f32 %v6660_v49, %v6626_v31  ;;  %v168_v31 = vld [vmem:[%s11152_s1 + $0x288] sm:$0xff] }
  0x9f   :  { %v1721_v47 = vpop.f32.mrf.mxu3  ;;  %v5655_v48 = vpop.eup %5654  ;;  %v2093_v50 = vadd.f32 %v6657_v43, %v1559_v46  ;;  %v2527_v55 = vmul.f32 %v5653_v45, %v6654_v42 }
  0xa0   :  { %v1136_v51 = vpop.f32.mrf.mxu0  ;;  %v6663_v52 = vpop.f32.mrf.mxu1  ;;  %v2528_v58 = vmul.f32 %v5655_v48, %v6654_v42  ;;  %v2147_v15 = vadd.f32 %v6660_v49, %v1721_v47 }
  0xa1   :  { %v2903_v60 = vsel %vm11180_vm0, %v2527_v55, 0.0  ;;  %5660 = vtanh.f32 %v2093_v50  ;;  %v5657_v0 = vpop.eup %5656  ;;  %v1952_v18 = vadd.f32 %v6641_v38, %v1136_v51  ;;  %v2014_v45 = vadd.f32 %v6622_v27, %v6663_v52 }
  0xa2   :  { %5389 = vmatmul.msk.f32.gmra.mxu0 %vm11180_vm0, %v104_v53  ;;  %v2906_v61 = vsel %vm11180_vm0, %v2528_v58, 0.0  ;;  %2904 = vadd.xlane.f32.xlu0 %v2903_v60  ;;  %5662 = vtanh.f32 %v2092_v59  ;;  %v5659_v3 = vpop.eup %5658  ;;  %v2467_v11 = vmul.f32 %v5657_v0, %v6654_v42  ;;  %v1912_v51 = vrot.slane %v6643_v39, 1  ;;  %v249_v60 = vld [vmem:[%s11152_s1 + $0x510] sm:$0xff]  ;;  %v303_v0 = vld [vmem:[%s11152_s1 + $0x6c0] sm:$0xff] }
  0xa3   :  { %5451 = vmatmul.msk.f32.gmra.mxu1 %vm11180_vm0, %v166_v54  ;;  %5531 = vmatmul.msk.f32.gmra.mxu2 %vm11180_vm0, %v246_v56  ;;  %5664 = vtanh.f32 %v2091_v62  ;;  %v2529_v9 = vmul.f32 %v5659_v3, %v6654_v42  ;;  %v6754_v54 = vperm.slane %v1908_v44, 0  ;;  %v107_v56 = vld [vmem:[%s11152_s1 + $0xa0] sm:$0xff] }
  0xa4   :  { %5585 = vmatmul.msk.f32.gmra.mxu3 %vm11180_vm0, %v300_v57  ;;  %2907 = vadd.xlane.f32.xlu1 %v2906_v61  ;;  %5666 = vtanh.f32 %v2145_v63  ;;  %v2723_v21 = vsel %vm11180_vm0, %v2467_v11, 0.0  ;;  %v169_v57 = vld [vmem:[%s11152_s1 + $0x290] sm:$0xff]  ;;  %v6769_v62 = vperm.slane %v1912_v51, 0 }
  0xa5   :  { %v2909_v16 = vsel %vm11180_vm0, %v2529_v9, 0.0  ;;  %5668 = vtanh.f32 %v2146_v12 }
  0xa6   :  { %v1562_v1 = vpop.f32.mrf.mxu2  ;;  %2910 = vadd.xlane.f32.xlu2 %v2909_v16  ;;  %5670 = vtanh.f32 %v2147_v15 }
  0xa7   :  { %v1724_v2 = vpop.f32.mrf.mxu3  ;;  %v5661_v8 = vpop.eup %5660  ;;  %5672 = vtanh.f32 %v1952_v18  ;;  %v2094_v35 = vadd.f32 %v6657_v43, %v1562_v1 }
  0xa8   :  { %v6689_v4 = vpop.f32.mrf.mxu0  ;;  %v6691_v5 = vpop.f32.mrf.mxu1  ;;  %v2609_v14 = vmul.f32 %v5661_v8, %v6654_v42  ;;  %v2148_v37 = vadd.f32 %v6660_v49, %v1724_v2 }
  0xa9   :  { %v5663_v17 = vpop.eup %5662  ;;  %5674 = vtanh.f32 %v2094_v35  ;;  %v1953_v1 = vadd.f32 %v6641_v38, %v6689_v4  ;;  %v171_v35 = vld [vmem:[%s11152_s1 + $0x2a0] sm:$0xff] }
  0xaa   :  { %5390 = vmatmul.msk.f32.gmra.mxu0 %vm11180_vm0, %v105_v6  ;;  %v3149_v19 = vsel %vm11180_vm0, %v2609_v14, 0.0  ;;  %v5665_v20 = vpop.eup %5664  ;;  %2724 = vadd.xlane.f32.xlu0 %v2723_v21  ;;  %v2608_v34 = vmul.f32 %v5663_v17, %v6654_v42  ;;  %5676 = vtanh.f32 %v2148_v37  ;;  %v170_v14 = vld [vmem:[%s11152_s1 + $0x298] sm:$0xff]  ;;  %v2015_v21 = vadd.f32 %v6754_v54, %v6691_v5 }
  0xab   :  { %5452 = vmatmul.msk.f32.gmra.mxu1 %vm11180_vm0, %v167_v7  ;;  %5532 = vmatmul.msk.f32.gmra.mxu2 %vm11180_vm0, %v247_v10  ;;  %v5667_v22 = vpop.eup %5666  ;;  %v2607_v23 = vmul.f32 %v5665_v20, %v6654_v42  ;;  %5678 = vtanh.f32 %v2014_v45  ;;  %v250_v17 = vld [vmem:[%s11152_s1 + $0x518] sm:$0xff]  ;;  %v304_v20 = vld [vmem:[%s11152_s1 + $0x6c8] sm:$0xff]  ;;  %v305_v45 = vld [vmem:[%s11152_s1 + $0x6d0] sm:$0xff] }
  0xac   :  { %5586 = vmatmul.msk.f32.gmra.mxu3 %vm11180_vm0, %v301_v13  ;;  %3150 = vadd.xlane.f32.xlu1 %v3149_v19  ;;  %v2661_v32 = vmul.f32 %v5667_v22, %v6654_v42  ;;  %v5669_v41 = vpop.eup %5668  ;;  %v3146_v48 = vsel %vm11180_vm0, %v2608_v34, 0.0  ;;  %v108_v13 = vld [vmem:[%s11152_s1 + $0xa8] sm:$0xff] }
  0xad   :  { %v3143_v40 = vsel %vm11180_vm0, %v2607_v23, 0.0  ;;  %v5671_v47 = vpop.eup %5670  ;;  %v2662_v25 = vmul.f32 %v5669_v41, %v6654_v42 }
  0xae   :  { %v1565_v24 = vpop.f32.mrf.mxu2  ;;  %3144 = vadd.xlane.f32.xlu2 %v3143_v40  ;;  %v3305_v46 = vsel %vm11180_vm0, %v2661_v32, 0.0  ;;  %v5673_v50 = vpop.eup %5672  ;;  %v2663_v58 = vmul.f32 %v5671_v47, %v6654_v42  ;;  %v251_v40 = vld [vmem:[%s11152_s1 + $0x520] sm:$0xff] }
  0xaf   :  { %v6720_v26 = vpop.f32.mrf.mxu3  ;;  %v2468_v61 = vmul.f32 %v5673_v50, %v6654_v42  ;;  %v3308_v2 = vsel %vm11180_vm0, %v2662_v25, 0.0  ;;  %v5675_v3 = vpop.eup %5674  ;;  %v2095_v6 = vadd.f32 %v6769_v62, %v1565_v24 }
  0xb0   :  { %v6722_v28 = vpop.f32.mrf.mxu0  ;;  %v1328_v29 = vpop.f32.mrf.mxu1  ;;  %v3311_v7 = vsel %vm11180_vm0, %v2663_v58, 0.0  ;;  %v2610_v10 = vmul.f32 %v5675_v3, %v6654_v42 }
  0xb1   :  { %v2016_v63 = vadd.f32 %v6754_v54, %v1328_v29  ;;  %v5677_v8 = vpop.eup %5676  ;;  %v2726_v4 = vsel %vm11180_vm0, %v2468_v61, 0.0  ;;  %v2149_v29 = vadd.f32 %v6660_v49, %v6720_v26  ;;  %v109_v26 = vld [vmem:[%s11152_s1 + $0xb0] sm:$0xff] }
  0xb2   :  { %5391 = vmatmul.msk.f32.gmra.mxu0 %vm11180_vm0, %v106_v30  ;;  %3147 = vadd.xlane.f32.xlu0 %v3146_v48  ;;  %v5679_v9 = vpop.eup %5678  ;;  %v2664_v15 = vmul.f32 %v5677_v8, %v6654_v42  ;;  %v3152_v22 = vsel %vm11180_vm0, %v2610_v10, 0.0 }
  0xb3   :  { %5453 = vmatmul.msk.f32.gmra.mxu1 %vm11180_vm0, %v168_v31  ;;  %5533 = vmatmul.msk.f32.gmra.mxu2 %vm11180_vm0, %v248_v33  ;;  %5680 = vtanh.f32 %v2016_v63  ;;  %v2530_v18 = vmul.f32 %v5679_v9, %v6654_v42  ;;  %v252_v63 = vld [vmem:[%s11152_s1 + $0x528] sm:$0xff] }
  0xb4   :  { %5587 = vmatmul.msk.f32.gmra.mxu3 %vm11180_vm0, %v302_v36  ;;  %3306 = vadd.xlane.f32.xlu1 %v3305_v46  ;;  %5682 = vtanh.f32 %v1953_v1  ;;  %v3314_v30 = vsel %vm11180_vm0, %v2664_v15, 0.0  ;;  %v1954_v46 = vadd.f32 %v6641_v38, %v6722_v28 }
  0xb5   :  { %5684 = vtanh.f32 %v2095_v6  ;;  %v2912_v5 = vsel %vm11180_vm0, %v2530_v18, 0.0  ;;  %v111_v18 = vld [vmem:[%s11152_s1 + $0xc0] sm:$0xff] }
  0xb6   :  { %v6752_v52 = vpop.f32.mrf.mxu2  ;;  %3309 = vadd.xlane.f32.xlu2 %v3308_v2  ;;  %v306_v2 = vld [vmem:[%s11152_s1 + $0x6d8] sm:$0xff] }
  0xb7   :  { %v1730_v53 = vpop.f32.mrf.mxu3  ;;  %v2096_v3 = vadd.f32 %v6769_v62, %v6752_v52 }
  0xb8   :  { %v6756_v55 = vpop.f32.mrf.mxu1  ;;  %v1145_v59 = vpop.f32.mrf.mxu0  ;;  %v2150_v19 = vadd.f32 %v6660_v49, %v1730_v53 }
  0xb9   :  { %v5681_v24 = vpop.eup %5680  ;;  %v1955_v44 = vadd.f32 %v6641_v38, %v1145_v59  ;;  %v2017_v51 = vadd.f32 %v6754_v54, %v6756_v55  ;;  %v110_v59 = vld [vmem:[%s11152_s1 + $0xb8] sm:$0xff] }
  0xba   :  { %5392 = vmatmul.msk.f32.gmra.mxu0 %vm11180_vm0, %v107_v56  ;;  %2727 = vadd.xlane.f32.xlu0 %v2726_v4  ;;  %v5683_v31 = vpop.eup %5682  ;;  %5686 = vtanh.f32 %v2150_v19  ;;  %v2532_v33 = vmul.f32 %v5681_v24, %v6654_v42  ;;  %v173_v19 = vld [vmem:[%s11152_s1 + $0x2b0] sm:$0xff] }
  0xbb   :  { %5454 = vmatmul.msk.f32.gmra.mxu1 %vm11180_vm0, %v169_v57  ;;  %5534 = vmatmul.msk.f32.gmra.mxu2 %vm11180_vm0, %v249_v60  ;;  %v5685_v32 = vpop.eup %5684  ;;  %5688 = vtanh.f32 %v2015_v21  ;;  %v2469_v36 = vmul.f32 %v5683_v31, %v6654_v42  ;;  %v172_v60 = vld [vmem:[%s11152_s1 + $0x2a8] sm:$0xff]  ;;  %v253_v21 = vld [vmem:[%s11152_s1 + $0x530] sm:$0xff] }
  0xbc   :  { %5588 = vmatmul.msk.f32.gmra.mxu3 %vm11180_vm0, %v303_v0  ;;  %3312 = vadd.xlane.f32.xlu1 %v3311_v7  ;;  %5690 = vtanh.f32 %v2149_v29  ;;  %v2611_v41 = vmul.f32 %v5685_v32, %v6654_v42  ;;  %v2918_v47 = vsel %vm11180_vm0, %v2532_v33, 0.0  ;;  %v307_v29 = vld [vmem:[%s11152_s1 + $0x6e0] sm:$0xff] }
  0xbd   :  { %v2729_v25 = vsel %vm11180_vm0, %v2469_v36, 0.0  ;;  %5692 = vtanh.f32 %v1955_v44  ;;  %v174_v44 = vld [vmem:[%s11152_s1 + $0x2b8] sm:$0xff] }
  0xbe   :  { %v1571_v16 = vpop.f32.mrf.mxu2  ;;  %3153 = vadd.xlane.f32.xlu2 %v3152_v22  ;;  %v3155_v28 = vsel %vm11180_vm0, %v2611_v41, 0.0  ;;  %5694 = vtanh.f32 %v1954_v46  ;;  %v112_v41 = vld [vmem:[%s11152_s1 + $0xc8] sm:$0xff] }
  0xbf   :  { %v6786_v11 = vpop.f32.mrf.mxu3  ;;  %5696 = vtanh.f32 %v2017_v51  ;;  %v2097_v1 = vadd.f32 %v6769_v62, %v1571_v16  ;;  %v308_v51 = vld [vmem:[%s11152_s1 + $0x6e8] sm:$0xff] }
  0xc0   :  { %v6788_v12 = vpop.f32.mrf.mxu1  ;;  %v6808_v23 = vpop.f32.mrf.mxu0 }
  0xc1   :  { %v5687_v50 = vpop.eup %5686  ;;  %5698 = vtanh.f32 %v2097_v1  ;;  %v1956_v24 = vadd.f32 %v6641_v38, %v6808_v23 }
  0xc2   :  { %5393 = vmatmul.msk.f32.gmra.mxu0 %vm11180_vm0, %v108_v13  ;;  %2913 = vadd.xlane.f32.xlu0 %v2912_v5  ;;  %v5689_v53 = vpop.eup %5688  ;;  %v2666_v58 = vmul.f32 %v5687_v50, %v6654_v42  ;;  %5700 = vtanh.f32 %v2096_v3  ;;  %v255_v3 = vld [vmem:[%s11152_s1 + $0x540] sm:$0xff] }
  0xc3   :  { %5455 = vmatmul.msk.f32.gmra.mxu1 %vm11180_vm0, %v170_v14  ;;  %5535 = vmatmul.msk.f32.gmra.mxu2 %vm11180_vm0, %v250_v17  ;;  %v5691_v57 = vpop.eup %5690  ;;  %v2531_v61 = vmul.f32 %v5689_v53, %v6654_v42 }
  0xc4   :  { %5589 = vmatmul.msk.f32.gmra.mxu3 %vm11180_vm0, %v304_v20  ;;  %3315 = vadd.xlane.f32.xlu1 %v3314_v30  ;;  %v2665_v0 = vmul.f32 %v5691_v57, %v6654_v42  ;;  %v3320_v6 = vsel %vm11180_vm0, %v2666_v58, 0.0  ;;  %v5693_v8 = vpop.eup %5692  ;;  %v2151_v30 = vadd.f32 %v6660_v49, %v6786_v11 }
  0xc5   :  { %v2915_v9 = vsel %vm11180_vm0, %v2531_v61, 0.0  ;;  %v5695_v10 = vpop.eup %5694  ;;  %v2471_v16 = vmul.f32 %v5693_v8, %v6654_v42 }
  0xc6   :  { %v1574_v48 = vpop.f32.mrf.mxu2  ;;  %2919 = vadd.xlane.f32.xlu2 %v2918_v47  ;;  %v3317_v52 = vsel %vm11180_vm0, %v2665_v0, 0.0  ;;  %v5697_v14 = vpop.eup %5696  ;;  %v2470_v20 = vmul.f32 %v5695_v10, %v6654_v42  ;;  %v254_v47 = vld [vmem:[%s11152_s1 + $0x538] sm:$0xff]  ;;  %v175_v0 = vld [vmem:[%s11152_s1 + $0x2c0] sm:$0xff] }
  0xc7   :  { %v6828_v37 = vpop.f32.mrf.mxu3  ;;  %v2098_v4 = vadd.f32 %v6769_v62, %v1574_v48  ;;  %v2533_v22 = vmul.f32 %v5697_v14, %v6654_v42  ;;  %v2735_v31 = vsel %vm11180_vm0, %v2471_v16, 0.0  ;;  %v5699_v5 = vpop.eup %5698 }
  0xc8   :  { %v6819_v34 = vpop.f32.mrf.mxu1  ;;  %v6847_v56 = vpop.f32.mrf.mxu0  ;;  %v2152_v32 = vadd.f32 %v6660_v49, %v6828_v37  ;;  %v2732_v23 = vsel %vm11180_vm0, %v2470_v20, 0.0  ;;  %v2613_v37 = vmul.f32 %v5699_v5, %v6654_v42 }
  0xc9   :  { %5702 = vtanh.f32 %v2098_v4  ;;  %v5701_v33 = vpop.eup %5700  ;;  %v2921_v11 = vsel %vm11180_vm0, %v2533_v22, 0.0  ;;  %v2019_v50 = vadd.f32 %v6754_v54, %v6819_v34  ;;  %v1957_v57 = vadd.f32 %v6641_v38, %v6847_v56  ;;  %v309_v4 = vld [vmem:[%s11152_s1 + $0x6f0] sm:$0xff] }
  0xca   :  { %5394 = vmatmul.msk.f32.gmra.mxu0 %vm11180_vm0, %v109_v26  ;;  %3156 = vadd.xlane.f32.xlu0 %v3155_v28  ;;  %5704 = vtanh.f32 %v1956_v24  ;;  %v3161_v53 = vsel %vm11180_vm0, %v2613_v37, 0.0  ;;  %v176_v24 = vld [vmem:[%s11152_s1 + $0x2c8] sm:$0xff] }
  0xcb   :  { %5456 = vmatmul.msk.f32.gmra.mxu1 %vm11180_vm0, %v171_v35  ;;  %5536 = vmatmul.msk.f32.gmra.mxu2 %vm11180_vm0, %v251_v40  ;;  %5706 = vtanh.f32 %v2151_v30 }
  0xcc   :  { %5590 = vmatmul.msk.f32.gmra.mxu3 %vm11180_vm0, %v305_v45  ;;  %2730 = vadd.xlane.f32.xlu1 %v2729_v25  ;;  %5708 = vtanh.f32 %v2152_v32  ;;  %v2612_v45 = vmul.f32 %v5701_v33, %v6654_v42  ;;  %v2018_v25 = vadd.f32 %v6754_v54, %v6788_v12 }
  0xcd   :  { %5710 = vtanh.f32 %v2019_v50  ;;  %v177_v50 = vld [vmem:[%s11152_s1 + $0x2d0] sm:$0xff] }
  0xce   :  { %3321 = vadd.xlane.f32.xlu2 %v3320_v6  ;;  %v6879_v13 = vpop.f32.mrf.mxu2  ;;  %v3158_v34 = vsel %vm11180_vm0, %v2612_v45, 0.0  ;;  %5712 = vtanh.f32 %v2018_v25  ;;  %v257_v25 = vld [vmem:[%s11152_s1 + $0x550] sm:$0xff] }
  0xcf   :  { %v6872_v7 = vpop.f32.mrf.mxu3  ;;  %v5703_v35 = vpop.eup %5702  ;;  %5714 = vtanh.f32 %v1957_v57  ;;  %v311_v57 = vld [vmem:[%s11152_s1 + $0x700] sm:$0xff] }
  0xd0   :  { %v6852_v55 = vpop.f32.mrf.mxu1  ;;  %v6883_v15 = vpop.f32.mrf.mxu0  ;;  %v2614_v48 = vmul.f32 %v5703_v35, %v6654_v42  ;;  %v2153_v16 = vadd.f32 %v6660_v49, %v6872_v7  ;;  %v114_v7 = vld [vmem:[%s11152_s1 + $0xd8] sm:$0xff] }
  0xd1   :  { %v5705_v28 = vpop.eup %5704  ;;  %v1958_v33 = vadd.f32 %v6641_v38, %v6883_v15  ;;  %v2020_v37 = vadd.f32 %v6754_v54, %v6852_v55 }
  0xd2   :  { %5395 = vmatmul.msk.f32.gmra.mxu0 %vm11180_vm0, %v110_v59  ;;  %3318 = vadd.xlane.f32.xlu0 %v3317_v52  ;;  %v5707_v58 = vpop.eup %5706  ;;  %v3164_v12 = vsel %vm11180_vm0, %v2614_v48, 0.0  ;;  %v2472_v61 = vmul.f32 %v5705_v28, %v6654_v42  ;;  %v115_v48 = vld [vmem:[%s11152_s1 + $0xe0] sm:$0xff] }
  0xd3   :  { %5457 = vmatmul.msk.f32.gmra.mxu1 %vm11180_vm0, %v172_v60  ;;  %5537 = vmatmul.msk.f32.gmra.mxu2 %vm11180_vm0, %v252_v63  ;;  %v5709_v59 = vpop.eup %5708  ;;  %v113_v63 = vld [vmem:[%s11152_s1 + $0xd0] sm:$0xff]  ;;  %v2667_v1 = vmul.f32 %v5707_v58, %v6654_v42 }
  0xd4   :  { %5591 = vmatmul.msk.f32.gmra.mxu3 %vm11180_vm0, %v306_v2  ;;  %2916 = vadd.xlane.f32.xlu1 %v2915_v9  ;;  %v2668_v6 = vmul.f32 %v5709_v59, %v6654_v42  ;;  %v2099_v9 = vadd.f32 %v6769_v62, %v6879_v13  ;;  %v2738_v52 = vsel %vm11180_vm0, %v2472_v61, 0.0  ;;  %v5711_v14 = vpop.eup %5710 }
  0xd6   :  { %2736 = vadd.xlane.f32.xlu2 %v2735_v31  ;;  %v1580_v36 = vpop.f32.mrf.mxu2  ;;  %v3326_v13 = vsel %vm11180_vm0, %v2668_v6, 0.0  ;;  %v256_v31 = vld [vmem:[%s11152_s1 + $0x548] sm:$0xff] }
  0xd7   :  { %v6913_v26 = vpop.f32.mrf.mxu3  ;;  %v2100_v8 = vadd.f32 %v6769_v62, %v1580_v36 }
  0xd8   :  { %v6886_v17 = vpop.f32.mrf.mxu1  ;;  %v1157_v46 = vpop.f32.mrf.mxu0  ;;  %v2154_v61 = vadd.f32 %v6660_v49, %v6913_v26 }
  0xd9   :  { %5716 = vtanh.f32 %v2100_v8  ;;  %v1959_v32 = vadd.f32 %v6641_v38, %v1157_v46  ;;  %v116_v8 = vld [vmem:[%s11152_s1 + $0xe8] sm:$0xff] }
  0xda   :  { %5396 = vmatmul.msk.f32.gmra.mxu0 %vm11180_vm0, %v111_v18  ;;  %2922 = vadd.xlane.f32.xlu0 %v2921_v11  ;;  %v3323_v18 = vsel %vm11180_vm0, %v2667_v1, 0.0  ;;  %5718 = vtanh.f32 %v2099_v9 }
  0xdb   :  { %5458 = vmatmul.msk.f32.gmra.mxu1 %vm11180_vm0, %v173_v19  ;;  %5538 = vmatmul.msk.f32.gmra.mxu2 %vm11180_vm0, %v253_v21  ;;  %v5713_v19 = vpop.eup %5712  ;;  %v2535_v21 = vmul.f32 %v5711_v14, %v6654_v42  ;;  %5720 = vtanh.f32 %v2153_v16 }
  0xdc   :  { %5592 = vmatmul.msk.f32.gmra.mxu3 %vm11180_vm0, %v307_v29  ;;  %2733 = vadd.xlane.f32.xlu1 %v2732_v23  ;;  %v5715_v20 = vpop.eup %5714  ;;  %v2534_v29 = vmul.f32 %v5713_v19, %v6654_v42  ;;  %v310_v23 = vld [vmem:[%s11152_s1 + $0x6f8] sm:$0xff]  ;;  %5722 = vtanh.f32 %v1959_v32 }
  0xdd   :  { %v2473_v5 = vmul.f32 %v5715_v20, %v6654_v42  ;;  %v2927_v35 = vsel %vm11180_vm0, %v2535_v21, 0.0  ;;  %5724 = vtanh.f32 %v1958_v33  ;;  %v117_v33 = vld [vmem:[%s11152_s1 + $0xf0] sm:$0xff] }
  0xde   :  { %3162 = vadd.xlane.f32.xlu2 %v3161_v53  ;;  %v6959_v2 = vpop.f32.mrf.mxu2  ;;  %5726 = vtanh.f32 %v2020_v37  ;;  %v259_v37 = vld [vmem:[%s11152_s1 + $0x560] sm:$0xff] }
  0xdf   :  { %v6947_v60 = vpop.f32.mrf.mxu3  ;;  %v5717_v36 = vpop.eup %5716  ;;  %v2741_v15 = vsel %vm11180_vm0, %v2473_v5, 0.0  ;;  %v2101_v21 = vadd.f32 %v6769_v62, %v6959_v2 }
  0xe0   :  { %v6918_v40 = vpop.f32.mrf.mxu1  ;;  %v6971_v10 = vpop.f32.mrf.mxu0 }
  0xe1   :  { %v2022_v28 = vadd.f32 %v6754_v54, %v6918_v40 }
  0xe2   :  { %5397 = vmatmul.msk.f32.gmra.mxu0 %vm11180_vm0, %v112_v41  ;;  %3165 = vadd.xlane.f32.xlu0 %v3164_v12  ;;  %v2924_v41 = vsel %vm11180_vm0, %v2534_v29, 0.0 }
  0xe3   :  { %5459 = vmatmul.msk.f32.gmra.mxu1 %vm11180_vm0, %v174_v44  ;;  %5539 = vmatmul.msk.f32.gmra.mxu2 %vm11180_vm0, %v254_v47  ;;  %v5719_v44 = vpop.eup %5718  ;;  %v2616_v47 = vmul.f32 %v5717_v36, %v6654_v42  ;;  %5728 = vtanh.f32 %v2022_v28 }
  0xe4   :  { %5593 = vmatmul.msk.f32.gmra.mxu3 %vm11180_vm0, %v308_v51  ;;  %3159 = vadd.xlane.f32.xlu1 %v3158_v34  ;;  %v5721_v46 = vpop.eup %5720  ;;  %v2615_v51 = vmul.f32 %v5719_v44, %v6654_v42  ;;  %v2021_v34 = vadd.f32 %v6754_v54, %v6886_v17 }
  0xe5   :  { %v2669_v53 = vmul.f32 %v5721_v46, %v6654_v42  ;;  %v3170_v12 = vsel %vm11180_vm0, %v2616_v47, 0.0  ;;  %v5723_v59 = vpop.eup %5722 }
  0xe6   :  { %2739 = vadd.xlane.f32.xlu2 %v2738_v52  ;;  %v1586_v11 = vpop.f32.mrf.mxu2  ;;  %v3167_v40 = vsel %vm11180_vm0, %v2615_v51, 0.0  ;;  %5730 = vtanh.f32 %v2021_v34  ;;  %v2475_v26 = vmul.f32 %v5723_v59, %v6654_v42  ;;  %v258_v52 = vld [vmem:[%s11152_s1 + $0x558] sm:$0xff] }
  0xe7   :  { %v6992_v30 = vpop.f32.mrf.mxu3  ;;  %v3329_v17 = vsel %vm11180_vm0, %v2669_v53, 0.0  ;;  %5732 = vtanh.f32 %v2154_v61  ;;  %v2102_v19 = vadd.f32 %v6769_v62, %v1586_v11  ;;  %v179_v11 = vld [vmem:[%s11152_s1 + $0x2e0] sm:$0xff]  ;;  %v118_v34 = vld [vmem:[%s11152_s1 + $0xf8] sm:$0xff]  ;;  %v260_v61 = vld [vmem:[%s11152_s1 + $0x568] sm:$0xff] }
  0xe8   :  { %v6950_v56 = vpop.f32.mrf.mxu1  ;;  %v7011_v45 = vpop.f32.mrf.mxu0 }
  0xe9   :  { %v1961_v46 = vadd.f32 %v6641_v38, %v7011_v45 }
  0xea   :  { %5398 = vmatmul.msk.f32.gmra.mxu0 %vm11180_vm0, %v113_v63  ;;  %3327 = vadd.xlane.f32.xlu0 %v3326_v13  ;;  %v5725_v63 = vpop.eup %5724  ;;  %v2747_v13 = vsel %vm11180_vm0, %v2475_v26, 0.0 }
  0xeb   :  { %5460 = vmatmul.msk.f32.gmra.mxu1 %vm11180_vm0, %v175_v0  ;;  %5540 = vmatmul.msk.f32.gmra.mxu2 %vm11180_vm0, %v255_v3  ;;  %v5727_v1 = vpop.eup %5726  ;;  %v2474_v9 = vmul.f32 %v5725_v63, %v6654_v42 }
  0xec   :  { %5594 = vmatmul.msk.f32.gmra.mxu3 %vm11180_vm0, %v309_v4  ;;  %3324 = vadd.xlane.f32.xlu1 %v3323_v18  ;;  %v178_v4 = vld [vmem:[%s11152_s1 + $0x2d8] sm:$0xff]  ;;  %v2536_v14 = vmul.f32 %v5727_v1, %v6654_v42  ;;  %v312_v18 = vld [vmem:[%s11152_s1 + $0x708] sm:$0xff]  ;;  %v5729_v20 = vpop.eup %5728 }
  0xed   :  { %v2538_v2 = vmul.f32 %v5729_v20, %v6654_v42 }
  0xee   :  { %2928 = vadd.xlane.f32.xlu2 %v2927_v35  ;;  %v1589_v0 = vpop.f32.mrf.mxu2 }
  0xef   :  { %v1751_v58 = vpop.f32.mrf.mxu3  ;;  %v2103_v16 = vadd.f32 %v6769_v62, %v1589_v0  ;;  %v2936_v47 = vsel %vm11180_vm0, %v2538_v2, 0.0  ;;  %v314_v0 = vld [vmem:[%s11152_s1 + $0x718] sm:$0xff] }
  0xf0   :  { %v6983_v22 = vpop.f32.mrf.mxu1  ;;  %v7045_v3 = vpop.f32.mrf.mxu0  ;;  %v2157_v44 = vadd.f32 %v6660_v49, %v1751_v58  ;;  %v180_v58 = vld [vmem:[%s11152_s1 + $0x2e8] sm:$0xff] }
  0xf1   :  { %5734 = vtanh.f32 %v2103_v16  ;;  %v1962_v63 = vadd.f32 %v6641_v38, %v7045_v3 }
  0xf2   :  { %5399 = vmatmul.msk.f32.gmra.mxu0 %vm11180_vm0, %v114_v7  ;;  %2742 = vadd.xlane.f32.xlu0 %v2741_v15  ;;  %v2744_v7 = vsel %vm11180_vm0, %v2474_v9, 0.0  ;;  %5736 = vtanh.f32 %v2102_v19  ;;  %v313_v15 = vld [vmem:[%s11152_s1 + $0x710] sm:$0xff] }
  0xf3   :  { %5461 = vmatmul.msk.f32.gmra.mxu1 %vm11180_vm0, %v176_v24  ;;  %5541 = vmatmul.msk.f32.gmra.mxu2 %vm11180_vm0, %v256_v31  ;;  %v5731_v24 = vpop.eup %5730  ;;  %v2930_v31 = vsel %vm11180_vm0, %v2536_v14, 0.0  ;;  %5738 = vtanh.f32 %v2101_v21  ;;  %v181_v19 = vld [vmem:[%s11152_s1 + $0x2f0] sm:$0xff] }
  0xf4   :  { %5595 = vmatmul.msk.f32.gmra.mxu3 %vm11180_vm0, %v310_v23  ;;  %2925 = vadd.xlane.f32.xlu1 %v2924_v41  ;;  %v5733_v5 = vpop.eup %5732  ;;  %v2537_v35 = vmul.f32 %v5731_v24, %v6654_v42  ;;  %5740 = vtanh.f32 %v2157_v44 }
  0xf5   :  { %v2670_v41 = vmul.f32 %v5733_v5, %v6654_v42  ;;  %5742 = vtanh.f32 %v1961_v46  ;;  %v315_v5 = vld [vmem:[%s11152_s1 + $0x720] sm:$0xff] }
  0xf6   :  { %3171 = vadd.xlane.f32.xlu2 %v3170_v12  ;;  %v7077_v32 = vpop.f32.mrf.mxu2  ;;  %v2933_v51 = vsel %vm11180_vm0, %v2537_v35, 0.0 }
  0xf7   :  { %v7073_v29 = vpop.f32.mrf.mxu3  ;;  %v3332_v45 = vsel %vm11180_vm0, %v2670_v41, 0.0 }
  0xf8   :  { %v7016_v55 = vpop.f32.mrf.mxu1  ;;  %v7089_v36 = vpop.f32.mrf.mxu0 }
  0xfa   :  { %5400 = vmatmul.msk.f32.gmra.mxu0 %vm11180_vm0, %v115_v48  ;;  %3330 = vadd.xlane.f32.xlu0 %v3329_v17  ;;  %v5735_v48 = vpop.eup %5734  ;;  %v2024_v17 = vadd.f32 %v6754_v54, %v6983_v22 }
  0xfb   :  { %5462 = vmatmul.msk.f32.gmra.mxu1 %vm11180_vm0, %v177_v50  ;;  %5542 = vmatmul.msk.f32.gmra.mxu2 %vm11180_vm0, %v257_v25  ;;  %v2155_v50 = vadd.f32 %v6660_v49, %v6947_v60  ;;  %v5737_v25 = vpop.eup %5736 }
  0xfc   :  { %5596 = vmatmul.msk.f32.gmra.mxu3 %vm11180_vm0, %v311_v57  ;;  %3168 = vadd.xlane.f32.xlu1 %v3167_v40  ;;  %v5739_v53 = vpop.eup %5738  ;;  %v2619_v57 = vmul.f32 %v5735_v48, %v6654_v42  ;;  %v2618_v12 = vmul.f32 %v5737_v25, %v6654_v42  ;;  %v182_v25 = vld [vmem:[%s11152_s1 + $0x2f8] sm:$0xff] }
  0xfd   :  { %5744 = vtanh.f32 %v2155_v50  ;;  %v2617_v40 = vmul.f32 %v5739_v53, %v6654_v42 }
  0xfe   :  { %2748 = vadd.xlane.f32.xlu2 %v2747_v13  ;;  %v1595_v59 = vpop.f32.mrf.mxu2  ;;  %v3179_v26 = vsel %vm11180_vm0, %v2619_v57, 0.0  ;;  %v3176_v3 = vsel %vm11180_vm0, %v2618_v12, 0.0  ;;  %5746 = vtanh.f32 %v1962_v63  ;;  %v262_v57 = vld [vmem:[%s11152_s1 + $0x578] sm:$0xff] }
  0xff   :  { %v7110_v28 = vpop.f32.mrf.mxu3  ;;  %v3173_v22 = vsel %vm11180_vm0, %v2617_v40, 0.0  ;;  %5748 = vtanh.f32 %v2024_v17  ;;  %v2105_v2 = vadd.f32 %v6769_v62, %v1595_v59  ;;  %v316_v59 = vld [vmem:[%s11152_s1 + $0x728] sm:$0xff] }
 0x100   :  { %v7048_v6 = vpop.f32.mrf.mxu1  ;;  %v7133_v1 = vpop.f32.mrf.mxu0 }
 0x102   :  { %5401 = vmatmul.msk.f32.gmra.mxu0 %vm11180_vm0, %v116_v8  ;;  %2931 = vadd.xlane.f32.xlu0 %v2930_v31  ;;  %v5741_v8 = vpop.eup %5740  ;;  %v2025_v31 = vadd.f32 %v6754_v54, %v7016_v55  ;;  %v2156_v55 = vadd.f32 %v6660_v49, %v6992_v30 }
 0x103   :  { %5463 = vmatmul.msk.f32.gmra.mxu1 %vm11180_vm0, %v178_v4  ;;  %5543 = vmatmul.msk.f32.gmra.mxu2 %vm11180_vm0, %v258_v52  ;;  %v1960_v4 = vadd.f32 %v6641_v38, %v6971_v10  ;;  %v5743_v9 = vpop.eup %5742  ;;  %v2673_v14 = vmul.f32 %v5741_v8, %v6654_v42 }
 0x104   :  { %5597 = vmatmul.msk.f32.gmra.mxu3 %vm11180_vm0, %v312_v18  ;;  %2745 = vadd.xlane.f32.xlu1 %v2744_v7  ;;  %v5745_v52 = vpop.eup %5744  ;;  %v119_v18 = vld [vmem:[%s11152_s1 + $0x100] sm:$0xff]  ;;  %v2477_v13 = vmul.f32 %v5743_v9, %v6654_v42  ;;  %v261_v7 = vld [vmem:[%s11152_s1 + $0x570] sm:$0xff] }
 0x105   :  { %5750 = vtanh.f32 %v1960_v4  ;;  %v2671_v24 = vmul.f32 %v5745_v52, %v6654_v42  ;;  %v5747_v35 = vpop.eup %5746  ;;  %v121_v52 = vld [vmem:[%s11152_s1 + $0x110] sm:$0xff] }
 0x106   :  { %2937 = vadd.xlane.f32.xlu2 %v2936_v47  ;;  %v2753_v41 = vsel %vm11180_vm0, %v2477_v13, 0.0  ;;  %v5749_v44 = vpop.eup %5748  ;;  %5752 = vtanh.f32 %v2025_v31  ;;  %v2478_v30 = vmul.f32 %v5747_v35, %v6654_v42  ;;  %v263_v13 = vld [vmem:[%s11152_s1 + $0x580] sm:$0xff] }
 0x107   :  { %v7156_v20 = vpop.f32.mrf.mxu3  ;;  %v3335_v46 = vsel %vm11180_vm0, %v2671_v24, 0.0  ;;  %5754 = vtanh.f32 %v2105_v2 }
 0x108   :  { %v7080_v23 = vpop.f32.mrf.mxu1  ;;  %5756 = vtanh.f32 %v2156_v55  ;;  %v2756_v63 = vsel %vm11180_vm0, %v2478_v30, 0.0 }
 0x109   :  { %v2027_v2 = vadd.f32 %v6754_v54, %v7080_v23 }
 0x10a   :  { %5402 = vmatmul.msk.f32.gmra.mxu0 %vm11180_vm0, %v117_v33  ;;  %3333 = vadd.xlane.f32.xlu0 %v3332_v45  ;;  %v7170_v33 = vpop.f32.mrf.mxu2  ;;  %v2540_v45 = vmul.f32 %v5749_v44, %v6654_v42 }
 0x10b   :  { %5464 = vmatmul.msk.f32.gmra.mxu1 %vm11180_vm0, %v179_v11  ;;  %5544 = vmatmul.msk.f32.gmra.mxu2 %vm11180_vm0, %v259_v37  ;;  %v3341_v11 = vsel %vm11180_vm0, %v2673_v14, 0.0  ;;  %v1916_v37 = vrot.slane %v6643_v39, 5  ;;  %v5751_v47 = vpop.eup %5750  ;;  %v183_v14 = vld [vmem:[%s11152_s1 + $0x300] sm:$0xff]  ;;  %v2106_v24 = vadd.f32 %v6769_v62, %v7170_v33 }
 0x10c   :  { %5598 = vmatmul.msk.f32.gmra.mxu3 %vm11180_vm0, %v313_v15  ;;  %2934 = vadd.xlane.f32.xlu1 %v2933_v51  ;;  %v7180_v15 = vpop.f32.mrf.mxu0  ;;  %v120_v51 = vld [vmem:[%s11152_s1 + $0x108] sm:$0xff] }
 0x10d   :  { %v7187_v48 = vperm.slane %v1916_v37, 0  ;;  %v2104_v37 = vadd.f32 %v6769_v62, %v7077_v32 }
 0x10e   :  { %3180 = vadd.xlane.f32.xlu2 %v3179_v26 }
 0x10f   :  { %11193 = vst [vmem:[#allocation19_spill] sm:$0xff] %v7187_v48  ;;  %v7213_v40 = vpop.f32.mrf.mxu3 }
 0x110   :  { %v7113_v60 = vpop.f32.mrf.mxu1 }
 0x112   :  { %5403 = vmatmul.msk.f32.gmra.mxu0 %vm11180_vm0, %v118_v34  ;;  %3174 = vadd.xlane.f32.xlu0 %v3173_v22  ;;  %v2476_v34 = vmul.f32 %v5751_v47, %v6654_v42  ;;  %v5753_v42 = vpop.eup %5752  ;;  %v7222_v26 = vpop.f32.mrf.mxu2 }
 0x113   :  { %5465 = vmatmul.msk.f32.gmra.mxu1 %vm11180_vm0, %v180_v58  ;;  %5545 = vmatmul.msk.f32.gmra.mxu2 %vm11180_vm0, %v260_v61  ;;  %v2159_v58 = vadd.f32 %v7187_v48, %v7110_v28  ;;  %v1964_v61 = vadd.f32 %v6641_v38, %v7133_v1  ;;  %v2023_v28 = vadd.f32 %v6754_v54, %v6950_v56  ;;  %v5755_v17 = vpop.eup %5754 }
 0x114   :  { %5599 = vmatmul.msk.f32.gmra.mxu3 %vm11180_vm0, %v314_v0  ;;  %3177 = vadd.xlane.f32.xlu1 %v3176_v3  ;;  %v2942_v0 = vsel %vm11180_vm0, %v2540_v45, 0.0  ;;  %v2750_v1 = vsel %vm11180_vm0, %v2476_v34, 0.0  ;;  %v5757_v8 = vpop.eup %5756  ;;  %v7226_v4 = vpop.f32.mrf.mxu0  ;;  %v7233_v3 = vld [vmem:[%s11157_s6] ss:$0 sm:$0xff] }
 0x115   :  { %v7147_v10 = vpop.xlane.xlu0 %2904  ;;  %5758 = vtanh.f32 %v2159_v58  ;;  %v2541_v9 = vmul.f32 %v7233_v3, %v5753_v42  ;;  %v264_v58 = vld [vmem:[%s11152_s1 + $0x588] sm:$0xff]  ;;  %v318_v42 = vld [vmem:[%s11152_s1 + $0x738] sm:$0xff] }
 0x116   :  { %11191 = vst [vmem:[#allocation17_spill] sm:$0xff] %v7147_v10  ;;  %3342 = vadd.xlane.f32.xlu2 %v3341_v11  ;;  %5760 = vtanh.f32 %v1964_v61  ;;  %v1965_v61 = vadd.f32 %v6641_v38, %v7180_v15 }
 0x117   :  { %v7145_v16 = vpop.xlane.xlu1 %2907  ;;  %5762 = vtanh.f32 %v2023_v28  ;;  %v2945_v11 = vsel %vm11180_vm0, %v2541_v9, 0.0  ;;  %v7304_v9 = vld [vmem:[#allocation2] sm:$0xff] }
 0x118   :  { %11190 = vst [vmem:[#allocation16_spill] sm:$0xff] %v7145_v16  ;;  %v7158_v21 = vpop.f32.mrf.mxu1  ;;  %5764 = vtanh.f32 %v2106_v24 }
 0x119   :  { %v7184_v39 = vpop.xlane.xlu2 %2910  ;;  %5766 = vtanh.f32 %v2027_v2  ;;  %v185_v2 = vld [vmem:[%s11152_s1 + $0x310] sm:$0xff] }
 0x11a   :  { %5404 = vmatmul.msk.f32.gmra.mxu0 %vm11180_vm0, %v119_v18  ;;  %3336 = vadd.xlane.f32.xlu0 %v3335_v46  ;;  %11192 = vst [vmem:[#allocation18_spill] sm:$0xff] %v7184_v39  ;;  %v2621_v18 = vmul.f32 %v7233_v3, %v5755_v17  ;;  %v1604_v46 = vpop.f32.mrf.mxu2  ;;  %5768 = vtanh.f32 %v2104_v37 }
 0x11b   :  { %5466 = vmatmul.msk.f32.gmra.mxu1 %vm11180_vm0, %v181_v19  ;;  %5546 = vmatmul.msk.f32.gmra.mxu2 %vm11180_vm0, %v261_v7  ;;  %v2672_v7 = vmul.f32 %v7233_v3, %v5757_v8  ;;  %v5759_v35 = vpop.eup %5758  ;;  %v2108_v28 = vadd.f32 %v6769_v62, %v1604_v46  ;;  %5770 = vtanh.f32 %v1965_v61 }
 0x11c   :  { %5600 = vmatmul.msk.f32.gmra.mxu3 %vm11180_vm0, %v315_v5  ;;  %2754 = vadd.xlane.f32.xlu1 %v2753_v41  ;;  %v317_v5 = vld [vmem:[%s11152_s1 + $0x730] sm:$0xff]  ;;  %v3185_v33 = vsel %vm11180_vm0, %v2621_v18, 0.0  ;;  %v5761_v55 = vpop.eup %5760  ;;  %v7267_v41 = vpop.f32.mrf.mxu3  ;;  %v2675_v32 = vmul.f32 %v7233_v3, %v5759_v35 }
 0x11d   :  { %v7198_v53 = vpop.xlane.xlu0 %2724  ;;  %v3338_v23 = vsel %vm11180_vm0, %v2672_v7, 0.0  ;;  %v5763_v44 = vpop.eup %5762  ;;  %v2480_v45 = vmul.f32 %v7233_v3, %v5761_v55  ;;  %5772 = vtanh.f32 %v2108_v28  ;;  %v265_v55 = vld [vmem:[%s11152_s1 + $0x590] sm:$0xff] }
 0x11e   :  { %11195 = vst [vmem:[#allocation21_spill] sm:$0xff] %v7198_v53  ;;  %2757 = vadd.xlane.f32.xlu2 %v2756_v63  ;;  %v5765_v17 = vpop.eup %5764 }
 0x11f   :  { %v7189_v50 = vpop.xlane.xlu1 %3150  ;;  %v2762_v15 = vsel %vm11180_vm0, %v2480_v45, 0.0  ;;  %v5767_v8 = vpop.eup %5766  ;;  %v2622_v7 = vmul.f32 %v7233_v3, %v5765_v17  ;;  %v124_v17 = vld [vmem:[%s11152_s1 + $0x128] sm:$0xff] }
 0x120   :  { %11194 = vst [vmem:[#allocation20_spill] sm:$0xff] %v7189_v50  ;;  %v7206_v12 = vpop.f32.mrf.mxu1  ;;  %v5769_v18 = vpop.eup %5768 }
 0x121   :  { %v7228_v56 = vpop.xlane.xlu2 %3144  ;;  %v3188_v45 = vsel %vm11180_vm0, %v2622_v7, 0.0  ;;  %v2162_v7 = vadd.f32 %v7187_v48, %v7267_v41  ;;  %v2026_v41 = vadd.f32 %v6754_v54, %v7048_v6 }
 0x122   :  { %5405 = vmatmul.msk.f32.gmra.mxu0 %vm11180_vm0, %v120_v51  ;;  %2751 = vadd.xlane.f32.xlu0 %v2750_v1  ;;  %11196 = vst [vmem:[#allocation22_spill] sm:$0xff] %v7228_v56  ;;  %v122_v51 = vld [vmem:[%s11152_s1 + $0x118] sm:$0xff]  ;;  %v2158_v1 = vadd.f32 %v6660_v49, %v7073_v29  ;;  %v7325_v37 = vpop.f32.mrf.mxu2 }
 0x123   :  { %5467 = vmatmul.msk.f32.gmra.mxu1 %vm11180_vm0, %v182_v25  ;;  %5547 = vmatmul.msk.f32.gmra.mxu2 %vm11180_vm0, %v262_v57  ;;  %v184_v25 = vld [vmem:[%s11152_s1 + $0x308] sm:$0xff]  ;;  %v1181_v57 = vpop.f32.mrf.mxu0 }
 0x124   :  { %5601 = vmatmul.msk.f32.gmra.mxu3 %vm11180_vm0, %v316_v59  ;;  %2943 = vadd.xlane.f32.xlu1 %v2942_v0  ;;  %v2539_v59 = vmul.f32 %v7233_v3, %v5763_v44  ;;  %v3347_v0 = vsel %vm11180_vm0, %v2675_v32, 0.0  ;;  %v7309_v29 = vpop.f32.mrf.mxu3  ;;  %5774 = vtanh.f32 %v2158_v1  ;;  %v2028_v44 = vadd.f32 %v6754_v54, %v7113_v60  ;;  %v319_v32 = vld [vmem:[%s11152_s1 + $0x740] sm:$0xff]  ;;  %v186_v1 = vld [vmem:[%s11152_s1 + $0x318] sm:$0xff] }
 0x125   :  { %v7245_v19 = vpop.xlane.xlu0 %3147  ;;  %v1963_v60 = vadd.f32 %v6641_v38, %v7089_v36 }
 0x126   :  { %11198 = vst [vmem:[#allocation24_spill] sm:$0xff] %v7245_v19  ;;  %2946 = vadd.xlane.f32.xlu2 %v2945_v11  ;;  %v2543_v11 = vmul.f32 %v7233_v3, %v5767_v8  ;;  %5776 = vtanh.f32 %v2028_v44 }
 0x127   :  { %v7236_v22 = vpop.xlane.xlu1 %3306 }
 0x128   :  { %11197 = vst [vmem:[#allocation23_spill] sm:$0xff] %v7236_v22  ;;  %v7253_v31 = vpop.f32.mrf.mxu1 }
 0x129   :  { %v7271_v47 = vpop.xlane.xlu2 %3309 }
 0x12a   :  { %5406 = vmatmul.msk.f32.gmra.mxu0 %vm11180_vm0, %v121_v52  ;;  %3339 = vadd.xlane.f32.xlu0 %v3338_v23  ;;  %11199 = vst [vmem:[#allocation25_spill] sm:$0xff] %v7271_v47  ;;  %v1905_v52 = vrot.slane %v7304_v9, 1  ;;  %v2620_v23 = vmul.f32 %v7233_v3, %v5769_v18 }
 0x12b   :  { %5468 = vmatmul.msk.f32.gmra.mxu1 %vm11180_vm0, %v183_v14  ;;  %5548 = vmatmul.msk.f32.gmra.mxu2 %vm11180_vm0, %v263_v13  ;;  %v2939_v14 = vsel %vm11180_vm0, %v2539_v59, 0.0  ;;  %v2951_v59 = vsel %vm11180_vm0, %v2543_v11, 0.0  ;;  %v2030_v11 = vadd.f32 %v6754_v54, %v7206_v12 }
 0x12c   :  { %5602 = vmatmul.msk.f32.gmra.mxu3 %vm11180_vm0, %v317_v5  ;;  %3186 = vadd.xlane.f32.xlu1 %v3185_v33  ;;  %v123_v5 = vld [vmem:[%s11152_s1 + $0x120] sm:$0xff]  ;;  %v7323_v35 = vperm.slane %v1905_v52, 0  ;;  %v1772_v8 = vpop.f32.mrf.mxu3 }
 0x12d   :  { %v7283_v34 = vpop.xlane.xlu0 %2727 }
 0x12e   :  { %11201 = vst [vmem:[#allocation27_spill] sm:$0xff] %v7283_v34  ;;  %3348 = vadd.xlane.f32.xlu2 %v3347_v0 }
 0x12f   :  { %v7274_v30 = vpop.xlane.xlu1 %3312 }
 0x130   :  { %11200 = vst [vmem:[#allocation26_spill] sm:$0xff] %v7274_v30  ;;  %v7291_v63 = vpop.f32.mrf.mxu1 }
 0x131   :  { %v7311_v13 = vpop.xlane.xlu2 %3153 }
 0x132   :  { %5407 = vmatmul.msk.f32.gmra.mxu0 %vm11180_vm0, %v122_v51  ;;  %2940 = vadd.xlane.f32.xlu0 %v2939_v14  ;;  %11202 = vst [vmem:[#allocation28_spill] sm:$0xff] %v7311_v13  ;;  %v1967_v51 = vadd.f32 %v7323_v35, %v1181_v57  ;;  %v3182_v57 = vsel %vm11180_vm0, %v2620_v23, 0.0  ;;  %v266_v14 = vld [vmem:[%s11152_s1 + $0x598] sm:$0xff] }
 0x133   :  { %5469 = vmatmul.msk.f32.gmra.mxu1 %vm11180_vm0, %v184_v25  ;;  %5549 = vmatmul.msk.f32.gmra.mxu2 %vm11180_vm0, %v264_v58  ;;  %v7341_v25 = vpop.f32.mrf.mxu0  ;;  %v5771_v58 = vpop.eup %5770 }
 0x134   :  { %5603 = vmatmul.msk.f32.gmra.mxu3 %vm11180_vm0, %v318_v42  ;;  %2763 = vadd.xlane.f32.xlu1 %v2762_v15  ;;  %v5773_v61 = vpop.eup %5772  ;;  %5778 = vtanh.f32 %v1967_v51  ;;  %v2481_v0 = vmul.f32 %v7233_v3, %v5771_v58 }
 0x135   :  { %v7327_v33 = vpop.xlane.xlu0 %2913  ;;  %v5775_v42 = vpop.eup %5774  ;;  %5780 = vtanh.f32 %v1963_v60  ;;  %v2624_v15 = vmul.f32 %v7233_v3, %v5773_v61  ;;  %v125_v61 = vld [vmem:[%s11152_s1 + $0x130] sm:$0xff] }
 0x136   :  { %11204 = vst [vmem:[#allocation30_spill] sm:$0xff] %v7327_v33  ;;  %3189 = vadd.xlane.f32.xlu2 %v3188_v45  ;;  %v2674_v18 = vmul.f32 %v7233_v3, %v5775_v42  ;;  %v2765_v23 = vsel %vm11180_vm0, %v2481_v0, 0.0  ;;  %v5777_v44 = vpop.eup %5776  ;;  %5782 = vtanh.f32 %v2162_v7  ;;  %v2164_v7 = vadd.f32 %v7187_v48, %v1772_v8 }
 0x137   :  { %v7314_v24 = vpop.xlane.xlu1 %3315  ;;  %5784 = vtanh.f32 %v2030_v11  ;;  %v2544_v6 = vmul.f32 %v7233_v3, %v5777_v44 }
 0x138   :  { %11203 = vst [vmem:[#allocation29_spill] sm:$0xff] %v7314_v24  ;;  %v7335_v46 = vpop.f32.mrf.mxu1  ;;  %v3344_v12 = vsel %vm11180_vm0, %v2674_v18, 0.0  ;;  %5786 = vtanh.f32 %v2026_v41  ;;  %v321_v18 = vld [vmem:[%s11152_s1 + $0x750] sm:$0xff] }
 0x139   :  { %v7352_v28 = vpop.xlane.xlu2 %2919  ;;  %v2954_v11 = vsel %vm11180_vm0, %v2544_v6, 0.0 }
 0x13a   :  { %5408 = vmatmul.msk.f32.gmra.mxu0 %vm11180_vm0, %v123_v5  ;;  %3183 = vadd.xlane.f32.xlu0 %v3182_v57  ;;  %11205 = vst [vmem:[#allocation31_spill] sm:$0xff] %v7352_v28  ;;  %v5779_v51 = vpop.eup %5778  ;;  %v187_v57 = vld [vmem:[%s11152_s1 + $0x320] sm:$0xff] }
 0x13b   :  { %5470 = vmatmul.msk.f32.gmra.mxu1 %vm11180_vm0, %v185_v2  ;;  %5550 = vmatmul.msk.f32.gmra.mxu2 %vm11180_vm0, %v265_v55  ;;  %v320_v2 = vld [vmem:[%s11152_s1 + $0x748] sm:$0xff]  ;;  %v7379_v55 = vpop.f32.mrf.mxu2  ;;  %v7388_v45 = vpop.f32.mrf.mxu0  ;;  %v2483_v42 = vmul.f32 %v7233_v3, %v5779_v51 }
 0x13c   :  { %5604 = vmatmul.msk.f32.gmra.mxu3 %vm11180_vm0, %v319_v32  ;;  %2952 = vadd.xlane.f32.xlu1 %v2951_v59  ;;  %v3194_v32 = vsel %vm11180_vm0, %v2624_v15, 0.0  ;;  %v5781_v58 = vpop.eup %5780  ;;  %v2109_v15 = vadd.f32 %v6769_v62, %v7325_v37  ;;  %v2160_v37 = vadd.f32 %v7187_v48, %v7156_v20 }
 0x13d   :  { %v7364_v52 = vpop.xlane.xlu0 %3156  ;;  %v2771_v44 = vsel %vm11180_vm0, %v2483_v42, 0.0  ;;  %v126_v42 = vld [vmem:[%s11152_s1 + $0x138] sm:$0xff] }
 0x13e   :  { %11207 = vst [vmem:[#allocation33_spill] sm:$0xff] %v7364_v52  ;;  %2766 = vadd.xlane.f32.xlu2 %v2765_v23  ;;  %v5783_v23 = vpop.eup %5782  ;;  %5788 = vtanh.f32 %v2109_v15 }
 0x13f   :  { %v7355_v36 = vpop.xlane.xlu1 %2730  ;;  %v5785_v41 = vpop.eup %5784  ;;  %5790 = vtanh.f32 %v2164_v7  ;;  %v268_v7 = vld [vmem:[%s11152_s1 + $0x5a8] sm:$0xff] }
 0x140   :  { %11206 = vst [vmem:[#allocation32_spill] sm:$0xff] %v7355_v36  ;;  %v7372_v5 = vpop.f32.mrf.mxu1  ;;  %5792 = vtanh.f32 %v2160_v37 }
 0x141   :  { %v7392_v60 = vpop.xlane.xlu2 %3321 }
 0x142   :  { %5409 = vmatmul.msk.f32.gmra.mxu0 %vm11180_vm0, %v124_v17  ;;  %3345 = vadd.xlane.f32.xlu0 %v3344_v12  ;;  %11208 = vst [vmem:[#allocation34_spill] sm:$0xff] %v7392_v60  ;;  %v267_v17 = vld [vmem:[%s11152_s1 + $0x5a0] sm:$0xff] }
 0x143   :  { %5471 = vmatmul.msk.f32.gmra.mxu1 %vm11180_vm0, %v186_v1  ;;  %5551 = vmatmul.msk.f32.gmra.mxu2 %vm11180_vm0, %v266_v14  ;;  %v2479_v1 = vmul.f32 %v7233_v3, %v5781_v58  ;;  %v1613_v51 = vpop.f32.mrf.mxu2  ;;  %v5787_v58 = vpop.eup %5786 }
 0x144   :  { %5605 = vmatmul.msk.f32.gmra.mxu3 %vm11180_vm0, %v320_v2  ;;  %3195 = vadd.xlane.f32.xlu1 %v3194_v32  ;;  %v7418_v2 = vpop.f32.mrf.mxu3  ;;  %v7427_v32 = vld [vmem:[#allocation2 + $0x8] sm:$0xff]  ;;  %v1190_v20 = vpop.f32.mrf.mxu0 }
 0x145   :  { %v7404_v0 = vpop.xlane.xlu0 %3318  ;;  %v1913_v8 = vrot.slane %v7427_v32, 2  ;;  %v2759_v12 = vsel %vm11180_vm0, %v2479_v1, 0.0  ;;  %v2546_v1 = vmul.f32 %v7233_v3, %v5785_v41 }
 0x146   :  { %11210 = vst [vmem:[#allocation36_spill] sm:$0xff] %v7404_v0  ;;  %2955 = vadd.xlane.f32.xlu2 %v2954_v11  ;;  %v2542_v11 = vmul.f32 %v7233_v3, %v5787_v58  ;;  %v2107_v58 = vadd.f32 %v6769_v62, %v7222_v26 }
 0x147   :  { %v7395_v59 = vpop.xlane.xlu1 %2916  ;;  %v7444_v15 = vperm.slane %v1913_v8, 0 }
 0x148   :  { %11209 = vst [vmem:[#allocation35_spill] sm:$0xff] %v7395_v59  ;;  %v7412_v14 = vpop.f32.mrf.mxu1 }
 0x149   :  { %v7432_v6 = vpop.xlane.xlu2 %2736  ;;  %v2111_v41 = vadd.f32 %v7444_v15, %v1613_v51  ;;  %v2948_v51 = vsel %vm11180_vm0, %v2542_v11, 0.0  ;;  %v189_v11 = vld [vmem:[%s11152_s1 + $0x330] sm:$0xff] }
 0x14a   :  { %5410 = vmatmul.msk.f32.gmra.mxu0 %vm11180_vm0, %v125_v61  ;;  %2760 = vadd.xlane.f32.xlu0 %v2759_v12  ;;  %11211 = vst [vmem:[#allocation37_spill] sm:$0xff] %v7432_v6  ;;  %v2678_v61 = vmul.f32 %v7233_v3, %v5783_v23  ;;  %v2163_v23 = vadd.f32 %v7187_v48, %v7309_v29  ;;  %v5789_v12 = vpop.eup %5788  ;;  %v2960_v29 = vsel %vm11180_vm0, %v2546_v1, 0.0 }
 0x14b   :  { %5472 = vmatmul.msk.f32.gmra.mxu1 %vm11180_vm0, %v187_v57  ;;  %5552 = vmatmul.msk.f32.gmra.mxu2 %vm11180_vm0, %v267_v17  ;;  %v188_v17 = vld [vmem:[%s11152_s1 + $0x328] sm:$0xff]  ;;  %v5791_v0 = vpop.eup %5790 }
 0x14c   :  { %5606 = vmatmul.msk.f32.gmra.mxu3 %vm11180_vm0, %v321_v18  ;;  %2772 = vadd.xlane.f32.xlu1 %v2771_v44  ;;  %v322_v44 = vld [vmem:[%s11152_s1 + $0x758] sm:$0xff]  ;;  %v3356_v8 = vsel %vm11180_vm0, %v2678_v61, 0.0  ;;  %v7467_v60 = vpop.f32.mrf.mxu3  ;;  %v5793_v61 = vpop.eup %5792  ;;  %5794 = vtanh.f32 %v2163_v23  ;;  %v2680_v23 = vmul.f32 %v7233_v3, %v5791_v0  ;;  %v1970_v0 = vadd.f32 %v7323_v35, %v1190_v20 }
 0x14d   :  { %v7446_v18 = vpop.xlane.xlu0 %2922  ;;  %5796 = vtanh.f32 %v2111_v41 }
 0x14e   :  { %11213 = vst [vmem:[#allocation39_spill] sm:$0xff] %v7446_v18  ;;  %3357 = vadd.xlane.f32.xlu2 %v3356_v8  ;;  %5798 = vtanh.f32 %v2107_v58  ;;  %v269_v8 = vld [vmem:[%s11152_s1 + $0x5b0] sm:$0xff]  ;;  %v1968_v58 = vadd.f32 %v7323_v35, %v7341_v25  ;;  %v2161_v25 = vadd.f32 %v7187_v48, %v7213_v40  ;;  %v3362_v30 = vsel %vm11180_vm0, %v2680_v23, 0.0  ;;  %v128_v23 = vld [vmem:[%s11152_s1 + $0x148] sm:$0xff] }
 0x14f   :  { %v7435_v57 = vpop.xlane.xlu1 %2733 }
 0x150   :  { %11212 = vst [vmem:[#allocation38_spill] sm:$0xff] %v7435_v57  ;;  %v7454_v37 = vpop.f32.mrf.mxu1  ;;  %5800 = vtanh.f32 %v1968_v58 }
 0x151   :  { %v7473_v26 = vpop.xlane.xlu2 %3162  ;;  %5802 = vtanh.f32 %v1970_v0 }
 0x152   :  { %5411 = vmatmul.msk.f32.gmra.mxu0 %vm11180_vm0, %v126_v42  ;;  %2949 = vadd.xlane.f32.xlu0 %v2948_v51  ;;  %v7471_v42 = vpop.f32.mrf.mxu2  ;;  %11214 = vst [vmem:[#allocation40_spill] sm:$0xff] %v7473_v26  ;;  %v323_v51 = vld [vmem:[%s11152_s1 + $0x760] sm:$0xff]  ;;  %v5795_v13 = vpop.eup %5794  ;;  %5804 = vtanh.f32 %v2161_v25  ;;  %v324_v25 = vld [vmem:[%s11152_s1 + $0x768] sm:$0xff] }
 0x153   :  { %5473 = vmatmul.msk.f32.gmra.mxu1 %vm11180_vm0, %v188_v17  ;;  %5553 = vmatmul.msk.f32.gmra.mxu2 %vm11180_vm0, %v268_v7  ;;  %v2625_v17 = vmul.f32 %v7233_v3, %v5789_v12  ;;  %v127_v7 = vld [vmem:[%s11152_s1 + $0x140] sm:$0xff]  ;;  %v2676_v12 = vmul.f32 %v7233_v3, %v5793_v61  ;;  %v1909_v61 = vrot.slane %v7304_v9, 5  ;;  %v2679_v40 = vmul.f32 %v7233_v3, %v5795_v13  ;;  %v270_v13 = vld [vmem:[%s11152_s1 + $0x5b8] sm:$0xff] }
 0x154   :  { %5607 = vmatmul.msk.f32.gmra.mxu3 %vm11180_vm0, %v322_v44  ;;  %2961 = vadd.xlane.f32.xlu1 %v2960_v29  ;;  %v7485_v44 = vpop.f32.mrf.mxu0 }
 0x155   :  { %v7487_v41 = vpop.xlane.xlu0 %3165  ;;  %v3197_v24 = vsel %vm11180_vm0, %v2625_v17, 0.0  ;;  %v3350_v20 = vsel %vm11180_vm0, %v2676_v12, 0.0 }
 0x156   :  { %11216 = vst [vmem:[#allocation42_spill] sm:$0xff] %v7487_v41  ;;  %3198 = vadd.xlane.f32.xlu2 %v3197_v24  ;;  %v5797_v41 = vpop.eup %5796  ;;  %v7514_v24 = vperm.slane %v1909_v61, 0 }
 0x157   :  { %v7476_v1 = vpop.xlane.xlu1 %3159  ;;  %v5799_v17 = vpop.eup %5798 }
 0x158   :  { %11215 = vst [vmem:[#allocation41_spill] sm:$0xff] %v7476_v1  ;;  %v7495_v29 = vpop.f32.mrf.mxu1  ;;  %v2031_v0 = vadd.f32 %v7514_v24, %v7253_v31  ;;  %v1966_v31 = vadd.f32 %v6641_v38, %v7226_v4  ;;  %v129_v4 = vld [vmem:[%s11152_s1 + $0x150] sm:$0xff] }
 0x159   :  { %v7511_v9 = vpop.xlane.xlu2 %2739 }
 0x15a   :  { %5412 = vmatmul.msk.f32.gmra.mxu0 %vm11180_vm0, %v127_v7  ;;  %3351 = vadd.xlane.f32.xlu0 %v3350_v20  ;;  %v1781_v7 = vpop.f32.mrf.mxu3  ;;  %11217 = vst [vmem:[#allocation43_spill] sm:$0xff] %v7511_v9  ;;  %v7525_v12 = vpop.f32.mrf.mxu2  ;;  %5806 = vtanh.f32 %v2031_v0 }
 0x15b   :  { %5474 = vmatmul.msk.f32.gmra.mxu1 %vm11180_vm0, %v189_v11  ;;  %5554 = vmatmul.msk.f32.gmra.mxu2 %vm11180_vm0, %v269_v8  ;;  %v2627_v8 = vmul.f32 %v7233_v3, %v5797_v41  ;;  %v2033_v41 = vadd.f32 %v7514_v24, %v7335_v46 }
 0x15c   :  { %5608 = vmatmul.msk.f32.gmra.mxu3 %vm11180_vm0, %v323_v51  ;;  %3363 = vadd.xlane.f32.xlu1 %v3362_v30  ;;  %v190_v30 = vld [vmem:[%s11152_s1 + $0x338] sm:$0xff]  ;;  %v2623_v51 = vmul.f32 %v7233_v3, %v5799_v17  ;;  %v7542_v20 = vpop.f32.mrf.mxu0  ;;  %v5801_v17 = vpop.eup %5800 }
 0x15d   :  { %v7527_v58 = vpop.xlane.xlu0 %3327  ;;  %v5803_v26 = vpop.eup %5802  ;;  %5808 = vtanh.f32 %v2033_v41 }
 0x15e   :  { %11219 = vst [vmem:[#allocation45_spill] sm:$0xff] %v7527_v58  ;;  %v3359_v58 = vsel %vm11180_vm0, %v2679_v40, 0.0  ;;  %v3191_v46 = vsel %vm11180_vm0, %v2623_v51, 0.0  ;;  %v5805_v40 = vpop.eup %5804  ;;  %5810 = vtanh.f32 %v1966_v31  ;;  %v271_v51 = vld [vmem:[%s11152_s1 + $0x5c0] sm:$0xff] }
 0x15f   :  { %v7516_v11 = vpop.xlane.xlu1 %3324  ;;  %3360 = vadd.xlane.f32.xlu2 %v3359_v58  ;;  %v2677_v0 = vmul.f32 %v7233_v3, %v5805_v40  ;;  %v2029_v40 = vadd.f32 %v6754_v54, %v7158_v21 }
 0x160   :  { %11218 = vst [vmem:[#allocation44_spill] sm:$0xff] %v7516_v11  ;;  %v7535_v61 = vpop.f32.mrf.mxu1  ;;  %v3203_v11 = vsel %vm11180_vm0, %v2627_v8, 0.0  ;;  %v191_v8 = vld [vmem:[%s11152_s1 + $0x340] sm:$0xff]  ;;  %v5807_v1 = vpop.eup %5806 }
 0x161   :  { %v2547_v54 = vmul.f32 %v7233_v3, %v5807_v1 }
 0x162   :  { %5413 = vmatmul.msk.f32.gmra.mxu0 %vm11180_vm0, %v128_v23  ;;  %3192 = vadd.xlane.f32.xlu0 %v3191_v46  ;;  %v7553_v23 = vpop.xlane.xlu2 %2928  ;;  %v7565_v58 = vpop.f32.mrf.mxu3 }
 0x163   :  { %5475 = vmatmul.msk.f32.gmra.mxu1 %vm11180_vm0, %v190_v30  ;;  %5555 = vmatmul.msk.f32.gmra.mxu2 %vm11180_vm0, %v270_v13  ;;  %11220 = vst [vmem:[#allocation46_spill] sm:$0xff] %v7553_v23  ;;  %v2484_v30 = vmul.f32 %v7233_v3, %v5801_v17  ;;  %v325_v17 = vld [vmem:[%s11152_s1 + $0x770] sm:$0xff]  ;;  %v1622_v31 = vpop.f32.mrf.mxu2  ;;  %v5809_v52 = vpop.eup %5808 }
 0x164   :  { %5609 = vmatmul.msk.f32.gmra.mxu3 %vm11180_vm0, %v324_v25  ;;  %3204 = vadd.xlane.f32.xlu1 %v3203_v11  ;;  %v2486_v11 = vmul.f32 %v7233_v3, %v5803_v26  ;;  %v2112_v25 = vadd.f32 %v7444_v15, %v7471_v42  ;;  %v2167_v26 = vadd.f32 %v7187_v48, %v1781_v7  ;;  %v7588_v33 = vpop.f32.mrf.mxu0  ;;  %v3353_v7 = vsel %vm11180_vm0, %v2677_v0, 0.0 }
 0x165   :  { %v7567_v13 = vpop.xlane.xlu0 %2742  ;;  %v2774_v46 = vsel %vm11180_vm0, %v2484_v30, 0.0  ;;  %v5811_v30 = vpop.eup %5810 }
 0x166   :  { %11222 = vst [vmem:[#allocation48_spill] sm:$0xff] %v7567_v13  ;;  %v2780_v42 = vsel %vm11180_vm0, %v2486_v11, 0.0  ;;  %5812 = vtanh.f32 %v2112_v25  ;;  %v192_v11 = vld [vmem:[%s11152_s1 + $0x348] sm:$0xff]  ;;  %v2482_v1 = vmul.f32 %v7233_v3, %v5811_v30 }
 0x167   :  { %v7556_v38 = vpop.xlane.xlu1 %2925  ;;  %2775 = vadd.xlane.f32.xlu2 %v2774_v46  ;;  %5814 = vtanh.f32 %v2167_v26  ;;  %v272_v25 = vld [vmem:[%s11152_s1 + $0x5c8] sm:$0xff]  ;;  %v326_v46 = vld [vmem:[%s11152_s1 + $0x778] sm:$0xff] }
 0x168   :  { %11221 = vst [vmem:[#allocation47_spill] sm:$0xff] %v7556_v38  ;;  %v7575_v41 = vpop.f32.mrf.mxu1  ;;  %5816 = vtanh.f32 %v2029_v40  ;;  %v2114_v40 = vadd.f32 %v7444_v15, %v1622_v31  ;;  %v2768_v31 = vsel %vm11180_vm0, %v2482_v1, 0.0 }
 0x16a   :  { %5414 = vmatmul.msk.f32.gmra.mxu0 %vm11180_vm0, %v129_v4  ;;  %3354 = vadd.xlane.f32.xlu0 %v3353_v7  ;;  %v7592_v4 = vpop.xlane.xlu2 %3171 }
 0x16b   :  { %5476 = vmatmul.msk.f32.gmra.mxu1 %vm11180_vm0, %v191_v8  ;;  %5556 = vmatmul.msk.f32.gmra.mxu2 %vm11180_vm0, %v271_v51  ;;  %11223 = vst [vmem:[#allocation49_spill] sm:$0xff] %v7592_v4  ;;  %v130_v8 = vld [vmem:[%s11152_s1 + $0x158] sm:$0xff]  ;;  %v2549_v51 = vmul.f32 %v7233_v3, %v5809_v52  ;;  %v7618_v52 = vpop.f32.mrf.mxu3  ;;  %v7627_v4 = vpop.f32.mrf.mxu2 }
 0x16c   :  { %5610 = vmatmul.msk.f32.gmra.mxu3 %vm11180_vm0, %v325_v17  ;;  %2781 = vadd.xlane.f32.xlu1 %v2780_v42  ;;  %v2166_v17 = vadd.f32 %v7187_v48, %v7467_v60  ;;  %v2963_v42 = vsel %vm11180_vm0, %v2547_v54, 0.0  ;;  %v5813_v7 = vpop.eup %5812  ;;  %v2110_v60 = vadd.f32 %v6769_v62, %v7379_v55 }
 0x16d   :  { %v7604_v0 = vpop.xlane.xlu0 %3330  ;;  %v2969_v30 = vsel %vm11180_vm0, %v2549_v51, 0.0  ;;  %v2628_v55 = vmul.f32 %v7233_v3, %v5813_v7  ;;  %v131_v51 = vld [vmem:[%s11152_s1 + $0x160] sm:$0xff] }
 0x16e   :  { %11225 = vst [vmem:[#allocation51_spill] sm:$0xff] %v7604_v0  ;;  %v5815_v0 = vpop.eup %5814  ;;  %5818 = vtanh.f32 %v2166_v17 }
 0x16f   :  { %v7595_v21 = vpop.xlane.xlu1 %3168  ;;  %2964 = vadd.xlane.f32.xlu2 %v2963_v42  ;;  %v5817_v54 = vpop.eup %5816  ;;  %5820 = vtanh.f32 %v2114_v40  ;;  %v2683_v1 = vmul.f32 %v7233_v3, %v5815_v0  ;;  %v1971_v42 = vadd.f32 %v7323_v35, %v7485_v44  ;;  %v2168_v0 = vadd.f32 %v7187_v48, %v7565_v58 }
 0x170   :  { %11224 = vst [vmem:[#allocation50_spill] sm:$0xff] %v7595_v21  ;;  %v7612_v26 = vpop.f32.mrf.mxu1  ;;  %5822 = vtanh.f32 %v2110_v60  ;;  %v2545_v40 = vmul.f32 %v7233_v3, %v5817_v54  ;;  %v327_v60 = vld [vmem:[%s11152_s1 + $0x780] sm:$0xff]  ;;  %v1969_v54 = vadd.f32 %v7323_v35, %v7388_v45 }
 0x171   :  { %v3371_v44 = vsel %vm11180_vm0, %v2683_v1, 0.0  ;;  %5824 = vtanh.f32 %v1971_v42 }
 0x172   :  { %5415 = vmatmul.msk.f32.gmra.mxu0 %vm11180_vm0, %v130_v8  ;;  %2769 = vadd.xlane.f32.xlu0 %v2768_v31  ;;  %v7631_v8 = vpop.f32.mrf.mxu0  ;;  %v7633_v62 = vpop.xlane.xlu2 %2748  ;;  %v2957_v58 = vsel %vm11180_vm0, %v2545_v40, 0.0  ;;  %5826 = vtanh.f32 %v2168_v0  ;;  %v194_v40 = vld [vmem:[%s11152_s1 + $0x358] sm:$0xff] }
 0x173   :  { %5477 = vmatmul.msk.f32.gmra.mxu1 %vm11180_vm0, %v192_v11  ;;  %5557 = vmatmul.msk.f32.gmra.mxu2 %vm11180_vm0, %v272_v25  ;;  %11226 = vst [vmem:[#allocation52_spill] sm:$0xff] %v7633_v62  ;;  %v193_v25 = vld [vmem:[%s11152_s1 + $0x350] sm:$0xff]  ;;  %v7667_v47 = vpop.f32.mrf.mxu3  ;;  %5828 = vtanh.f32 %v1969_v54  ;;  %v2034_v54 = vadd.f32 %v7514_v24, %v7372_v5 }
 0x174   :  { %5611 = vmatmul.msk.f32.gmra.mxu3 %vm11180_vm0, %v326_v46  ;;  %2970 = vadd.xlane.f32.xlu1 %v2969_v30  ;;  %v273_v46 = vld [vmem:[%s11152_s1 + $0x5d0] sm:$0xff]  ;;  %v3206_v30 = vsel %vm11180_vm0, %v2628_v55, 0.0  ;;  %v5819_v31 = vpop.eup %5818 }
 0x175   :  { %v7645_v17 = vpop.xlane.xlu0 %2931  ;;  %v5821_v21 = vpop.eup %5820  ;;  %5830 = vtanh.f32 %v2034_v54 }
 0x176   :  { %11228 = vst [vmem:[#allocation54_spill] sm:$0xff] %v7645_v17  ;;  %v5823_v55 = vpop.eup %5822  ;;  %v2630_v42 = vmul.f32 %v7233_v3, %v5821_v21  ;;  %v1973_v21 = vadd.f32 %v7323_v35, %v7588_v33 }
 0x177   :  { %v7636_v11 = vpop.xlane.xlu1 %2745  ;;  %3207 = vadd.xlane.f32.xlu2 %v3206_v30  ;;  %v274_v30 = vld [vmem:[%s11152_s1 + $0x5d8] sm:$0xff]  ;;  %v5825_v19 = vpop.eup %5824 }
 0x178   :  { %11227 = vst [vmem:[#allocation53_spill] sm:$0xff] %v7636_v11  ;;  %v7653_v7 = vpop.f32.mrf.mxu1  ;;  %v3212_v5 = vsel %vm11180_vm0, %v2630_v42, 0.0  ;;  %v5827_v22 = vpop.eup %5826  ;;  %5832 = vtanh.f32 %v1973_v21  ;;  %v133_v42 = vld [vmem:[%s11152_s1 + $0x170] sm:$0xff] }
 0x17a   :  { %5416 = vmatmul.msk.f32.gmra.mxu0 %vm11180_vm0, %v131_v51  ;;  %2958 = vadd.xlane.f32.xlu0 %v2957_v58  ;;  %v7671_v51 = vpop.f32.mrf.mxu2  ;;  %v7673_v45 = vpop.xlane.xlu2 %2937  ;;  %v328_v58 = vld [vmem:[%s11152_s1 + $0x788] sm:$0xff] }
 0x17b   :  { %5478 = vmatmul.msk.f32.gmra.mxu1 %vm11180_vm0, %v193_v25  ;;  %5558 = vmatmul.msk.f32.gmra.mxu2 %vm11180_vm0, %v273_v46  ;;  %11229 = vst [vmem:[#allocation55_spill] sm:$0xff] %v7673_v45  ;;  %v2682_v25 = vmul.f32 %v7233_v3, %v5819_v31  ;;  %v132_v46 = vld [vmem:[%s11152_s1 + $0x168] sm:$0xff]  ;;  %v2626_v31 = vmul.f32 %v7233_v3, %v5823_v55 }
 0x17c   :  { %5612 = vmatmul.msk.f32.gmra.mxu3 %vm11180_vm0, %v327_v60  ;;  %3372 = vadd.xlane.f32.xlu1 %v3371_v44  ;;  %v7685_v60 = vpop.f32.mrf.mxu0  ;;  %v2165_v55 = vadd.f32 %v7187_v48, %v7418_v2  ;;  %v2487_v2 = vmul.f32 %v7233_v3, %v5825_v19  ;;  %v275_v19 = vld [vmem:[%s11152_s1 + $0x5e0] sm:$0xff] }
 0x17d   :  { %v7687_v0 = vpop.xlane.xlu0 %3333  ;;  %v3200_v33 = vsel %vm11180_vm0, %v2626_v31, 0.0  ;;  %v2684_v31 = vmul.f32 %v7233_v3, %v5827_v22  ;;  %v2169_v22 = vadd.f32 %v7187_v48, %v7618_v52 }
 0x17e   :  { %11231 = vst [vmem:[#allocation57_spill] sm:$0xff] %v7687_v0  ;;  %v3368_v0 = vsel %vm11180_vm0, %v2682_v25, 0.0  ;;  %v5829_v25 = vpop.eup %5828  ;;  %5834 = vtanh.f32 %v2165_v55  ;;  %v2115_v55 = vadd.f32 %v7444_v15, %v7627_v4  ;;  %v2032_v4 = vadd.f32 %v7514_v24, %v7291_v63 }
 0x17f   :  { %v7676_v1 = vpop.xlane.xlu1 %2934  ;;  %3369 = vadd.xlane.f32.xlu2 %v3368_v0  ;;  %v2485_v21 = vmul.f32 %v7233_v3, %v5829_v25  ;;  %v5831_v25 = vpop.eup %5830 }
 0x180   :  { %11230 = vst [vmem:[#allocation56_spill] sm:$0xff] %v7676_v1  ;;  %v7695_v44 = vpop.f32.mrf.mxu1  ;;  %v5833_v56 = vpop.eup %5832  ;;  %5836 = vtanh.f32 %v2115_v55  ;;  %v276_v55 = vld [vmem:[%s11152_s1 + $0x5e8] sm:$0xff] }
 0x181   :  { %v2777_v52 = vsel %vm11180_vm0, %v2485_v21, 0.0  ;;  %5838 = vtanh.f32 %v2169_v22  ;;  %v1974_v22 = vadd.f32 %v7323_v35, %v7631_v8  ;;  %v2113_v8 = vadd.f32 %v7444_v15, %v7525_v12 }
 0x182   :  { %5417 = vmatmul.msk.f32.gmra.mxu0 %vm11180_vm0, %v132_v46  ;;  %3201 = vadd.xlane.f32.xlu0 %v3200_v33  ;;  %v7711_v46 = vpop.f32.mrf.mxu3  ;;  %v7725_v54 = vpop.f32.mrf.mxu2  ;;  %v329_v33 = vld [vmem:[%s11152_s1 + $0x790] sm:$0xff]  ;;  %5840 = vtanh.f32 %v2032_v4  ;;  %v330_v4 = vld [vmem:[%s11152_s1 + $0x798] sm:$0xff] }
 0x183   :  { %5479 = vmatmul.msk.f32.gmra.mxu1 %vm11180_vm0, %v194_v40  ;;  %5559 = vmatmul.msk.f32.gmra.mxu2 %vm11180_vm0, %v274_v30  ;;  %v7713_v40 = vpop.xlane.xlu2 %3180  ;;  %v195_v30 = vld [vmem:[%s11152_s1 + $0x360] sm:$0xff]  ;;  %5842 = vtanh.f32 %v1974_v22 }
 0x184   :  { %5613 = vmatmul.msk.f32.gmra.mxu3 %vm11180_vm0, %v328_v58  ;;  %3213 = vadd.xlane.f32.xlu1 %v3212_v5  ;;  %11232 = vst [vmem:[#allocation58_spill] sm:$0xff] %v7713_v40  ;;  %v7742_v40 = vpop.f32.mrf.mxu0 }
 0x185   :  { %v7727_v58 = vpop.xlane.xlu0 %3174 }
 0x186   :  { %11234 = vst [vmem:[#allocation60_spill] sm:$0xff] %v7727_v58  ;;  %v3374_v58 = vsel %vm11180_vm0, %v2684_v31, 0.0  ;;  %v196_v31 = vld [vmem:[%s11152_s1 + $0x368] sm:$0xff] }
 0x187   :  { %v7716_v0 = vpop.xlane.xlu1 %3177 }
 0x188   :  { %11233 = vst [vmem:[#allocation59_spill] sm:$0xff] %v7716_v0  ;;  %v7735_v5 = vpop.f32.mrf.mxu1  ;;  %v2783_v0 = vsel %vm11180_vm0, %v2487_v2, 0.0  ;;  %v5835_v2 = vpop.eup %5834 }
 0x189   :  { %2784 = vadd.xlane.f32.xlu2 %v2783_v0  ;;  %v134_v0 = vld [vmem:[%s11152_s1 + $0x178] sm:$0xff] }
 0x18a   :  { %5418 = vmatmul.msk.f32.gmra.mxu0 %vm11180_vm0, %v133_v42  ;;  %2778 = vadd.xlane.f32.xlu0 %v2777_v52  ;;  %v1634_v52 = vpop.f32.mrf.mxu2 }
 0x18b   :  { %5480 = vmatmul.msk.f32.gmra.mxu1 %vm11180_vm0, %v195_v30  ;;  %5560 = vmatmul.msk.f32.gmra.mxu2 %vm11180_vm0, %v275_v19  ;;  %v7753_v42 = vpop.xlane.xlu2 %3342  ;;  %v2550_v30 = vmul.f32 %v7233_v3, %v5831_v25  ;;  %v7765_v19 = vpop.f32.mrf.mxu3 }
 0x18c   :  { %5614 = vmatmul.msk.f32.gmra.mxu3 %vm11180_vm0, %v329_v33  ;;  %3375 = vadd.xlane.f32.xlu1 %v3374_v58  ;;  %11235 = vst [vmem:[#allocation61_spill] sm:$0xff] %v7753_v42  ;;  %v2489_v58 = vmul.f32 %v7233_v3, %v5833_v56  ;;  %v2681_v33 = vmul.f32 %v7233_v3, %v5835_v2  ;;  %v5837_v2 = vpop.eup %5836  ;;  %v7789_v45 = vpop.f32.mrf.mxu0 }
 0x18d   :  { %v7767_v21 = vpop.xlane.xlu0 %3336  ;;  %v2036_v56 = vadd.f32 %v7514_v24, %v7454_v37  ;;  %v5839_v50 = vpop.eup %5838  ;;  %v2631_v12 = vmul.f32 %v7233_v3, %v5837_v2  ;;  %v331_v2 = vld [vmem:[%s11152_s1 + $0x7a0] sm:$0xff] }
 0x18e   :  { %11237 = vst [vmem:[#allocation63_spill] sm:$0xff] %v7767_v21  ;;  %v2972_v21 = vsel %vm11180_vm0, %v2550_v30, 0.0  ;;  %v2789_v42 = vsel %vm11180_vm0, %v2489_v58, 0.0  ;;  %v3365_v37 = vsel %vm11180_vm0, %v2681_v33, 0.0  ;;  %v5841_v30 = vpop.eup %5840  ;;  %v135_v58 = vld [vmem:[%s11152_s1 + $0x180] sm:$0xff]  ;;  %v277_v33 = vld [vmem:[%s11152_s1 + $0x5f0] sm:$0xff] }
 0x18f   :  { %v7756_v63 = vpop.xlane.xlu1 %2754  ;;  %5844 = vtanh.f32 %v2036_v56  ;;  %v2548_v22 = vmul.f32 %v7233_v3, %v5841_v30  ;;  %v5843_v30 = vpop.eup %5842 }
 0x190   :  { %11236 = vst [vmem:[#allocation62_spill] sm:$0xff] %v7756_v63  ;;  %v7775_v25 = vpop.f32.mrf.mxu1  ;;  %5846 = vtanh.f32 %v2113_v8 }
 0x191   :  { %2973 = vadd.xlane.f32.xlu2 %v2972_v21  ;;  %v197_v21 = vld [vmem:[%s11152_s1 + $0x370] sm:$0xff] }
 0x192   :  { %5419 = vmatmul.msk.f32.gmra.mxu0 %vm11180_vm0, %v134_v0  ;;  %3366 = vadd.xlane.f32.xlu0 %v3365_v37  ;;  %v3215_v37 = vsel %vm11180_vm0, %v2631_v12, 0.0  ;;  %v7829_v10 = vpop.f32.mrf.mxu2 }
 0x193   :  { %5481 = vmatmul.msk.f32.gmra.mxu1 %vm11180_vm0, %v196_v31  ;;  %5561 = vmatmul.msk.f32.gmra.mxu2 %vm11180_vm0, %v276_v55  ;;  %v7793_v0 = vpop.xlane.xlu2 %2757  ;;  %v7820_v8 = vpop.f32.mrf.mxu3 }
 0x194   :  { %5615 = vmatmul.msk.f32.gmra.mxu3 %vm11180_vm0, %v330_v4  ;;  %2790 = vadd.xlane.f32.xlu1 %v2789_v42  ;;  %11238 = vst [vmem:[#allocation64_spill] sm:$0xff] %v7793_v0  ;;  %v2685_v42 = vmul.f32 %v7233_v3, %v5839_v50  ;;  %v2037_v4 = vadd.f32 %v7514_v24, %v7495_v29 }
 0x195   :  { %v7805_v55 = vpop.xlane.xlu0 %2751  ;;  %v2170_v50 = vadd.f32 %v7187_v48, %v7667_v47  ;;  %v1972_v29 = vadd.f32 %v7323_v35, %v7542_v20  ;;  %v5845_v39 = vpop.eup %5844  ;;  %v2966_v47 = vsel %vm11180_vm0, %v2548_v22, 0.0 }
 0x196   :  { %11240 = vst [vmem:[#allocation66_spill] sm:$0xff] %v7805_v55  ;;  %v5847_v12 = vpop.eup %5846  ;;  %5848 = vtanh.f32 %v2037_v4  ;;  %v2552_v22 = vmul.f32 %v7233_v3, %v5845_v39 }
 0x197   :  { %v7796_v31 = vpop.xlane.xlu1 %2943  ;;  %5850 = vtanh.f32 %v2170_v50  ;;  %v2629_v50 = vmul.f32 %v7233_v3, %v5847_v12 }
 0x198   :  { %11239 = vst [vmem:[#allocation65_spill] sm:$0xff] %v7796_v31  ;;  %v7813_v56 = vpop.f32.mrf.mxu1  ;;  %v3377_v31 = vsel %vm11180_vm0, %v2685_v42, 0.0  ;;  %5852 = vtanh.f32 %v1972_v29  ;;  %v332_v29 = vld [vmem:[%s11152_s1 + $0x7a8] sm:$0xff] }
 0x199   :  { %3216 = vadd.xlane.f32.xlu2 %v3215_v37  ;;  %v2118_v37 = vadd.f32 %v7444_v15, %v1634_v52  ;;  %v2978_v52 = vsel %vm11180_vm0, %v2552_v22, 0.0 }
 0x19a   :  { %5420 = vmatmul.msk.f32.gmra.mxu0 %vm11180_vm0, %v135_v58  ;;  %2967 = vadd.xlane.f32.xlu0 %v2966_v47  ;;  %v7833_v58 = vpop.f32.mrf.mxu0  ;;  %v2117_v47 = vadd.f32 %v7444_v15, %v7725_v54  ;;  %v3209_v54 = vsel %vm11180_vm0, %v2629_v50, 0.0  ;;  %v137_v50 = vld [vmem:[%s11152_s1 + $0x190] sm:$0xff] }
 0x19b   :  { %5482 = vmatmul.msk.f32.gmra.mxu1 %vm11180_vm0, %v197_v21  ;;  %5562 = vmatmul.msk.f32.gmra.mxu2 %vm11180_vm0, %v277_v33  ;;  %v7835_v20 = vpop.xlane.xlu2 %2946  ;;  %v2490_v21 = vmul.f32 %v7233_v3, %v5843_v30  ;;  %v136_v33 = vld [vmem:[%s11152_s1 + $0x188] sm:$0xff]  ;;  %v2035_v3 = vadd.f32 %v7514_v24, %v7412_v14  ;;  %5854 = vtanh.f32 %v2118_v37  ;;  %v199_v37 = vld [vmem:[%s11152_s1 + $0x380] sm:$0xff] }
 0x19c   :  { %5616 = vmatmul.msk.f32.gmra.mxu3 %vm11180_vm0, %v331_v2  ;;  %3378 = vadd.xlane.f32.xlu1 %v3377_v31  ;;  %11241 = vst [vmem:[#allocation67_spill] sm:$0xff] %v7835_v20  ;;  %v198_v31 = vld [vmem:[%s11152_s1 + $0x378] sm:$0xff]  ;;  %5856 = vtanh.f32 %v2117_v47 }
 0x19d   :  { %v7847_v4 = vpop.xlane.xlu0 %3339  ;;  %v278_v2 = vld [vmem:[%s11152_s1 + $0x5f8] sm:$0xff]  ;;  %v2792_v39 = vsel %vm11180_vm0, %v2490_v21, 0.0  ;;  %5858 = vtanh.f32 %v2035_v3 }
 0x19e   :  { %11243 = vst [vmem:[#allocation69_spill] sm:$0xff] %v7847_v4  ;;  %v5849_v4 = vpop.eup %5848 }
 0x19f   :  { %v7838_v42 = vpop.xlane.xlu1 %3186  ;;  %v5851_v12 = vpop.eup %5850 }
 0x1a0   :  { %11242 = vst [vmem:[#allocation68_spill] sm:$0xff] %v7838_v42  ;;  %v7854_v30 = vpop.f32.mrf.mxu1  ;;  %v7868_v42 = vpop.f32.mrf.mxu3 }
 0x1a1   :  { %2793 = vadd.xlane.f32.xlu2 %v2792_v39  ;;  %11244 = vst [vmem:[#allocation70_spill] sm:$0xff] %v7868_v42  ;;  %v5853_v21 = vpop.eup %5852 }
 0x1a2   :  { %5421 = vmatmul.msk.f32.gmra.mxu0 %vm11180_vm0, %v136_v33  ;;  %3210 = vadd.xlane.f32.xlu0 %v3209_v54  ;;  %v7872_v33 = vpop.f32.mrf.mxu2  ;;  %v7891_v47 = vpop.f32.mrf.mxu0 }
 0x1a3   :  { %5483 = vmatmul.msk.f32.gmra.mxu1 %vm11180_vm0, %v198_v31  ;;  %5563 = vmatmul.msk.f32.gmra.mxu2 %vm11180_vm0, %v278_v2  ;;  %v7874_v14 = vpop.xlane.xlu2 %3348  ;;  %v7879_v31 = vld [vmem:[%s11157_s6] ss:$0 sm:$0xff] }
 0x1a4   :  { %5617 = vmatmul.msk.f32.gmra.mxu3 %vm11180_vm0, %v332_v29  ;;  %2979 = vadd.xlane.f32.xlu1 %v2978_v52  ;;  %11245 = vst [vmem:[#allocation71_spill] sm:$0xff] %v7874_v14  ;;  %v2553_v22 = vmul.f32 %v7879_v31, %v5849_v4  ;;  %v2686_v29 = vmul.f32 %v7879_v31, %v5851_v12  ;;  %v279_v4 = vld [vmem:[%s11152_s1 + $0x600] sm:$0xff]  ;;  %v333_v14 = vld [vmem:[%s11152_s1 + $0x7b0] sm:$0xff] }
 0x1a5   :  { %v7893_v39 = vpop.xlane.xlu0 %2940  ;;  %v2488_v3 = vmul.f32 %v7879_v31, %v5853_v21  ;;  %v1977_v52 = vadd.f32 %v7323_v35, %v7789_v45  ;;  %v2171_v12 = vadd.f32 %v7187_v48, %v7711_v46  ;;  %v2116_v21 = vadd.f32 %v7444_v15, %v7671_v51 }
 0x1a6   :  { %11247 = vst [vmem:[#allocation73_spill] sm:$0xff] %v7893_v39  ;;  %v2981_v20 = vsel %vm11180_vm0, %v2553_v22, 0.0  ;;  %v5855_v39 = vpop.eup %5854  ;;  %v3380_v45 = vsel %vm11180_vm0, %v2686_v29, 0.0  ;;  %v200_v29 = vld [vmem:[%s11152_s1 + $0x388] sm:$0xff] }
 0x1a7   :  { %v7882_v2 = vpop.xlane.xlu1 %2763  ;;  %v5857_v16 = vpop.eup %5856  ;;  %v2786_v46 = vsel %vm11180_vm0, %v2488_v3, 0.0  ;;  %5860 = vtanh.f32 %v1977_v52  ;;  %v2634_v51 = vmul.f32 %v7879_v31, %v5855_v39  ;;  %v280_v39 = vld [vmem:[%s11152_s1 + $0x608] sm:$0xff] }
 0x1a8   :  { %11246 = vst [vmem:[#allocation72_spill] sm:$0xff] %v7882_v2  ;;  %v7901_v54 = vpop.f32.mrf.mxu1  ;;  %v5859_v22 = vpop.eup %5858  ;;  %5862 = vtanh.f32 %v2171_v12 }
 0x1a9   :  { %2982 = vadd.xlane.f32.xlu2 %v2981_v20  ;;  %5864 = vtanh.f32 %v2116_v21  ;;  %v2551_v12 = vmul.f32 %v7879_v31, %v5859_v22  ;;  %v2040_v21 = vadd.f32 %v7514_v24, %v7612_v26  ;;  %v1975_v26 = vadd.f32 %v7323_v35, %v7685_v60 }
 0x1aa   :  { %5422 = vmatmul.msk.f32.gmra.mxu0 %vm11180_vm0, %v137_v50  ;;  %2787 = vadd.xlane.f32.xlu0 %v2786_v46  ;;  %v7917_v50 = vpop.f32.mrf.mxu3  ;;  %v1643_v3 = vpop.f32.mrf.mxu2  ;;  %v334_v46 = vld [vmem:[%s11152_s1 + $0x7b8] sm:$0xff] }
 0x1ab   :  { %5484 = vmatmul.msk.f32.gmra.mxu1 %vm11180_vm0, %v199_v37  ;;  %5564 = vmatmul.msk.f32.gmra.mxu2 %vm11180_vm0, %v279_v4  ;;  %v7919_v37 = vpop.xlane.xlu2 %3189  ;;  %v2633_v4 = vmul.f32 %v7879_v31, %v5857_v16  ;;  %v1976_v16 = vadd.f32 %v7323_v35, %v7742_v40  ;;  %v2975_v40 = vsel %vm11180_vm0, %v2551_v12, 0.0  ;;  %5866 = vtanh.f32 %v2040_v21 }
 0x1ac   :  { %5618 = vmatmul.msk.f32.gmra.mxu3 %vm11180_vm0, %v333_v14  ;;  %3381 = vadd.xlane.f32.xlu1 %v3380_v45  ;;  %11248 = vst [vmem:[#allocation74_spill] sm:$0xff] %v7919_v37  ;;  %v138_v14 = vld [vmem:[%s11152_s1 + $0x198] sm:$0xff]  ;;  %v1220_v37 = vpop.f32.mrf.mxu0 }
 0x1ad   :  { %v7931_v52 = vpop.xlane.xlu0 %3183  ;;  %v5861_v22 = vpop.eup %5860  ;;  %5868 = vtanh.f32 %v1976_v16 }
 0x1ae   :  { %11250 = vst [vmem:[#allocation76_spill] sm:$0xff] %v7931_v52  ;;  %v3224_v52 = vsel %vm11180_vm0, %v2634_v51, 0.0  ;;  %v5863_v1 = vpop.eup %5862  ;;  %5870 = vtanh.f32 %v1975_v26  ;;  %v2039_v26 = vadd.f32 %v7514_v24, %v7575_v41 }
 0x1af   :  { %v7922_v20 = vpop.xlane.xlu1 %2952  ;;  %v5865_v51 = vpop.eup %5864 }
 0x1b0   :  { %11249 = vst [vmem:[#allocation75_spill] sm:$0xff] %v7922_v20  ;;  %v7939_v45 = vpop.f32.mrf.mxu1  ;;  %v3221_v20 = vsel %vm11180_vm0, %v2633_v4, 0.0  ;;  %v139_v4 = vld [vmem:[%s11152_s1 + $0x1a0] sm:$0xff]  ;;  %v2632_v21 = vmul.f32 %v7879_v31, %v5865_v51 }
 0x1b1   :  { %3225 = vadd.xlane.f32.xlu2 %v3224_v52  ;;  %v201_v52 = vld [vmem:[%s11152_s1 + $0x390] sm:$0xff]  ;;  %v5867_v51 = vpop.eup %5866 }
 0x1b2   :  { %5423 = vmatmul.msk.f32.gmra.mxu0 %vm11180_vm0, %v138_v14  ;;  %2976 = vadd.xlane.f32.xlu0 %v2975_v40  ;;  %v7980_v40 = vpop.f32.mrf.mxu2  ;;  %v3218_v41 = vsel %vm11180_vm0, %v2632_v21, 0.0  ;;  %v202_v21 = vld [vmem:[%s11152_s1 + $0x398] sm:$0xff] }
 0x1b3   :  { %5485 = vmatmul.msk.f32.gmra.mxu1 %vm11180_vm0, %v200_v29  ;;  %5565 = vmatmul.msk.f32.gmra.mxu2 %vm11180_vm0, %v280_v39  ;;  %v7955_v14 = vpop.xlane.xlu2 %2766  ;;  %v2493_v29 = vmul.f32 %v7879_v31, %v5861_v22  ;;  %v7967_v39 = vpop.f32.mrf.mxu3  ;;  %v335_v22 = vld [vmem:[%s11152_s1 + $0x7c0] sm:$0xff] }
 0x1b4   :  { %5619 = vmatmul.msk.f32.gmra.mxu3 %vm11180_vm0, %v334_v46  ;;  %3222 = vadd.xlane.f32.xlu1 %v3221_v20  ;;  %11251 = vst [vmem:[#allocation77_spill] sm:$0xff] %v7955_v14  ;;  %v2687_v20 = vmul.f32 %v7879_v31, %v5863_v1  ;;  %v2121_v46 = vadd.f32 %v7444_v15, %v1643_v3  ;;  %v7988_v23 = vpop.f32.mrf.mxu0 }
 0x1b5   :  { %v7969_v12 = vpop.xlane.xlu0 %3345  ;;  %v2801_v1 = vsel %vm11180_vm0, %v2493_v29, 0.0  ;;  %v2038_v3 = vadd.f32 %v7514_v24, %v7535_v61 }
 0x1b6   :  { %11253 = vst [vmem:[#allocation79_spill] sm:$0xff] %v7969_v12  ;;  %v3383_v12 = vsel %vm11180_vm0, %v2687_v20, 0.0  ;;  %5872 = vtanh.f32 %v2121_v46  ;;  %v140_v20 = vld [vmem:[%s11152_s1 + $0x1a8] sm:$0xff] }
 0x1b7   :  { %v7958_v60 = vpop.xlane.xlu1 %3195  ;;  %5874 = vtanh.f32 %v2039_v26  ;;  %v1980_v26 = vadd.f32 %v7323_v35, %v1220_v37  ;;  %v1917_v37 = vrot.slane %v7427_v32, 6 }
 0x1b8   :  { %11252 = vst [vmem:[#allocation78_spill] sm:$0xff] %v7958_v60  ;;  %v7973_v16 = vpop.f32.mrf.mxu1  ;;  %v5869_v60 = vpop.eup %5868  ;;  %5876 = vtanh.f32 %v2038_v3  ;;  %v2173_v3 = vadd.f32 %v7187_v48, %v7820_v8 }
 0x1b9   :  { %2802 = vadd.xlane.f32.xlu2 %v2801_v1  ;;  %v5871_v29 = vpop.eup %5870  ;;  %5878 = vtanh.f32 %v1980_v26 }
 0x1ba   :  { %5424 = vmatmul.msk.f32.gmra.mxu0 %vm11180_vm0, %v139_v4  ;;  %3219 = vadd.xlane.f32.xlu0 %v3218_v41  ;;  %v8024_v28 = vpop.f32.mrf.mxu2  ;;  %5880 = vtanh.f32 %v2173_v3 }
 0x1bb   :  { %5486 = vmatmul.msk.f32.gmra.mxu1 %vm11180_vm0, %v201_v52  ;;  %v7992_v4 = vpop.xlane.xlu2 %2955  ;;  %v2556_v52 = vmul.f32 %v7879_v31, %v5867_v51  ;;  %v336_v51 = vld [vmem:[%s11152_s1 + $0x7c8] sm:$0xff]  ;;  %v8015_v41 = vpop.f32.mrf.mxu3 }
 0x1bc   :  { %5620 = vmatmul.msk.f32.gmra.mxu3 %vm11180_vm0, %v335_v22  ;;  %3384 = vadd.xlane.f32.xlu1 %v3383_v12  ;;  %11254 = vst [vmem:[#allocation80_spill] sm:$0xff] %v7992_v4  ;;  %v2492_v12 = vmul.f32 %v7879_v31, %v5869_v60  ;;  %v2491_v22 = vmul.f32 %v7879_v31, %v5871_v29  ;;  %v5873_v60 = vpop.eup %5872 }
 0x1bd   :  { %v8004_v46 = vpop.xlane.xlu0 %2760  ;;  %v2990_v4 = vsel %vm11180_vm0, %v2556_v52, 0.0  ;;  %v2172_v29 = vadd.f32 %v7187_v48, %v7765_v19  ;;  %v5875_v38 = vpop.eup %5874  ;;  %v2637_v19 = vmul.f32 %v7879_v31, %v5873_v60 }
 0x1be   :  { %11255 = vst [vmem:[#allocation81_spill] sm:$0xff] %v8004_v46  ;;  %v2798_v17 = vsel %vm11180_vm0, %v2492_v12, 0.0  ;;  %v2795_v8 = vsel %vm11180_vm0, %v2491_v22, 0.0  ;;  %v5877_v52 = vpop.eup %5876  ;;  %v141_v12 = vld [vmem:[%s11152_s1 + $0x1b0] sm:$0xff]  ;;  %v2555_v22 = vmul.f32 %v7879_v31, %v5875_v38 }
 0x1bf   :  { %v7995_v61 = vpop.xlane.xlu1 %2772  ;;  %5882 = vtanh.f32 %v2172_v29  ;;  %v2120_v29 = vadd.f32 %v7444_v15, %v7872_v33  ;;  %v5879_v38 = vpop.eup %5878 }
 0x1c0   :  { %v8008_v1 = vpop.f32.mrf.mxu1 }
 0x1c1   :  { %2991 = vadd.xlane.f32.xlu2 %v2990_v4  ;;  %v8033_v4 = vperm.slane %v1917_v37, 0  ;;  %v337_v37 = vld [vmem:[%s11152_s1 + $0x7d0] sm:$0xff] }
 0x1c2   :  { %5425 = vmatmul.msk.f32.gmra.mxu0 %vm11180_vm0, %v140_v20  ;;  %2796 = vadd.xlane.f32.xlu0 %v2795_v8  ;;  %v8028_v20 = vpop.f32.mrf.mxu0  ;;  %v3233_v8 = vsel %vm11180_vm0, %v2637_v19, 0.0 }
 0x1c3   :  { %5487 = vmatmul.msk.f32.gmra.mxu1 %vm11180_vm0, %v202_v21  ;;  %v8030_v32 = vpop.xlane.xlu2 %3357  ;;  %11257 = vst [vmem:[#allocation83_spill] sm:$0xff] %v8033_v4  ;;  %v2176_v3 = vadd.f32 %v8033_v4, %v7967_v39  ;;  %v2987_v39 = vsel %vm11180_vm0, %v2555_v22, 0.0 }
 0x1c4   :  { %5621 = vmatmul.msk.f32.gmra.mxu3 %vm11180_vm0, %v336_v51  ;;  %2799 = vadd.xlane.f32.xlu1 %v2798_v17  ;;  %11256 = vst [vmem:[#allocation82_spill] sm:$0xff] %v8030_v32  ;;  %v203_v17 = vld [vmem:[%s11152_s1 + $0x3a0] sm:$0xff]  ;;  %v2554_v51 = vmul.f32 %v7879_v31, %v5877_v52  ;;  %v2119_v52 = vadd.f32 %v7444_v15, %v7829_v10  ;;  %v5881_v32 = vpop.eup %5880 }
 0x1c5   :  { %v8044_v26 = vpop.xlane.xlu0 %2949  ;;  %v5883_v19 = vpop.eup %5882  ;;  %5884 = vtanh.f32 %v2176_v3  ;;  %v2496_v10 = vmul.f32 %v7879_v31, %v5879_v38  ;;  %v2689_v3 = vmul.f32 %v7879_v31, %v5881_v32  ;;  %v2043_v38 = vadd.f32 %v7514_v24, %v7735_v5 }
 0x1c6   :  { %11259 = vst [vmem:[#allocation85_spill] sm:$0xff] %v8044_v26  ;;  %v2984_v33 = vsel %vm11180_vm0, %v2554_v51, 0.0  ;;  %5886 = vtanh.f32 %v2120_v29  ;;  %v204_v51 = vld [vmem:[%s11152_s1 + $0x3a8] sm:$0xff] }
 0x1c7   :  { %v8035_v21 = vpop.xlane.xlu1 %2961  ;;  %5888 = vtanh.f32 %v2119_v52  ;;  %v3389_v26 = vsel %vm11180_vm0, %v2689_v3, 0.0 }
 0x1c8   :  { %11258 = vst [vmem:[#allocation84_spill] sm:$0xff] %v8035_v21  ;;  %v8049_v60 = vpop.f32.mrf.mxu1  ;;  %v8062_v21 = vpop.f32.mrf.mxu3  ;;  %5890 = vtanh.f32 %v2043_v38 }
 0x1c9   :  { %3234 = vadd.xlane.f32.xlu2 %v3233_v8 }
 0x1ca   :  { %5426 = vmatmul.msk.f32.gmra.mxu0 %vm11180_vm0, %v141_v12  ;;  %2985 = vadd.xlane.f32.xlu0 %v2984_v33  ;;  %v8066_v12 = vpop.f32.mrf.mxu2  ;;  %v1229_v29 = vpop.f32.mrf.mxu0  ;;  %v338_v33 = vld [vmem:[%s11152_s1 + $0x7d8] sm:$0xff] }
 0x1cb   :  { %5488 = vmatmul.msk.f32.gmra.mxu1 %vm11180_vm0, %v203_v17  ;;  %v8068_v17 = vpop.xlane.xlu2 %3198  ;;  %v5885_v32 = vpop.eup %5884 }
 0x1cc   :  { %5622 = vmatmul.msk.f32.gmra.mxu3 %vm11180_vm0, %v337_v37  ;;  %2988 = vadd.xlane.f32.xlu1 %v2987_v39  ;;  %11260 = vst [vmem:[#allocation86_spill] sm:$0xff] %v8068_v17  ;;  %v142_v37 = vld [vmem:[%s11152_s1 + $0x1b8] sm:$0xff]  ;;  %v2688_v39 = vmul.f32 %v7879_v31, %v5883_v19  ;;  %v1979_v17 = vadd.f32 %v7323_v35, %v7891_v47  ;;  %v8095_v19 = vld [vmem:[#allocation2] sm:$0xff]  ;;  %v5887_v18 = vpop.eup %5886 }
 0x1cd   :  { %v8080_v8 = vpop.xlane.xlu0 %3351  ;;  %v1906_v5 = vrot.slane %v8095_v19, 2  ;;  %v2692_v59 = vmul.f32 %v7879_v31, %v5885_v32  ;;  %v339_v32 = vld [vmem:[%s11152_s1 + $0x7e0] sm:$0xff] }
 0x1ce   :  { %11262 = vst [vmem:[#allocation88_spill] sm:$0xff] %v8080_v8  ;;  %v1978_v8 = vadd.f32 %v7323_v35, %v7833_v58  ;;  %v3386_v47 = vsel %vm11180_vm0, %v2688_v39, 0.0  ;;  %5892 = vtanh.f32 %v1979_v17  ;;  %v2636_v17 = vmul.f32 %v7879_v31, %v5887_v18 }
 0x1cf   :  { %v8071_v22 = vpop.xlane.xlu1 %3363  ;;  %v8106_v48 = vperm.slane %v1906_v5, 0  ;;  %v2175_v5 = vadd.f32 %v8033_v4, %v7917_v50  ;;  %v3398_v18 = vsel %vm11180_vm0, %v2692_v59, 0.0 }
 0x1d0   :  { %11261 = vst [vmem:[#allocation87_spill] sm:$0xff] %v8071_v22  ;;  %v8085_v52 = vpop.f32.mrf.mxu1  ;;  %v2810_v22 = vsel %vm11180_vm0, %v2496_v10, 0.0  ;;  %v5889_v10 = vpop.eup %5888  ;;  %5894 = vtanh.f32 %v1978_v8 }
 0x1d1   :  { %2811 = vadd.xlane.f32.xlu2 %v2810_v22  ;;  %v143_v22 = vld [vmem:[%s11152_s1 + $0x1c0] sm:$0xff]  ;;  %v2635_v38 = vmul.f32 %v7879_v31, %v5889_v10  ;;  %v1983_v8 = vadd.f32 %v8106_v48, %v1229_v29  ;;  %v5891_v10 = vpop.eup %5890  ;;  %v2041_v29 = vadd.f32 %v7514_v24, %v7653_v7  ;;  %v144_v7 = vld [vmem:[%s11152_s1 + $0x1c8] sm:$0xff] }
 0x1d2   :  { %5427 = vmatmul.msk.f32.gmra.mxu0 %vm11180_vm0, %v142_v37  ;;  %3387 = vadd.xlane.f32.xlu0 %v3386_v47  ;;  %v1817_v37 = vpop.f32.mrf.mxu3  ;;  %v8117_v3 = vpop.f32.mrf.mxu2 }
 0x1d3   :  { %5489 = vmatmul.msk.f32.gmra.mxu1 %vm11180_vm0, %v204_v51  ;;  %v8103_v51 = vpop.xlane.xlu2 %3360  ;;  %v8130_v47 = vpop.f32.mrf.mxu0  ;;  %v3227_v50 = vsel %vm11180_vm0, %v2635_v38, 0.0  ;;  %5896 = vtanh.f32 %v1983_v8 }
 0x1d4   :  { %5623 = vmatmul.msk.f32.gmra.mxu3 %vm11180_vm0, %v338_v33  ;;  %3390 = vadd.xlane.f32.xlu1 %v3389_v26  ;;  %11263 = vst [vmem:[#allocation89_spill] sm:$0xff] %v8103_v51  ;;  %v205_v26 = vld [vmem:[%s11152_s1 + $0x3b0] sm:$0xff]  ;;  %v5893_v51 = vpop.eup %5892  ;;  %5898 = vtanh.f32 %v2175_v5  ;;  %v2179_v5 = vadd.f32 %v8033_v4, %v1817_v37  ;;  %v2122_v37 = vadd.f32 %v7444_v15, %v7980_v40 }
 0x1d5   :  { %v8119_v39 = vpop.xlane.xlu0 %3192  ;;  %5900 = vtanh.f32 %v2041_v29  ;;  %v2042_v29 = vadd.f32 %v7514_v24, %v7695_v44 }
 0x1d6   :  { %11264 = vst [vmem:[#allocation90_spill] sm:$0xff] %v8119_v39  ;;  %v3230_v39 = vsel %vm11180_vm0, %v2636_v17, 0.0  ;;  %v5895_v42 = vpop.eup %5894  ;;  %v206_v17 = vld [vmem:[%s11152_s1 + $0x3b8] sm:$0xff]  ;;  %5902 = vtanh.f32 %v2179_v5 }
 0x1d7   :  { %v8108_v58 = vpop.xlane.xlu1 %3204  ;;  %5904 = vtanh.f32 %v2042_v29  ;;  %v2046_v29 = vadd.f32 %v7514_v24, %v7854_v30  ;;  %v1981_v30 = vadd.f32 %v7323_v35, %v7988_v23 }
 0x1d8   :  { %v8123_v33 = vpop.f32.mrf.mxu1  ;;  %5906 = vtanh.f32 %v2122_v37  ;;  %v2123_v37 = vadd.f32 %v7444_v15, %v8024_v28 }
 0x1d9   :  { %3399 = vadd.xlane.f32.xlu2 %v3398_v18  ;;  %5908 = vtanh.f32 %v2046_v29 }
 0x1da   :  { %5428 = vmatmul.msk.f32.gmra.mxu0 %vm11180_vm0, %v143_v22  ;;  %3228 = vadd.xlane.f32.xlu0 %v3227_v50  ;;  %v2559_v22 = vmul.f32 %v7879_v31, %v5891_v10  ;;  %v8152_v38 = vpop.f32.mrf.mxu3  ;;  %v340_v10 = vld [vmem:[%s11152_s1 + $0x7e8] sm:$0xff]  ;;  %v8165_v50 = vpop.f32.mrf.mxu2  ;;  %5910 = vtanh.f32 %v2123_v37 }
 0x1db   :  { %5490 = vmatmul.msk.f32.gmra.mxu1 %vm11180_vm0, %v205_v26  ;;  %v8140_v59 = vpop.xlane.xlu2 %2775  ;;  %v8173_v2 = vpop.f32.mrf.mxu0  ;;  %5912 = vtanh.f32 %v1981_v30  ;;  %v342_v30 = vld [vmem:[%s11152_s1 + $0x7f8] sm:$0xff] }
 0x1dc   :  { %5624 = vmatmul.msk.f32.gmra.mxu3 %vm11180_vm0, %v339_v32  ;;  %3231 = vadd.xlane.f32.xlu1 %v3230_v39  ;;  %v2495_v39 = vmul.f32 %v7879_v31, %v5893_v51  ;;  %v2494_v32 = vmul.f32 %v7879_v31, %v5895_v42  ;;  %v2999_v51 = vsel %vm11180_vm0, %v2559_v22, 0.0  ;;  %v5897_v42 = vpop.eup %5896 }
 0x1dd   :  { %v8154_v8 = vpop.xlane.xlu0 %3354  ;;  %v5899_v14 = vpop.eup %5898 }
 0x1de   :  { %11265 = vst [vmem:[#allocation91_spill] sm:$0xff] %v8154_v8  ;;  %v2807_v8 = vsel %vm11180_vm0, %v2495_v39, 0.0  ;;  %v2804_v44 = vsel %vm11180_vm0, %v2494_v32, 0.0  ;;  %v5901_v22 = vpop.eup %5900  ;;  %v145_v39 = vld [vmem:[%s11152_s1 + $0x1d0] sm:$0xff]  ;;  %v207_v32 = vld [vmem:[%s11152_s1 + $0x3c0] sm:$0xff] }
 0x1df   :  { %v8143_v26 = vpop.xlane.xlu1 %2781 }
 0x1e0   :  { %v8158_v18 = vpop.f32.mrf.mxu1 }
 0x1e1   :  { %3000 = vadd.xlane.f32.xlu2 %v2999_v51 }
 0x1e2   :  { %5429 = vmatmul.msk.f32.gmra.mxu0 %vm11180_vm0, %v144_v7  ;;  %2805 = vadd.xlane.f32.xlu0 %v2804_v44  ;;  %v8201_v44 = vpop.f32.mrf.mxu3  ;;  %v8209_v46 = vpop.f32.mrf.mxu2 }
 0x1e3   :  { %5491 = vmatmul.msk.f32.gmra.mxu1 %vm11180_vm0, %v206_v17  ;;  %v8177_v7 = vpop.xlane.xlu2 %2964  ;;  %v2499_v17 = vmul.f32 %v7879_v31, %v5897_v42  ;;  %v341_v42 = vld [vmem:[%s11152_s1 + $0x7f0] sm:$0xff] }
 0x1e4   :  { %5625 = vmatmul.msk.f32.gmra.mxu3 %vm11180_vm0, %v340_v10  ;;  %2808 = vadd.xlane.f32.xlu1 %v2807_v8  ;;  %v2691_v8 = vmul.f32 %v7879_v31, %v5899_v14  ;;  %v2557_v10 = vmul.f32 %v7879_v31, %v5901_v22  ;;  %v5903_v22 = vpop.eup %5902 }
 0x1e5   :  { %v8189_v5 = vpop.xlane.xlu0 %2769  ;;  %v2819_v14 = vsel %vm11180_vm0, %v2499_v17, 0.0  ;;  %v5905_v43 = vpop.eup %5904  ;;  %v2695_v23 = vmul.f32 %v7879_v31, %v5903_v22 }
 0x1e6   :  { %11266 = vst [vmem:[#allocation92_spill] sm:$0xff] %v8189_v5  ;;  %v3395_v5 = vsel %vm11180_vm0, %v2691_v8, 0.0  ;;  %v2993_v28 = vsel %vm11180_vm0, %v2557_v10, 0.0  ;;  %v5907_v17 = vpop.eup %5906  ;;  %v146_v8 = vld [vmem:[%s11152_s1 + $0x1d8] sm:$0xff]  ;;  %v2558_v10 = vmul.f32 %v7879_v31, %v5905_v43 }
 0x1e7   :  { %v8180_v40 = vpop.xlane.xlu1 %2970  ;;  %v5909_v43 = vpop.eup %5908 }
 0x1e8   :  { %v8194_v51 = vpop.f32.mrf.mxu1  ;;  %v2996_v0 = vsel %vm11180_vm0, %v2558_v10, 0.0  ;;  %v5911_v63 = vpop.eup %5910  ;;  %v209_v10 = vld [vmem:[%s11152_s1 + $0x3d0] sm:$0xff] }
 0x1e9   :  { %2820 = vadd.xlane.f32.xlu2 %v2819_v14 }
 0x1ea   :  { %5430 = vmatmul.msk.f32.gmra.mxu0 %vm11180_vm0, %v145_v39  ;;  %2994 = vadd.xlane.f32.xlu0 %v2993_v28  ;;  %v1238_v39 = vpop.f32.mrf.mxu0  ;;  %v1982_v28 = vadd.f32 %v7323_v35, %v8028_v20  ;;  %v1826_v55 = vpop.f32.mrf.mxu3 }
 0x1eb   :  { %5492 = vmatmul.msk.f32.gmra.mxu1 %vm11180_vm0, %v207_v32  ;;  %v8213_v32 = vpop.xlane.xlu2 %3207  ;;  %v1986_v37 = vadd.f32 %v8106_v48, %v1238_v39  ;;  %v2177_v39 = vadd.f32 %v8033_v4, %v8015_v41  ;;  %v5913_v20 = vpop.eup %5912 }
 0x1ec   :  { %5626 = vmatmul.msk.f32.gmra.mxu3 %vm11180_vm0, %v341_v42  ;;  %3396 = vadd.xlane.f32.xlu1 %v3395_v5  ;;  %v208_v5 = vld [vmem:[%s11152_s1 + $0x3c8] sm:$0xff]  ;;  %v2638_v42 = vmul.f32 %v7879_v31, %v5907_v17 }
 0x1ed   :  { %v8225_v29 = vpop.xlane.xlu0 %2958  ;;  %5914 = vtanh.f32 %v1986_v37 }
 0x1ee   :  { %11268 = vst [vmem:[#allocation94_spill] sm:$0xff] %v8225_v29  ;;  %v6185_v29 = vld [vmem:[#allocation2 + $0x8] sm:$0xff]  ;;  %v3236_v35 = vsel %vm11180_vm0, %v2638_v42, 0.0  ;;  %5916 = vtanh.f32 %v1982_v28  ;;  %v2497_v42 = vmul.f32 %v7879_v31, %v5913_v20  ;;  %v2124_v28 = vadd.f32 %v7444_v15, %v8066_v12 }
 0x1ef   :  { %v8216_v14 = vpop.xlane.xlu1 %3372  ;;  %v1914_v17 = vrot.slane %v6185_v29, 3  ;;  %5918 = vtanh.f32 %v2177_v39  ;;  %v2044_v39 = vadd.f32 %v7514_v24, %v7775_v25  ;;  %v210_v25 = vld [vmem:[%s11152_s1 + $0x3d8] sm:$0xff] }
 0x1f0   :  { %11267 = vst [vmem:[#allocation93_spill] sm:$0xff] %v8216_v14  ;;  %v8229_v22 = vpop.f32.mrf.mxu1  ;;  %v3407_v14 = vsel %vm11180_vm0, %v2695_v23, 0.0  ;;  %v1664_v23 = vpop.f32.mrf.mxu2  ;;  %v2813_v20 = vsel %vm11180_vm0, %v2497_v42, 0.0 }
 0x1f1   :  { %11269 = vst [vmem:[#allocation95_spill] sm:$0xff] %v8229_v22  ;;  %3408 = vadd.xlane.f32.xlu2 %v3407_v14  ;;  %v8247_v41 = vperm.slane %v1914_v17, 0 }
 0x1f2   :  { %5431 = vmatmul.msk.f32.gmra.mxu0 %vm11180_vm0, %v146_v8  ;;  %3237 = vadd.xlane.f32.xlu0 %v3236_v35 }
 0x1f3   :  { %5493 = vmatmul.msk.f32.gmra.mxu1 %vm11180_vm0, %v208_v5  ;;  %v8244_v8 = vpop.xlane.xlu2 %3369  ;;  %v2562_v5 = vmul.f32 %v7879_v31, %v5909_v43  ;;  %11271 = vst [vmem:[#allocation97_spill] sm:$0xff] %v8247_v41  ;;  %v2128_v37 = vadd.f32 %v8247_v41, %v1664_v23  ;;  %v5915_v17 = vpop.eup %5914 }
 0x1f4   :  { %5627 = vmatmul.msk.f32.gmra.mxu3 %vm11180_vm0, %v342_v30  ;;  %2997 = vadd.xlane.f32.xlu1 %v2996_v0  ;;  %11270 = vst [vmem:[#allocation96_spill] sm:$0xff] %v8244_v8  ;;  %v2639_v0 = vmul.f32 %v7879_v31, %v5911_v63  ;;  %v5917_v35 = vpop.eup %5916 }
 0x1f5   :  { %v8255_v29 = vpop.xlane.xlu0 %3201  ;;  %v3008_v43 = vsel %vm11180_vm0, %v2562_v5, 0.0  ;;  %v5919_v23 = vpop.eup %5918  ;;  %5920 = vtanh.f32 %v2128_v37  ;;  %v2502_v5 = vmul.f32 %v7879_v31, %v5915_v17  ;;  %v2182_v37 = vadd.f32 %v8033_v4, %v1826_v55 }
 0x1f6   :  { %11272 = vst [vmem:[#allocation98_spill] sm:$0xff] %v8255_v29  ;;  %v3239_v63 = vsel %vm11180_vm0, %v2639_v0, 0.0  ;;  %5922 = vtanh.f32 %v2124_v28  ;;  %v2498_v0 = vmul.f32 %v7879_v31, %v5917_v35  ;;  %v2693_v42 = vmul.f32 %v7879_v31, %v5919_v23 }
 0x1f7   :  { %v8249_v14 = vpop.xlane.xlu1 %3213  ;;  %5924 = vtanh.f32 %v2044_v39  ;;  %v2045_v17 = vadd.f32 %v7514_v24, %v7813_v56  ;;  %v2828_v39 = vsel %vm11180_vm0, %v2502_v5, 0.0  ;;  %v2178_v35 = vadd.f32 %v8033_v4, %v8062_v21  ;;  %v8293_v24 = vpop.f32.mrf.mxu0 }
 0x1f8   :  { %v8259_v30 = vpop.f32.mrf.mxu1  ;;  %v2816_v23 = vsel %vm11180_vm0, %v2498_v0, 0.0  ;;  %v3401_v55 = vsel %vm11180_vm0, %v2693_v42, 0.0  ;;  %5926 = vtanh.f32 %v2182_v37 }
 0x1f9   :  { %11273 = vst [vmem:[#allocation99_spill] sm:$0xff] %v8259_v30  ;;  %3009 = vadd.xlane.f32.xlu2 %v3008_v43  ;;  %5928 = vtanh.f32 %v2045_v17 }
 0x1fa   :  { %2814 = vadd.xlane.f32.xlu0 %v2813_v20  ;;  %v1910_v20 = vrot.slane %v8095_v19, 6  ;;  %5930 = vtanh.f32 %v2178_v35 }
 0x1fb   :  { %5494 = vmatmul.msk.f32.gmra.mxu1 %vm11180_vm0, %v209_v10 }
 0x1fc   :  { %3240 = vadd.xlane.f32.xlu1 %v3239_v63  ;;  %v8269_v12 = vpop.xlane.xlu2 %2784  ;;  %v5921_v63 = vpop.eup %5920  ;;  %v8298_v5 = vperm.slane %v1910_v20, 0 }
 0x1fd   :  { %v8278_v43 = vpop.xlane.xlu0 %2778  ;;  %v2644_v19 = vmul.f32 %v7879_v31, %v5921_v63  ;;  %v2125_v63 = vadd.f32 %v7444_v15, %v8117_v3 }
 0x1fe   :  { %11276 = vst [vmem:[#allocation102_spill] sm:$0xff] %v8298_v5  ;;  %v2049_v17 = vadd.f32 %v8298_v5, %v7973_v16 }
 0x1ff   :  { %v8272_v10 = vpop.xlane.xlu1 %3375  ;;  %v3254_v20 = vsel %vm11180_vm0, %v2644_v19, 0.0 }
 0x200   :  { %11274 = vst [vmem:[#allocation100_spill] sm:$0xff] %v8272_v10  ;;  %v8282_v28 = vpop.f32.mrf.mxu1  ;;  %v5923_v10 = vpop.eup %5922  ;;  %5932 = vtanh.f32 %v2049_v17 }
 0x201   :  { %11275 = vst [vmem:[#allocation101_spill] sm:$0xff] %v8282_v28  ;;  %2829 = vadd.xlane.f32.xlu2 %v2828_v39  ;;  %v5925_v29 = vpop.eup %5924  ;;  %v2640_v0 = vmul.f32 %v7879_v31, %v5923_v10  ;;  %v1984_v10 = vadd.f32 %v8106_v48, %v8130_v47  ;;  %5934 = vtanh.f32 %v2125_v63  ;;  %v212_v47 = vld [vmem:[%s11152_s1 + $0x3e8] sm:$0xff]  ;;  %v8335_v63 = vpop.f32.mrf.mxu2 }
 0x202   :  { %3402 = vadd.xlane.f32.xlu0 %v3401_v55  ;;  %v2560_v37 = vmul.f32 %v7879_v31, %v5925_v29  ;;  %v5927_v35 = vpop.eup %5926  ;;  %v1829_v55 = vpop.f32.mrf.mxu3  ;;  %v2129_v36 = vadd.f32 %v8247_v41, %v8335_v63 }
 0x203   :  { %5495 = vmatmul.msk.f32.gmra.mxu1 %vm11180_vm0, %v210_v25  ;;  %v211_v25 = vld [vmem:[%s11152_s1 + $0x3e0] sm:$0xff]  ;;  %v5929_v29 = vpop.eup %5928  ;;  %v2698_v19 = vmul.f32 %v7879_v31, %v5927_v35  ;;  %5936 = vtanh.f32 %v1984_v10  ;;  %v2180_v10 = vadd.f32 %v8033_v4, %v8152_v38 }
 0x204   :  { %2817 = vadd.xlane.f32.xlu1 %v2816_v23  ;;  %v8295_v56 = vpop.xlane.xlu2 %2973  ;;  %v3242_v23 = vsel %vm11180_vm0, %v2640_v0, 0.0  ;;  %v3002_v16 = vsel %vm11180_vm0, %v2560_v37, 0.0  ;;  %v5931_v8 = vpop.eup %5930  ;;  %v2561_v0 = vmul.f32 %v7879_v31, %v5929_v29 }
 0x205   :  { %v8306_v42 = vpop.xlane.xlu0 %3366  ;;  %v2694_v17 = vmul.f32 %v7879_v31, %v5931_v8 }
 0x206   :  { %11277 = vst [vmem:[#allocation103_spill] sm:$0xff] %v8306_v42  ;;  %v5933_v29 = vpop.eup %5932  ;;  %v3005_v8 = vsel %vm11180_vm0, %v2561_v0, 0.0 }
 0x207   :  { %v8300_v21 = vpop.xlane.xlu1 %2790  ;;  %v5935_v42 = vpop.eup %5934  ;;  %v3404_v62 = vsel %vm11180_vm0, %v2694_v17, 0.0 }
 0x208   :  { %v8311_v39 = vpop.f32.mrf.mxu1  ;;  %v2641_v0 = vmul.f32 %v7879_v31, %v5935_v42  ;;  %v2181_v42 = vadd.f32 %v8033_v4, %v8201_v44  ;;  %v214_v44 = vld [vmem:[%s11152_s1 + $0x3f8] sm:$0xff] }
 0x209   :  { %11278 = vst [vmem:[#allocation104_spill] sm:$0xff] %v8311_v39  ;;  %3255 = vadd.xlane.f32.xlu2 %v3254_v20  ;;  %v8330_v20 = vpop.f32.mrf.mxu0  ;;  %v8369_v13 = vpop.f32.mrf.mxu2 }
 0x20a   :  { %3003 = vadd.xlane.f32.xlu0 %v3002_v16  ;;  %v3416_v16 = vsel %vm11180_vm0, %v2698_v19, 0.0  ;;  %v1832_v38 = vpop.f32.mrf.mxu3  ;;  %v2565_v19 = vmul.f32 %v7879_v31, %v5933_v29 }
 0x20b   :  { %5496 = vmatmul.msk.f32.gmra.mxu1 %vm11180_vm0, %v211_v25 }
 0x20c   :  { %3243 = vadd.xlane.f32.xlu1 %v3242_v23  ;;  %v8321_v3 = vpop.xlane.xlu2 %3216  ;;  %v2183_v23 = vadd.f32 %v8033_v4, %v1829_v55  ;;  %v5937_v55 = vpop.eup %5936  ;;  %v3017_v29 = vsel %vm11180_vm0, %v2565_v19, 0.0 }
 0x20d   :  { %v8332_v37 = vpop.xlane.xlu0 %2967 }
 0x20e   :  { %5938 = vtanh.f32 %v2183_v23  ;;  %v2500_v23 = vmul.f32 %v7879_v31, %v5937_v55  ;;  %v3245_v55 = vsel %vm11180_vm0, %v2641_v0, 0.0 }
 0x20f   :  { %v8324_v25 = vpop.xlane.xlu1 %3378  ;;  %5940 = vtanh.f32 %v2180_v10 }
 0x210   :  { %11279 = vst [vmem:[#allocation105_spill] sm:$0xff] %v8324_v25  ;;  %v8338_v35 = vpop.f32.mrf.mxu1  ;;  %v2047_v25 = vadd.f32 %v8298_v5, %v7901_v54  ;;  %v213_v54 = vld [vmem:[%s11152_s1 + $0x3f0] sm:$0xff]  ;;  %v2822_v9 = vsel %vm11180_vm0, %v2500_v23, 0.0 }
 0x211   :  { %11280 = vst [vmem:[#allocation106_spill] sm:$0xff] %v8338_v35  ;;  %3417 = vadd.xlane.f32.xlu2 %v3416_v16  ;;  %v2126_v16 = vadd.f32 %v7444_v15, %v8165_v50 }
 0x212   :  { %3405 = vadd.xlane.f32.xlu0 %v3404_v62  ;;  %5942 = vtanh.f32 %v2047_v25  ;;  %v2184_v62 = vadd.f32 %v8033_v4, %v1832_v38  ;;  %v1247_v25 = vpop.f32.mrf.mxu0 }
 0x213   :  { %5497 = vmatmul.msk.f32.gmra.mxu1 %vm11180_vm0, %v212_v47 }
 0x214   :  { %3006 = vadd.xlane.f32.xlu1 %v3005_v8  ;;  %v8348_v11 = vpop.xlane.xlu2 %2793  ;;  %v5939_v8 = vpop.eup %5938  ;;  %5944 = vtanh.f32 %v2184_v62 }
 0x215   :  { %v8357_v17 = vpop.xlane.xlu0 %3210  ;;  %v5941_v38 = vpop.eup %5940  ;;  %5946 = vtanh.f32 %v2126_v16  ;;  %v2699_v50 = vmul.f32 %v7879_v31, %v5939_v8  ;;  %v1985_v16 = vadd.f32 %v8106_v48, %v8173_v2 }
 0x216   :  { %5948 = vtanh.f32 %v2181_v42  ;;  %v1987_v42 = vadd.f32 %v8106_v48, %v8293_v24  ;;  %v8398_v2 = vpop.f32.mrf.mxu2 }
 0x217   :  { %v8351_v47 = vpop.xlane.xlu1 %2979 }
 0x218   :  { %v8361_v10 = vpop.f32.mrf.mxu1  ;;  %v5943_v6 = vpop.eup %5942 }
 0x219   :  { %11281 = vst [vmem:[#allocation107_spill] sm:$0xff] %v8361_v10  ;;  %3018 = vadd.xlane.f32.xlu2 %v3017_v29  ;;  %v2563_v23 = vmul.f32 %v7879_v31, %v5943_v6  ;;  %v3419_v29 = vsel %vm11180_vm0, %v2699_v50, 0.0  ;;  %v1835_v50 = vpop.f32.mrf.mxu3 }
 0x21a   :  { %2823 = vadd.xlane.f32.xlu0 %v2822_v9  ;;  %v1989_v9 = vadd.f32 %v8106_v48, %v1247_v25  ;;  %v5945_v8 = vpop.eup %5944  ;;  %v8395_v6 = vpop.f32.mrf.mxu0 }
 0x21b   :  { %5498 = vmatmul.msk.f32.gmra.mxu1 %vm11180_vm0, %v213_v54  ;;  %v2696_v54 = vmul.f32 %v7879_v31, %v5941_v38  ;;  %v5947_v38 = vpop.eup %5946  ;;  %v3011_v25 = vsel %vm11180_vm0, %v2563_v23, 0.0  ;;  %v2700_v24 = vmul.f32 %v7879_v31, %v5945_v8  ;;  %v2127_v8 = vadd.f32 %v8247_v41, %v8209_v46 }
 0x21c   :  { %3246 = vadd.xlane.f32.xlu1 %v3245_v55  ;;  %v8373_v15 = vpop.xlane.xlu2 %2982  ;;  %5950 = vtanh.f32 %v1989_v9  ;;  %v2642_v23 = vmul.f32 %v7879_v31, %v5947_v38 }
 0x21d   :  { %v8382_v0 = vpop.xlane.xlu0 %2787  ;;  %v3410_v55 = vsel %vm11180_vm0, %v2696_v54, 0.0  ;;  %5952 = vtanh.f32 %v1985_v16  ;;  %v215_v54 = vld [vmem:[%s11152_s1 + $0x400] sm:$0xff]  ;;  %v2185_v16 = vadd.f32 %v8033_v4, %v1835_v50 }
 0x21e   :  { %5954 = vtanh.f32 %v1987_v42  ;;  %v3422_v42 = vsel %vm11180_vm0, %v2700_v24, 0.0  ;;  %v3248_v38 = vsel %vm11180_vm0, %v2642_v23, 0.0  ;;  %v1676_v53 = vpop.f32.mrf.mxu2  ;;  %v216_v23 = vld [vmem:[%s11152_s1 + $0x408] sm:$0xff] }
 0x21f   :  { %v8376_v19 = vpop.xlane.xlu1 %3381  ;;  %5956 = vtanh.f32 %v2185_v16 }
 0x220   :  { %11282 = vst [vmem:[#allocation108_spill] sm:$0xff] %v8376_v19  ;;  %v8386_v62 = vpop.f32.mrf.mxu1  ;;  %v5949_v19 = vpop.eup %5948  ;;  %5958 = vtanh.f32 %v2127_v8 }
 0x221   :  { %11283 = vst [vmem:[#allocation109_spill] sm:$0xff] %v8386_v62  ;;  %3420 = vadd.xlane.f32.xlu2 %v3419_v29  ;;  %v2697_v9 = vmul.f32 %v7879_v31, %v5949_v19  ;;  %5960 = vtanh.f32 %v2129_v36  ;;  %v2048_v36 = vadd.f32 %v8298_v5, %v7939_v45  ;;  %v2051_v62 = vadd.f32 %v8298_v5, %v8049_v60 }
 0x222   :  { %3012 = vadd.xlane.f32.xlu0 %v3011_v25  ;;  %v5951_v57 = vpop.eup %5950  ;;  %v8423_v46 = vpop.f32.mrf.mxu0  ;;  %v2132_v60 = vadd.f32 %v8247_v41, %v1676_v53  ;;  %v2053_v53 = vadd.f32 %v8298_v5, %v8123_v33 }
 0x223   :  { %5499 = vmatmul.msk.f32.gmra.mxu1 %vm11180_vm0, %v214_v44  ;;  %v5953_v34 = vpop.eup %5952  ;;  %v3413_v19 = vsel %vm11180_vm0, %v2697_v9, 0.0 }
 0x224   :  { %3411 = vadd.xlane.f32.xlu1 %v3410_v55  ;;  %v8400_v44 = vpop.xlane.xlu2 %3225  ;;  %v5955_v50 = vpop.eup %5954  ;;  %v2501_v9 = vmul.f32 %v7879_v31, %v5953_v34  ;;  %v2050_v34 = vadd.f32 %v8298_v5, %v8008_v1 }
 0x225   :  { %v8409_v55 = vpop.xlane.xlu0 %2976  ;;  %v2503_v8 = vmul.f32 %v7879_v31, %v5955_v50 }
 0x226   :  { %v2825_v49 = vsel %vm11180_vm0, %v2501_v9, 0.0 }
 0x227   :  { %v8403_v29 = vpop.xlane.xlu1 %3222  ;;  %v2831_v50 = vsel %vm11180_vm0, %v2503_v8, 0.0  ;;  %v1988_v8 = vadd.f32 %v8106_v48, %v8330_v20 }
 0x228   :  { %v8413_v25 = vpop.f32.mrf.mxu1 }
 0x229   :  { %11284 = vst [vmem:[#allocation110_spill] sm:$0xff] %v8413_v25  ;;  %3423 = vadd.xlane.f32.xlu2 %v3422_v42  ;;  %v1838_v42 = vpop.f32.mrf.mxu3  ;;  %v2130_v25 = vadd.f32 %v8247_v41, %v8369_v13 }
 0x22a   :  { %3414 = vadd.xlane.f32.xlu0 %v3413_v19 }
 0x22b   :  { %5500 = vmatmul.msk.f32.gmra.mxu1 %vm11180_vm0, %v215_v54  ;;  %v2505_v54 = vmul.f32 %v7879_v31, %v5951_v57 }
 0x22c   :  { %3249 = vadd.xlane.f32.xlu1 %v3248_v38  ;;  %v8425_v24 = vpop.xlane.xlu2 %2802  ;;  %v2052_v38 = vadd.f32 %v8298_v5, %v8085_v52 }
 0x22d   :  { %11285 = vst [vmem:[#allocation111_spill] sm:$0xff] %v8425_v24  ;;  %v8434_v16 = vpop.xlane.xlu0 %3219  ;;  %v2837_v57 = vsel %vm11180_vm0, %v2505_v54, 0.0  ;;  %v8454_v54 = vld [vmem:[%s11157_s6] ss:$0 sm:$0xff] }
 0x22e   :  { %5962 = vtanh.f32 %v2052_v38  ;;  %v1256_v38 = vpop.f32.mrf.mxu0 }
 0x22f   :  { %v8428_v63 = vpop.xlane.xlu1 %3384  ;;  %5964 = vtanh.f32 %v2048_v36 }
 0x230   :  { %11286 = vst [vmem:[#allocation112_spill] sm:$0xff] %v8428_v63  ;;  %v8439_v19 = vpop.f32.mrf.mxu1  ;;  %v5957_v63 = vpop.eup %5956  ;;  %5966 = vtanh.f32 %v2050_v34 }
 0x231   :  { %11287 = vst [vmem:[#allocation113_spill] sm:$0xff] %v8439_v19  ;;  %2838 = vadd.xlane.f32.xlu2 %v2837_v57  ;;  %v5959_v31 = vpop.eup %5958  ;;  %v2701_v1 = vmul.f32 %v8454_v54, %v5957_v63  ;;  %v1679_v63 = vpop.f32.mrf.mxu2  ;;  %v3749_v19 = vlaneseq  ;;  %5968 = vtanh.f32 %v1988_v8 }
 0x232   :  { %v5961_v52 = vpop.eup %5960  ;;  %2832 = vadd.xlane.f32.xlu0 %v2831_v50  ;;  %v2643_v9 = vmul.f32 %v8454_v54, %v5959_v31  ;;  %v2186_v50 = vadd.f32 %v8033_v4, %v1838_v42  ;;  %v1841_v10 = vpop.f32.mrf.mxu3 }
 0x233   :  { %5501 = vmatmul.msk.f32.gmra.mxu1 %vm11180_vm0, %v216_v23  ;;  %v2645_v57 = vmul.f32 %v8454_v54, %v5961_v52  ;;  %v3425_v31 = vsel %vm11180_vm0, %v2701_v1, 0.0  ;;  %v1990_v1 = vadd.f32 %v8106_v48, %v8395_v6  ;;  %v218_v6 = vld [vmem:[%s11152_s1 + $0x418] sm:$0xff] }
 0x234   :  { %2826 = vadd.xlane.f32.xlu1 %v2825_v49  ;;  %v8449_v45 = vpop.xlane.xlu2 %2991  ;;  %v217_v49 = vld [vmem:[%s11152_s1 + $0x410] sm:$0xff]  ;;  %v5963_v20 = vpop.eup %5962  ;;  %v3251_v52 = vsel %vm11180_vm0, %v2643_v9, 0.0  ;;  %5970 = vtanh.f32 %v2186_v50 }
 0x235   :  { %v8465_v36 = vpop.xlane.xlu0 %2796  ;;  %v5965_v42 = vpop.eup %5964  ;;  %v3257_v35 = vsel %vm11180_vm0, %v2645_v57, 0.0  ;;  %5972 = vtanh.f32 %v2130_v25  ;;  %v2568_v8 = vmul.f32 %v8454_v54, %v5963_v20 }
 0x236   :  { %v5967_v13 = vpop.eup %5966  ;;  %5974 = vtanh.f32 %v2051_v62  ;;  %v8505_v62 = vstv %s11158_s7  ;;  %v8516_v20 = vpop.f32.mrf.mxu0  ;;  %s5337_s7 = sshll.u32 %s6247_s14, 4  ;;  %s5338_s7 = int_to_ptr.vmem [resolvable:$true] %s5337_s7 }
 0x237   :  { %v8457_v23 = vpop.xlane.xlu1 %2799 }
 0x238   :  { %v8469_v34 = vpop.f32.mrf.mxu1 }
 0x239   :  { %11288 = vst [vmem:[#allocation114_spill] sm:$0xff] %v8469_v34  ;;  %3426 = vadd.xlane.f32.xlu2 %v3425_v31  ;;  %v2131_v34 = vadd.f32 %v8247_v41, %v8398_v2  ;;  %v1991_v2 = vadd.f32 %v8106_v48, %v8423_v46  ;;  %v1992_v46 = vadd.f32 %v8106_v48, %v1256_v38  ;;  %v5969_v31 = vpop.eup %5968 }
 0x23a   :  { %3258 = vadd.xlane.f32.xlu0 %v3257_v35  ;;  %v2564_v35 = vmul.f32 %v8454_v54, %v5965_v42  ;;  %v5971_v42 = vpop.eup %5970 }
 0x23b   :  { %5502 = vmatmul.msk.f32.gmra.mxu1 %vm11180_vm0, %v217_v49  ;;  %v8483_v49 = vand.u32 127, %v3749_v19  ;;  %5976 = vtanh.f32 %v2131_v34  ;;  %v2566_v19 = vmul.f32 %v8454_v54, %v5967_v13  ;;  %v5973_v27 = vpop.eup %5972 }
 0x23c   :  { %3252 = vadd.xlane.f32.xlu1 %v3251_v52  ;;  %v8486_v9 = vpop.xlane.xlu2 %3234  ;;  %5978 = vtanh.f32 %v1990_v1  ;;  %v3026_v52 = vsel %vm11180_vm0, %v2568_v8, 0.0  ;;  %v1682_v1 = vpop.f32.mrf.mxu2  ;;  %v2133_v8 = vadd.f32 %v8247_v41, %v1679_v63 }
 0x23d   :  { %11289 = vst [vmem:[#allocation115_spill] sm:$0xff] %v8486_v9  ;;  %v8499_v25 = vpop.xlane.xlu0 %2985  ;;  %v8511_v34 = vadd.s32 4294967200, %v8483_v49  ;;  %v8514_v33 = vadd.s32 4294967280, %v8483_v49  ;;  %5980 = vtanh.f32 %v2132_v60  ;;  %v8521_v13 = vadd.s32 4294967272, %v8483_v49  ;;  %v5975_v30 = vpop.eup %5974 }
 0x23e   :  { %v8524_v38 = vadd.s32 4294967264, %v8483_v49  ;;  %5982 = vtanh.f32 %v1991_v2  ;;  %v8528_v60 = vadd.s32 4294967288, %v8483_v49  ;;  %v3020_v39 = vsel %vm11180_vm0, %v2566_v19, 0.0 }
 0x23f   :  { %v8491_v57 = vpop.xlane.xlu1 %2988  ;;  %11291 = vst [vmem:[#allocation117_spill] sm:$0xff] %v8511_v34  ;;  %5984 = vtanh.f32 %v2053_v53  ;;  %v8533_v28 = vadd.s32 4294967256, %v8483_v49  ;;  %v8536_v2 = vadd.s32 4294967240, %v8483_v49  ;;  %v8540_v53 = vadd.s32 4294967248, %v8483_v49 }
 0x240   :  { %v8508_v50 = vpop.f32.mrf.mxu1  ;;  %5986 = vtanh.f32 %v1992_v46  ;;  %v8543_v63 = vadd.s32 4294967232, %v8483_v49  ;;  %v2134_v19 = vadd.f32 %v8247_v41, %v1682_v1  ;;  %v2702_v34 = vmul.f32 %v8454_v54, %v5971_v42  ;;  %v219_v1 = vld [vmem:[%s11152_s1 + $0x420] sm:$0xff] }
 0x241   :  { %11290 = vst [vmem:[#allocation116_spill] sm:$0xff] %v8508_v50  ;;  %3027 = vadd.xlane.f32.xlu2 %v3026_v52  ;;  %v3014_v50 = vsel %vm11180_vm0, %v2564_v35, 0.0  ;;  %v2187_v35 = vadd.f32 %v8033_v4, %v1841_v10  ;;  %v5977_v52 = vpop.eup %5976  ;;  %v8550_v24 = vadd.s32 4294967224, %v8483_v49  ;;  %v3510_v42 = vadd.f32 %v8505_v62, %v8140_v59 }
 0x242   :  { %3021 = vadd.xlane.f32.xlu0 %v3020_v39  ;;  %v5979_v22 = vpop.eup %5978  ;;  %v3509_v39 = vadd.f32 %v8505_v62, %v7995_v61  ;;  %5988 = vtanh.f32 %v2133_v8  ;;  %v2567_v61 = vmul.f32 %v8454_v54, %v5975_v30  ;;  %v2647_v59 = vmul.f32 %v8454_v54, %v5977_v52 }
 0x243   :  { %5503 = vmatmul.msk.f32.gmra.mxu1 %vm11180_vm0, %v218_v6  ;;  %v1844_v6 = vpop.f32.mrf.mxu3  ;;  %11293 = vst [vmem:[#allocation119_spill] sm:$0xff] %v8550_v24  ;;  %v5981_v41 = vpop.eup %5980  ;;  %v2646_v24 = vmul.f32 %v8454_v54, %v5973_v27  ;;  %5990 = vtanh.f32 %v2187_v35  ;;  %v3428_v27 = vsel %vm11180_vm0, %v2702_v34, 0.0  ;;  %v2506_v30 = vmul.f32 %v8454_v54, %v5979_v22 }
 0x244   :  { %3015 = vadd.xlane.f32.xlu1 %v3014_v50  ;;  %v8546_v50 = vpop.xlane.xlu2 %2811  ;;  %v2188_v10 = vadd.f32 %v8033_v4, %v1844_v6  ;;  %v5983_v6 = vpop.eup %5982  ;;  %v8572_v4 = vadd.f32 %v8505_v62, %v8108_v58  ;;  %5992 = vtanh.f32 %v2134_v19  ;;  %v4072_v58 = vperm.slane %v3509_v39, %v8483_v49 }
 0x245   :  { %11292 = vst [vmem:[#allocation118_spill] sm:$0xff] %v8546_v50  ;;  %v2504_v50 = vmul.f32 %v8454_v54, %v5969_v31  ;;  %v8563_v9 = vpop.xlane.xlu0 %3387  ;;  %v5985_v8 = vpop.eup %5984  ;;  %v8586_v35 = vadd.f32 %v8505_v62, %v8143_v26  ;;  %v3260_v34 = vsel %vm11180_vm0, %v2646_v24, 0.0  ;;  %v3023_v22 = vsel %vm11180_vm0, %v2567_v61, 0.0 }
 0x246   :  { %11295 = vst [vmem:[#allocation121_spill] sm:$0xff] %v8563_v9  ;;  %v8578_v9 = vadd.s32 4294967208, %v8483_v49  ;;  %5994 = vtanh.f32 %v2188_v10  ;;  %v8590_v19 = vpop.f32.mrf.mxu0  ;;  %v2054_v26 = vadd.f32 %v8298_v5, %v8158_v18  ;;  %v2569_v10 = vmul.f32 %v8454_v54, %v5985_v8 }
 0x247   :  { %v8555_v46 = vpop.xlane.xlu1 %3390  ;;  %v2834_v52 = vsel %vm11180_vm0, %v2504_v50, 0.0  ;;  %11299 = vst [vmem:[#allocation125_spill] sm:$0xff] %v8590_v19  ;;  %v8600_v50 = vsel %vm11180_vm0, %v2647_v59, 0.0  ;;  %v3574_v24 = vadd.f32 %v8505_v62, %v8332_v37  ;;  %v3573_v8 = vadd.f32 %v8505_v62, %v8177_v7 }
 0x248   :  { %11294 = vst [vmem:[#allocation120_spill] sm:$0xff] %v8555_v46  ;;  %v8568_v46 = vadd.s32 4294967216, %v8483_v49  ;;  %v8574_v31 = vpop.f32.mrf.mxu1  ;;  %v3511_v37 = vadd.f32 %v8505_v62, %v8278_v43  ;;  %v1993_v59 = vadd.f32 %v8106_v48, %v8516_v20  ;;  %v3655_v7 = vadd.f32 %v8505_v62, %v8357_v17  ;;  %v8639_v20 = vpop.f32.mrf.mxu2 }
 0x249   :  { %11297 = vst [vmem:[#allocation123_spill] sm:$0xff] %v8574_v31  ;;  %3429 = vadd.xlane.f32.xlu2 %v3428_v27  ;;  %v4073_v31 = vperm.slane %v3510_v42, %v8528_v60  ;;  %v2840_v27 = vsel %vm11180_vm0, %v2506_v30, 0.0  ;;  %5996 = vtanh.f32 %v2054_v26  ;;  %v8644_v17 = vsel %vm11180_vm0, %v2569_v10, 0.0 }
 0x24a   :  { %11296 = vst [vmem:[#allocation122_spill] sm:$0xff] %v8568_v46  ;;  %v5987_v46 = vpop.eup %5986  ;;  %3261 = vadd.xlane.f32.xlu0 %v3260_v34  ;;  %v3654_v34 = vadd.f32 %v8505_v62, %v8213_v32  ;;  %5998 = vtanh.f32 %v1993_v59  ;;  %v3513_v59 = vadd.f32 %v8505_v62, %v8269_v12  ;;  %v3514_v12 = vadd.f32 %v8505_v62, %v8382_v0 }
 0x24b   :  { %11298 = vst [vmem:[#allocation124_spill] sm:$0xff] %v8578_v9  ;;  %5504 = vmatmul.msk.f32.gmra.mxu1 %vm11180_vm0, %v219_v1  ;;  %v2648_v1 = vmul.f32 %v8454_v54, %v5981_v41  ;;  %v5989_v42 = vpop.eup %5988  ;;  %v2508_v41 = vmul.f32 %v8454_v54, %v5987_v46  ;;  %v220_v46 = vld [vmem:[%s11152_s1 + $0x428] sm:$0xff]  ;;  %v4074_v30 = vsel %vm4014_vm1, %v4073_v31, %v4072_v58 }
 0x24c   :  { %2835 = vadd.xlane.f32.xlu1 %v2834_v52  ;;  %v8605_v61 = vpop.xlane.xlu2 %3399  ;;  %v2507_v52 = vmul.f32 %v8454_v54, %v5983_v6  ;;  %v5991_v18 = vpop.eup %5990  ;;  %v3575_v9 = vadd.f32 %v8505_v62, %v8180_v40  ;;  %v2055_v31 = vadd.f32 %v8298_v5, %v8194_v51  ;;  %v4196_v51 = vperm.slane %v3573_v8, %v8483_v49 }
 0x24d   :  { %11300 = vst [vmem:[#allocation126_spill] sm:$0xff] %v8605_v61  ;;  %v5993_v6 = vpop.eup %5992  ;;  %v8626_v61 = vpop.f32.mrf.mxu3  ;;  %v8633_v43 = vsel %vm11180_vm0, %v2648_v1, 0.0  ;;  %v2846_v1 = vsel %vm11180_vm0, %v2508_v41, 0.0  ;;  %v2703_v40 = vmul.f32 %v8454_v54, %v5991_v18  ;;  %v4352_v5 = vperm.slane %v3654_v34, %v8528_v60 }
 0x24e   :  { %11301 = vst [vmem:[#allocation127_spill] sm:$0xff] %v8626_v61  ;;  %v8630_v32 = vpop.xlane.xlu0 %3228  ;;  %v5995_v19 = vpop.eup %5994  ;;  %v4197_v61 = vperm.slane %v3574_v24, %v8528_v60  ;;  %v8650_v26 = vsel %vm11180_vm0, %v2507_v52, 0.0  ;;  %v8657_v10 = vmul.f32 %v8454_v54, %v5989_v42  ;;  %v4354_v24 = vperm.slane %v3655_v7, %v8514_v33 }
 0x24f   :  { %v8618_v39 = vpop.xlane.xlu1 %3231  ;;  %v2650_v41 = vmul.f32 %v8454_v54, %v5993_v6  ;;  %v2704_v52 = vmul.f32 %v8454_v54, %v5995_v19  ;;  %v4199_v18 = vperm.slane %v3575_v9, %v8514_v33  ;;  %6000 = vtanh.f32 %v2055_v31  ;;  %v1265_v42 = vpop.f32.mrf.mxu0  ;;  %v221_v6 = vld [vmem:[%s11152_s1 + $0x430] sm:$0xff] }
 0x250   :  { %v8641_v58 = vpop.f32.mrf.mxu1  ;;  %v3656_v8 = vadd.f32 %v8505_v62, %v8249_v14  ;;  %v3577_v34 = vadd.f32 %v8505_v62, %v8409_v55  ;;  %v4198_v19 = vsel %vm4014_vm1, %v4197_v61, %v4196_v51  ;;  %v8675_v9 = vsel %vm11180_vm0, %v2703_v40, 0.0  ;;  %v8677_v14 = vpop.eup %5996 }
 0x251   :  { %11302 = vst [vmem:[#allocation128_spill] sm:$0xff] %v8641_v58  ;;  %v4075_v58 = vperm.slane %v3511_v37, %v8514_v33  ;;  %2847 = vadd.xlane.f32.xlu2 %v2846_v1  ;;  %v11303_v55 = vperm.slane %v8572_v4, %v8483_v49  ;;  %v3657_v7 = vadd.f32 %v8505_v62, %v8321_v3  ;;  %v8700_v0 = vsel %vm11180_vm0, %v2704_v52, 0.0  ;;  %v8710_v40 = vpop.eup %5998 }
 0x252   :  { %2841 = vadd.xlane.f32.xlu0 %v2840_v27  ;;  %v8704_v31 = vadd.f32 %v8106_v48, %v1265_v42  ;;  %v4203_v1 = vperm.slane %v3577_v34, %v8524_v38  ;;  %v8723_v42 = vpop.f32.mrf.mxu2 }
 0x253   :  { %5505 = vmatmul.msk.f32.gmra.mxu1 %vm11180_vm0, %v220_v46  ;;  %v4353_v27 = vsel %vm4014_vm1, %v4352_v5, %v11303_v55  ;;  %v4076_v46 = vsel %vm4018_vm2, %v4075_v58, %v4074_v30  ;;  %v3272_v5 = vsel %vm11180_vm0, %v2650_v41, 0.0  ;;  %v4200_v58 = vsel %vm4018_vm2, %v4199_v18, %v4198_v19 }
 0x254   :  { %3024 = vadd.xlane.f32.xlu1 %v3023_v22  ;;  %v3576_v22 = vadd.f32 %v8505_v62, %v8295_v56  ;;  %v8672_v37 = vpop.xlane.xlu2 %3000  ;;  %v3658_v56 = vadd.f32 %v8505_v62, %v8434_v16  ;;  %v4355_v4 = vsel %vm4018_vm2, %v4354_v24, %v4353_v27  ;;  %v4356_v16 = vperm.slane %v3656_v8, %v8521_v13 }
 0x255   :  { %v8712_v51 = vpop.f32.mrf.mxu3  ;;  %v4079_v24 = vperm.slane %v3513_v59, %v8524_v38  ;;  %v11305_v41 = vperm.slane %v8586_v35, %v8521_v13  ;;  %v3578_v18 = vadd.f32 %v8505_v62, %v8351_v47  ;;  %v6001_v34 = vpop.eup %6000  ;;  %v3515_v19 = vadd.f32 %v8505_v62, %v8300_v21 }
 0x256   :  { %v8697_v30 = vpop.xlane.xlu0 %2805  ;;  %11304 = vst [vmem:[#allocation129_spill] sm:$0xff] %v8712_v51  ;;  %v4201_v8 = vperm.slane %v3576_v22, %v8521_v13  ;;  %v4357_v59 = vsel %vm4022_vm3, %v4356_v16, %v4355_v4  ;;  %v4081_v35 = vperm.slane %v3514_v12, %v8533_v28  ;;  %v4360_v55 = vperm.slane %v3658_v56, %v8533_v28 }
 0x257   :  { %v8688_v61 = vpop.xlane.xlu1 %2808  ;;  %v4078_v52 = vsel %vm4022_vm3, %v11305_v41, %v4076_v46  ;;  %v4358_v22 = vperm.slane %v3657_v7, %v8524_v38  ;;  %v3659_v27 = vadd.f32 %v8505_v62, %v8403_v29  ;;  %v3580_v46 = vadd.f32 %v8505_v62, %v8499_v25 }
 0x258   :  { %v8708_v3 = vpop.f32.mrf.mxu1  ;;  %v4202_v47 = vsel %vm4022_vm3, %v4201_v8, %v4200_v58  ;;  %v3516_v21 = vadd.f32 %v8505_v62, %v8348_v11  ;;  %v3579_v12 = vadd.f32 %v8505_v62, %v8373_v15  ;;  %v4080_v56 = vsel %vm4026_vm4, %v4079_v24, %v4078_v52 }
 0x259   :  { %3273 = vadd.xlane.f32.xlu2 %v3272_v5  ;;  %v4205_v29 = vperm.slane %v3578_v18, %v8533_v28  ;;  %v4359_v7 = vsel %vm4026_vm4, %v4358_v22, %v4357_v59  ;;  %v3517_v25 = vadd.f32 %v8505_v62, %v8465_v36  ;;  %v4082_v15 = vsel %vm4030_vm5, %v4081_v35, %v4080_v56  ;;  %v222_v36 = vld [vmem:[%s11152_s1 + $0x438] sm:$0xff] }
 0x25a   :  { %3267 = vadd.xlane.f32.xlu0 %v8633_v43  ;;  %v3660_v4 = vadd.f32 %v8505_v62, %v8400_v44  ;;  %v4361_v5 = vsel %vm4030_vm5, %v4360_v55, %v4359_v7  ;;  %v3581_v43 = vadd.f32 %v8505_v62, %v8491_v57  ;;  %v4209_v44 = vperm.slane %v3580_v46, %v8536_v2  ;;  %v1691_v56 = vpop.f32.mrf.mxu2 }
 0x25b   :  { %5506 = vmatmul.msk.f32.gmra.mxu1 %vm11180_vm0, %v221_v6  ;;  %v4204_v6 = vsel %vm4026_vm4, %v4203_v1, %v4202_v47  ;;  %v4362_v1 = vperm.slane %v3659_v27, %v8540_v53  ;;  %v4085_v41 = vperm.slane %v3516_v21, %v8536_v2  ;;  %v4207_v57 = vperm.slane %v3579_v12, %v8540_v53 }
 0x25c   :  { %3264 = vadd.xlane.f32.xlu1 %v8600_v50  ;;  %v3661_v50 = vadd.f32 %v8505_v62, %v8630_v32  ;;  %v8750_v11 = vpop.xlane.xlu2 %2820  ;;  %v4083_v32 = vperm.slane %v3515_v19, %v8540_v53  ;;  %v4206_v58 = vsel %vm4030_vm5, %v4205_v29, %v4204_v6  ;;  %v3518_v52 = vadd.f32 %v8505_v62, %v8457_v23  ;;  %v8793_v6 = vpop.f32.mrf.mxu0  ;;  %v11306_v29 = vld [vmem:[#allocation119_spill] sm:$0xff] }
 0x25d   :  { %v3662_v8 = vadd.f32 %v8505_v62, %v8618_v39  ;;  %v4363_v59 = vsel %vm4034_vm6, %v4362_v1, %v4361_v5  ;;  %v4087_v35 = vperm.slane %v3517_v25, %v8543_v63  ;;  %v4364_v22 = vperm.slane %v3660_v4, %v8536_v2  ;;  %v8786_v27 = vpop.f32.mrf.mxu3  ;;  %v11308_v5 = vld [vmem:[#allocation97_spill] sm:$0xff] }
 0x25e   :  { %v2995_v24 = vpop.xlane.xlu0 %2994  ;;  %v4084_v19 = vsel %vm4034_vm6, %v4083_v32, %v4082_v15  ;;  %v4366_v55 = vperm.slane %v3661_v50, %v8543_v63  ;;  %v4208_v23 = vsel %vm4034_vm6, %v4207_v57, %v4206_v58  ;;  %v4211_v39 = vperm.slane %v3581_v43, %v8543_v63  ;;  %v11307_v50 = vld [vmem:[#allocation115_spill] sm:$0xff]  ;;  %v11310_v58 = vld [vmem:[#allocation122_spill] sm:$0xff] }
 0x25f   :  { %v8758_v16 = vpop.xlane.xlu1 %3396  ;;  %v3583_v47 = vadd.f32 %v8505_v62, %v2995_v24  ;;  %6002 = vtanh.f32 %v8704_v31  ;;  %v3582_v46 = vadd.f32 %v8505_v62, %v8449_v45  ;;  %v4210_v21 = vsel %vm11183_vm7, %v4209_v44, %v4208_v23  ;;  %v223_v24 = vld [vmem:[%s11152_s1 + $0x440] sm:$0xff] }
 0x260   :  { %v8773_v18 = vpop.f32.mrf.mxu1  ;;  %v2571_v12 = vmul.f32 %v8454_v54, %v6001_v34  ;;  %v4089_v7 = vperm.slane %v3518_v52, %v11306_v29  ;;  %v4365_v31 = vsel %vm11183_vm7, %v4364_v22, %v4363_v59  ;;  %v4368_v25 = vperm.slane %v3662_v8, %v11306_v29 }
 0x261   :  { %3435 = vadd.xlane.f32.xlu2 %v8700_v0  ;;  %v4086_v0 = vsel %vm11183_vm7, %v4085_v41, %v4084_v19  ;;  %v4367_v34 = vsel %vm4042_vm8, %v4366_v55, %v4365_v31  ;;  %v3520_v15 = vadd.f32 %v8505_v62, %v8697_v30  ;;  %v2135_v43 = vadd.f32 %v11308_v5, %v8639_v20 }
 0x262   :  { %3030 = vadd.xlane.f32.xlu0 %v8644_v17  ;;  %v4088_v45 = vsel %vm4042_vm8, %v4087_v35, %v4086_v0  ;;  %v4212_v17 = vsel %vm4042_vm8, %v4211_v39, %v4210_v21  ;;  %v4215_v1 = vperm.slane %v3583_v47, %v11310_v58  ;;  %v2137_v41 = vadd.f32 %v11308_v5, %v1691_v56  ;;  %v11311_v39 = vld [vmem:[#allocation124_spill] sm:$0xff]  ;;  %v11313_v56 = vld [vmem:[#allocation102_spill] sm:$0xff] }
 0x263   :  { %5507 = vmatmul.msk.f32.gmra.mxu1 %vm11180_vm0, %v222_v36  ;;  %v11309_v36 = vld [vmem:[#allocation111_spill] sm:$0xff]  ;;  %v4213_v30 = vperm.slane %v3582_v46, %v11306_v29  ;;  %v3035_v57 = vsel %vm11180_vm0, %v2571_v12, 0.0  ;;  %v4090_v8 = vsel %vm4046_vm9, %v4089_v7, %v4088_v45  ;;  %v4369_v19 = vsel %vm4046_vm9, %v4368_v25, %v4367_v34  ;;  %v11314_v34 = vld [vmem:[#allocation117_spill] sm:$0xff] }
 0x264   :  { %2844 = vadd.xlane.f32.xlu1 %v8650_v26  ;;  %v3663_v26 = vadd.f32 %v8505_v62, %v11307_v50  ;;  %v8806_v4 = vpop.xlane.xlu2 %3408  ;;  %v3519_v32 = vadd.f32 %v8505_v62, %v11309_v36  ;;  %v3521_v59 = vadd.f32 %v8505_v62, %v8688_v61  ;;  %v4093_v47 = vperm.slane %v3520_v15, %v11311_v39  ;;  %v11312_v12 = vld [vmem:[#allocation95_spill] sm:$0xff] }
 0x265   :  { %v6003_v22 = vpop.eup %6002  ;;  %v4214_v46 = vsel %vm4046_vm9, %v4213_v30, %v4212_v17  ;;  %v2056_v0 = vadd.f32 %v11313_v56, %v11312_v12  ;;  %v3269_v50 = vsel %vm11180_vm0, %v8657_v10, 0.0  ;;  %6004 = vtanh.f32 %v2137_v41  ;;  %v11315_v17 = vld [vmem:[#allocation118_spill] sm:$0xff] }
 0x266   :  { %v3238_v52 = vpop.xlane.xlu0 %3237  ;;  %v4370_v23 = vperm.slane %v3663_v26, %v11310_v58  ;;  %v4091_v61 = vperm.slane %v3519_v32, %v11310_v58  ;;  %v4216_v7 = vsel %vm4050_vm10, %v4215_v1, %v4214_v46  ;;  %v4095_v15 = vperm.slane %v3521_v59, %v11314_v34  ;;  %v1856_v32 = vpop.f32.mrf.mxu3 }
 0x267   :  { %v2998_v44 = vpop.xlane.xlu1 %2997  ;;  %v3664_v35 = vadd.f32 %v8505_v62, %v3238_v52  ;;  %6006 = vtanh.f32 %v2135_v43  ;;  %v3522_v1 = vadd.f32 %v8505_v62, %v11315_v17  ;;  %v2511_v10 = vmul.f32 %v8454_v54, %v6003_v22  ;;  %v224_v43 = vld [vmem:[%s11152_s1 + $0x448] sm:$0xff]  ;;  %v11316_v22 = vld [vmem:[#allocation101_spill] sm:$0xff] }
 0x268   :  { %v3584_v20 = vadd.f32 %v8505_v62, %v2998_v44  ;;  %v8826_v55 = vpop.f32.mrf.mxu1  ;;  %v4371_v25 = vsel %vm4050_vm10, %v4370_v23, %v4369_v19  ;;  %v4092_v26 = vsel %vm4050_vm10, %v4091_v61, %v4090_v8  ;;  %v8855_v30 = vadd.s32 4294967192, %v8483_v49 }
 0x269   :  { %3036 = vadd.xlane.f32.xlu2 %v3035_v57  ;;  %v4372_v31 = vperm.slane %v3664_v35, %v11311_v39  ;;  %v4094_v44 = vsel %vm11179_vm11, %v4093_v47, %v4092_v26  ;;  %6008 = vtanh.f32 %v2056_v0  ;;  %v8857_v57 = vpop.f32.mrf.mxu0  ;;  %v8865_v8 = vadd.s32 4294967184, %v8483_v49 }
 0x26a   :  { %v4217_v21 = vperm.slane %v3584_v20, %v11311_v39  ;;  %3270 = vadd.xlane.f32.xlu0 %v3269_v50  ;;  %v2570_v20 = vmul.f32 %v8454_v54, %v8677_v14  ;;  %v2509_v35 = vmul.f32 %v8454_v54, %v8710_v40  ;;  %v2058_v23 = vadd.f32 %v11313_v56, %v11316_v22  ;;  %v11317_v14 = vld [vmem:[#allocation125_spill] sm:$0xff] }
 0x26b   :  { %5508 = vmatmul.msk.f32.gmra.mxu1 %vm11180_vm0, %v223_v24  ;;  %v4373_v36 = vsel %vm11179_vm11, %v4372_v31, %v4371_v25  ;;  %v4096_v47 = vsel %vm11178_vm12, %v4095_v15, %v4094_v44  ;;  %v1994_v12 = vadd.f32 %v8106_v48, %v11317_v14  ;;  %v4097_v0 = vperm.slane %v3522_v1, %v8855_v30  ;;  %v6005_v40 = vpop.eup %6004 }
 0x26c   :  { %v8840_v45 = vsel %vm11179_vm11, %v4217_v21, %v4216_v7  ;;  %3432 = vadd.xlane.f32.xlu1 %v8675_v9  ;;  %v8851_v24 = vpop.xlane.xlu2 %3009  ;;  %v6187_v9 = vld [vmem:[#allocation2 + $0x8] sm:$0xff]  ;;  %v2855_v61 = vsel %vm11180_vm0, %v2511_v10, 0.0  ;;  %v2136_v31 = vadd.f32 %v11308_v5, %v8723_v42  ;;  %v3032_v50 = vsel %vm11180_vm0, %v2570_v20, 0.0 }
 0x26d   :  { %v1918_v41 = vrot.slane %v6187_v9, 7  ;;  %v6007_v26 = vpop.eup %6006  ;;  %v3717_v15 = vadd.f32 %v8505_v62, %v8758_v16  ;;  %v4098_v17 = vsel %vm4062_vm13, %v4097_v0, %v4096_v47  ;;  %v2849_v44 = vsel %vm11180_vm0, %v2509_v35, 0.0  ;;  %v11318_v9 = vld [vmem:[#allocation126_spill] sm:$0xff] }
 0x26e   :  { %v2815_v19 = vpop.xlane.xlu0 %2814  ;;  %6010 = vtanh.f32 %v2058_v23  ;;  %v2653_v16 = vmul.f32 %v8454_v54, %v6005_v40  ;;  %v8906_v35 = vadd.s32 4294967176, %v8483_v49  ;;  %v8908_v22 = vpop.f32.mrf.mxu3 }
 0x26f   :  { %v3241_v52 = vpop.xlane.xlu1 %3240  ;;  %v3523_v46 = vadd.f32 %v8505_v62, %v2815_v19  ;;  %v6009_v10 = vpop.eup %6008  ;;  %6012 = vtanh.f32 %v1994_v12  ;;  %v8899_v20 = vperm.slane %v1918_v41, 0  ;;  %v225_v19 = vld [vmem:[%s11152_s1 + $0x450] sm:$0xff]  ;;  %v4475_v23 = vperm.slane %v3717_v15, %v8483_v49 }
 0x270   :  { %v3665_v59 = vadd.f32 %v8505_v62, %v3241_v52  ;;  %v8874_v21 = vpop.f32.mrf.mxu1  ;;  %v3718_v52 = vadd.f32 %v8505_v62, %v11318_v9  ;;  %6014 = vtanh.f32 %v2136_v31  ;;  %v2572_v41 = vmul.f32 %v8454_v54, %v6009_v10  ;;  %v1694_v10 = vpop.f32.mrf.mxu2 }
 0x271   :  { %2856 = vadd.xlane.f32.xlu2 %v2855_v61  ;;  %v4099_v25 = vperm.slane %v3523_v46, %v8865_v8  ;;  %v2192_v14 = vadd.f32 %v8899_v20, %v1856_v32  ;;  %v8914_v12 = vpop.f32.mrf.mxu0  ;;  %v1996_v32 = vadd.f32 %v8106_v48, %v8793_v6  ;;  %v3585_v6 = vadd.f32 %v8505_v62, %v8672_v37 }
 0x272   :  { %v4374_v7 = vperm.slane %v3665_v59, %v11314_v34  ;;  %2850 = vadd.xlane.f32.xlu0 %v2849_v44  ;;  %v2651_v59 = vmul.f32 %v8454_v54, %v6007_v26  ;;  %v4476_v31 = vperm.slane %v3718_v52, %v8528_v60 }
 0x273   :  { %5509 = vmatmul.msk.f32.gmra.mxu1 %vm11180_vm0, %v224_v43  ;;  %v4100_v42 = vsel %vm4066_vm14, %v4099_v25, %v4098_v17  ;;  %v3281_v25 = vsel %vm11180_vm0, %v2653_v16, 0.0  ;;  %v3038_v16 = vsel %vm11180_vm0, %v2572_v41, 0.0  ;;  %6016 = vtanh.f32 %v2192_v14 }
 0x274   :  { %v8890_v1 = vsel %vm11178_vm12, %v4374_v7, %v4373_v36  ;;  %3033 = vadd.xlane.f32.xlu1 %v3032_v50  ;;  %v8896_v43 = vpop.xlane.xlu2 %2829  ;;  %v11319_v7 = vld [vmem:[#allocation99_spill] sm:$0xff]  ;;  %v6011_v26 = vpop.eup %6010  ;;  %v3275_v17 = vsel %vm11180_vm0, %v2651_v59, 0.0  ;;  %v4477_v9 = vsel %vm4014_vm1, %v4476_v31, %v4475_v23  ;;  %v2191_v31 = vadd.f32 %v8899_v20, %v8786_v27 }
 0x275   :  { %v2057_v40 = vadd.f32 %v11313_v56, %v11319_v7  ;;  %v6013_v44 = vpop.eup %6012  ;;  %v2574_v23 = vmul.f32 %v8454_v54, %v6011_v26  ;;  %v2138_v7 = vadd.f32 %v11308_v5, %v1694_v10 }
 0x276   :  { %v3403_v47 = vpop.xlane.xlu0 %3402 }
 0x277   :  { %v2818_v36 = vpop.xlane.xlu1 %2817  ;;  %v3719_v0 = vadd.f32 %v8505_v62, %v3403_v47  ;;  %6018 = vtanh.f32 %v2057_v40  ;;  %v226_v47 = vld [vmem:[%s11152_s1 + $0x458] sm:$0xff]  ;;  %v3044_v26 = vsel %vm11180_vm0, %v2574_v23, 0.0 }
 0x278   :  { %v3524_v46 = vadd.f32 %v8505_v62, %v2818_v36  ;;  %v8917_v61 = vpop.f32.mrf.mxu1  ;;  %v6015_v36 = vpop.eup %6014  ;;  %6020 = vtanh.f32 %v1996_v32 }
 0x279   :  { %3282 = vadd.xlane.f32.xlu2 %v3281_v25  ;;  %v4478_v15 = vperm.slane %v3719_v0, %v8514_v33  ;;  %v2652_v0 = vmul.f32 %v8454_v54, %v6015_v36  ;;  %v1862_v25 = vpop.f32.mrf.mxu3  ;;  %v8960_v10 = vpop.f32.mrf.mxu0  ;;  %6022 = vtanh.f32 %v2138_v7 }
 0x27a   :  { %v4101_v50 = vperm.slane %v3524_v46, %v8906_v35  ;;  %3039 = vadd.xlane.f32.xlu0 %v3038_v16  ;;  %v2510_v46 = vmul.f32 %v8454_v54, %v6013_v44  ;;  %6024 = vtanh.f32 %v2191_v31 }
 0x27b   :  { %5510 = vmatmul.msk.f32.gmra.mxu1 %vm11180_vm0, %v225_v19  ;;  %v8935_v19 = vsel %vm4018_vm2, %v4478_v15, %v4477_v9  ;;  %v6017_v15 = vpop.eup %6016  ;;  %v3278_v23 = vsel %vm11180_vm0, %v2652_v0, 0.0  ;;  %v3721_v0 = vadd.f32 %v8505_v62, %v8806_v4  ;;  %v2194_v4 = vadd.f32 %v8899_v20, %v1862_v25 }
 0x27c   :  { %v8931_v52 = vsel %vm4070_vm15, %v4101_v50, %v4100_v42  ;;  %3276 = vadd.xlane.f32.xlu1 %v3275_v17  ;;  %v8939_v59 = vpop.xlane.xlu2 %3255  ;;  %v4219_v50 = vperm.slane %v3585_v6, %v11314_v34  ;;  %v11321_v17 = vld [vmem:[#allocation104_spill] sm:$0xff]  ;;  %v2852_v27 = vsel %vm11180_vm0, %v2510_v46, 0.0  ;;  %v2708_v46 = vmul.f32 %v8454_v54, %v6017_v15 }
 0x27d   :  { %11320 = vst [vmem:[#allocation119_spill] sm:$0xff] %v8931_v52  ;;  %v2059_v44 = vadd.f32 %v11313_v56, %v11321_v17  ;;  %v6019_v16 = vpop.eup %6018 }
 0x27e   :  { %v3004_v41 = vpop.xlane.xlu0 %3003  ;;  %v4220_v36 = vsel %vm11178_vm12, %v4219_v50, %v8840_v45  ;;  %v3588_v45 = vadd.f32 %v8505_v62, %v8851_v24  ;;  %v1997_v24 = vadd.f32 %v8106_v48, %v8857_v57  ;;  %v3446_v17 = vsel %vm11180_vm0, %v2708_v46, 0.0 }
 0x27f   :  { %v3244_v42 = vpop.xlane.xlu1 %3243  ;;  %v3586_v37 = vadd.f32 %v8505_v62, %v3004_v41  ;;  %v1697_v41 = vpop.f32.mrf.mxu2  ;;  %6026 = vtanh.f32 %v2059_v44 }
 0x280   :  { %v3666_v14 = vadd.f32 %v8505_v62, %v3244_v42  ;;  %v8950_v40 = vpop.f32.mrf.mxu1  ;;  %v6021_v42 = vpop.eup %6020 }
 0x281   :  { %3045 = vadd.xlane.f32.xlu2 %v3044_v26  ;;  %v4221_v9 = vperm.slane %v3586_v37, %v8855_v30  ;;  %v2573_v37 = vmul.f32 %v8454_v54, %v6019_v16  ;;  %v2512_v31 = vmul.f32 %v8454_v54, %v6021_v42  ;;  %v2139_v26 = vadd.f32 %v11308_v5, %v1697_v41  ;;  %v8994_v42 = vpop.f32.mrf.mxu3  ;;  %v8999_v25 = vpop.f32.mrf.mxu0 }
 0x282   :  { %v4376_v32 = vperm.slane %v3666_v14, %v8855_v30  ;;  %3279 = vadd.xlane.f32.xlu0 %v3278_v23  ;;  %v4482_v41 = vperm.slane %v3721_v0, %v8524_v38 }
 0x283   :  { %5511 = vmatmul.msk.f32.gmra.mxu1 %vm11180_vm0, %v226_v47  ;;  %v4222_v47 = vsel %vm4062_vm13, %v4221_v9, %v4220_v36  ;;  %v6023_v9 = vpop.eup %6022  ;;  %v3041_v36 = vsel %vm11180_vm0, %v2573_v37, 0.0  ;;  %v2858_v46 = vsel %vm11180_vm0, %v2512_v31, 0.0  ;;  %6028 = vtanh.f32 %v2139_v26 }
 0x284   :  { %v8968_v6 = vsel %vm4062_vm13, %v4376_v32, %v8890_v1  ;;  %2853 = vadd.xlane.f32.xlu1 %v2852_v27  ;;  %v8972_v14 = vpop.xlane.xlu2 %3417  ;;  %v4225_v27 = vperm.slane %v3588_v45, %v8906_v35  ;;  %v6025_v23 = vpop.eup %6024  ;;  %6030 = vtanh.f32 %v1997_v24  ;;  %v2654_v0 = vmul.f32 %v8454_v54, %v6023_v9 }
 0x285   :  { %6032 = vtanh.f32 %v2194_v4  ;;  %v2707_v31 = vmul.f32 %v8454_v54, %v6025_v23  ;;  %v2193_v24 = vadd.f32 %v8899_v20, %v8908_v22 }
 0x286   :  { %v3406_v7 = vpop.xlane.xlu0 %3405 }
 0x287   :  { %v3007_v1 = vpop.xlane.xlu1 %3006  ;;  %v3720_v32 = vadd.f32 %v8505_v62, %v3406_v7  ;;  %v3443_v23 = vsel %vm11180_vm0, %v2707_v31, 0.0 }
 0x288   :  { %v3587_v50 = vadd.f32 %v8505_v62, %v3007_v1  ;;  %v8984_v15 = vpop.f32.mrf.mxu1  ;;  %v6027_v1 = vpop.eup %6026 }
 0x289   :  { %3447 = vadd.xlane.f32.xlu2 %v3446_v17  ;;  %v4480_v16 = vperm.slane %v3720_v32, %v8521_v13  ;;  %v1998_v17 = vadd.f32 %v8106_v48, %v8914_v12  ;;  %v6029_v4 = vpop.eup %6028 }
 0x28a   :  { %v4223_v44 = vperm.slane %v3587_v50, %v8865_v8  ;;  %2859 = vadd.xlane.f32.xlu0 %v2858_v46  ;;  %v9031_v46 = vpop.f32.mrf.mxu3 }
 0x28b   :  { %v4481_v45 = vsel %vm4022_vm3, %v4480_v16, %v8935_v19  ;;  %v2575_v19 = vmul.f32 %v8454_v54, %v6027_v1  ;;  %6034 = vtanh.f32 %v1998_v17  ;;  %v2655_v1 = vmul.f32 %v8454_v54, %v6029_v4 }
 0x28c   :  { %v4224_v57 = vsel %vm4066_vm14, %v4223_v44, %v4222_v47  ;;  %3042 = vadd.xlane.f32.xlu1 %v3041_v36  ;;  %v9006_v37 = vpop.xlane.xlu2 %3018  ;;  %v4483_v47 = vsel %vm4026_vm4, %v4482_v41, %v4481_v45  ;;  %v3284_v44 = vsel %vm11180_vm0, %v2654_v0, 0.0  ;;  %v6031_v41 = vpop.eup %6030  ;;  %6036 = vtanh.f32 %v2193_v24 }
 0x28d   :  { %v9004_v7 = vsel %vm4070_vm15, %v4225_v27, %v4224_v57  ;;  %v11323_v27 = vld [vmem:[#allocation13_spill] sm:$0xff]  ;;  %v3047_v22 = vsel %vm11180_vm0, %v2575_v19, 0.0  ;;  %v6033_v12 = vpop.eup %6032  ;;  %v1700_v57 = vpop.f32.mrf.mxu2 }
 0x28e   :  { %11322 = vst [vmem:[#allocation115_spill] sm:$0xff] %v9004_v7  ;;  %v9011_v26 = vpop.xlane.xlu0 %2823  ;;  %v1999_v16 = vadd.f32 %v11323_v27, %v8960_v10  ;;  %v9034_v45 = vpop.f32.mrf.mxu0  ;;  %v2710_v17 = vmul.f32 %v8454_v54, %v6033_v12  ;;  %v2140_v24 = vadd.f32 %v11308_v5, %v1700_v57 }
 0x28f   :  { %v3247_v50 = vpop.xlane.xlu1 %3246 }
 0x290   :  { %v3667_v32 = vadd.f32 %v8505_v62, %v3247_v50  ;;  %v9023_v36 = vpop.f32.mrf.mxu1  ;;  %6038 = vtanh.f32 %v1999_v16  ;;  %v11324_v50 = vld [vmem:[#allocation106_spill] sm:$0xff]  ;;  %v11325_v16 = vld [vmem:[#allocation109_spill] sm:$0xff] }
 0x291   :  { %3285 = vadd.xlane.f32.xlu2 %v3284_v44  ;;  %v2060_v31 = vadd.f32 %v11313_v56, %v11324_v50  ;;  %v3287_v44 = vsel %vm11180_vm0, %v2655_v1, 0.0  ;;  %v6035_v4 = vpop.eup %6034  ;;  %v9056_v1 = vld [vmem:[%s11157_s6] ss:$0 sm:$0xff] }
 0x292   :  { %v4378_v9 = vperm.slane %v3667_v32, %v8865_v8  ;;  %3048 = vadd.xlane.f32.xlu0 %v3047_v22  ;;  %v6037_v22 = vpop.eup %6036 }
 0x293   :  { %6040 = vtanh.f32 %v2060_v31 }
 0x294   :  { %v9028_v48 = vsel %vm4066_vm14, %v4378_v9, %v8968_v6  ;;  %3444 = vadd.xlane.f32.xlu1 %v3443_v23  ;;  %v3421_v10 = vpop.xlane.xlu2 %3420  ;;  %v2513_v6 = vmul.f32 %v8454_v54, %v6031_v41  ;;  %v2062_v23 = vadd.f32 %v11313_v56, %v11325_v16  ;;  %6042 = vtanh.f32 %v2140_v24 }
 0x295   :  { %v3724_v24 = vadd.f32 %v8505_v62, %v8972_v14  ;;  %v3725_v7 = vadd.f32 %v8505_v62, %v3421_v10  ;;  %v1703_v52 = vpop.f32.mrf.mxu2 }
 0x296   :  { %v9039_v32 = vpop.xlane.xlu0 %3012  ;;  %v2861_v41 = vsel %vm11180_vm0, %v2513_v6, 0.0  ;;  %v6039_v54 = vpop.eup %6038  ;;  %v2514_v6 = vmul.f32 %v9056_v1, %v6035_v4  ;;  %6044 = vtanh.f32 %v2062_v23 }
 0x297   :  { %v3412_v0 = vpop.xlane.xlu1 %3411 }
 0x298   :  { %v3722_v19 = vadd.f32 %v8505_v62, %v3412_v0  ;;  %v3452_v0 = vsel %vm11180_vm0, %v2710_v17, 0.0  ;;  %v9051_v12 = vpop.f32.mrf.mxu1 }
 0x299   :  { %3288 = vadd.xlane.f32.xlu2 %v3287_v44  ;;  %v1871_v44 = vpop.f32.mrf.mxu3  ;;  %v6041_v23 = vpop.eup %6040 }
 0x29a   :  { %v4484_v9 = vperm.slane %v3722_v19, %v8533_v28  ;;  %3453 = vadd.xlane.f32.xlu0 %v3452_v0  ;;  %v11326_v19 = vld [vmem:[#allocation107_spill] sm:$0xff]  ;;  %v1286_v0 = vpop.f32.mrf.mxu0  ;;  %v6043_v51 = vpop.eup %6042 }
 0x29b   :  { %v2061_v17 = vadd.f32 %v11313_v56, %v11326_v19  ;;  %v2864_v19 = vsel %vm11180_vm0, %v2514_v6, 0.0 }
 0x29c   :  { %v4485_v50 = vsel %vm4030_vm5, %v4484_v9, %v4483_v47  ;;  %2862 = vadd.xlane.f32.xlu1 %v2861_v41  ;;  %v3424_v57 = vpop.xlane.xlu2 %3423  ;;  %v2709_v47 = vmul.f32 %v9056_v1, %v6037_v22  ;;  %v2515_v41 = vmul.f32 %v9056_v1, %v6039_v54  ;;  %v2000_v22 = vadd.f32 %v11323_v27, %v8999_v25 }
 0x29d   :  { %v3726_v56 = vadd.f32 %v8505_v62, %v3424_v57  ;;  %v3526_v54 = vadd.f32 %v8505_v62, %v9011_v26  ;;  %6046 = vtanh.f32 %v2061_v17  ;;  %v4488_v25 = vperm.slane %v3724_v24, %v8536_v2 }
 0x29e   :  { %v3415_v9 = vpop.xlane.xlu0 %3414  ;;  %v2867_v6 = vsel %vm11180_vm0, %v2515_v41, 0.0  ;;  %v3525_v26 = vadd.f32 %v8505_v62, %v8750_v11  ;;  %6048 = vtanh.f32 %v2000_v22  ;;  %v2656_v41 = vmul.f32 %v9056_v1, %v6043_v51 }
 0x29f   :  { %v3250_v31 = vpop.xlane.xlu1 %3249  ;;  %v3723_v4 = vadd.f32 %v8505_v62, %v3415_v9  ;;  %v3449_v9 = vsel %vm11180_vm0, %v2709_v47, 0.0  ;;  %v2576_v47 = vmul.f32 %v9056_v1, %v6041_v23  ;;  %v4492_v17 = vperm.slane %v3726_v56, %v11306_v29 }
 0x2a0   :  { %v3668_v16 = vadd.f32 %v8505_v62, %v3250_v31  ;;  %v2197_v31 = vadd.f32 %v8899_v20, %v1871_v44  ;;  %v6045_v44 = vpop.eup %6044  ;;  %v3528_v11 = vadd.f32 %v8505_v62, %v8896_v43  ;;  %v2195_v51 = vadd.f32 %v8899_v20, %v8994_v42 }
 0x2a1   :  { %2865 = vadd.xlane.f32.xlu2 %v2864_v19  ;;  %v4486_v10 = vperm.slane %v3723_v4, %v8540_v53  ;;  %v9097_v19 = vpop.f32.mrf.mxu1 }
 0x2a2   :  { %v4380_v14 = vperm.slane %v3668_v16, %v8906_v35  ;;  %v4490_v16 = vperm.slane %v3725_v7, %v8543_v63  ;;  %2868 = vadd.xlane.f32.xlu0 %v2867_v6  ;;  %6050 = vtanh.f32 %v2197_v31  ;;  %v4104_v7 = vperm.slane %v3526_v54, %v8528_v60 }
 0x2a3   :  { %v4487_v4 = vsel %vm4034_vm6, %v4486_v10, %v4485_v50  ;;  %v2578_v10 = vmul.f32 %v9056_v1, %v6045_v44  ;;  %v4103_v31 = vperm.slane %v3525_v26, %v8483_v49  ;;  %v6047_v54 = vpop.eup %6046  ;;  %v4108_v44 = vperm.slane %v3528_v11, %v8521_v13 }
 0x2a4   :  { %v9081_v57 = vsel %vm4070_vm15, %v4380_v14, %v9028_v48  ;;  %3450 = vadd.xlane.f32.xlu1 %v3449_v9  ;;  %v4489_v48 = vsel %vm11183_vm7, %v4488_v25, %v4487_v4  ;;  %v9091_v24 = vpop.xlane.xlu2 %2838  ;;  %v2196_v9 = vadd.f32 %v8899_v20, %v9031_v46  ;;  %v3290_v25 = vsel %vm11180_vm0, %v2656_v41, 0.0  ;;  %v9112_v4 = vpop.f32.mrf.mxu0 }
 0x2a5   :  { %11327 = vst [vmem:[#allocation97_spill] sm:$0xff] %v9081_v57  ;;  %v4491_v23 = vsel %vm4042_vm8, %v4490_v16, %v4489_v48  ;;  %v2002_v16 = vadd.f32 %v11323_v27, %v1286_v0  ;;  %v4105_v42 = vsel %vm4014_vm1, %v4104_v7, %v4103_v31  ;;  %v3050_v26 = vsel %vm11180_vm0, %v2576_v47, 0.0 }
 0x2a6   :  { %v2833_v22 = vpop.xlane.xlu0 %2832  ;;  %v4493_v14 = vsel %vm4046_vm9, %v4492_v17, %v4491_v23  ;;  %v6049_v17 = vpop.eup %6048  ;;  %v3056_v41 = vsel %vm11180_vm0, %v2578_v10, 0.0  ;;  %6052 = vtanh.f32 %v2195_v51  ;;  %v3670_v11 = vadd.f32 %v8505_v62, %v8939_v59 }
 0x2a7   :  { %v2827_v50 = vpop.xlane.xlu1 %2826  ;;  %v3529_v43 = vadd.f32 %v8505_v62, %v2833_v22  ;;  %v1706_v23 = vpop.f32.mrf.mxu2  ;;  %6054 = vtanh.f32 %v2196_v9  ;;  %v2577_v47 = vmul.f32 %v9056_v1, %v6047_v54  ;;  %v2516_v51 = vmul.f32 %v9056_v1, %v6049_v17 }
 0x2a8   :  { %v3527_v56 = vadd.f32 %v8505_v62, %v2827_v50  ;;  %v6051_v50 = vpop.eup %6050  ;;  %6056 = vtanh.f32 %v2002_v16  ;;  %v2141_v31 = vadd.f32 %v11308_v5, %v1703_v52 }
 0x2a9   :  { %3291 = vadd.xlane.f32.xlu2 %v3290_v25  ;;  %v4110_v48 = vperm.slane %v3529_v43, %v8524_v38  ;;  %v1874_v43 = vpop.f32.mrf.mxu3  ;;  %v2713_v59 = vmul.f32 %v9056_v1, %v6051_v50  ;;  %v9133_v54 = vpop.f32.mrf.mxu1 }
 0x2aa   :  { %v4106_v6 = vperm.slane %v3527_v56, %v8514_v33  ;;  %3057 = vadd.xlane.f32.xlu0 %v3056_v41  ;;  %v2870_v41 = vsel %vm11180_vm0, %v2516_v51, 0.0  ;;  %6058 = vtanh.f32 %v2141_v31 }
 0x2ac   :  { %v4107_v46 = vsel %vm4018_vm2, %v4106_v6, %v4105_v42  ;;  %3051 = vadd.xlane.f32.xlu1 %v3050_v26  ;;  %v3427_v7 = vpop.xlane.xlu2 %3426  ;;  %v2142_v6 = vadd.f32 %v11308_v5, %v1706_v23  ;;  %v4383_v42 = vperm.slane %v3670_v11, %v8528_v60  ;;  %v3053_v26 = vsel %vm11180_vm0, %v2577_v47, 0.0  ;;  %v6053_v17 = vpop.eup %6052 }
 0x2ad   :  { %v4109_v0 = vsel %vm4022_vm3, %v4108_v44, %v4107_v46  ;;  %v3727_v56 = vadd.f32 %v8505_v62, %v3427_v7  ;;  %v6055_v50 = vpop.eup %6054  ;;  %v3461_v7 = vsel %vm11180_vm0, %v2713_v59, 0.0  ;;  %v2711_v31 = vmul.f32 %v9056_v1, %v6053_v17 }
 0x2ae   :  { %v9125_v22 = vsel %vm4026_vm4, %v4110_v48, %v4109_v0  ;;  %v3259_v25 = vpop.xlane.xlu0 %3258  ;;  %v2198_v48 = vadd.f32 %v8899_v20, %v1874_v43  ;;  %v6189_v0 = vld [vmem:[#allocation2] sm:$0xff]  ;;  %v6057_v47 = vpop.eup %6056  ;;  %6060 = vtanh.f32 %v2142_v6  ;;  %v3591_v43 = vadd.f32 %v8505_v62, %v9006_v37 }
 0x2af   :  { %v3253_v10 = vpop.xlane.xlu1 %3252  ;;  %v4494_v44 = vperm.slane %v3727_v56, %v11310_v58  ;;  %v3671_v16 = vadd.f32 %v8505_v62, %v3259_v25  ;;  %v1911_v23 = vrot.slane %v6189_v0, 7  ;;  %v9148_v56 = vpop.f32.mrf.mxu0 }
 0x2b0   :  { %v3669_v9 = vadd.f32 %v8505_v62, %v3253_v10  ;;  %v3589_v10 = vadd.f32 %v8505_v62, %v9039_v32  ;;  %6062 = vtanh.f32 %v2198_v48  ;;  %v2001_v32 = vadd.f32 %v11323_v27, %v9034_v45 }
 0x2b1   :  { %v9142_v46 = vsel %vm4050_vm10, %v4494_v44, %v4493_v14  ;;  %3054 = vadd.xlane.f32.xlu2 %v3053_v26  ;;  %v4385_v5 = vperm.slane %v3671_v16, %v8514_v33  ;;  %v9161_v59 = vperm.slane %v1911_v23, 0  ;;  %v2518_v16 = vmul.f32 %v9056_v1, %v6057_v47  ;;  %v6059_v26 = vpop.eup %6058 }
 0x2b2   :  { %v4382_v52 = vperm.slane %v3669_v9, %v8483_v49  ;;  %3462 = vadd.xlane.f32.xlu0 %v3461_v7  ;;  %v2712_v9 = vmul.f32 %v9056_v1, %v6055_v50  ;;  %v4227_v37 = vperm.slane %v3589_v10, %v8483_v49  ;;  %v3455_v48 = vsel %vm11180_vm0, %v2711_v31, 0.0  ;;  %v11329_v50 = vld [vmem:[#allocation114_spill] sm:$0xff]  ;;  %v1709_v7 = vpop.f32.mrf.mxu2 }
 0x2b3   :  { %v2065_v0 = vadd.f32 %v9161_v59, %v11329_v50  ;;  %v4230_v23 = vperm.slane %v3591_v43, %v8514_v33  ;;  %v2876_v31 = vsel %vm11180_vm0, %v2518_v16, 0.0  ;;  %6064 = vtanh.f32 %v2001_v32  ;;  %v1877_v43 = vpop.f32.mrf.mxu3 }
 0x2b4   :  { %v4384_v11 = vsel %vm4014_vm1, %v4383_v42, %v4382_v52  ;;  %2871 = vadd.xlane.f32.xlu1 %v2870_v41  ;;  %v9155_v51 = vpop.xlane.xlu2 %3027  ;;  %v11328_v52 = vld [vmem:[#allocation110_spill] sm:$0xff]  ;;  %v6061_v41 = vpop.eup %6060  ;;  %v3458_v45 = vsel %vm11180_vm0, %v2712_v9, 0.0  ;;  %v3531_v16 = vadd.f32 %v8505_v62, %v9091_v24 }
 0x2b5   :  { %v9151_v14 = vsel %vm4018_vm2, %v4385_v5, %v4384_v11  ;;  %v2063_v17 = vadd.f32 %v9161_v59, %v11328_v52  ;;  %v9176_v11 = vpop.f32.mrf.mxu1  ;;  %v2657_v52 = vmul.f32 %v9056_v1, %v6059_v26  ;;  %v2658_v9 = vmul.f32 %v9056_v1, %v6061_v41 }
 0x2b6   :  { %v3022_v6 = vpop.xlane.xlu0 %3021 }
 0x2b7   :  { %v3016_v25 = vpop.xlane.xlu1 %3015  ;;  %v3592_v42 = vadd.f32 %v8505_v62, %v3022_v6  ;;  %6066 = vtanh.f32 %v2063_v17 }
 0x2b8   :  { %v3590_v44 = vadd.f32 %v8505_v62, %v3016_v25  ;;  %v6063_v25 = vpop.eup %6062  ;;  %6068 = vtanh.f32 %v2065_v0 }
 0x2b9   :  { %3456 = vadd.xlane.f32.xlu2 %v3455_v48  ;;  %v4232_v47 = vperm.slane %v3592_v42, %v8521_v13  ;;  %v9186_v42 = vpop.f32.mrf.mxu0  ;;  %v2714_v50 = vmul.f32 %v9056_v1, %v6063_v25  ;;  %v4114_v25 = vperm.slane %v3531_v16, %v8540_v53 }
 0x2ba   :  { %v4228_v5 = vperm.slane %v3590_v44, %v8528_v60  ;;  %2877 = vadd.xlane.f32.xlu0 %v2876_v31  ;;  %v3296_v31 = vsel %vm11180_vm0, %v2658_v9, 0.0  ;;  %v1712_v16 = vpop.f32.mrf.mxu2 }
 0x2bc   :  { %v4229_v10 = vsel %vm4014_vm1, %v4228_v5, %v4227_v37  ;;  %3459 = vadd.xlane.f32.xlu1 %v3458_v45  ;;  %v3430_v44 = vpop.xlane.xlu2 %3429  ;;  %v11331_v45 = vld [vmem:[#allocation15_spill] sm:$0xff] }
 0x2bd   :  { %v4231_v6 = vsel %vm4018_vm2, %v4230_v23, %v4229_v10  ;;  %v3728_v32 = vadd.f32 %v8505_v62, %v3430_v44  ;;  %v11330_v23 = vld [vmem:[#allocation113_spill] sm:$0xff]  ;;  %v3293_v10 = vsel %vm11180_vm0, %v2657_v52, 0.0  ;;  %v2199_v44 = vadd.f32 %v8899_v20, %v1877_v43 }
 0x2be   :  { %v4233_v48 = vsel %vm4022_vm3, %v4232_v47, %v4231_v6  ;;  %v3262_v5 = vpop.xlane.xlu0 %3261  ;;  %v2064_v26 = vadd.f32 %v9161_v59, %v11330_v23  ;;  %v2143_v47 = vadd.f32 %v11331_v45, %v1709_v7  ;;  %v6065_v6 = vpop.eup %6064  ;;  %v3464_v52 = vsel %vm11180_vm0, %v2714_v50, 0.0 }
 0x2bf   :  { %v2836_v37 = vpop.xlane.xlu1 %2835  ;;  %v4496_v41 = vperm.slane %v3728_v32, %v11311_v39  ;;  %v3672_v0 = vadd.f32 %v8505_v62, %v3262_v5  ;;  %v6067_v5 = vpop.eup %6066 }
 0x2c0   :  { %v3530_v17 = vadd.f32 %v8505_v62, %v2836_v37  ;;  %v6069_v9 = vpop.eup %6068  ;;  %6070 = vtanh.f32 %v2064_v26  ;;  %v2579_v26 = vmul.f32 %v9056_v1, %v6067_v5 }
 0x2c1   :  { %v9205_v37 = vsel %vm11179_vm11, %v4496_v41, %v9142_v46  ;;  %3294 = vadd.xlane.f32.xlu2 %v3293_v10  ;;  %v4387_v32 = vperm.slane %v3672_v0, %v8521_v13  ;;  %6072 = vtanh.f32 %v2143_v47  ;;  %v2517_v41 = vmul.f32 %v9056_v1, %v6065_v6  ;;  %v1880_v0 = vpop.f32.mrf.mxu3 }
 0x2c2   :  { %v4112_v24 = vperm.slane %v3530_v17, %v8533_v28  ;;  %v9211_v17 = vpop.f32.mrf.mxu1  ;;  %3465 = vadd.xlane.f32.xlu0 %v3464_v52  ;;  %6074 = vtanh.f32 %v2199_v44  ;;  %v2144_v47 = vadd.f32 %v11331_v45, %v1712_v16  ;;  %v2003_v6 = vadd.f32 %v11323_v27, %v9112_v4 }
 0x2c3   :  { %v4388_v43 = vsel %vm4022_vm3, %v4387_v32, %v9151_v14  ;;  %v2200_v5 = vadd.f32 %v8899_v20, %v1880_v0  ;;  %v3059_v45 = vsel %vm11180_vm0, %v2579_v26, 0.0 }
 0x2c4   :  { %v4113_v7 = vsel %vm4030_vm5, %v4112_v24, %v9125_v22  ;;  %3297 = vadd.xlane.f32.xlu1 %v3296_v31  ;;  %v9216_v23 = vpop.xlane.xlu2 %2847  ;;  %v3594_v22 = vadd.f32 %v8505_v62, %v9155_v51  ;;  %v2581_v24 = vmul.f32 %v9056_v1, %v6069_v9  ;;  %v9225_v31 = vpop.f32.mrf.mxu0  ;;  %v2873_v51 = vsel %vm11180_vm0, %v2517_v41, 0.0 }
 0x2c5   :  { %v4115_v46 = vsel %vm4034_vm6, %v4114_v25, %v4113_v7  ;;  %6076 = vtanh.f32 %v2144_v47 }
 0x2c6   :  { %v2842_v10 = vpop.xlane.xlu0 %2841  ;;  %v6071_v32 = vpop.eup %6070  ;;  %v4236_v7 = vperm.slane %v3594_v22, %v8533_v28  ;;  %6078 = vtanh.f32 %v2003_v6 }
 0x2c7   :  { %v3025_v50 = vpop.xlane.xlu1 %3024  ;;  %v3532_v25 = vadd.f32 %v8505_v62, %v2842_v10  ;;  %v6073_v9 = vpop.eup %6072  ;;  %v2580_v10 = vmul.f32 %v9056_v1, %v6071_v32  ;;  %6080 = vtanh.f32 %v2200_v5 }
 0x2c8   :  { %v3593_v14 = vadd.f32 %v8505_v62, %v3025_v50  ;;  %v3065_v50 = vsel %vm11180_vm0, %v2581_v24, 0.0  ;;  %v6075_v4 = vpop.eup %6074 }
 0x2c9   :  { %2874 = vadd.xlane.f32.xlu2 %v2873_v51  ;;  %v4116_v52 = vperm.slane %v3532_v25, %v8536_v2  ;;  %v2004_v25 = vadd.f32 %v11323_v27, %v9148_v56  ;;  %v11332_v51 = vld [vmem:[#allocation116_spill] sm:$0xff]  ;;  %v3062_v32 = vsel %vm11180_vm0, %v2580_v10, 0.0 }
 0x2ca   :  { %v4234_v44 = vperm.slane %v3593_v14, %v8524_v38  ;;  %3066 = vadd.xlane.f32.xlu0 %v3065_v50  ;;  %v9245_v26 = vpop.f32.mrf.mxu1  ;;  %v2659_v14 = vmul.f32 %v9056_v1, %v6073_v9  ;;  %v1883_v50 = vpop.f32.mrf.mxu3 }
 0x2cb   :  { %v4117_v41 = vsel %vm11183_vm7, %v4116_v52, %v4115_v46  ;;  %v2715_v46 = vmul.f32 %v9056_v1, %v6075_v4  ;;  %v2005_v52 = vadd.f32 %v11323_v27, %v9186_v42  ;;  %6082 = vtanh.f32 %v2004_v25  ;;  %v4671_v42 = vld [vmem:[%s11153_s2 + $0xf8] sm:$0xff] }
 0x2cc   :  { %v4235_v16 = vsel %vm4026_vm4, %v4234_v44, %v4233_v48  ;;  %3060 = vadd.xlane.f32.xlu1 %v3059_v45  ;;  %v9242_v22 = vpop.xlane.xlu2 %3273  ;;  %v2066_v44 = vadd.f32 %v9161_v59, %v11332_v51  ;;  %v9259_v45 = vpop.f32.mrf.mxu0  ;;  %v3299_v56 = vsel %vm11180_vm0, %v2659_v14, 0.0  ;;  %4916 = vmatpush.msrb.mxu3 %v4671_v42 }
 0x2cd   :  { %v9240_v0 = vsel %vm4030_vm5, %v4236_v7, %v4235_v16  ;;  %v6077_v7 = vpop.eup %6076 }
 0x2ce   :  { %v3268_v24 = vpop.xlane.xlu0 %3267  ;;  %v6079_v16 = vpop.eup %6078  ;;  %6084 = vtanh.f32 %v2066_v44  ;;  %v2660_v14 = vmul.f32 %v9056_v1, %v6077_v7 }
 0x2cf   :  { %v3265_v48 = vpop.xlane.xlu1 %3264  ;;  %v3674_v6 = vadd.f32 %v8505_v62, %v3268_v24  ;;  %v6081_v10 = vpop.eup %6080  ;;  %6086 = vtanh.f32 %v2005_v52  ;;  %v2519_v25 = vmul.f32 %v9056_v1, %v6079_v16  ;;  %v2006_v52 = vadd.f32 %v11323_v27, %v9225_v31 }
 0x2d0   :  { %v3673_v47 = vadd.f32 %v8505_v62, %v3265_v48  ;;  %v3467_v48 = vsel %vm11180_vm0, %v2715_v46, 0.0 }
 0x2d1   :  { %3063 = vadd.xlane.f32.xlu2 %v3062_v32  ;;  %v4391_v9 = vperm.slane %v3674_v6, %v8533_v28  ;;  %v2716_v32 = vmul.f32 %v9056_v1, %v6081_v10  ;;  %v6083_v16 = vpop.eup %6082  ;;  %v2879_v42 = vsel %vm11180_vm0, %v2519_v25, 0.0 }
 0x2d2   :  { %v4389_v5 = vperm.slane %v3673_v47, %v8524_v38  ;;  %3468 = vadd.xlane.f32.xlu0 %v3467_v48  ;;  %v9279_v44 = vpop.f32.mrf.mxu1  ;;  %v1886_v25 = vpop.f32.mrf.mxu3 }
 0x2d4   :  { %v4390_v4 = vsel %vm4026_vm4, %v4389_v5, %v4388_v43  ;;  %3300 = vadd.xlane.f32.xlu1 %v3299_v56  ;;  %v3436_v47 = vpop.xlane.xlu2 %3435  ;;  %v3534_v43 = vadd.f32 %v8505_v62, %v9216_v23  ;;  %v11333_v5 = vld [vmem:[#allocation123_spill] sm:$0xff]  ;;  %v3302_v23 = vsel %vm11180_vm0, %v2660_v14, 0.0  ;;  %v9292_v14 = vpop.f32.mrf.mxu0 }
 0x2d5   :  { %v9266_v24 = vsel %vm4030_vm5, %v4391_v9, %v4390_v4  ;;  %v2067_v9 = vadd.f32 %v9161_v59, %v11333_v5  ;;  %v2201_v4 = vadd.f32 %v8899_v20, %v1883_v50  ;;  %v3470_v5 = vsel %vm11180_vm0, %v2716_v32, 0.0 }
 0x2d6   :  { %v3031_v6 = vpop.xlane.xlu0 %3030  ;;  %v4120_v48 = vperm.slane %v3534_v43, %v11306_v29  ;;  %v3730_v32 = vadd.f32 %v8505_v62, %v3436_v47 }
 0x2d7   :  { %v2845_v46 = vpop.xlane.xlu1 %2844  ;;  %v3595_v7 = vadd.f32 %v8505_v62, %v3031_v6  ;;  %6088 = vtanh.f32 %v2067_v9 }
 0x2d8   :  { %v3533_v51 = vadd.f32 %v8505_v62, %v2845_v46  ;;  %v6085_v46 = vpop.eup %6084  ;;  %6090 = vtanh.f32 %v2006_v52  ;;  %v2202_v52 = vadd.f32 %v8899_v20, %v1886_v25 }
 0x2d9   :  { %3303 = vadd.xlane.f32.xlu2 %v3302_v23  ;;  %v4238_v10 = vperm.slane %v3595_v7, %v8540_v53  ;;  %v6087_v31 = vpop.eup %6086  ;;  %6092 = vtanh.f32 %v2201_v4  ;;  %v2582_v9 = vmul.f32 %v9056_v1, %v6085_v46  ;;  %v3676_v23 = vadd.f32 %v8505_v62, %v9242_v22  ;;  %v11334_v46 = vld [vmem:[#allocation128_spill] sm:$0xff] }
 0x2da   :  { %v4118_v56 = vperm.slane %v3533_v51, %v8543_v63  ;;  %3471 = vadd.xlane.f32.xlu0 %v3470_v5  ;;  %v2068_v22 = vadd.f32 %v9161_v59, %v11334_v46  ;;  %v4500_v5 = vperm.slane %v3730_v32, %v8855_v30  ;;  %6094 = vtanh.f32 %v2202_v52 }
 0x2db   :  { %v9296_v50 = vsel %vm4034_vm6, %v4238_v10, %v9240_v0  ;;  %v3068_v25 = vsel %vm11180_vm0, %v2582_v9, 0.0 }
 0x2dc   :  { %v4119_v6 = vsel %vm4042_vm8, %v4118_v56, %v4117_v41  ;;  %2880 = vadd.xlane.f32.xlu1 %v2879_v42  ;;  %v3037_v51 = vpop.xlane.xlu2 %3036  ;;  %v2520_v41 = vmul.f32 %v9056_v1, %v6083_v16  ;;  %v2069_v16 = vadd.f32 %v9161_v59, %v8708_v3  ;;  %v4395_v3 = vperm.slane %v3676_v23, %v8536_v2 }
 0x2dd   :  { %v9299_v43 = vsel %vm4046_vm9, %v4120_v48, %v4119_v6  ;;  %v2521_v48 = vmul.f32 %v9056_v1, %v6087_v31  ;;  %v6089_v42 = vpop.eup %6088  ;;  %v9316_v6 = vpop.f32.mrf.mxu1 }
 0x2de   :  { %v3271_v0 = vpop.xlane.xlu0 %3270  ;;  %v2882_v47 = vsel %vm11180_vm0, %v2520_v41, 0.0  ;;  %6096 = vtanh.f32 %v2069_v16  ;;  %v2583_v23 = vmul.f32 %v9056_v1, %v6089_v42 }
 0x2df   :  { %v3433_v7 = vpop.xlane.xlu1 %3432  ;;  %v3675_v10 = vadd.f32 %v8505_v62, %v3271_v0  ;;  %v2885_v0 = vsel %vm11180_vm0, %v2521_v48, 0.0  ;;  %6098 = vtanh.f32 %v2068_v22  ;;  %v3597_v48 = vadd.f32 %v8505_v62, %v3037_v51 }
 0x2e0   :  { %v3729_v56 = vadd.f32 %v8505_v62, %v3433_v7  ;;  %v6091_v7 = vpop.eup %6090  ;;  %v3071_v22 = vsel %vm11180_vm0, %v2583_v23, 0.0 }
 0x2e1   :  { %2883 = vadd.xlane.f32.xlu2 %v2882_v47  ;;  %v4393_v31 = vperm.slane %v3675_v10, %v8540_v53  ;;  %v2522_v47 = vmul.f32 %v9056_v1, %v6091_v7 }
 0x2e2   :  { %v4498_v4 = vperm.slane %v3729_v56, %v11314_v34  ;;  %v6093_v56 = vpop.eup %6092  ;;  %2886 = vadd.xlane.f32.xlu0 %v2885_v0 }
 0x2e3   :  { %v4394_v46 = vsel %vm4034_vm6, %v4393_v31, %v9266_v24  ;;  %v1889_v24 = vpop.f32.mrf.mxu3  ;;  %v2717_v16 = vmul.f32 %v9056_v1, %v6093_v56  ;;  %v2007_v31 = vadd.f32 %v11323_v27, %v9259_v45  ;;  %v2888_v56 = vsel %vm11180_vm0, %v2522_v47, 0.0  ;;  %v11336_v45 = vld [vmem:[#allocation21_spill] sm:$0xff] }
 0x2e4   :  { %v4499_v41 = vsel %vm11178_vm12, %v4498_v4, %v9205_v37  ;;  %3069 = vadd.xlane.f32.xlu1 %v3068_v25  ;;  %v9330_v9 = vpop.xlane.xlu2 %2856  ;;  %v9334_v10 = vsel %vm11183_vm7, %v4395_v3, %v4394_v46  ;;  %v1307_v37 = vpop.f32.mrf.mxu0  ;;  %v2203_v7 = vadd.f32 %v8899_v20, %v1889_v24 }
 0x2e5   :  { %v9328_v32 = vsel %vm4062_vm13, %v4500_v5, %v4499_v41  ;;  %v2009_v25 = vadd.f32 %v11323_v27, %v1307_v37  ;;  %v6095_v3 = vpop.eup %6094  ;;  %v4242_v41 = vperm.slane %v3597_v48, %v8543_v63  ;;  %v3473_v23 = vsel %vm11180_vm0, %v2717_v16, 0.0  ;;  %v9357_v48 = vpop.f32.mrf.mxu1  ;;  %v11338_v16 = vld [vmem:[#allocation32_spill] sm:$0xff] }
 0x2e6   :  { %11335 = vst [vmem:[#allocation111_spill] sm:$0xff] %v9328_v32  ;;  %v2851_v4 = vpop.xlane.xlu0 %2850  ;;  %v6097_v46 = vpop.eup %6096  ;;  %6100 = vtanh.f32 %v2007_v31  ;;  %v2718_v31 = vmul.f32 %v9056_v1, %v6095_v3  ;;  %v2070_v3 = vadd.f32 %v9161_v59, %v8773_v18 }
 0x2e7   :  { %v3034_v52 = vpop.xlane.xlu1 %3033  ;;  %v3535_v42 = vadd.f32 %v8505_v62, %v2851_v4  ;;  %v6099_v4 = vpop.eup %6098  ;;  %6102 = vtanh.f32 %v2009_v25 }
 0x2e8   :  { %v3596_v5 = vadd.f32 %v8505_v62, %v3034_v52  ;;  %v3493_v52 = vadd.f32 %v8505_v62, %v11336_v45  ;;  %6104 = vtanh.f32 %v2203_v7 }
 0x2e9   :  { %3072 = vadd.xlane.f32.xlu2 %v3071_v22  ;;  %v4122_v0 = vperm.slane %v3535_v42, %v11310_v58  ;;  %v3495_v22 = vadd.f32 %v8505_v62, %v11338_v16  ;;  %v3476_v16 = vsel %vm11180_vm0, %v2718_v31, 0.0  ;;  %6106 = vtanh.f32 %v2070_v3 }
 0x2ea   :  { %v4240_v51 = vperm.slane %v3596_v5, %v8536_v2  ;;  %v11337_v5 = vld [vmem:[#allocation27_spill] sm:$0xff]  ;;  %3474 = vadd.xlane.f32.xlu0 %v3473_v23  ;;  %v2584_v23 = vmul.f32 %v9056_v1, %v6099_v4  ;;  %v11340_v4 = vld [vmem:[#allocation37_spill] sm:$0xff] }
 0x2eb   :  { %v3494_v24 = vadd.f32 %v8505_v62, %v11337_v5  ;;  %v9361_v47 = vsel %vm4050_vm10, %v4122_v0, %v9299_v43  ;;  %v2585_v43 = vmul.f32 %v9056_v1, %v6097_v46  ;;  %v11339_v0 = vld [vmem:[#allocation38_spill] sm:$0xff]  ;;  %v4011_v5 = vperm.slane %v3493_v52, %v8483_v49 }
 0x2ec   :  { %v4241_v37 = vsel %vm11183_vm7, %v4240_v51, %v9296_v50  ;;  %2889 = vadd.xlane.f32.xlu1 %v2888_v56  ;;  %v4687_v50 = vld [vmem:[%s11153_s2 + $0x178] sm:$0xff]  ;;  %v3283_v51 = vpop.xlane.xlu2 %3282  ;;  %v3496_v45 = vadd.f32 %v8505_v62, %v11339_v0  ;;  %v2072_v46 = vadd.f32 %v9161_v59, %v8874_v21  ;;  %v6101_v0 = vpop.eup %6100  ;;  %v3497_v52 = vadd.f32 %v8505_v62, %v11340_v4 }
 0x2ed   :  { %v4243_v42 = vsel %vm4042_vm8, %v4242_v41, %v4241_v37  ;;  %4936 = vmatpush.msra.mxu0 %v4687_v50  ;;  %v4013_v25 = vperm.slane %v3494_v24, %v8528_v60  ;;  %v4017_v50 = vperm.slane %v3495_v22, %v8514_v33  ;;  %v2008_v24 = vadd.f32 %v11323_v27, %v9292_v14  ;;  %v6103_v22 = vpop.eup %6102 }
 0x2ee   :  { %v3040_v41 = vpop.xlane.xlu0 %3039  ;;  %v4021_v32 = vperm.slane %v3496_v45, %v8521_v13  ;;  %v3074_v31 = vsel %vm11180_vm0, %v2584_v23, 0.0  ;;  %v6105_v4 = vpop.eup %6104  ;;  %v11342_v45 = vld [vmem:[#allocation48_spill] sm:$0xff]  ;;  %6108 = vtanh.f32 %v2072_v46  ;;  %v2523_v57 = vmul.f32 %v9056_v1, %v6101_v0 }
 0x2ef   :  { %v3277_v56 = vpop.xlane.xlu1 %3276  ;;  %v3598_v7 = vadd.f32 %v8505_v62, %v3040_v41  ;;  %v3077_v41 = vsel %vm11180_vm0, %v2585_v43, 0.0  ;;  %v4015_v14 = vsel %vm4014_vm1, %v4013_v25, %v4011_v5  ;;  %v3499_v23 = vadd.f32 %v8505_v62, %v11342_v45  ;;  %v9409_v25 = vpop.f32.mrf.mxu1 }
 0x2f0   :  { %v3677_v37 = vadd.f32 %v8505_v62, %v3277_v56  ;;  %v4025_v5 = vperm.slane %v3497_v52, %v8524_v38  ;;  %6110 = vtanh.f32 %v2008_v24  ;;  %v2719_v0 = vmul.f32 %v9056_v1, %v6105_v4  ;;  %v11343_v24 = vld [vmem:[#allocation53_spill] sm:$0xff]  ;;  %v6107_v45 = vpop.eup %6106 }
 0x2f1   :  { %3477 = vadd.xlane.f32.xlu2 %v3476_v16  ;;  %v4244_v18 = vperm.slane %v3598_v7, %v11306_v29  ;;  %v11341_v16 = vld [vmem:[#allocation43_spill] sm:$0xff]  ;;  %v2071_v4 = vadd.f32 %v9161_v59, %v8826_v55 }
 0x2f2   :  { %v4397_v56 = vperm.slane %v3677_v37, %v8543_v63  ;;  %v4670_v37 = vld [vmem:[%s11153_s2 + $0xf0] sm:$0xff]  ;;  %v3498_v7 = vadd.f32 %v8505_v62, %v11341_v16  ;;  %3075 = vadd.xlane.f32.xlu0 %v3074_v31  ;;  %v3679_v31 = vadd.f32 %v8505_v62, %v3283_v51  ;;  %v2891_v51 = vsel %vm11180_vm0, %v2523_v57, 0.0 }
 0x2f3   :  { %v9402_v43 = vsel %vm4046_vm9, %v4244_v18, %v4243_v42  ;;  %4917 = vmatpush.msrb.mxu3 %v4670_v37  ;;  %v3537_v42 = vadd.f32 %v8505_v62, %v9330_v9  ;;  %v2525_v18 = vmul.f32 %v9056_v1, %v6103_v22  ;;  %v4033_v22 = vperm.slane %v3499_v23, %v8540_v53 }
 0x2f4   :  { %v4398_v21 = vsel %vm4042_vm8, %v4397_v56, %v9334_v10  ;;  %3078 = vadd.xlane.f32.xlu1 %v3077_v41  ;;  %v4019_v10 = vsel %vm4018_vm2, %v4017_v50, %v4015_v14  ;;  %v1310_v56 = vpop.f32.mrf.mxu0  ;;  %v3046_v41 = vpop.xlane.xlu2 %3045  ;;  %v4029_v52 = vperm.slane %v3498_v7, %v8533_v28  ;;  %v3500_v14 = vadd.f32 %v8505_v62, %v11343_v24 }
 0x2f5   :  { %v4023_v50 = vsel %vm4022_vm3, %v4021_v32, %v4019_v10  ;;  %v2010_v16 = vadd.f32 %v11323_v27, %v1310_v56  ;;  %v2075_v32 = vadd.f32 %v9161_v59, %v8984_v15  ;;  %v4126_v7 = vperm.slane %v3537_v42, %v11314_v34 }
 0x2f6   :  { %v3280_v37 = vpop.xlane.xlu0 %3279  ;;  %v2897_v56 = vsel %vm11180_vm0, %v2525_v18, 0.0  ;;  %v4027_v23 = vsel %vm4026_vm4, %v4025_v5, %v4023_v50  ;;  %v4401_v15 = vperm.slane %v3679_v31, %v11310_v58  ;;  %v4037_v55 = vperm.slane %v3500_v14, %v8536_v2 }
 0x2f7   :  { %v2854_v3 = vpop.xlane.xlu1 %2853  ;;  %v3678_v9 = vadd.f32 %v8505_v62, %v3280_v37  ;;  %v3479_v37 = vsel %vm11180_vm0, %v2719_v0, 0.0  ;;  %6112 = vtanh.f32 %v2010_v16  ;;  %v4031_v24 = vsel %vm4030_vm5, %v4029_v52, %v4027_v23  ;;  %v11344_v16 = vld [vmem:[#allocation52_spill] sm:$0xff] }
 0x2f8   :  { %v3536_v46 = vadd.f32 %v8505_v62, %v2854_v3  ;;  %v6109_v3 = vpop.eup %6108  ;;  %6114 = vtanh.f32 %v2075_v32  ;;  %v2586_v50 = vmul.f32 %v9056_v1, %v6107_v45  ;;  %v4035_v31 = vsel %vm4034_vm6, %v4033_v22, %v4031_v24 }
 0x2f9   :  { %2892 = vadd.xlane.f32.xlu2 %v2891_v51  ;;  %v4399_v27 = vperm.slane %v3678_v9, %v11306_v29  ;;  %6116 = vtanh.f32 %v2071_v4  ;;  %v3600_v0 = vadd.f32 %v8505_v62, %v3046_v41  ;;  %v3501_v9 = vadd.f32 %v8505_v62, %v11344_v16  ;;  %v11345_v51 = vld [vmem:[#allocation66_spill] sm:$0xff]  ;;  %v9458_v41 = vpop.f32.mrf.mxu1 }
 0x2fa   :  { %v4124_v10 = vperm.slane %v3536_v46, %v11311_v39  ;;  %v6111_v46 = vpop.eup %6110  ;;  %3480 = vadd.xlane.f32.xlu0 %v3479_v37  ;;  %v3502_v52 = vadd.f32 %v8505_v62, %v11345_v51  ;;  %v2073_v22 = vadd.f32 %v9161_v59, %v8917_v61  ;;  %v3080_v23 = vsel %vm11180_vm0, %v2586_v50, 0.0 }
 0x2fb   :  { %v4400_v42 = vsel %vm4046_vm9, %v4399_v27, %v4398_v21  ;;  %v2588_v21 = vmul.f32 %v9056_v1, %v6109_v3  ;;  %v2524_v45 = vmul.f32 %v9056_v1, %v6111_v46  ;;  %v11346_v27 = vld [vmem:[#allocation62_spill] sm:$0xff]  ;;  %v2078_v3 = vadd.f32 %v9161_v59, %v9097_v19 }
 0x2fc   :  { %v4125_v57 = vsel %vm11179_vm11, %v4124_v10, %v9361_v47  ;;  %2898 = vadd.xlane.f32.xlu1 %v2897_v56  ;;  %v3448_v5 = vpop.xlane.xlu2 %3447  ;;  %v9444_v47 = vsel %vm4050_vm10, %v4401_v15, %v4400_v42  ;;  %v3503_v56 = vadd.f32 %v8505_v62, %v11346_v27  ;;  %v2074_v37 = vadd.f32 %v9161_v59, %v8950_v40  ;;  %v11348_v27 = vld [vmem:[#allocation81_spill] sm:$0xff] }
 0x2fd   :  { %v4127_v18 = vsel %vm11178_vm12, %v4126_v7, %v4125_v57  ;;  %v4039_v7 = vsel %vm11183_vm7, %v4037_v55, %v4035_v31  ;;  %v6113_v57 = vpop.eup %6112  ;;  %v4248_v61 = vperm.slane %v3600_v0, %v11311_v39  ;;  %v3086_v55 = vsel %vm11180_vm0, %v2588_v21, 0.0 }
 0x2fe   :  { %v2860_v32 = vpop.xlane.xlu0 %2859  ;;  %v6115_v42 = vpop.eup %6114  ;;  %v4041_v24 = vperm.slane %v3501_v9, %v8543_v63  ;;  %v4045_v19 = vperm.slane %v3502_v52, %v11306_v29  ;;  %v2894_v31 = vsel %vm11180_vm0, %v2524_v45, 0.0  ;;  %6118 = vtanh.f32 %v2073_v22 }
 0x2ff   :  { %v3043_v14 = vpop.xlane.xlu1 %3042  ;;  %v3538_v4 = vadd.f32 %v8505_v62, %v2860_v32  ;;  %6120 = vtanh.f32 %v2078_v3  ;;  %v3734_v16 = vadd.f32 %v8505_v62, %v3448_v5  ;;  %v2526_v51 = vmul.f32 %v9056_v1, %v6113_v57  ;;  %v11349_v57 = vld [vmem:[#allocation14_spill] sm:$0xff] }
 0x300   :  { %v3599_v10 = vadd.f32 %v8505_v62, %v3043_v14  ;;  %v6117_v14 = vpop.eup %6116  ;;  %v4043_v21 = vsel %vm4042_vm8, %v4041_v24, %v4039_v7  ;;  %6122 = vtanh.f32 %v2074_v37  ;;  %v3505_v3 = vadd.f32 %v8505_v62, %v11348_v27  ;;  %v11351_v27 = vld [vmem:[#allocation77_spill] sm:$0xff] }
 0x301   :  { %3081 = vadd.xlane.f32.xlu2 %v3080_v23  ;;  %v4128_v46 = vperm.slane %v3538_v4, %v8855_v30  ;;  %v4047_v22 = vsel %vm4046_vm9, %v4045_v19, %v4043_v21  ;;  %v2587_v5 = vmul.f32 %v9056_v1, %v6117_v14  ;;  %v2081_v37 = vadd.f32 %v11349_v57, %v9211_v17  ;;  %v9505_v24 = vpop.f32.mrf.mxu1 }
 0x302   :  { %v4246_v15 = vperm.slane %v3599_v10, %v11310_v58  ;;  %2895 = vadd.xlane.f32.xlu0 %v2894_v31  ;;  %v11347_v10 = vld [vmem:[#allocation64_spill] sm:$0xff] }
 0x303   :  { %v9478_v40 = vsel %vm4062_vm13, %v4128_v46, %v4127_v18  ;;  %v2591_v18 = vmul.f32 %v9056_v1, %v6115_v42  ;;  %v3504_v45 = vadd.f32 %v8505_v62, %v11347_v10  ;;  %v2900_v46 = vsel %vm11180_vm0, %v2526_v51, 0.0 }
 0x304   :  { %v4247_v50 = vsel %vm4050_vm10, %v4246_v15, %v9402_v43  ;;  %3087 = vadd.xlane.f32.xlu1 %v3086_v55  ;;  %v3286_v9 = vpop.xlane.xlu2 %3285  ;;  %v4049_v43 = vperm.slane %v3503_v56, %v11310_v58  ;;  %v2076_v56 = vadd.f32 %v9161_v59, %v9023_v36  ;;  %v6119_v1 = vpop.eup %6118  ;;  %v2077_v42 = vadd.f32 %v9161_v59, %v9051_v12 }
 0x305   :  { %v4249_v0 = vsel %vm11179_vm11, %v4248_v61, %v4247_v50  ;;  %v3680_v52 = vadd.f32 %v8505_v62, %v3286_v9  ;;  %v4507_v61 = vperm.slane %v3734_v16, %v8528_v60  ;;  %v3095_v17 = vsel %vm11180_vm0, %v2591_v18, 0.0  ;;  %v4686_v50 = vld [vmem:[%s11153_s2 + $0x170] sm:$0xff]  ;;  %v6121_v31 = vpop.eup %6120  ;;  %v11350_v18 = vld [vmem:[#allocation72_spill] sm:$0xff] }
 0x306   :  { %v3049_v7 = vpop.xlane.xlu0 %3048  ;;  %v3083_v12 = vsel %vm11180_vm0, %v2587_v5, 0.0  ;;  %4937 = vmatpush.msra.mxu0 %v4686_v50  ;;  %v6123_v59 = vpop.eup %6122  ;;  %6124 = vtanh.f32 %v2076_v56  ;;  %v4053_v16 = vperm.slane %v3504_v45, %v11311_v39  ;;  %v4057_v9 = vperm.slane %v3505_v3, %v11314_v34  ;;  %v11352_v56 = vld [vmem:[#allocation92_spill] sm:$0xff] }
 0x307   :  { %v3445_v32 = vpop.xlane.xlu1 %3444  ;;  %v4403_v23 = vperm.slane %v3680_v52, %v11311_v39  ;;  %v3601_v15 = vadd.f32 %v8505_v62, %v3049_v7  ;;  %6126 = vtanh.f32 %v2081_v37  ;;  %v9527_v52 = vld [vmem:[%s11157_s6] ss:$0 sm:$0xff]  ;;  %v3507_v3 = vadd.f32 %v8505_v62, %v11351_v27 }
 0x308   :  { %v3733_v4 = vadd.f32 %v8505_v62, %v3445_v32  ;;  %v2589_v32 = vmul.f32 %v9527_v52, %v6119_v1  ;;  %6128 = vtanh.f32 %v2077_v42  ;;  %v2594_v45 = vmul.f32 %v9527_v52, %v6121_v31  ;;  %v4669_v31 = vld [vmem:[%s11153_s2 + $0xe8] sm:$0xff] }
 0x309   :  { %v4404_v36 = vsel %vm11179_vm11, %v4403_v23, %v9444_v47  ;;  %2901 = vadd.xlane.f32.xlu2 %v2900_v46  ;;  %v4250_v19 = vperm.slane %v3601_v15, %v11314_v34  ;;  %v4051_v47 = vsel %vm4050_vm10, %v4049_v43, %v4047_v22  ;;  %v3506_v43 = vadd.f32 %v8505_v62, %v11350_v18 }
 0x30a   :  { %v4506_v55 = vperm.slane %v3733_v4, %v8483_v49  ;;  %3084 = vadd.xlane.f32.xlu0 %v3083_v12  ;;  %v4055_v22 = vsel %vm11179_vm11, %v4053_v16, %v4051_v47  ;;  %v2590_v5 = vmul.f32 %v9527_v52, %v6123_v59  ;;  %v3508_v23 = vadd.f32 %v8505_v62, %v11352_v56  ;;  %v11353_v56 = vld [vmem:[#allocation119_spill] sm:$0xff] }
 0x30b   :  { %v9520_v21 = vsel %vm11178_vm12, %v4250_v19, %v4249_v0  ;;  %v2079_v15 = vadd.f32 %v11349_v57, %v9133_v54  ;;  %v2084_v46 = vadd.f32 %v11349_v57, %v9316_v6  ;;  %v4061_v19 = vperm.slane %v3506_v43, %v8855_v30  ;;  %v4655_v6 = vld [vmem:[%s11153_s2 + $0x78] sm:$0xff]  ;;  %4918 = vmatpush.msrb.mxu3 %v4669_v31 }
 0x30c   :  { %v9515_v14 = vsel %vm4014_vm1, %v4507_v61, %v4506_v55  ;;  %3096 = vadd.xlane.f32.xlu1 %v3095_v17  ;;  %v3289_v51 = vpop.xlane.xlu2 %3288  ;;  %v4059_v61 = vsel %vm11178_vm12, %v4057_v9, %v4055_v22  ;;  %v3089_v55 = vsel %vm11180_vm0, %v2589_v32, 0.0  ;;  %v6125_v42 = vpop.eup %6124  ;;  %v2080_v17 = vadd.f32 %v11349_v57, %v9176_v11  ;;  %4896 = vmatpush.msrb.mxu2 %v4655_v6 }
 0x30d   :  { %v3681_v0 = vadd.f32 %v8505_v62, %v3289_v51  ;;  %v3104_v54 = vsel %vm11180_vm0, %v2594_v45, 0.0  ;;  %v6127_v12 = vpop.eup %6126  ;;  %v3092_v11 = vsel %vm11180_vm0, %v2590_v5, 0.0  ;;  %v4063_v47 = vsel %vm4062_vm13, %v4061_v19, %v4059_v61  ;;  %v9567_v9 = vpop.f32.mrf.mxu1 }
 0x30e   :  { %v3454_v7 = vpop.xlane.xlu0 %3453  ;;  %v4069_v16 = vperm.slane %v3508_v23, %v8906_v35  ;;  %6130 = vtanh.f32 %v2079_v15  ;;  %v4065_v51 = vperm.slane %v3507_v3, %v8865_v8  ;;  %v2082_v3 = vadd.f32 %v11349_v57, %v9245_v26 }
 0x30f   :  { %v2863_v10 = vpop.xlane.xlu1 %2862  ;;  %v4405_v37 = vperm.slane %v3681_v0, %v11314_v34  ;;  %6132 = vtanh.f32 %v2084_v46  ;;  %v3736_v18 = vadd.f32 %v8505_v62, %v3454_v7  ;;  %vm11181_vm11 = vcmask 1042434  }
 0x310   :  { %v3539_v4 = vadd.f32 %v8505_v62, %v2863_v10  ;;  %6134 = vtanh.f32 %v2080_v17  ;;  %v2597_v10 = vmul.f32 %v9527_v52, %v6127_v12  ;;  %v4067_v45 = vsel %vm4066_vm14, %v4065_v51, %v4063_v47 }
 0x311   :  { %v9553_v50 = vsel %vm11178_vm12, %v4405_v37, %v4404_v36  ;;  %3090 = vadd.xlane.f32.xlu2 %v3089_v55  ;;  %v6129_v36 = vpop.eup %6128  ;;  %vm11182_vm12 = vcmask 1041409   ;;  %v4071_v27 = vsel %vm4070_vm15, %v4069_v16, %v4067_v45  ;;  %v2087_v15 = vadd.f32 %v11349_v57, %v9458_v41 }
 0x312   :  { %v4130_v1 = vperm.slane %v3539_v4, %v8865_v8  ;;  %3093 = vadd.xlane.f32.xlu0 %v3092_v11  ;;  %v2593_v5 = vmul.f32 %v9527_v52, %v6129_v36  ;;  %v4538_v23 = vsel %vm11182_vm12, %v11353_v56, %v4071_v27  ;;  %v2083_v55 = vadd.f32 %v11349_v57, %v9279_v44  ;;  %v1892_v27 = vpop.f32.mrf.mxu3 }
 0x313   :  { %6136 = vtanh.f32 %v2082_v3  ;;  %v2086_v45 = vadd.f32 %v11349_v57, %v9409_v25  ;;  %vm11185_vm12 = vcmask 1045509  }
 0x314   :  { %v4131_v59 = vsel %vm4066_vm14, %v4130_v1, %v9478_v40  ;;  %3105 = vadd.xlane.f32.xlu1 %v3104_v54  ;;  %v2866_v32 = vpop.xlane.xlu2 %2865  ;;  %v2592_v40 = vmul.f32 %v9527_v52, %v6125_v42  ;;  %v6131_v46 = vpop.eup %6130  ;;  %v4511_v1 = vperm.slane %v3736_v18, %v8521_v13  ;;  %v3113_v42 = vsel %vm11180_vm0, %v2597_v10, 0.0 }
 0x315   :  { %v3540_v43 = vadd.f32 %v8505_v62, %v2866_v32  ;;  %v6133_v19 = vpop.eup %6132  ;;  %v3101_v54 = vsel %vm11180_vm0, %v2593_v5, 0.0  ;;  %6138 = vtanh.f32 %v2087_v15  ;;  %v2595_v12 = vmul.f32 %v9527_v52, %v6131_v46 }
 0x316   :  { %v2869_v22 = vpop.xlane.xlu0 %2868  ;;  %v3098_v37 = vsel %vm11180_vm0, %v2592_v40, 0.0  ;;  %v6135_v6 = vpop.eup %6134  ;;  %6140 = vtanh.f32 %v2083_v55  ;;  %v2085_v32 = vadd.f32 %v11349_v57, %v9357_v48 }
 0x317   :  { %v3451_v0 = vpop.xlane.xlu1 %3450  ;;  %v4132_v7 = vperm.slane %v3540_v43, %v8906_v35  ;;  %v2596_v51 = vmul.f32 %v9527_v52, %v6135_v6  ;;  %v3107_v43 = vsel %vm11180_vm0, %v2595_v12, 0.0  ;;  %v3541_v25 = vadd.f32 %v8505_v62, %v2869_v22 }
 0x318   :  { %v3735_v4 = vadd.f32 %v8505_v62, %v3451_v0  ;;  %6142 = vtanh.f32 %v2085_v32  ;;  %v2088_v22 = vadd.f32 %v11349_v57, %v9505_v24  ;;  %v4685_v24 = vld [vmem:[%s11153_s2 + $0x168] sm:$0xff] }
 0x319   :  { %v4133_v26 = vsel %vm4070_vm15, %v4132_v7, %v4131_v59  ;;  %3099 = vadd.xlane.f32.xlu2 %v3098_v37  ;;  %v1550_v59 = vpop.f32.mrf.mxu1  ;;  %v6137_v10 = vpop.eup %6136  ;;  %v3110_v7 = vsel %vm11180_vm0, %v2596_v51, 0.0  ;;  %4938 = vmatpush.msra.mxu0 %v4685_v24 }
 0x31a   :  { %v4509_v61 = vperm.slane %v3735_v4, %v8514_v33  ;;  %v9593_v17 = vsel %vm11181_vm11, %v4133_v26, %v4538_v23  ;;  %3102 = vadd.xlane.f32.xlu0 %v3101_v54  ;;  %v2090_v18 = vadd.f32 %v11349_v57, %v1550_v59  ;;  %v2598_v15 = vmul.f32 %v9527_v52, %v6137_v10  ;;  %v11354_v26 = vld [vmem:[#allocation70_spill] sm:$0xff] }
 0x31b   :  { %v6139_v48 = vpop.eup %6138  ;;  %v4134_v54 = vperm.slane %v3541_v25, %v8483_v49  ;;  %v11357_v25 = vld [vmem:[#allocation83_spill] sm:$0xff]  ;;  %vm11394_vm11 = vcmask 851712  }
 0x31c   :  { %v4510_v41 = vsel %vm4018_vm2, %v4509_v61, %v9515_v14  ;;  %3114 = vadd.xlane.f32.xlu1 %v3113_v42  ;;  %v3292_v31 = vpop.xlane.xlu2 %3291  ;;  %v2600_v14 = vmul.f32 %v9527_v52, %v6133_v19  ;;  %v6141_v56 = vpop.eup %6140  ;;  %6144 = vtanh.f32 %v2090_v18  ;;  %v11355_v42 = vld [vmem:[#allocation19_spill] sm:$0xff] }
 0x31d   :  { %v9599_v44 = vsel %vm4022_vm3, %v4511_v1, %v4510_v41  ;;  %v3682_v11 = vadd.f32 %v8505_v62, %v3292_v31  ;;  %6146 = vtanh.f32 %v2086_v45  ;;  %v2599_v1 = vmul.f32 %v9527_v52, %v6141_v56  ;;  %v11356_v56 = vld [vmem:[#allocation127_spill] sm:$0xff] }
 0x31e   :  { %v3058_v47 = vpop.xlane.xlu0 %3057  ;;  %v3122_v5 = vsel %vm11180_vm0, %v2600_v14, 0.0  ;;  %v2174_v19 = vadd.f32 %v11355_v42, %v11354_v26  ;;  %v3116_v31 = vsel %vm11180_vm0, %v2598_v15, 0.0  ;;  %v6143_v59 = vpop.eup %6142  ;;  %6148 = vtanh.f32 %v2088_v22  ;;  %v11358_v15 = vld [vmem:[#allocation129_spill] sm:$0xff] }
 0x31f   :  { %v3052_v36 = vpop.xlane.xlu1 %3051  ;;  %v4407_v40 = vperm.slane %v3682_v11, %v8855_v30  ;;  %v2089_v11 = vadd.f32 %v11349_v57, %v9567_v9  ;;  %v3119_v32 = vsel %vm11180_vm0, %v2599_v1, 0.0 }
 0x320   :  { %v3602_v16 = vadd.f32 %v8505_v62, %v3052_v36  ;;  %6150 = vtanh.f32 %v2174_v19 }
 0x321   :  { %v9616_v4 = vsel %vm4062_vm13, %v4407_v40, %v9553_v50  ;;  %3108 = vadd.xlane.f32.xlu2 %v3107_v43  ;;  %v3604_v50 = vadd.f32 %v8505_v62, %v3058_v47  ;;  %v4654_v47 = vld [vmem:[%s11153_s2 + $0x70] sm:$0xff]  ;;  %v1895_v40 = vpop.f32.mrf.mxu3  ;;  %v2601_v43 = vmul.f32 %v9527_v52, %v6143_v59  ;;  %6152 = vtanh.f32 %v2089_v11 }
 0x322   :  { %v4252_v0 = vperm.slane %v3602_v16, %v8855_v30  ;;  %3111 = vadd.xlane.f32.xlu0 %v3110_v7  ;;  %v6145_v16 = vpop.eup %6144  ;;  %4897 = vmatpush.msrb.mxu2 %v4654_v47  ;;  %v2205_v47 = vadd.f32 %v8899_v20, %v1895_v40  ;;  %v4668_v40 = vld [vmem:[%s11153_s2 + $0xe0] sm:$0xff] }
 0x323   :  { %v4256_v6 = vperm.slane %v3604_v50, %v8906_v35  ;;  %v6147_v9 = vpop.eup %6146  ;;  %v2189_v50 = vadd.f32 %v11357_v25, %v11356_v56  ;;  %4919 = vmatpush.msrb.mxu3 %v4668_v40  ;;  %v4667_v40 = vld [vmem:[%s11153_s2 + $0xd8] sm:$0xff] }
 0x324   :  { %v4253_v3 = vsel %vm4062_vm13, %v4252_v0, %v9520_v21  ;;  %3123 = vadd.xlane.f32.xlu1 %v3122_v5  ;;  %v3055_v23 = vpop.xlane.xlu2 %3054  ;;  %v2603_v21 = vmul.f32 %v9527_v52, %v6139_v48  ;;  %v2606_v5 = vmul.f32 %v9527_v52, %v6145_v16  ;;  %v2602_v7 = vmul.f32 %v9527_v52, %v6147_v9 }
 0x325   :  { %v3603_v37 = vadd.f32 %v8505_v62, %v3055_v23  ;;  %6154 = vtanh.f32 %v2189_v50  ;;  %4920 = vmatpush.msrb.mxu3 %v4667_v40 }
 0x326   :  { %v3463_v46 = vpop.xlane.xlu0 %3462  ;;  %v3131_v14 = vsel %vm11180_vm0, %v2603_v21, 0.0  ;;  %v3140_v42 = vsel %vm11180_vm0, %v2606_v5, 0.0 }
 0x327   :  { %v2872_v61 = vpop.xlane.xlu1 %2871  ;;  %v4254_v41 = vperm.slane %v3603_v37, %v8865_v8  ;;  %v3739_v0 = vadd.f32 %v8505_v62, %v3463_v46  ;;  %v2190_v37 = vadd.f32 %v11357_v25, %v11358_v15  ;;  %v6149_v46 = vpop.eup %6148 }
 0x328   :  { %v3542_v55 = vadd.f32 %v8505_v62, %v2872_v61  ;;  %v3125_v61 = vsel %vm11180_vm0, %v2601_v43, 0.0  ;;  %v6151_v19 = vpop.eup %6150 }
 0x329   :  { %v4255_v36 = vsel %vm4066_vm14, %v4254_v41, %v4253_v3  ;;  %3117 = vadd.xlane.f32.xlu2 %v3116_v31  ;;  %v4517_v1 = vperm.slane %v3739_v0, %v8540_v53  ;;  %v3128_v41 = vsel %vm11180_vm0, %v2602_v7, 0.0  ;;  %6156 = vtanh.f32 %v2190_v37  ;;  %v1898_v11 = vpop.f32.mrf.mxu3 }
 0x32a   :  { %v4135_v12 = vperm.slane %v3542_v55, %v8528_v60  ;;  %v9653_v57 = vsel %vm4070_vm15, %v4256_v6, %v4255_v36  ;;  %3120 = vadd.xlane.f32.xlu0 %v3119_v32  ;;  %v2204_v55 = vadd.f32 %v8899_v20, %v1892_v27  ;;  %v2604_v31 = vmul.f32 %v9527_v52, %v6149_v46 }
 0x32b   :  { %v2690_v59 = vmul.f32 %v9527_v52, %v6151_v19  ;;  %v2206_v0 = vadd.f32 %v8899_v20, %v1898_v11 }
 0x32c   :  { %v9649_v51 = vsel %vm4014_vm1, %v4135_v12, %v4134_v54  ;;  %3132 = vadd.xlane.f32.xlu1 %v3131_v14  ;;  %v3457_v18 = vpop.xlane.xlu2 %3456  ;;  %v6153_v54 = vpop.eup %6152  ;;  %6158 = vtanh.f32 %v2204_v55  ;;  %v3134_v9 = vsel %vm11180_vm0, %v2604_v31, 0.0 }
 0x32d   :  { %v3737_v10 = vadd.f32 %v8505_v62, %v3457_v18  ;;  %v2605_v24 = vmul.f32 %v9527_v52, %v6153_v54  ;;  %v6155_v43 = vpop.eup %6154  ;;  %v3392_v5 = vsel %vm11180_vm0, %v2690_v59, 0.0  ;;  %6160 = vtanh.f32 %v2205_v47 }
 0x32e   :  { %v2878_v48 = vpop.xlane.xlu0 %2877  ;;  %6162 = vtanh.f32 %v2206_v0 }
 0x32f   :  { %v3460_v45 = vpop.xlane.xlu1 %3459  ;;  %v4513_v23 = vperm.slane %v3737_v10, %v8524_v38  ;;  %v3137_v56 = vsel %vm11180_vm0, %v2605_v24, 0.0  ;;  %v3544_v25 = vadd.f32 %v8505_v62, %v2878_v48 }
 0x330   :  { %v3738_v3 = vadd.f32 %v8505_v62, %v3460_v45 }
 0x331   :  { %v4514_v26 = vsel %vm4026_vm4, %v4513_v23, %v9599_v44  ;;  %3126 = vadd.xlane.f32.xlu2 %v3125_v61  ;;  %v2705_v23 = vmul.f32 %v9527_v52, %v6155_v43 }
 0x332   :  { %v4515_v21 = vperm.slane %v3738_v3, %v8533_v28  ;;  %3129 = vadd.xlane.f32.xlu0 %v3128_v41  ;;  %v6157_v3 = vpop.eup %6156 }
 0x333   :  { %v6159_v20 = vpop.eup %6158  ;;  %v2706_v61 = vmul.f32 %v9527_v52, %v6157_v3  ;;  %v3437_v48 = vsel %vm11180_vm0, %v2705_v23, 0.0 }
 0x334   :  { %v4516_v22 = vsel %vm4030_vm5, %v4515_v21, %v4514_v26  ;;  %3141 = vadd.xlane.f32.xlu1 %v3140_v42  ;;  %v3295_v27 = vpop.xlane.xlu2 %3294  ;;  %v2720_v46 = vmul.f32 %v9527_v52, %v6159_v20  ;;  %v6161_v26 = vpop.eup %6160 }
 0x335   :  { %v4518_v6 = vsel %vm4034_vm6, %v4517_v1, %v4516_v22  ;;  %v3683_v44 = vadd.f32 %v8505_v62, %v3295_v27  ;;  %v4139_v1 = vperm.slane %v3544_v25, %v8521_v13  ;;  %v3440_v19 = vsel %vm11180_vm0, %v2706_v61, 0.0  ;;  %v6163_v54 = vpop.eup %6162  ;;  %v11360_v61 = vld [vmem:[#allocation39_spill] sm:$0xff] }
 0x336   :  { %v3466_v36 = vpop.xlane.xlu0 %3465  ;;  %v3482_v22 = vsel %vm11180_vm0, %v2720_v46, 0.0  ;;  %v2721_v31 = vmul.f32 %v9527_v52, %v6161_v26  ;;  %v3559_v46 = vadd.f32 %v8505_v62, %v11360_v61  ;;  %v11362_v26 = vld [vmem:[#allocation47_spill] sm:$0xff] }
 0x337   :  { %v3298_v12 = vpop.xlane.xlu1 %3297  ;;  %v4409_v16 = vperm.slane %v3683_v44, %v8865_v8  ;;  %v3740_v32 = vadd.f32 %v8505_v62, %v3466_v36 }
 0x338   :  { %v3684_v14 = vadd.f32 %v8505_v62, %v3298_v12  ;;  %v2722_v12 = vmul.f32 %v9527_v52, %v6163_v54  ;;  %v3485_v11 = vsel %vm11180_vm0, %v2721_v31, 0.0 }
 0x339   :  { %v4410_v10 = vsel %vm4066_vm14, %v4409_v16, %v9616_v4  ;;  %3135 = vadd.xlane.f32.xlu2 %v3134_v9  ;;  %v4519_v45 = vperm.slane %v3740_v32, %v8536_v2 }
 0x33a   :  { %v4411_v18 = vperm.slane %v3684_v14, %v8906_v35  ;;  %3138 = vadd.xlane.f32.xlu0 %v3137_v56  ;;  %v4684_v14 = vld [vmem:[%s11153_s2 + $0x160] sm:$0xff]  ;;  %v3488_v24 = vsel %vm11180_vm0, %v2722_v12, 0.0  ;;  %vm11371_vm0 = vcmask 786112  }
 0x33b   :  { %v4520_v4 = vsel %vm11183_vm7, %v4519_v45, %v4518_v6  ;;  %v4653_v6 = vld [vmem:[%s11153_s2 + $0x68] sm:$0xff]  ;;  %4939 = vmatpush.msra.mxu0 %v4684_v14  ;;  %v11365_v14 = vld [vmem:[#allocation56_spill] sm:$0xff] }
 0x33c   :  { %v9695_v7 = vsel %vm4070_vm15, %v4411_v18, %v4410_v10  ;;  %3393 = vadd.xlane.f32.xlu1 %v3392_v5  ;;  %v2875_v50 = vpop.xlane.xlu2 %2874  ;;  %4898 = vmatpush.msrb.mxu2 %v4653_v6  ;;  %v4168_v6 = vperm.slane %v3559_v46, %v8514_v33 }
 0x33d   :  { %v3543_v15 = vadd.f32 %v8505_v62, %v2875_v50  ;;  %v11359_v50 = vld [vmem:[#allocation35_spill] sm:$0xff] }
 0x33e   :  { %v9705_v21 = vpop.xlane.xlu0 %3066  ;;  %v3557_v23 = vadd.f32 %v8505_v62, %v11359_v50  ;;  %v11366_v50 = vld [vmem:[#allocation16_spill] sm:$0xff] }
 0x33f   :  { %v9702_v37 = vpop.xlane.xlu1 %3060  ;;  %v4137_v55 = vperm.slane %v3543_v15, %v8514_v33 }
 0x341   :  { %v4138_v42 = vsel %vm4018_vm2, %v4137_v55, %v9649_v51  ;;  %3438 = vadd.xlane.f32.xlu2 %v3437_v48 }
 0x342   :  { %v9716_v41 = vsel %vm4022_vm3, %v4139_v1, %v4138_v42  ;;  %3483 = vadd.xlane.f32.xlu0 %v3482_v22  ;;  %v11361_v1 = vld [vmem:[#allocation31_spill] sm:$0xff]  ;;  %v3560_v42 = vadd.f32 %v8505_v62, %v11362_v26  ;;  %v4165_v22 = vperm.slane %v3557_v23, %v8483_v49  ;;  %v9793_v23 = vadd.f32 %v8505_v62, %v11366_v50 }
 0x343   :  { %v3558_v48 = vadd.f32 %v8505_v62, %v11361_v1 }
 0x344   :  { %3441 = vadd.xlane.f32.xlu1 %v3440_v19  ;;  %v9721_v27 = vpop.xlane.xlu2 %3063 }
 0x345   :  { %v4166_v31 = vperm.slane %v3558_v48, %v8528_v60  ;;  %v11368_v48 = vld [vmem:[#allocation17_spill] sm:$0xff] }
 0x346   :  { %v3469_v44 = vpop.xlane.xlu0 %3468  ;;  %v9801_v26 = vadd.f32 %v8505_v62, %v11368_v48 }
 0x347   :  { %v3301_v51 = vpop.xlane.xlu1 %3300  ;;  %v3741_v59 = vadd.f32 %v8505_v62, %v3469_v44  ;;  %v11363_v44 = vld [vmem:[#allocation54_spill] sm:$0xff] }
 0x348   :  { %v3685_v16 = vadd.f32 %v8505_v62, %v3301_v51  ;;  %v4170_v51 = vperm.slane %v3560_v42, %v8521_v13  ;;  %v3562_v12 = vadd.f32 %v8505_v62, %v11363_v44  ;;  %v11369_v42 = vld [vmem:[#allocation18_spill] sm:$0xff] }
 0x349   :  { %3486 = vadd.xlane.f32.xlu2 %v3485_v11  ;;  %v4521_v36 = vperm.slane %v3741_v59, %v8543_v63  ;;  %v11364_v11 = vld [vmem:[#allocation46_spill] sm:$0xff] }
 0x34a   :  { %3489 = vadd.xlane.f32.xlu0 %v3488_v24  ;;  %v4413_v43 = vperm.slane %v3685_v16, %v8483_v49  ;;  %v3563_v24 = vadd.f32 %v8505_v62, %v11365_v14  ;;  %v4652_v16 = vld [vmem:[%s11153_s2 + $0x60] sm:$0xff]  ;;  %v4174_v40 = vperm.slane %v3562_v12, %v8533_v28  ;;  %v11373_v44 = vld [vmem:[#allocation22_spill] sm:$0xff]  ;;  %v4159_v14 = vperm.slane %v9793_v23, %v8855_v30 }
 0x34b   :  { %v4522_v47 = vsel %vm4042_vm8, %v4521_v36, %v4520_v4  ;;  %v3561_v36 = vadd.f32 %v8505_v62, %v11364_v11  ;;  %4899 = vmatpush.msrb.mxu2 %v4652_v16  ;;  %v9816_v12 = vadd.f32 %v8505_v62, %v11373_v44 }
 0x34c   :  { %v3304_v52 = vpop.xlane.xlu2 %3303  ;;  %v4176_v46 = vperm.slane %v3563_v24, %v8540_v53 }
 0x34d   :  { %v3686_v32 = vadd.f32 %v8505_v62, %v3304_v52  ;;  %v4683_v52 = vld [vmem:[%s11153_s2 + $0x158] sm:$0xff]  ;;  %v4172_v61 = vperm.slane %v3561_v36, %v8524_v38 }
 0x34e   :  { %v3472_v18 = vpop.xlane.xlu0 %3471  ;;  %4940 = vmatpush.msra.mxu0 %v4683_v52  ;;  %v4157_v52 = vperm.slane %v9801_v26, %v11314_v34 }
 0x34f   :  { %v2881_v9 = vpop.xlane.xlu1 %2880  ;;  %v4414_v0 = vperm.slane %v3686_v32, %v8528_v60  ;;  %v3742_v10 = vadd.f32 %v8505_v62, %v3472_v18  ;;  %v4167_v32 = vsel %vm4014_vm1, %v4166_v31, %v4165_v22  ;;  %v11370_v22 = vld [vmem:[#allocation55_spill] sm:$0xff]  ;;  %v11372_v31 = vld [vmem:[#allocation20_spill] sm:$0xff] }
 0x351   :  { %v9739_v45 = vsel %vm4014_vm1, %v4414_v0, %v4413_v43  ;;  %v4523_v5 = vperm.slane %v3742_v10, %v11306_v29  ;;  %v4169_v0 = vsel %vm4018_vm2, %v4168_v6, %v4167_v32 }
 0x353   :  { %v4524_v3 = vsel %vm4046_vm9, %v4523_v5, %v4522_v47  ;;  %v4171_v5 = vsel %vm4022_vm3, %v4170_v51, %v4169_v0  ;;  %v9812_v51 = vadd.f32 %v8505_v62, %v11372_v31  ;;  %v11374_v0 = vld [vmem:[#allocation65_spill] sm:$0xff]  ;;  %v11377_v31 = vld [vmem:[#allocation67_spill] sm:$0xff] }
 0x354   :  { %v2884_v56 = vpop.xlane.xlu2 %2883  ;;  %v4173_v11 = vsel %vm4026_vm4, %v4172_v61, %v4171_v5  ;;  %v3566_v5 = vadd.f32 %v8505_v62, %v11374_v0  ;;  %v3567_v44 = vadd.f32 %v8505_v62, %v11377_v31 }
 0x355   :  { %v4175_v36 = vsel %vm4030_vm5, %v4174_v40, %v4173_v11 }
 0x356   :  { %v9748_v4 = vpop.xlane.xlu0 %2886  ;;  %v4177_v24 = vsel %vm4034_vm6, %v4176_v46, %v4175_v36  ;;  %v11376_v46 = vld [vmem:[#allocation24_spill] sm:$0xff] }
 0x357   :  { %v9746_v20 = vpop.xlane.xlu1 %3069  ;;  %v3547_v0 = vadd.f32 %v8505_v62, %v9748_v4 }
 0x35c   :  { %v9750_v25 = vpop.xlane.xlu2 %3072 }
 0x35e   :  { %v3475_v55 = vpop.xlane.xlu0 %3474 }
 0x35f   :  { %v9754_v15 = vpop.xlane.xlu1 %2889  ;;  %v3743_v19 = vadd.f32 %v8505_v62, %v3475_v55  ;;  %v11367_v55 = vld [vmem:[#allocation73_spill] sm:$0xff] }
 0x360   :  { %v3565_v1 = vadd.f32 %v8505_v62, %v11367_v55  ;;  %v9842_v55 = vadd.f32 %v8505_v62, %v11376_v46  ;;  %v11379_v46 = vld [vmem:[#allocation30_spill] sm:$0xff] }
 0x361   :  { %v4525_v54 = vperm.slane %v3743_v19, %v11310_v58  ;;  %v9805_v19 = vadd.f32 %v8505_v62, %v11369_v42  ;;  %v3606_v42 = vadd.f32 %v8505_v62, %v9721_v27  ;;  %v3548_v27 = vadd.f32 %v8505_v62, %v9754_v15 }
 0x362   :  { %v9870_v4 = vadd.f32 %v8505_v62, %v11379_v46 }
 0x363   :  { %v4526_v59 = vsel %vm4050_vm10, %v4525_v54, %v4524_v3  ;;  %v3564_v54 = vadd.f32 %v8505_v62, %v11370_v22  ;;  %v4161_v32 = vperm.slane %v9805_v19, %v8865_v8  ;;  %v3546_v22 = vadd.f32 %v8505_v62, %v2884_v56 }
 0x364   :  { %v3478_v47 = vpop.xlane.xlu2 %3477 }
 0x365   :  { %v3744_v18 = vadd.f32 %v8505_v62, %v3478_v47  ;;  %v4180_v47 = vperm.slane %v3565_v1, %v8543_v63 }
 0x366   :  { %v9786_v10 = vpop.xlane.xlu0 %3075 }
 0x367   :  { %v9783_v43 = vpop.xlane.xlu1 %3078  ;;  %v4527_v3 = vperm.slane %v3744_v18, %v11311_v39  ;;  %v4178_v18 = vperm.slane %v3564_v54, %v8536_v2 }
 0x369   :  { %v4528_v6 = vsel %vm11371_vm0, %v4527_v3, %v4526_v59  ;;  %v3545_v59 = vadd.f32 %v8505_v62, %v2881_v9  ;;  %v11375_v9 = vld [vmem:[#allocation23_spill] sm:$0xff]  ;;  %v4179_v48 = vsel %vm11183_vm7, %v4178_v18, %v4177_v24  ;;  %v3605_v24 = vadd.f32 %v8505_v62, %v9702_v37 }
 0x36a   :  { %v9838_v61 = vadd.f32 %v8505_v62, %v11375_v9  ;;  %v4181_v11 = vsel %vm4042_vm8, %v4180_v47, %v4179_v48  ;;  %v4182_v9 = vperm.slane %v3566_v5, %v11306_v29  ;;  %v4666_v18 = vld [vmem:[%s11153_s2 + $0xd0] sm:$0xff]  ;;  %v11378_v47 = vld [vmem:[#allocation25_spill] sm:$0xff]  ;;  %v4259_v48 = vperm.slane %v3606_v42, %v8528_v60 }
 0x36b   :  { %v4141_v36 = vperm.slane %v3545_v59, %v8524_v38  ;;  %v9866_v59 = vadd.f32 %v8505_v62, %v11378_v47  ;;  %v11380_v5 = vld [vmem:[#allocation85_spill] sm:$0xff]  ;;  %4921 = vmatpush.msrb.mxu3 %v4666_v18  ;;  %vm11381_vm0 = vcmask 851712   ;;  %v4184_v47 = vperm.slane %v3567_v44, %v11310_v58 }
 0x36c   :  { %v2893_v16 = vpop.xlane.xlu2 %2892  ;;  %v3568_v37 = vadd.f32 %v8505_v62, %v11380_v5  ;;  %v4183_v15 = vsel %vm4046_vm9, %v4182_v9, %v4181_v11  ;;  %v4145_v3 = vperm.slane %v3547_v0, %v8540_v53  ;;  %v11382_v5 = vld [vmem:[#allocation75_spill] sm:$0xff]  ;;  %v3607_v42 = vadd.f32 %v8505_v62, %v9705_v21  ;;  %v11383_v9 = vld [vmem:[#allocation33_spill] sm:$0xff] }
 0x36d   :  { %v4142_v46 = vsel %vm4026_vm4, %v4141_v36, %v9716_v41  ;;  %v3569_v11 = vadd.f32 %v8505_v62, %v11382_v5  ;;  %v9895_v41 = vadd.f32 %v8505_v62, %v11383_v9  ;;  %v4185_v36 = vsel %vm4050_vm10, %v4184_v47, %v4183_v15  ;;  %v4651_v9 = vld [vmem:[%s11153_s2 + $0x58] sm:$0xff] }
 0x36e   :  { %v3481_v1 = vpop.xlane.xlu0 %3480  ;;  %4900 = vmatpush.msrb.mxu2 %v4651_v9 }
 0x36f   :  { %v2899_v40 = vpop.xlane.xlu1 %2898  ;;  %v3745_v54 = vadd.f32 %v8505_v62, %v3481_v1  ;;  %v3549_v1 = vadd.f32 %v8505_v62, %v2893_v16  ;;  %v3608_v16 = vadd.f32 %v8505_v62, %v9746_v20  ;;  %v4186_v20 = vperm.slane %v3568_v37, %v11311_v39 }
 0x371   :  { %v4529_v56 = vperm.slane %v3745_v54, %v11314_v34  ;;  %v4143_v54 = vperm.slane %v3546_v22, %v8533_v28  ;;  %v4147_v22 = vperm.slane %v3548_v27, %v8536_v2  ;;  %v4149_v0 = vperm.slane %v3549_v1, %v8543_v63 }
 0x372   :  { %v4263_v37 = vperm.slane %v3608_v16, %v8521_v13  ;;  %v3610_v1 = vadd.f32 %v8505_v62, %v9786_v10  ;;  %v11386_v16 = vld [vmem:[#allocation94_spill] sm:$0xff] }
 0x373   :  { %v9879_v31 = vsel %vm11381_vm0, %v4529_v56, %v4528_v6  ;;  %v4258_v6 = vperm.slane %v3605_v24, %v8483_v49  ;;  %v4144_v21 = vsel %vm4030_vm5, %v4143_v54, %v4142_v46  ;;  %v3609_v24 = vadd.f32 %v8505_v62, %v9750_v25 }
 0x374   :  { %v3082_v18 = vpop.xlane.xlu2 %3081  ;;  %v4146_v15 = vsel %vm4034_vm6, %v4145_v3, %v4144_v21  ;;  %v4188_v54 = vperm.slane %v3569_v11, %v11314_v34  ;;  %v4261_v25 = vperm.slane %v3607_v42, %v8514_v33  ;;  %vm11385_vm0 = vcmask 786112  }
 0x375   :  { %v4260_v5 = vsel %vm4014_vm1, %v4259_v48, %v4258_v6  ;;  %v3551_v48 = vadd.f32 %v8505_v62, %v2899_v40  ;;  %v4148_v47 = vsel %vm11183_vm7, %v4147_v22, %v4146_v15  ;;  %v11384_v6 = vld [vmem:[#allocation80_spill] sm:$0xff]  ;;  %v4187_v3 = vsel %vm11385_vm0, %v4186_v20, %v4185_v36 }
 0x376   :  { %v2896_v56 = vpop.xlane.xlu0 %2895  ;;  %v3571_v21 = vadd.f32 %v8505_v62, %v11386_v16  ;;  %v4150_v10 = vsel %vm4042_vm8, %v4149_v0, %v4148_v47  ;;  %v4262_v40 = vsel %vm4018_vm2, %v4261_v25, %v4260_v5  ;;  %v4265_v11 = vperm.slane %v3609_v24, %v8524_v38  ;;  %v11387_v24 = vld [vmem:[#allocation41_spill] sm:$0xff] }
 0x377   :  { %v3088_v44 = vpop.xlane.xlu1 %3087  ;;  %v3550_v27 = vadd.f32 %v8505_v62, %v2896_v56  ;;  %v3570_v56 = vadd.f32 %v8505_v62, %v11384_v6  ;;  %v3611_v42 = vadd.f32 %v8505_v62, %v9783_v43  ;;  %v4267_v9 = vperm.slane %v3610_v1, %v8533_v28 }
 0x378   :  { %v4153_v36 = vperm.slane %v3551_v48, %v11310_v58  ;;  %v3612_v20 = vadd.f32 %v8505_v62, %v3082_v18  ;;  %v4163_v0 = vperm.slane %v9870_v4, %v8906_v35  ;;  %v4320_v5 = vperm.slane %v9895_v41, %v8483_v49 }
 0x379   :  { %v4151_v46 = vperm.slane %v3550_v27, %v11306_v29  ;;  %v4264_v27 = vsel %vm4022_vm3, %v4263_v37, %v4262_v40  ;;  %v3638_v43 = vadd.f32 %v8505_v62, %v11387_v24  ;;  %v11388_v37 = vld [vmem:[#allocation40_spill] sm:$0xff]  ;;  %vm11389_vm0 = vcmask 851712  }
 0x37a   :  { %v3639_v1 = vadd.f32 %v8505_v62, %v11388_v37  ;;  %v4189_v48 = vsel %vm11389_vm0, %v4188_v54, %v4187_v3  ;;  %v4192_v18 = vperm.slane %v3571_v21, %v8865_v8  ;;  %v4266_v4 = vsel %vm4026_vm4, %v4265_v11, %v4264_v27 }
 0x37b   :  { %v4152_v22 = vsel %vm4046_vm9, %v4151_v46, %v4150_v10  ;;  %v4269_v41 = vperm.slane %v3611_v42, %v8540_v53  ;;  %v4190_v40 = vperm.slane %v3570_v56, %v8855_v30  ;;  %v4268_v54 = vsel %vm4030_vm5, %v4267_v9, %v4266_v4  ;;  %v4682_v56 = vld [vmem:[%s11153_s2 + $0x150] sm:$0xff] }
 0x37c   :  { %v2902_v15 = vpop.xlane.xlu2 %2901  ;;  %v4154_v46 = vsel %vm4050_vm10, %v4153_v36, %v4152_v22  ;;  %v4271_v3 = vperm.slane %v3612_v20, %v8536_v2  ;;  %v4321_v21 = vperm.slane %v3638_v43, %v8528_v60  ;;  %v11391_v22 = vld [vmem:[#allocation42_spill] sm:$0xff]  ;;  %vm11392_vm0 = vcmask 786112   ;;  %4941 = vmatpush.msra.mxu0 %v4682_v56 }
 0x37d   :  { %v3552_v25 = vadd.f32 %v8505_v62, %v2902_v15  ;;  %v11390_v15 = vld [vmem:[#allocation84_spill] sm:$0xff]  ;;  %v3640_v11 = vadd.f32 %v8505_v62, %v11391_v22  ;;  %v11393_v36 = vld [vmem:[#allocation50_spill] sm:$0xff]  ;;  %v4191_v9 = vsel %vm4062_vm13, %v4190_v40, %v4189_v48  ;;  %v3614_v20 = vadd.f32 %v8505_v62, %v3088_v44  ;;  %v11395_v22 = vld [vmem:[#allocation115_spill] sm:$0xff] }
 0x37e   :  { %v3085_v6 = vpop.xlane.xlu0 %3084  ;;  %v3572_v24 = vadd.f32 %v8505_v62, %v11390_v15  ;;  %v4193_v37 = vsel %vm4066_vm14, %v4192_v18, %v4191_v9  ;;  %v11396_v56 = vld [vmem:[#allocation26_spill] sm:$0xff] }
 0x37f   :  { %v3097_v47 = vpop.xlane.xlu1 %3096  ;;  %v4155_v16 = vperm.slane %v3552_v25, %v11311_v39  ;;  %v3613_v10 = vadd.f32 %v8505_v62, %v3085_v6  ;;  %v3641_v25 = vadd.f32 %v8505_v62, %v11393_v36  ;;  %v11397_v36 = vld [vmem:[#allocation49_spill] sm:$0xff] }
 0x380   :  { %v4194_v48 = vperm.slane %v3572_v24, %v8906_v35  ;;  %v3642_v9 = vadd.f32 %v8505_v62, %v11397_v36 }
 0x381   :  { %v4156_v42 = vsel %vm11392_vm0, %v4155_v16, %v4154_v46  ;;  %v4273_v27 = vperm.slane %v3613_v10, %v8543_v63  ;;  %v4270_v46 = vsel %vm4034_vm6, %v4269_v41, %v4268_v54  ;;  %vm4541_vm0 = vcmask 1043459  }
 0x382   :  { %v4158_v43 = vsel %vm11394_vm11, %v4157_v52, %v4156_v42  ;;  %v4272_v44 = vsel %vm11183_vm7, %v4271_v3, %v4270_v46  ;;  %vm11186_vm11 = vcmask 1044484   ;;  %v4275_v16 = vperm.slane %v3614_v20, %v11306_v29 }
 0x383   :  { %v4160_v6 = vsel %vm4062_vm13, %v4159_v14, %v4158_v43  ;;  %v4274_v18 = vsel %vm4042_vm8, %v4273_v27, %v4272_v44  ;;  %v4195_v14 = vsel %vm4070_vm15, %v4194_v48, %v4193_v37  ;;  %vm11184_vm7 = vcmask 1046534   ;;  %v11398_v37 = vld [vmem:[#allocation60_spill] sm:$0xff]  ;;  %v11400_v44 = vld [vmem:[#allocation29_spill] sm:$0xff] }
 0x384   :  { %v4162_v26 = vsel %vm4066_vm14, %v4161_v32, %v4160_v6  ;;  %v3091_v52 = vpop.xlane.xlu2 %3090  ;;  %v4322_v32 = vsel %vm4014_vm1, %v4321_v21, %v4320_v5  ;;  %v4323_v54 = vperm.slane %v3639_v1, %v8514_v33  ;;  %v4276_v3 = vsel %vm4046_vm9, %v4275_v16, %v4274_v18  ;;  %v11399_v6 = vld [vmem:[#allocation28_spill] sm:$0xff] }
 0x385   :  { %v3615_v4 = vadd.f32 %v8505_v62, %v3091_v52  ;;  %v4164_v23 = vsel %vm4070_vm15, %v4163_v0, %v4162_v26  ;;  %v4416_v0 = vperm.slane %v9838_v61, %v8514_v33  ;;  %v3617_v5 = vadd.f32 %v8505_v62, %v3097_v47  ;;  %v11401_v52 = vld [vmem:[#allocation34_spill] sm:$0xff]  ;;  %v11403_v18 = vld [vmem:[#allocation36_spill] sm:$0xff] }
 0x386   :  { %v3094_v10 = vpop.xlane.xlu0 %3093  ;;  %v4542_v19 = vsel %vm4541_vm0, %v4164_v23, %v9593_v17  ;;  %v10006_v61 = vadd.f32 %v8505_v62, %v11396_v56  ;;  %v4324_v1 = vsel %vm4018_vm2, %v4323_v54, %v4322_v32  ;;  %v4327_v20 = vperm.slane %v3641_v25, %v8524_v38 }
 0x387   :  { %v3106_v41 = vpop.xlane.xlu1 %3105  ;;  %v4277_v40 = vperm.slane %v3615_v4, %v11310_v58  ;;  %v3616_v15 = vadd.f32 %v8505_v62, %v3094_v10  ;;  %v4544_v24 = vsel %vm11186_vm11, %v4195_v14, %v4542_v19  ;;  %v4418_v43 = vperm.slane %v9866_v59, %v8521_v13 }
 0x388   :  { %v4546_v42 = vsel %vm11185_vm12, %v11395_v22, %v4544_v24  ;;  %v4325_v47 = vperm.slane %v3640_v11, %v8521_v13  ;;  %v3643_v46 = vadd.f32 %v8505_v62, %v11398_v37  ;;  %v10020_v48 = vadd.f32 %v8505_v62, %v11399_v6 }
 0x389   :  { %v4279_v21 = vperm.slane %v3616_v15, %v11311_v39  ;;  %v4548_v27 = vsel %vm11184_vm7, %v9653_v57, %v4546_v42  ;;  %v4278_v57 = vsel %vm4050_vm10, %v4277_v40, %v4276_v3  ;;  %v10024_v26 = vadd.f32 %v8505_v62, %v11400_v44  ;;  %v11404_v40 = vld [vmem:[#allocation59_spill] sm:$0xff] }
 0x38a   :  { %v10028_v25 = vadd.f32 %v8505_v62, %v11401_v52  ;;  %vm11402_vm7 = vcmask 786112   ;;  %v10033_v4 = vadd.f32 %v8505_v62, %v11403_v18  ;;  %v4326_v23 = vsel %vm4022_vm3, %v4325_v47, %v4324_v1 }
 0x38b   :  { %v4280_v59 = vsel %vm11402_vm7, %v4279_v21, %v4278_v57  ;;  %v4281_v14 = vperm.slane %v3617_v5, %v11314_v34  ;;  %v4329_v19 = vperm.slane %v3642_v9, %v8533_v28  ;;  %v4328_v32 = vsel %vm4026_vm4, %v4327_v20, %v4326_v23  ;;  %v11406_v9 = vld [vmem:[#allocation58_spill] sm:$0xff]  ;;  %v11409_v23 = vld [vmem:[#allocation45_spill] sm:$0xff] }
 0x38c   :  { %v3100_v11 = vpop.xlane.xlu2 %3099  ;;  %v3644_v15 = vadd.f32 %v8505_v62, %v11404_v40  ;;  %v3620_v24 = vadd.f32 %v8505_v62, %v3106_v41  ;;  %v4331_v3 = vperm.slane %v3643_v46, %v8540_v53  ;;  %vm11405_vm7 = vcmask 851712   ;;  %v11410_v40 = vld [vmem:[#allocation51_spill] sm:$0xff] }
 0x38d   :  { %v3618_v16 = vadd.f32 %v8505_v62, %v3100_v11  ;;  %v4282_v22 = vsel %vm11405_vm7, %v4281_v14, %v4280_v59  ;;  %v4420_v21 = vperm.slane %v10006_v61, %v8524_v38  ;;  %v4422_v1 = vperm.slane %v10024_v26, %v8533_v28  ;;  %v4665_v61 = vld [vmem:[%s11153_s2 + $0xc8] sm:$0xff]  ;;  %v11407_v26 = vld [vmem:[#allocation76_spill] sm:$0xff] }
 0x38e   :  { %v3103_v54 = vpop.xlane.xlu0 %3102  ;;  %v4426_v41 = vperm.slane %v10028_v25, %v8536_v2  ;;  %v4424_v36 = vperm.slane %v10033_v4, %v8540_v53  ;;  %v3645_v20 = vadd.f32 %v8505_v62, %v11406_v9  ;;  %v4330_v47 = vsel %vm4030_vm5, %v4329_v19, %v4328_v32  ;;  %4922 = vmatpush.msrb.mxu3 %v4665_v61  ;;  %v11408_v11 = vld [vmem:[#allocation44_spill] sm:$0xff]  ;;  %v11413_v9 = vld [vmem:[#allocation61_spill] sm:$0xff] }
 0x38f   :  { %v10038_v10 = vpop.xlane.xlu1 %3114  ;;  %v4283_v42 = vperm.slane %v3618_v16, %v8855_v30  ;;  %v3619_v5 = vadd.f32 %v8505_v62, %v3103_v54  ;;  %v4333_v46 = vperm.slane %v3644_v15, %v8536_v2  ;;  %v4287_v57 = vperm.slane %v3620_v24, %v8906_v35  ;;  %v11411_v24 = vld [vmem:[#allocation57_spill] sm:$0xff] }
 0x390   :  { %vm4549_vm7 = vcmask 1047559   ;;  %v4332_v44 = vsel %vm4034_vm6, %v4331_v3, %v4330_v47  ;;  %v3646_v52 = vadd.f32 %v8505_v62, %v11407_v26  ;;  %vm3754_vm12 = vcmp.lt.s32.totalorder %v8483_v49, 10  ;;  %v11416_v26 = vld [vmem:[#allocation68_spill] sm:$0xff] }
 0x391   :  { %v4285_v37 = vperm.slane %v3619_v5, %v8865_v8  ;;  %v4284_v6 = vsel %vm4062_vm13, %v4283_v42, %v4282_v22  ;;  %v10076_v18 = vadd.f32 %v8505_v62, %v11408_v11  ;;  %v10080_v14 = vadd.f32 %v8505_v62, %v11409_v23  ;;  %v11417_v11 = vld [vmem:[#allocation71_spill] sm:$0xff] }
 0x392   :  { %v4417_v16 = vsel %vm4018_vm2, %v4416_v0, %v9739_v45  ;;  %v10087_v15 = vadd.f32 %v8505_v62, %v11410_v40  ;;  %v10091_v54 = vadd.f32 %v8505_v62, %v11411_v24  ;;  %v4335_v3 = vperm.slane %v3645_v20, %v8543_v63  ;;  %v11414_v0 = vld [vmem:[#allocation88_spill] sm:$0xff]  ;;  %v11415_v20 = vld [vmem:[#allocation91_spill] sm:$0xff] }
 0x393   :  { %v4286_v59 = vsel %vm4066_vm14, %v4285_v37, %v4284_v6  ;;  %vm11412_vm11 = vcmask 523712   ;;  %v10098_v45 = vadd.f32 %v8505_v62, %v11413_v9  ;;  %v3702_v47 = vadd.f32 %v8505_v62, %v11414_v0  ;;  %v4650_v24 = vld [vmem:[%s11153_s2 + $0x50] sm:$0xff] }
 0x394   :  { %v3109_v19 = vpop.xlane.xlu2 %3108  ;;  %v4288_v32 = vsel %vm4070_vm15, %v4287_v57, %v4286_v59  ;;  %v4334_v5 = vsel %vm11412_vm11, %v4333_v46, %v4332_v44  ;;  %v4337_v57 = vperm.slane %v3646_v52, %v11306_v29  ;;  %v3703_v6 = vadd.f32 %v8505_v62, %v11415_v20  ;;  %4901 = vmatpush.msrb.mxu2 %v4650_v24 }
 0x395   :  { %v4550_v42 = vsel %vm4549_vm7, %v4288_v32, %v4548_v27  ;;  %v4419_v27 = vsel %vm4022_vm3, %v4418_v43, %v4417_v16  ;;  %v4428_v44 = vperm.slane %v10076_v18, %v8543_v63  ;;  %v3647_v59 = vadd.f32 %v8505_v62, %v11416_v26 }
 0x396   :  { %v3112_v37 = vpop.xlane.xlu0 %3111  ;;  %v10104_v61 = vsel %vm3754_vm12, %v4550_v42, -1e+30  ;;  %v3701_v23 = vadd.f32 %v8505_v62, %v11417_v11  ;;  %v3621_v52 = vadd.f32 %v8505_v62, %v3109_v19  ;;  %v4430_v32 = vperm.slane %v10080_v14, %v11306_v29  ;;  %v11418_v42 = vld [vmem:[#allocation82_spill] sm:$0xff]  ;;  %v11419_v11 = vld [vmem:[#allocation63_spill] sm:$0xff] }
 0x397   :  { %v3124_v22 = vpop.xlane.xlu1 %3123  ;;  %v3622_v46 = vadd.f32 %v8505_v62, %v3112_v37  ;;  %4569 = vmax.xlane.f32.xlu1 %v10104_v61  ;;  %v4432_v43 = vperm.slane %v10087_v15, %v11310_v58  ;;  %v4434_v16 = vperm.slane %v10091_v54, %v11311_v39  ;;  %v4336_v40 = vsel %vm4042_vm8, %v4335_v3, %v4334_v5 }
 0x398   :  { %v3704_v9 = vadd.f32 %v8505_v62, %v11418_v42  ;;  %v4445_v19 = vperm.slane %v3702_v47, %v8528_v60  ;;  %v4421_v0 = vsel %vm4026_vm4, %v4420_v21, %v4419_v27  ;;  %v4338_v26 = vsel %vm4046_vm9, %v4337_v57, %v4336_v40  ;;  %v11421_v57 = vld [vmem:[#allocation74_spill] sm:$0xff] }
 0x399   :  { %v4290_v37 = vperm.slane %v3622_v46, %v8528_v60  ;;  %v4447_v3 = vperm.slane %v3703_v6, %v8514_v33  ;;  %v3623_v5 = vadd.f32 %v8505_v62, %v10038_v10  ;;  %v10142_v42 = vadd.f32 %v8505_v62, %v11419_v11  ;;  %v11420_v46 = vld [vmem:[#allocation69_spill] sm:$0xff] }
 0x39a   :  { %v4339_v47 = vperm.slane %v3647_v59, %v11310_v58  ;;  %v4444_v21 = vperm.slane %v3701_v23, %v8483_v49  ;;  %v4289_v60 = vperm.slane %v3621_v52, %v8483_v49  ;;  %v10149_v24 = vadd.f32 %v8505_v62, %v11420_v46  ;;  %v11422_v46 = vld [vmem:[#allocation89_spill] sm:$0xff]  ;;  %v4677_v49 = vld [vmem:[%s11153_s2 + $0x128] sm:$0xff] }
 0x39b   :  { %v3648_v6 = vadd.f32 %v8505_v62, %v11421_v57  ;;  %v4423_v10 = vsel %vm4030_vm5, %v4422_v1, %v4421_v0  ;;  %v4449_v23 = vperm.slane %v3704_v9, %v8521_v13  ;;  %v3705_v17 = vadd.f32 %v8505_v62, %v11422_v46  ;;  %v11429_v46 = vld [vmem:[#allocation79_spill] sm:$0xff] }
 0x39c   :  { %v3118_v27 = vpop.xlane.xlu2 %3117  ;;  %v4340_v59 = vsel %vm4050_vm10, %v4339_v47, %v4338_v26  ;;  %v4446_v52 = vsel %vm4014_vm1, %v4445_v19, %v4444_v21  ;;  %v4291_v20 = vsel %vm4014_vm1, %v4290_v37, %v4289_v60  ;;  %v4292_v1 = vperm.slane %v3623_v5, %v8514_v33  ;;  %v11424_v26 = vld [vmem:[#allocation90_spill] sm:$0xff] }
 0x39d   :  { %v3624_v40 = vadd.f32 %v8505_v62, %v3118_v27  ;;  %v4448_v57 = vsel %vm4018_vm2, %v4447_v3, %v4446_v52  ;;  %v11423_v27 = vld [vmem:[#allocation87_spill] sm:$0xff]  ;;  %v3649_v9 = vadd.f32 %v8505_v62, %v11424_v26  ;;  %v4425_v19 = vsel %vm4034_vm6, %v4424_v36, %v4423_v10  ;;  %v4681_v21 = vld [vmem:[%s11153_s2 + $0x148] sm:$0xff] }
 0x39e   :  { %v3121_v56 = vpop.xlane.xlu0 %3120  ;;  %v3706_v50 = vadd.f32 %v8505_v62, %v11423_v27  ;;  %v4341_v47 = vperm.slane %v3648_v6, %v11311_v39  ;;  %v11425_v3 = vld [vmem:[#allocation103_spill] sm:$0xff]  ;;  %v4436_v4 = vperm.slane %v10142_v42, %v11314_v34  ;;  %v4438_v36 = vperm.slane %v10149_v24, %v8855_v30  ;;  %4942 = vmatpush.msra.mxu0 %v4681_v21  ;;  %v11426_v6 = vld [vmem:[#allocation78_spill] sm:$0xff] }
 0x39f   :  { %v10155_v11 = vpop.xlane.xlu1 %3132  ;;  %v3625_v0 = vadd.f32 %v8505_v62, %v3121_v56  ;;  %v4294_v37 = vperm.slane %v3624_v40, %v8521_v13  ;;  %v3707_v33 = vadd.f32 %v8505_v62, %v11425_v3  ;;  %v4293_v56 = vsel %vm4018_vm2, %v4292_v1, %v4291_v20  ;;  %vm11428_vm2 = vmmov %vm11412_vm11  ;;  %v4648_v3 = vld [vmem:[%s11153_s2 + $0x40] sm:$0xff] }
 0x3a0   :  { %v4450_v13 = vsel %vm4022_vm3, %v4449_v23, %v4448_v57  ;;  %v3626_v60 = vadd.f32 %v8505_v62, %v3124_v22  ;;  %v10191_v20 = vadd.f32 %v8505_v62, %v11426_v6  ;;  %v4451_v10 = vperm.slane %v3705_v17, %v8524_v38  ;;  %v4662_v6 = vld [vmem:[%s11153_s2 + $0xb0] sm:$0xff]  ;;  %vm11438_vm11 = vmmov %vm11428_vm2 }
 0x3a1   :  { %v4296_v5 = vperm.slane %v3625_v0, %v8524_v38  ;;  %vm11427_vm1 = vcmask 786112   ;;  %v4427_v52 = vsel %vm11428_vm2, %v4426_v41, %v4425_v19  ;;  %v10201_v1 = vadd.f32 %v8505_v62, %v11429_v46  ;;  %v4649_v19 = vld [vmem:[%s11153_s2 + $0x48] sm:$0xff] }
 0x3a2   :  { %v4342_v40 = vsel %vm11427_vm1, %v4341_v47, %v4340_v59  ;;  %v4453_v22 = vperm.slane %v3706_v50, %v8533_v28  ;;  %v4343_v23 = vperm.slane %v3649_v9, %v11314_v34  ;;  %v4295_v57 = vsel %vm4022_vm3, %v4294_v37, %v4293_v56  ;;  %v4664_v9 = vld [vmem:[%s11153_s2 + $0xc0] sm:$0xff]  ;;  %v11430_v47 = vld [vmem:[#allocation96_spill] sm:$0xff]  ;;  %4902 = vmatpush.msrb.mxu2 %v4649_v19  ;;  %v11431_v46 = vld [vmem:[#allocation86_spill] sm:$0xff] }
 0x3a3   :  { %v4452_v38 = vsel %vm4026_vm4, %v4451_v10, %v4450_v13  ;;  %v4455_v17 = vperm.slane %v3707_v33, %v8540_v53  ;;  %v4297_v59 = vsel %vm4026_vm4, %v4296_v5, %v4295_v57  ;;  %v4429_v27 = vsel %vm4042_vm8, %v4428_v44, %v4427_v52  ;;  %v4680_v37 = vld [vmem:[%s11153_s2 + $0x140] sm:$0xff]  ;;  %4923 = vmatpush.msrb.mxu3 %v4664_v9  ;;  %v4663_v33 = vld [vmem:[%s11153_s2 + $0xb8] sm:$0xff] }
 0x3a4   :  { %v3127_v0 = vpop.xlane.xlu2 %3126  ;;  %v4298_v50 = vperm.slane %v3626_v60, %v8533_v28  ;;  %vm80_vm3 = vcmask 7168   ;;  %v3708_v18 = vadd.f32 %v8505_v62, %v11430_v47  ;;  %v4679_v56 = vld [vmem:[%s11153_s2 + $0x138] sm:$0xff]  ;;  %v6243_v5 = vmov -inf   ;;  %4943 = vmatpush.msra.mxu0 %v4680_v37  ;;  %4903 = vmatpush.msrb.mxu2 %v4648_v3 }
 0x3a5   :  { %v3627_v25 = vadd.f32 %v8505_v62, %v3127_v0  ;;  %81 = vst.msk [vmem:[#allocation3] sm:$0xff] %vm80_vm3, %v6243_v5  ;;  %v4454_v21 = vsel %vm4030_vm5, %v4453_v22, %v4452_v38  ;;  %v4647_v60 = vld [vmem:[%s11153_s2 + $0x38] sm:$0xff]  ;;  %v3629_v10 = vadd.f32 %v8505_v62, %v10155_v11  ;;  %4924 = vmatpush.msrb.mxu3 %v4663_v33  ;;  %vm11432_vm4 = vcmask 851712   ;;  %v11433_v0 = vld [vmem:[#allocation93_spill] sm:$0xff] }
 0x3a6   :  { %v3130_v26 = vpop.xlane.xlu0 %3129  ;;  %v4299_v13 = vsel %vm4030_vm5, %v4298_v50, %v4297_v59  ;;  %82 = vst.msk [vmem:[#allocation3 + $0x8] sm:$0xff] %vm80_vm3, %v6243_v5  ;;  %v3651_v22 = vadd.f32 %v8505_v62, %v11431_v46  ;;  %v4344_v57 = vsel %vm11432_vm4, %v4343_v23, %v4342_v40  ;;  %v3709_v38 = vadd.f32 %v8505_v62, %v11433_v0  ;;  %vm11437_vm5 = vmmov %vm11428_vm2  ;;  %v11439_v19 = vld [vmem:[#allocation108_spill] sm:$0xff] }
 0x3a7   :  { %v3142_v41 = vpop.xlane.xlu1 %3141  ;;  %v4300_v44 = vperm.slane %v3627_v25, %v8540_v53  ;;  %v3628_v28 = vadd.f32 %v8505_v62, %v3130_v26  ;;  %v4345_v53 = vperm.slane %v10191_v20, %v8855_v30  ;;  %v4431_v20 = vsel %vm4046_vm9, %v4430_v32, %v4429_v27  ;;  %4944 = vmatpush.msra.mxu0 %v4679_v56  ;;  %v11434_v32 = vld [vmem:[#allocation98_spill] sm:$0xff]  ;;  %v11435_v27 = vld [vmem:[#allocation100_spill] sm:$0xff]  ;;  %v11436_v26 = vld [vmem:[#allocation105_spill] sm:$0xff] }
 0x3a8   :  { %v4456_v59 = vsel %vm4034_vm6, %v4455_v17, %v4454_v21  ;;  %v4457_v14 = vperm.slane %v3708_v18, %v8536_v2  ;;  %v3652_v11 = vadd.f32 %v8505_v62, %v11434_v32  ;;  %4904 = vmatpush.msrb.mxu2 %v4647_v60  ;;  %4925 = vmatpush.msrb.mxu3 %v4662_v6  ;;  %v11440_v3 = vld [vmem:[#allocation112_spill] sm:$0xff]  ;;  %v11441_v56 = vld [vmem:[#allocation121_spill] sm:$0xff]  ;;  %vm11445_vm2 = vmmov %vm11427_vm1 }
 0x3a9   :  { %v4302_v52 = vperm.slane %v3628_v28, %v8536_v2  ;;  %v4301_v25 = vsel %vm4034_vm6, %v4300_v44, %v4299_v13  ;;  %v3710_v50 = vadd.f32 %v8505_v62, %v11435_v27  ;;  %v3711_v40 = vadd.f32 %v8505_v62, %v11436_v26  ;;  %vm11442_vm6 = vmmov %vm11427_vm1 }
 0x3aa   :  { %v4433_v2 = vsel %vm4050_vm10, %v4432_v43, %v4431_v20  ;;  %v4458_v17 = vsel %vm11438_vm11, %v4457_v14, %v4456_v59  ;;  %v3712_v37 = vadd.f32 %v8505_v62, %v11439_v19  ;;  %v4304_v47 = vperm.slane %v3629_v10, %v8543_v63 }
 0x3ab   :  { %v4303_v23 = vsel %vm11437_vm5, %v4302_v52, %v4301_v25  ;;  %v4459_v28 = vperm.slane %v3709_v38, %v8543_v63  ;;  %v3713_v33 = vadd.f32 %v8505_v62, %v11440_v3  ;;  %v3714_v15 = vadd.f32 %v8505_v62, %v11441_v56 }
 0x3ac   :  { %v3136_v9 = vpop.xlane.xlu2 %3135  ;;  %v3632_v43 = vadd.f32 %v8505_v62, %v3142_v41  ;;  %v4305_v21 = vsel %vm4042_vm8, %v4304_v47, %v4303_v23  ;;  %v4435_v63 = vsel %vm11442_vm6, %v4434_v16, %v4433_v2  ;;  %v4347_v6 = vperm.slane %v3651_v22, %v8865_v8 }
 0x3ad   :  { %v3630_v18 = vadd.f32 %v8505_v62, %v3136_v9  ;;  %v4346_v20 = vsel %vm4062_vm13, %v4345_v53, %v4344_v57  ;;  %v4460_v10 = vsel %vm4042_vm8, %v4459_v28, %v4458_v17  ;;  %v4463_v41 = vperm.slane %v3711_v40, %v11310_v58  ;;  %vm11443_vm8 = vmmov %vm11432_vm4 }
 0x3ae   :  { %v3139_v5 = vpop.xlane.xlu0 %3138  ;;  %v4349_v52 = vperm.slane %v3652_v11, %v8906_v35  ;;  %v4461_v46 = vperm.slane %v3710_v50, %v11306_v29  ;;  %v4465_v0 = vperm.slane %v3712_v37, %v11311_v39  ;;  %v4467_v54 = vperm.slane %v3713_v33, %v11314_v34 }
 0x3af   :  { %v3394_v44 = vpop.xlane.xlu1 %3393  ;;  %v4306_v13 = vperm.slane %v3630_v18, %v11306_v29  ;;  %v3631_v60 = vadd.f32 %v8505_v62, %v3139_v5  ;;  %v4310_v16 = vperm.slane %v3632_v43, %v11311_v39  ;;  %v4437_v53 = vsel %vm11443_vm8, %v4436_v4, %v4435_v63  ;;  %v11444_v29 = vld [vmem:[#allocation120_spill] sm:$0xff]  ;;  %v11454_v5 = vld [vmem:[#allocation97_spill] sm:$0xff] }
 0x3b0   :  { %v4462_v57 = vsel %vm4046_vm9, %v4461_v46, %v4460_v10  ;;  %v4469_v59 = vperm.slane %v3714_v15, %v8855_v30  ;;  %v3715_v14 = vadd.f32 %v8505_v62, %v11444_v29  ;;  %v4348_v32 = vsel %vm4066_vm14, %v4347_v6, %v4346_v20  ;;  %v11456_v6 = vld [vmem:[#allocation111_spill] sm:$0xff] }
 0x3b1   :  { %v4308_v38 = vperm.slane %v3631_v60, %v11310_v58  ;;  %v4307_v22 = vsel %vm4046_vm9, %v4306_v13, %v4305_v21  ;;  %v4464_v39 = vsel %vm4050_vm10, %v4463_v41, %v4462_v57  ;;  %v3716_v25 = vadd.f32 %v8505_v62, %v3394_v44  ;;  %vm11447_vm9 = vmmov %vm11432_vm4 }
 0x3b2   :  { %v4466_v4 = vsel %vm11445_vm2, %v4465_v0, %v4464_v39  ;;  %v11446_v27 = vperm.slane %v9816_v12, %v11314_v34  ;;  %v4439_v23 = vsel %vm4062_vm13, %v4438_v36, %v4437_v53  ;;  %v4350_v9 = vsel %vm4070_vm15, %v4349_v52, %v4348_v32 }
 0x3b3   :  { %v4309_v58 = vsel %vm4050_vm10, %v4308_v38, %v4307_v22  ;;  %vm11448_vm10 = vmmov %vm11432_vm4  ;;  %v11449_v17 = vperm.slane %v9842_v55, %v8855_v30  ;;  %v4471_v47 = vperm.slane %v3715_v14, %v8865_v8  ;;  %v11450_v24 = vperm.slane %v9812_v51, %v8865_v8 }
 0x3b4   :  { %v4311_v11 = vsel %vm11427_vm1, %v4310_v16, %v4309_v58  ;;  %v3439_v42 = vpop.xlane.xlu2 %3438  ;;  %v4468_v2 = vsel %vm11448_vm10, %v4467_v54, %v4466_v4  ;;  %v11451_v44 = vperm.slane %v10020_v48, %v8906_v35  ;;  %v4473_v28 = vperm.slane %v3716_v25, %v8906_v35  ;;  %v10402_v58 = vld [vmem:[#allocation3] sm:$0xff]  ;;  %v4660_v25 = vld [vmem:[%s11153_s2 + $0xa0] sm:$0xff] }
 0x3b5   :  { %v4313_v50 = vsel %vm11447_vm9, %v11446_v27, %v4311_v11  ;;  %v3731_v26 = vadd.f32 %v8505_v62, %v3439_v42  ;;  %v4470_v37 = vsel %vm4062_vm13, %v4469_v59, %v4468_v2  ;;  %v11452_v33 = vperm.slane %v10098_v45, %v8865_v8  ;;  %v4676_v42 = vld [vmem:[%s11153_s2 + $0x120] sm:$0xff]  ;;  %v4659_v27 = vld [vmem:[%s11153_s2 + $0x98] sm:$0xff]  ;;  %v4657_v2 = vld [vmem:[%s11153_s2 + $0x88] sm:$0xff] }
 0x3b6   :  { %v4315_v19 = vsel %vm4062_vm13, %v11449_v17, %v4313_v50  ;;  %v3484_v34 = vpop.xlane.xlu0 %3483  ;;  %v4442_v51 = vperm.slane %v10201_v1, %v8906_v35  ;;  %vm11453_vm4 = vcmask 1041409   ;;  %vm11455_vm5 = vcmask 1042434   ;;  %v4644_v4 = vld [vmem:[%s11153_s2 + $0x20] sm:$0xff]  ;;  %v4643_v50 = vld [vmem:[%s11153_s2 + $0x18] sm:$0xff]  ;;  %v4641_v17 = vld [vmem:[%s11153_s2 + $0x8] sm:$0xff] }
 0x3b7   :  { %v3442_v40 = vpop.xlane.xlu1 %3441  ;;  %v4317_v36 = vsel %vm4066_vm14, %v11450_v24, %v4315_v19  ;;  %v3746_v18 = vadd.f32 %v8505_v62, %v3484_v34  ;;  %v4502_v3 = vperm.slane %v3731_v26, %v8865_v8  ;;  %v4441_v56 = vsel %vm4066_vm14, %v11452_v33, %v4439_v23  ;;  %v4675_v26 = vld [vmem:[%s11153_s2 + $0x118] sm:$0xff]  ;;  %v4658_v23 = vld [vmem:[%s11153_s2 + $0x90] sm:$0xff]  ;;  %v4673_v19 = vld [vmem:[%s11153_s2 + $0x108] sm:$0xff] }
 0x3b8   :  { %v3732_v12 = vadd.f32 %v8505_v62, %v3442_v40  ;;  %v4319_v55 = vsel %vm4070_vm15, %v11451_v44, %v4317_v36  ;;  %v4472_v21 = vsel %vm4066_vm14, %v4471_v47, %v4470_v37  ;;  %v4443_v60 = vsel %vm4070_vm15, %v4442_v51, %v4441_v56  ;;  %v4642_v40 = vld [vmem:[%s11153_s2 + $0x10] sm:$0xff]  ;;  %v4656_v34 = vld [vmem:[%s11153_s2 + $0x80] sm:$0xff]  ;;  %v4703_v47 = vld [vmem:[%s11153_s2 + $0x1f8] sm:$0xff] }
 0x3b9   :  { %v4551_v43 = vsel %vm11453_vm4, %v4350_v9, %v4319_v55  ;;  %v4531_v13 = vperm.slane %v3746_v18, %v8855_v30  ;;  %v4474_v63 = vsel %vm4070_vm15, %v4473_v28, %v4472_v21  ;;  %v4503_v1 = vsel %vm4066_vm14, %v4502_v3, %v11456_v6  ;;  %v4674_v9 = vld [vmem:[%s11153_s2 + $0x110] sm:$0xff]  ;;  %v4672_v37 = vld [vmem:[%s11153_s2 + $0x100] sm:$0xff]  ;;  %v4719_v24 = vld [vmem:[%s11153_s2 + $0x278] sm:$0xff] }
 0x3ba   :  { %v4504_v15 = vperm.slane %v3732_v12, %v8906_v35  ;;  %v4552_v48 = vsel %vm11455_vm5, %v11454_v5, %v4551_v43  ;;  %vm11457_vm11 = vcmask 1044484   ;;  %vm11458_vm6 = vcmask 1045509   ;;  %v4640_v12 = vld [vmem:[%s11153_s2] sm:$0xff]  ;;  %v4568_v36 = vld [vmem:[#allocation3 + $0x8] sm:$0xff]  ;;  %v4702_v44 = vld [vmem:[%s11153_s2 + $0x1f0] sm:$0xff] }
 0x3bb   :  { %v4553_v45 = vsel %vm4541_vm0, %v9695_v7, %v4552_v48  ;;  %vm11459_vm8 = vcmask 1046534   ;;  %v4532_v7 = vsel %vm4062_vm13, %v4531_v13, %v9879_v31  ;;  %v6244_v29 = vmov 0   ;;  %v4645_v31 = vld [vmem:[%s11153_s2 + $0x28] sm:$0xff]  ;;  %v4735_v18 = vld [vmem:[%s11153_s2 + $0x2f8] sm:$0xff]  ;;  %v4718_v55 = vld [vmem:[%s11153_s2 + $0x270] sm:$0xff] }
 0x3bc   :  { %v3487_v20 = vpop.xlane.xlu2 %3486  ;;  %v4554_v10 = vsel %vm11457_vm11, %v4443_v60, %v4553_v45  ;;  %v4505_v41 = vsel %vm4070_vm15, %v4504_v15, %v4503_v1  ;;  %5647 = vset.pattern.permute.xlu0 %v6244_v29  ;;  %5648 = vset.pattern.permute.xlu1 %v6244_v29  ;;  %v6245_v14 = vmov 0.0   ;;  %v4734_v3 = vld [vmem:[%s11153_s2 + $0x2f0] sm:$0xff]  ;;  %v4701_v56 = vld [vmem:[%s11153_s2 + $0x1e8] sm:$0xff]  ;;  %v4700_v5 = vld [vmem:[%s11153_s2 + $0x1e0] sm:$0xff] }
 0x3bd   :  { %v3747_v52 = vadd.f32 %v8505_v62, %v3487_v20  ;;  %v4555_v46 = vsel %vm11458_vm6, %v4474_v63, %v4554_v10  ;;  %5649 = vset.pattern.permute.xlu2 %v6244_v29  ;;  %83 = vst.msk [vmem:[#allocation4] sm:$0xff] %vm80_vm3, %v6245_v14  ;;  %v4717_v51 = vld [vmem:[%s11153_s2 + $0x268] sm:$0xff]  ;;  %v4716_v48 = vld [vmem:[%s11153_s2 + $0x260] sm:$0xff]  ;;  %v4699_v60 = vld [vmem:[%s11153_s2 + $0x1d8] sm:$0xff] }
 0x3be   :  { %v3490_v30 = vpop.xlane.xlu0 %3489  ;;  %v4556_v0 = vsel %vm11459_vm8, %v4505_v41, %v4555_v46  ;;  %84 = vst.msk [vmem:[#allocation4 + $0x8] sm:$0xff] %vm80_vm3, %v6245_v14  ;;  %v4733_v15 = vld [vmem:[%s11153_s2 + $0x2e8] sm:$0xff]  ;;  %v4732_v21 = vld [vmem:[%s11153_s2 + $0x2e0] sm:$0xff]  ;;  %v4715_v45 = vld [vmem:[%s11153_s2 + $0x258] sm:$0xff] }
 0x3bf   :  { %v4533_v38 = vperm.slane %v3747_v52, %v8865_v8  ;;  %v3748_v54 = vadd.f32 %v8505_v62, %v3490_v30  ;;  %v4678_v62 = vld [vmem:[%s11153_s2 + $0x130] sm:$0xff]  ;;  %v4731_v63 = vld [vmem:[%s11153_s2 + $0x2d8] sm:$0xff]  ;;  %v4697_v10 = vld [vmem:[%s11153_s2 + $0x1c8] sm:$0xff] }
 0x3c0   :  { %v4646_v8 = vld [vmem:[%s11153_s2 + $0x30] sm:$0xff]  ;;  %4945 = vmatpush.msra.mxu0 %v4678_v62  ;;  %v4713_v41 = vld [vmem:[%s11153_s2 + $0x248] sm:$0xff]  ;;  %v4696_v30 = vld [vmem:[%s11153_s2 + $0x1c0] sm:$0xff] }
 0x3c1   :  { %v4535_v16 = vperm.slane %v3748_v54, %v8906_v35  ;;  %v4534_v22 = vsel %vm4066_vm14, %v4533_v38, %v4532_v7  ;;  %v4661_v35 = vld [vmem:[%s11153_s2 + $0xa8] sm:$0xff]  ;;  %4905 = vmatpush.msrb.mxu2 %v4646_v8  ;;  %v4698_v6 = vld [vmem:[%s11153_s2 + $0x1d0] sm:$0xff]  ;;  %v4728_v7 = vld [vmem:[%s11153_s2 + $0x2c0] sm:$0xff] }
 0x3c2   :  { %4926 = vmatpush.msrb.mxu3 %v4661_v35  ;;  %4946 = vmatpush.msra.mxu0 %v4677_v49  ;;  %v4714_v1 = vld [vmem:[%s11153_s2 + $0x250] sm:$0xff]  ;;  %v4729_v46 = vld [vmem:[%s11153_s2 + $0x2c8] sm:$0xff]  ;;  %v4695_v54 = vld [vmem:[%s11153_s2 + $0x1b8] sm:$0xff] }
 0x3c3   :  { %v4536_v53 = vsel %vm4070_vm15, %v4535_v16, %v4534_v22  ;;  %4906 = vmatpush.msrb.mxu2 %v4645_v31  ;;  %v4730_v20 = vld [vmem:[%s11153_s2 + $0x2d0] sm:$0xff]  ;;  %v4711_v16 = vld [vmem:[%s11153_s2 + $0x238] sm:$0xff]  ;;  %v4693_v29 = vld [vmem:[%s11153_s2 + $0x1a8] sm:$0xff] }
 0x3c4   :  { %v4557_v57 = vsel %vm4549_vm7, %v4536_v53, %v4556_v0  ;;  %4927 = vmatpush.msrb.mxu3 %v4660_v25  ;;  %4947 = vmatpush.msra.mxu0 %v4676_v42  ;;  %v4712_v0 = vld [vmem:[%s11153_s2 + $0x240] sm:$0xff]  ;;  %v4727_v22 = vld [vmem:[%s11153_s2 + $0x2b8] sm:$0xff]  ;;  %v4694_v53 = vld [vmem:[%s11153_s2 + $0x1b0] sm:$0xff] }
 0x3c5   :  { %v10380_v59 = vsel %vm3754_vm12, %v4557_v57, -1e+30  ;;  %vm11460_vm12 = vcmask 261120   ;;  %4907 = vmatpush.msrb.mxu2 %v4644_v4  ;;  %v4710_v62 = vld [vmem:[%s11153_s2 + $0x230] sm:$0xff]  ;;  %v4692_v35 = vld [vmem:[%s11153_s2 + $0x1a0] sm:$0xff]  ;;  %v4709_v49 = vld [vmem:[%s11153_s2 + $0x228] sm:$0xff] }
 0x3c6   :  { %4571 = vmax.xlane.f32.xlu2 %v10380_v59  ;;  %86 = vst.msk [vmem:[#allocation5 + $0x8] sm:$0xff] %vm11460_vm12, %v6245_v14  ;;  %vm11461_vm13 = vmmov %vm11460_vm12  ;;  %4928 = vmatpush.msrb.mxu3 %v4659_v27  ;;  %v4726_v8 = vld [vmem:[%s11153_s2 + $0x2b0] sm:$0xff]  ;;  %v4725_v31 = vld [vmem:[%s11153_s2 + $0x2a8] sm:$0xff] }
 0x3c7   :  { %85 = vst.msk [vmem:[#allocation5] sm:$0xff] %vm11461_vm13, %v6245_v14  ;;  %4908 = vmatpush.msrb.mxu2 %v4643_v50  ;;  %4948 = vmatpush.msra.mxu0 %v4675_v26  ;;  %v4691_v14 = vld [vmem:[%s11153_s2 + $0x198] sm:$0xff]  ;;  %v4724_v25 = vld [vmem:[%s11153_s2 + $0x2a0] sm:$0xff]  ;;  %v4690_v42 = vld [vmem:[%s11153_s2 + $0x190] sm:$0xff] }
 0x3c8   :  { %4929 = vmatpush.msrb.mxu3 %v4658_v23  ;;  %v4707_v4 = vld [vmem:[%s11153_s2 + $0x218] sm:$0xff]  ;;  %v4689_v50 = vld [vmem:[%s11153_s2 + $0x188] sm:$0xff]  ;;  %v4706_v26 = vld [vmem:[%s11153_s2 + $0x210] sm:$0xff] }
 0x3c9   :  { %4909 = vmatpush.msrb.mxu2 %v4642_v40  ;;  %4949 = vmatpush.msra.mxu0 %v4674_v9  ;;  %v4723_v27 = vld [vmem:[%s11153_s2 + $0x298] sm:$0xff]  ;;  %v4722_v40 = vld [vmem:[%s11153_s2 + $0x290] sm:$0xff]  ;;  %v4688_v23 = vld [vmem:[%s11153_s2 + $0x180] sm:$0xff] }
 0x3ca   :  { %4930 = vmatpush.msrb.mxu3 %v4657_v2  ;;  %v4705_v9 = vld [vmem:[%s11153_s2 + $0x208] sm:$0xff]  ;;  %vm11462_vm14 = vmmov %vm11453_vm4 }
 0x3cb   :  { %4910 = vmatpush.msrb.mxu2 %v4641_v17  ;;  %4950 = vmatpush.msra.mxu0 %v4673_v19  ;;  %v4721_v2 = vld [vmem:[%s11153_s2 + $0x288] sm:$0xff]  ;;  %v4704_v17 = vld [vmem:[%s11153_s2 + $0x200] sm:$0xff]  ;;  %vm11463_vm15 = vmmov %vm11455_vm5 }
 0x3cc   :  { %4931 = vmatpush.msrb.mxu3 %v4656_v34  ;;  %v4720_v19 = vld [vmem:[%s11153_s2 + $0x280] sm:$0xff]  ;;  %vm11464_vm1 = vmmov %vm11457_vm11 }
 0x3cd   :  { %4911 = vmatpush.msrb.mxu2 %v4640_v12  ;;  %4951 = vmatpush.msra.mxu0 %v4672_v37  ;;  %vm11465_vm2 = vmmov %vm11458_vm6 }
 0x3ce   :  { %4976 = vmatpush.msra.mxu3 %v4719_v24  ;;  %vm11466_vm9 = vmmov %vm11459_vm8 }
 0x3cf   :  { %4956 = vmatpush.msra.mxu2 %v4703_v47  ;;  %4996 = vmatpush.msrb.mxu0 %v4735_v18  ;;  %v4751_v47 = vld [vmem:[%s11153_s2 + $0x378] sm:$0xff]  ;;  %vm11467_vm10 = vmmov %vm11460_vm12 }
 0x3d0   :  { %4977 = vmatpush.msra.mxu3 %v4718_v55  ;;  %v4767_v55 = vld [vmem:[%s11153_s2 + $0x3f8] sm:$0xff]  ;;  %vm11469_vm11 = vmmov %vm11464_vm1 }
 0x3d1   :  { %4957 = vmatpush.msra.mxu2 %v4702_v44  ;;  %4997 = vmatpush.msrb.mxu0 %v4734_v3  ;;  %v4750_v44 = vld [vmem:[%s11153_s2 + $0x370] sm:$0xff]  ;;  %v4749_v3 = vld [vmem:[%s11153_s2 + $0x368] sm:$0xff]  ;;  %vm11470_vm6 = vmmov %vm11465_vm2 }
 0x3d2   :  { %4978 = vmatpush.msra.mxu3 %v4717_v51  ;;  %v4748_v51 = vld [vmem:[%s11153_s2 + $0x360] sm:$0xff] }
 0x3d3   :  { %4958 = vmatpush.msra.mxu2 %v4701_v56  ;;  %4998 = vmatpush.msrb.mxu0 %v4733_v15  ;;  %v4782_v56 = vld [vmem:[%s11153_s2 + $0x470] sm:$0xff]  ;;  %v4765_v15 = vld [vmem:[%s11153_s2 + $0x3e8] sm:$0xff] }
 0x3d4   :  { %4979 = vmatpush.msra.mxu3 %v4716_v48  ;;  %v4747_v48 = vld [vmem:[%s11153_s2 + $0x358] sm:$0xff] }
 0x3d5   :  { %4959 = vmatpush.msra.mxu2 %v4700_v5  ;;  %4999 = vmatpush.msrb.mxu0 %v4732_v21  ;;  %v4764_v21 = vld [vmem:[%s11153_s2 + $0x3e0] sm:$0xff] }
 0x3d6   :  { %4980 = vmatpush.msra.mxu3 %v4715_v45  ;;  %v4746_v45 = vld [vmem:[%s11153_s2 + $0x350] sm:$0xff] }
 0x3d7   :  { %4960 = vmatpush.msra.mxu2 %v4699_v60  ;;  %5000 = vmatpush.msrb.mxu0 %v4731_v63 }
 0x3d8   :  { %4981 = vmatpush.msra.mxu3 %v4714_v1  ;;  %v4779_v1 = vld [vmem:[%s11153_s2 + $0x458] sm:$0xff] }
 0x3d9   :  { %4961 = vmatpush.msra.mxu2 %v4698_v6  ;;  %5001 = vmatpush.msrb.mxu0 %v4730_v20  ;;  %v4763_v6 = vld [vmem:[%s11153_s2 + $0x3d8] sm:$0xff]  ;;  %v4745_v20 = vld [vmem:[%s11153_s2 + $0x348] sm:$0xff] }
 0x3da   :  { %4982 = vmatpush.msra.mxu3 %v4713_v41  ;;  %v4778_v41 = vld [vmem:[%s11153_s2 + $0x450] sm:$0xff] }
 0x3db   :  { %4962 = vmatpush.msra.mxu2 %v4697_v10  ;;  %5002 = vmatpush.msrb.mxu0 %v4729_v46  ;;  %v4762_v10 = vld [vmem:[%s11153_s2 + $0x3d0] sm:$0xff]  ;;  %v4761_v46 = vld [vmem:[%s11153_s2 + $0x3c8] sm:$0xff] }
 0x3dc   :  { %4983 = vmatpush.msra.mxu3 %v4712_v0  ;;  %v4743_v0 = vld [vmem:[%s11153_s2 + $0x338] sm:$0xff] }
 0x3dd   :  { %4963 = vmatpush.msra.mxu2 %v4696_v30  ;;  %5003 = vmatpush.msrb.mxu0 %v4728_v7  ;;  %v4777_v30 = vld [vmem:[%s11153_s2 + $0x448] sm:$0xff]  ;;  %v4760_v7 = vld [vmem:[%s11153_s2 + $0x3c0] sm:$0xff] }
 0x3de   :  { %4984 = vmatpush.msra.mxu3 %v4711_v16  ;;  %v4742_v16 = vld [vmem:[%s11153_s2 + $0x330] sm:$0xff] }
 0x3df   :  { %4964 = vmatpush.msra.mxu2 %v4695_v54  ;;  %5004 = vmatpush.msrb.mxu0 %v4727_v22  ;;  %v4776_v54 = vld [vmem:[%s11153_s2 + $0x440] sm:$0xff]  ;;  %v4759_v22 = vld [vmem:[%s11153_s2 + $0x3b8] sm:$0xff] }
 0x3e0   :  { %4985 = vmatpush.msra.mxu3 %v4710_v62  ;;  %v4774_v62 = vld [vmem:[%s11153_s2 + $0x430] sm:$0xff] }
 0x3e1   :  { %4965 = vmatpush.msra.mxu2 %v4694_v53  ;;  %5005 = vmatpush.msrb.mxu0 %v4726_v8  ;;  %v4775_v53 = vld [vmem:[%s11153_s2 + $0x438] sm:$0xff]  ;;  %v4740_v8 = vld [vmem:[%s11153_s2 + $0x320] sm:$0xff] }
 0x3e2   :  { %4986 = vmatpush.msra.mxu3 %v4709_v49  ;;  %v4773_v49 = vld [vmem:[%s11153_s2 + $0x428] sm:$0xff] }
 0x3e3   :  { %4966 = vmatpush.msra.mxu2 %v4693_v29  ;;  %5006 = vmatpush.msrb.mxu0 %v4725_v31  ;;  %v4758_v29 = vld [vmem:[%s11153_s2 + $0x3b0] sm:$0xff]  ;;  %v4739_v31 = vld [vmem:[%s11153_s2 + $0x318] sm:$0xff] }
 0x3e5   :  { %4967 = vmatpush.msra.mxu2 %v4692_v35  ;;  %5007 = vmatpush.msrb.mxu0 %v4724_v25  ;;  %v4757_v35 = vld [vmem:[%s11153_s2 + $0x3a8] sm:$0xff]  ;;  %v4738_v25 = vld [vmem:[%s11153_s2 + $0x310] sm:$0xff] }
 0x3e7   :  { %4968 = vmatpush.msra.mxu2 %v4691_v14  ;;  %5008 = vmatpush.msrb.mxu0 %v4723_v27  ;;  %v4756_v14 = vld [vmem:[%s11153_s2 + $0x3a0] sm:$0xff]  ;;  %v4737_v27 = vld [vmem:[%s11153_s2 + $0x308] sm:$0xff] }
 0x3e9   :  { %4969 = vmatpush.msra.mxu2 %v4690_v42  ;;  %5009 = vmatpush.msrb.mxu0 %v4722_v40  ;;  %v4755_v42 = vld [vmem:[%s11153_s2 + $0x398] sm:$0xff]  ;;  %v4736_v40 = vld [vmem:[%s11153_s2 + $0x300] sm:$0xff] }
 0x3eb   :  { %4970 = vmatpush.msra.mxu2 %v4689_v50  ;;  %5010 = vmatpush.msrb.mxu0 %v4721_v2  ;;  %v4754_v50 = vld [vmem:[%s11153_s2 + $0x390] sm:$0xff] }
 0x3ed   :  { %4971 = vmatpush.msra.mxu2 %v4688_v23  ;;  %5011 = vmatpush.msrb.mxu0 %v4720_v19  ;;  %v4753_v23 = vld [vmem:[%s11153_s2 + $0x388] sm:$0xff]  ;;  %v4752_v19 = vld [vmem:[%s11153_s2 + $0x380] sm:$0xff] }
 0x40a   :  { %v4570_v32 = vpop.xlane.xlu1 %4569 }
 0x40b   :  { %v10405_v39 = vmax.f32 %v10402_v58, %v4570_v32  ;;  %v4708_v32 = vld [vmem:[%s11153_s2 + $0x220] sm:$0xff] }
 0x40c   :  { %4987 = vmatpush.msra.mxu3 %v4708_v32  ;;  %v4772_v32 = vld [vmem:[%s11153_s2 + $0x420] sm:$0xff] }
 0x40d   :  { %v4575_v11 = vsub.f32 %v10402_v58, %v10405_v39  ;;  %5280 = vst.msk [vmem:[#allocation3] sm:$0xff] %vm80_vm3, %v10405_v39  ;;  %4583 = vperm.xlu0 %5647, %v10405_v39   ;;  %v4801_v58 = vld [vmem:[%s11153_s2 + $0x508] sm:$0xff] }
 0x40e   :  { %4988 = vmatpush.msra.mxu3 %v4707_v4  ;;  %v4771_v4 = vld [vmem:[%s11153_s2 + $0x418] sm:$0xff]  ;;  %v4817_v39 = vld [vmem:[%s11153_s2 + $0x588] sm:$0xff] }
 0x410   :  { %4989 = vmatpush.msra.mxu3 %v4706_v26  ;;  %v4770_v26 = vld [vmem:[%s11153_s2 + $0x410] sm:$0xff] }
 0x412   :  { %4990 = vmatpush.msra.mxu3 %v4705_v9  ;;  %v4769_v9 = vld [vmem:[%s11153_s2 + $0x408] sm:$0xff] }
 0x414   :  { %v5291_v57 = vld [vmem:[#allocation3] sm:$0xff]  ;;  %4991 = vmatpush.msra.mxu3 %v4704_v17  ;;  %v4799_v17 = vld [vmem:[%s11153_s2 + $0x4f8] sm:$0xff] }
 0x439   :  { %v4572_v28 = vpop.xlane.xlu2 %4571 }
 0x43a   :  { %v4574_v33 = vmax.f32 %v4568_v36, %v4572_v28  ;;  %v4783_v28 = vld [vmem:[%s11153_s2 + $0x478] sm:$0xff] }
 0x43c   :  { %v4576_v43 = vsub.f32 %v4568_v36, %v4574_v33  ;;  %5281 = vst.msk [vmem:[#allocation3 + $0x8] sm:$0xff] %vm80_vm3, %v4574_v33  ;;  %4588 = vperm.xlu1 %5648, %v4574_v33   ;;  %v4766_v33 = vld [vmem:[%s11153_s2 + $0x3f0] sm:$0xff] }
 0x43e   :  { %v4579_v13 = vmul.f32 1.442695, %v4576_v43  ;;  %v4781_v43 = vld [vmem:[%s11153_s2 + $0x468] sm:$0xff] }
 0x440   :  { %6164 = vpow2.f32 %v4579_v13  ;;  %v4780_v13 = vld [vmem:[%s11153_s2 + $0x460] sm:$0xff] }
 0x443   :  { %v5292_v52 = vld [vmem:[#allocation3 + $0x8] sm:$0xff] }
 0x444   :  { %5300 = vperm.xlu0 %5647, %v5292_v52   ;;  %v4744_v52 = vld [vmem:[%s11153_s2 + $0x340] sm:$0xff] }
 0x446   :  { %v10530_v38 = vpop.eup %6164 }
 0x447   :  { %5225 = vperm.xlu1 %5648, %v10530_v38  }
 0x44f   :  { %5295 = vperm.xlu1 %5648, %v5291_v57   ;;  %v4741_v57 = vld [vmem:[%s11153_s2 + $0x328] sm:$0xff] }
 0x47f   :  { %v4584_v34 = vpop.permute.xlu0 %4583 }
 0x480   :  { %v4591_v12 = vsub.f32 %v10104_v61, %v4584_v34  ;;  %v4768_v34 = vld [vmem:[%s11153_s2 + $0x400] sm:$0xff] }
 0x482   :  { %v4593_v37 = vmul.f32 1.442695, %v4591_v12 }
 0x484   :  { %6166 = vpow2.f32 %v4593_v37  ;;  %v4798_v37 = vld [vmem:[%s11153_s2 + $0x4f0] sm:$0xff] }
 0x48a   :  { %v10609_v24 = vpop.eup %6166 }
 0x48b   :  { %4601 = vadd.xlane.f32.xlu2 %v10609_v24  ;;  %4912 = vmatmul.f32.vlgmr.msrb.gmra.mxu2 %v10609_v24  ;;  %v4612_v36 = vrot.slane %v10609_v24, 1  ;;  %v4613_v18 = vrot.slane %v10609_v24, 2  ;;  %v4614_v5 = vrot.slane %v10609_v24, 3  ;;  %v4615_v60 = vrot.slane %v10609_v24, 4 }
 0x48c   :  { %5016 = vmatpush.msrb.mxu2 %v4751_v47  ;;  %v4616_v63 = vrot.slane %v10609_v24, 5  ;;  %v4617_v2 = vrot.slane %v10609_v24, 6  ;;  %v4618_v12 = vrot.slane %v10609_v24, 7  ;;  %v4815_v47 = vld [vmem:[%s11153_s2 + $0x578] sm:$0xff]  ;;  %v4797_v24 = vld [vmem:[%s11153_s2 + $0x4e8] sm:$0xff] }
 0x48d   :  { %4932 = vmatmul.f32.vlgmr.msrb.gmra.mxu3 %v4612_v36  ;;  %4952 = vmatmul.f32.vlgmr.msra.gmra.mxu0 %v4613_v18  ;;  %v4831_v36 = vld [vmem:[%s11153_s2 + $0x5f8] sm:$0xff]  ;;  %v4814_v18 = vld [vmem:[%s11153_s2 + $0x570] sm:$0xff] }
 0x48e   :  { %5017 = vmatpush.msrb.mxu2 %v4750_v44  ;;  %5036 = vmatpush.msrb.mxu3 %v4767_v55  ;;  %v4830_v55 = vld [vmem:[%s11153_s2 + $0x5f0] sm:$0xff] }
 0x48f   :  { %5056 = vmatpush.msra.mxu0 %v4783_v28 }
 0x490   :  { %5018 = vmatpush.msrb.mxu2 %v4749_v3  ;;  %5037 = vmatpush.msrb.mxu3 %v4766_v33  ;;  %v4796_v3 = vld [vmem:[%s11153_s2 + $0x4e0] sm:$0xff]  ;;  %v4813_v33 = vld [vmem:[%s11153_s2 + $0x568] sm:$0xff] }
 0x491   :  { %5057 = vmatpush.msra.mxu0 %v4782_v56 }
 0x492   :  { %5019 = vmatpush.msrb.mxu2 %v4748_v51  ;;  %5038 = vmatpush.msrb.mxu3 %v4765_v15  ;;  %v4829_v51 = vld [vmem:[%s11153_s2 + $0x5e8] sm:$0xff]  ;;  %v4795_v15 = vld [vmem:[%s11153_s2 + $0x4d8] sm:$0xff] }
 0x493   :  { %5058 = vmatpush.msra.mxu0 %v4781_v43  ;;  %4972 = vmatmul.f32.vlgmr.msra.gmra.mxu2 %v4614_v5  ;;  %v4812_v43 = vld [vmem:[%s11153_s2 + $0x560] sm:$0xff] }
 0x494   :  { %5020 = vmatpush.msrb.mxu2 %v4747_v48  ;;  %5039 = vmatpush.msrb.mxu3 %v4764_v21  ;;  %v4828_v5 = vld [vmem:[%s11153_s2 + $0x5e0] sm:$0xff]  ;;  %v4794_v48 = vld [vmem:[%s11153_s2 + $0x4d0] sm:$0xff]  ;;  %v4811_v21 = vld [vmem:[%s11153_s2 + $0x558] sm:$0xff] }
 0x495   :  { %5059 = vmatpush.msra.mxu0 %v4780_v13  ;;  %4992 = vmatmul.f32.vlgmr.msra.gmra.mxu3 %v4615_v60  ;;  %v4827_v13 = vld [vmem:[%s11153_s2 + $0x5d8] sm:$0xff]  ;;  %v4793_v60 = vld [vmem:[%s11153_s2 + $0x4c8] sm:$0xff] }
 0x496   :  { %5012 = vmatmul.f32.vlgmr.msrb.gmra.mxu0 %v4616_v63  ;;  %5021 = vmatpush.msrb.mxu2 %v4746_v45  ;;  %v4810_v45 = vld [vmem:[%s11153_s2 + $0x550] sm:$0xff] }
 0x497   :  { %5040 = vmatpush.msrb.mxu3 %v4763_v6  ;;  %5060 = vmatpush.msra.mxu0 %v4779_v1  ;;  %v4826_v63 = vld [vmem:[%s11153_s2 + $0x5d0] sm:$0xff]  ;;  %v4792_v6 = vld [vmem:[%s11153_s2 + $0x4c0] sm:$0xff]  ;;  %v4809_v1 = vld [vmem:[%s11153_s2 + $0x548] sm:$0xff] }
 0x498   :  { %5022 = vmatpush.msrb.mxu2 %v4745_v20 }
 0x499   :  { %5041 = vmatpush.msrb.mxu3 %v4762_v10  ;;  %5061 = vmatpush.msra.mxu0 %v4778_v41  ;;  %v4825_v10 = vld [vmem:[%s11153_s2 + $0x5c8] sm:$0xff]  ;;  %v4791_v41 = vld [vmem:[%s11153_s2 + $0x4b8] sm:$0xff] }
 0x49a   :  { %5023 = vmatpush.msrb.mxu2 %v4744_v52  ;;  %v4808_v52 = vld [vmem:[%s11153_s2 + $0x540] sm:$0xff] }
 0x49b   :  { %5042 = vmatpush.msrb.mxu3 %v4761_v46  ;;  %5062 = vmatpush.msra.mxu0 %v4777_v30  ;;  %v4824_v46 = vld [vmem:[%s11153_s2 + $0x5c0] sm:$0xff]  ;;  %v4790_v30 = vld [vmem:[%s11153_s2 + $0x4b0] sm:$0xff] }
 0x49c   :  { %5024 = vmatpush.msrb.mxu2 %v4743_v0  ;;  %v4807_v0 = vld [vmem:[%s11153_s2 + $0x538] sm:$0xff] }
 0x49d   :  { %5043 = vmatpush.msrb.mxu3 %v4760_v7  ;;  %5063 = vmatpush.msra.mxu0 %v4776_v54  ;;  %v4823_v7 = vld [vmem:[%s11153_s2 + $0x5b8] sm:$0xff]  ;;  %v4789_v54 = vld [vmem:[%s11153_s2 + $0x4a8] sm:$0xff] }
 0x49e   :  { %5025 = vmatpush.msrb.mxu2 %v4742_v16  ;;  %v4806_v16 = vld [vmem:[%s11153_s2 + $0x530] sm:$0xff] }
 0x49f   :  { %5044 = vmatpush.msrb.mxu3 %v4759_v22  ;;  %5064 = vmatpush.msra.mxu0 %v4775_v53  ;;  %v4822_v22 = vld [vmem:[%s11153_s2 + $0x5b0] sm:$0xff]  ;;  %v4788_v53 = vld [vmem:[%s11153_s2 + $0x4a0] sm:$0xff] }
 0x4a0   :  { %5026 = vmatpush.msrb.mxu2 %v4741_v57  ;;  %v4805_v57 = vld [vmem:[%s11153_s2 + $0x528] sm:$0xff] }
 0x4a1   :  { %5045 = vmatpush.msrb.mxu3 %v4758_v29  ;;  %5065 = vmatpush.msra.mxu0 %v4774_v62  ;;  %v4821_v29 = vld [vmem:[%s11153_s2 + $0x5a8] sm:$0xff]  ;;  %v4787_v62 = vld [vmem:[%s11153_s2 + $0x498] sm:$0xff] }
 0x4a2   :  { %5027 = vmatpush.msrb.mxu2 %v4740_v8  ;;  %v4804_v8 = vld [vmem:[%s11153_s2 + $0x520] sm:$0xff] }
 0x4a3   :  { %5046 = vmatpush.msrb.mxu3 %v4757_v35  ;;  %5066 = vmatpush.msra.mxu0 %v4773_v49  ;;  %v4820_v35 = vld [vmem:[%s11153_s2 + $0x5a0] sm:$0xff]  ;;  %v4786_v49 = vld [vmem:[%s11153_s2 + $0x490] sm:$0xff] }
 0x4a4   :  { %5028 = vmatpush.msrb.mxu2 %v4739_v31  ;;  %v4803_v31 = vld [vmem:[%s11153_s2 + $0x518] sm:$0xff] }
 0x4a5   :  { %5047 = vmatpush.msrb.mxu3 %v4756_v14  ;;  %5067 = vmatpush.msra.mxu0 %v4772_v32  ;;  %v4819_v14 = vld [vmem:[%s11153_s2 + $0x598] sm:$0xff]  ;;  %v4785_v32 = vld [vmem:[%s11153_s2 + $0x488] sm:$0xff] }
 0x4a6   :  { %5029 = vmatpush.msrb.mxu2 %v4738_v25  ;;  %v4577_v25 = vmul.f32 1.442695, %v4575_v11 }
 0x4a7   :  { %5048 = vmatpush.msrb.mxu3 %v4755_v42  ;;  %5068 = vmatpush.msra.mxu0 %v4771_v4  ;;  %v4802_v42 = vld [vmem:[%s11153_s2 + $0x510] sm:$0xff] }
 0x4a8   :  { %5030 = vmatpush.msrb.mxu2 %v4737_v27  ;;  %v4818_v4 = vld [vmem:[%s11153_s2 + $0x590] sm:$0xff]  ;;  %v4784_v27 = vld [vmem:[%s11153_s2 + $0x480] sm:$0xff] }
 0x4a9   :  { %5049 = vmatpush.msrb.mxu3 %v4754_v50  ;;  %5069 = vmatpush.msra.mxu0 %v4770_v26  ;;  %v4847_v50 = vld [vmem:[%s11153_s2 + $0x678] sm:$0xff]  ;;  %v4800_v26 = vld [vmem:[%s11153_s2 + $0x500] sm:$0xff] }
 0x4aa   :  { %5031 = vmatpush.msrb.mxu2 %v4736_v40  ;;  %v4816_v40 = vld [vmem:[%s11153_s2 + $0x580] sm:$0xff] }
 0x4ab   :  { %5050 = vmatpush.msrb.mxu3 %v4753_v23  ;;  %5070 = vmatpush.msra.mxu0 %v4769_v9  ;;  %v4846_v9 = vld [vmem:[%s11153_s2 + $0x670] sm:$0xff] }
 0x4ac   :  { %5032 = vmatmul.f32.vlgmr.msrb.gmra.mxu2 %v4617_v2 }
 0x4ad   :  { %5076 = vmatpush.msra.mxu2 %v4799_v17  ;;  %5051 = vmatpush.msrb.mxu3 %v4752_v19  ;;  %v4863_v17 = vld [vmem:[%s11153_s2 + $0x6f8] sm:$0xff] }
 0x4ae   :  { %5071 = vmatpush.msra.mxu0 %v4768_v34  ;;  %5052 = vmatmul.f32.vlgmr.msrb.gmra.mxu3 %v4618_v12  ;;  %v4589_v44 = vpop.permute.xlu1 %4588  ;;  %v4879_v19 = vld [vmem:[%s11153_s2 + $0x778] sm:$0xff]  ;;  %v4845_v34 = vld [vmem:[%s11153_s2 + $0x668] sm:$0xff]  ;;  %v4862_v12 = vld [vmem:[%s11153_s2 + $0x6f0] sm:$0xff] }
 0x4af   :  { %5077 = vmatpush.msra.mxu2 %v4798_v37  ;;  %5096 = vmatpush.msra.mxu3 %v4815_v47  ;;  %v4592_v28 = vsub.f32 %v10380_v59, %v4589_v44  ;;  %v4878_v37 = vld [vmem:[%s11153_s2 + $0x770] sm:$0xff]  ;;  %v4843_v44 = vld [vmem:[%s11153_s2 + $0x658] sm:$0xff] }
 0x4b0   :  { %5116 = vmatpush.msrb.mxu0 %v4831_v36  ;;  %v4844_v36 = vld [vmem:[%s11153_s2 + $0x660] sm:$0xff] }
 0x4b1   :  { %5078 = vmatpush.msra.mxu2 %v4797_v24  ;;  %5097 = vmatpush.msra.mxu3 %v4814_v18  ;;  %v4595_v56 = vmul.f32 1.442695, %v4592_v28  ;;  %v4861_v24 = vld [vmem:[%s11153_s2 + $0x6e8] sm:$0xff]  ;;  %v4876_v28 = vld [vmem:[%s11153_s2 + $0x760] sm:$0xff] }
 0x4b2   :  { %5117 = vmatpush.msrb.mxu0 %v4830_v55  ;;  %v4877_v18 = vld [vmem:[%s11153_s2 + $0x768] sm:$0xff]  ;;  %v4860_v55 = vld [vmem:[%s11153_s2 + $0x6e0] sm:$0xff] }
 0x4b3   :  { %6168 = vpow2.f32 %v4595_v56  ;;  %5079 = vmatpush.msra.mxu2 %v4796_v3  ;;  %5098 = vmatpush.msra.mxu3 %v4813_v33  ;;  %v4842_v3 = vld [vmem:[%s11153_s2 + $0x650] sm:$0xff]  ;;  %v4859_v33 = vld [vmem:[%s11153_s2 + $0x6d8] sm:$0xff] }
 0x4b4   :  { %5118 = vmatpush.msrb.mxu0 %v4829_v51  ;;  %6170 = vpow2.f32 %v4577_v25  ;;  %v4875_v56 = vld [vmem:[%s11153_s2 + $0x758] sm:$0xff]  ;;  %v4841_v51 = vld [vmem:[%s11153_s2 + $0x648] sm:$0xff]  ;;  %v4848_v25 = vld [vmem:[%s11153_s2 + $0x680] sm:$0xff] }
 0x4b5   :  { %5080 = vmatpush.msra.mxu2 %v4795_v15  ;;  %5099 = vmatpush.msra.mxu3 %v4812_v43  ;;  %v4858_v15 = vld [vmem:[%s11153_s2 + $0x6d0] sm:$0xff] }
 0x4b6   :  { %5119 = vmatpush.msrb.mxu0 %v4828_v5  ;;  %v4874_v43 = vld [vmem:[%s11153_s2 + $0x750] sm:$0xff]  ;;  %v4840_v5 = vld [vmem:[%s11153_s2 + $0x640] sm:$0xff] }
 0x4b7   :  { %5081 = vmatpush.msra.mxu2 %v4794_v48  ;;  %5100 = vmatpush.msra.mxu3 %v4811_v21  ;;  %v4857_v48 = vld [vmem:[%s11153_s2 + $0x6c8] sm:$0xff] }
 0x4b8   :  { %5120 = vmatpush.msrb.mxu0 %v4827_v13  ;;  %v4873_v21 = vld [vmem:[%s11153_s2 + $0x748] sm:$0xff]  ;;  %v4839_v13 = vld [vmem:[%s11153_s2 + $0x638] sm:$0xff] }
 0x4b9   :  { %v10825_v20 = vpop.eup %6168  ;;  %5082 = vmatpush.msra.mxu2 %v4793_v60  ;;  %5101 = vmatpush.msra.mxu3 %v4810_v45  ;;  %v4856_v60 = vld [vmem:[%s11153_s2 + $0x6c0] sm:$0xff] }
 0x4ba   :  { %5121 = vmatpush.msrb.mxu0 %v4826_v63  ;;  %4603 = vadd.xlane.f32.xlu2 %v10825_v20  ;;  %v4619_v11 = vrot.slane %v10825_v20, 1  ;;  %v4620_v23 = vrot.slane %v10825_v20, 2  ;;  %v4621_v2 = vrot.slane %v10825_v20, 3  ;;  %v10937_v47 = vpop.eup %6170  ;;  %v4872_v45 = vld [vmem:[%s11153_s2 + $0x740] sm:$0xff]  ;;  %v4838_v63 = vld [vmem:[%s11153_s2 + $0x630] sm:$0xff] }
 0x4bb   :  { %5083 = vmatpush.msra.mxu2 %v4792_v6  ;;  %5102 = vmatpush.msra.mxu3 %v4809_v1  ;;  %v4855_v6 = vld [vmem:[%s11153_s2 + $0x6b8] sm:$0xff] }
 0x4bc   :  { %5122 = vmatpush.msrb.mxu0 %v4825_v10  ;;  %v4871_v1 = vld [vmem:[%s11153_s2 + $0x738] sm:$0xff]  ;;  %v4837_v10 = vld [vmem:[%s11153_s2 + $0x628] sm:$0xff] }
 0x4bd   :  { %5084 = vmatpush.msra.mxu2 %v4791_v41  ;;  %5103 = vmatpush.msra.mxu3 %v4808_v52  ;;  %v4854_v41 = vld [vmem:[%s11153_s2 + $0x6b0] sm:$0xff] }
 0x4be   :  { %5123 = vmatpush.msrb.mxu0 %v4824_v46  ;;  %v4870_v52 = vld [vmem:[%s11153_s2 + $0x730] sm:$0xff]  ;;  %v4836_v46 = vld [vmem:[%s11153_s2 + $0x620] sm:$0xff] }
 0x4bf   :  { %5072 = vmatmul.f32.vlgmr.msra.gmra.mxu0 %v10825_v20  ;;  %5085 = vmatpush.msra.mxu2 %v4790_v30  ;;  %v4853_v30 = vld [vmem:[%s11153_s2 + $0x6a8] sm:$0xff] }
 0x4c0   :  { %5104 = vmatpush.msra.mxu3 %v4807_v0  ;;  %5124 = vmatpush.msrb.mxu0 %v4823_v7  ;;  %v4869_v0 = vld [vmem:[%s11153_s2 + $0x728] sm:$0xff]  ;;  %v4835_v7 = vld [vmem:[%s11153_s2 + $0x618] sm:$0xff] }
 0x4c1   :  { %5086 = vmatpush.msra.mxu2 %v4789_v54  ;;  %v4852_v54 = vld [vmem:[%s11153_s2 + $0x6a0] sm:$0xff] }
 0x4c2   :  { %5105 = vmatpush.msra.mxu3 %v4806_v16  ;;  %5125 = vmatpush.msrb.mxu0 %v4822_v22  ;;  %v4868_v16 = vld [vmem:[%s11153_s2 + $0x720] sm:$0xff]  ;;  %v4834_v22 = vld [vmem:[%s11153_s2 + $0x610] sm:$0xff] }
 0x4c3   :  { %5087 = vmatpush.msra.mxu2 %v4788_v53  ;;  %v4851_v53 = vld [vmem:[%s11153_s2 + $0x698] sm:$0xff] }
 0x4c4   :  { %5106 = vmatpush.msra.mxu3 %v4805_v57  ;;  %5126 = vmatpush.msrb.mxu0 %v4821_v29  ;;  %v4867_v57 = vld [vmem:[%s11153_s2 + $0x718] sm:$0xff]  ;;  %v4833_v29 = vld [vmem:[%s11153_s2 + $0x608] sm:$0xff] }
 0x4c5   :  { %5088 = vmatpush.msra.mxu2 %v4787_v62  ;;  %v4850_v62 = vld [vmem:[%s11153_s2 + $0x690] sm:$0xff] }
 0x4c6   :  { %5107 = vmatpush.msra.mxu3 %v4804_v8  ;;  %5127 = vmatpush.msrb.mxu0 %v4820_v35  ;;  %v4866_v8 = vld [vmem:[%s11153_s2 + $0x710] sm:$0xff]  ;;  %v4832_v35 = vld [vmem:[%s11153_s2 + $0x600] sm:$0xff] }
 0x4c7   :  { %5089 = vmatpush.msra.mxu2 %v4786_v49  ;;  %v4849_v49 = vld [vmem:[%s11153_s2 + $0x688] sm:$0xff] }
 0x4c8   :  { %5108 = vmatpush.msra.mxu3 %v4803_v31  ;;  %5128 = vmatpush.msrb.mxu0 %v4819_v14  ;;  %v4865_v31 = vld [vmem:[%s11153_s2 + $0x708] sm:$0xff]  ;;  %v4622_v14 = vrot.slane %v10825_v20, 4 }
 0x4c9   :  { %5090 = vmatpush.msra.mxu2 %v4785_v32  ;;  %v4895_v32 = vld [vmem:[%s11153_s2 + $0x7f8] sm:$0xff] }
 0x4ca   :  { %5109 = vmatpush.msra.mxu3 %v4802_v42  ;;  %5129 = vmatpush.msrb.mxu0 %v4818_v4  ;;  %v4864_v42 = vld [vmem:[%s11153_s2 + $0x700] sm:$0xff]  ;;  %v4623_v4 = vrot.slane %v10825_v20, 5 }
 0x4cb   :  { %5091 = vmatpush.msra.mxu2 %v4784_v27  ;;  %v4894_v27 = vld [vmem:[%s11153_s2 + $0x7f0] sm:$0xff] }
 0x4cc   :  { %5110 = vmatpush.msra.mxu3 %v4801_v58  ;;  %5130 = vmatpush.msrb.mxu0 %v4817_v39  ;;  %v4624_v58 = vrot.slane %v10825_v20, 6  ;;  %v4893_v39 = vld [vmem:[%s11153_s2 + $0x7e8] sm:$0xff] }
 0x4cd   :  { %5092 = vmatmul.f32.vlgmr.msra.gmra.mxu2 %v4619_v11  ;;  %v4892_v11 = vld [vmem:[%s11153_s2 + $0x7e0] sm:$0xff] }
 0x4ce   :  { %5136 = vmatpush.msrb.mxu2 %v4847_v50  ;;  %5111 = vmatpush.msra.mxu3 %v4800_v26  ;;  %v4891_v50 = vld [vmem:[%s11153_s2 + $0x7d8] sm:$0xff]  ;;  %v4890_v26 = vld [vmem:[%s11153_s2 + $0x7d0] sm:$0xff] }
 0x4cf   :  { %5131 = vmatpush.msrb.mxu0 %v4816_v40  ;;  %5112 = vmatmul.f32.vlgmr.msra.gmra.mxu3 %v4620_v23  ;;  %v4889_v40 = vld [vmem:[%s11153_s2 + $0x7c8] sm:$0xff]  ;;  %v4888_v23 = vld [vmem:[%s11153_s2 + $0x7c0] sm:$0xff] }
 0x4d0   :  { %5132 = vmatmul.f32.vlgmr.msrb.gmra.mxu0 %v4621_v2  ;;  %5137 = vmatpush.msrb.mxu2 %v4846_v9  ;;  %v4597_v9 = vld [vmem:[#allocation4] sm:$0xff]  ;;  %v4887_v2 = vld [vmem:[%s11153_s2 + $0x7b8] sm:$0xff] }
 0x4d1   :  { %5156 = vmatpush.msrb.mxu3 %v4863_v17  ;;  %5176 = vmatpush.msra.mxu0 %v4879_v19  ;;  %v4599_v17 = vmul.f32 %v10937_v47, %v4597_v9  ;;  %v4886_v19 = vld [vmem:[%s11153_s2 + $0x7b0] sm:$0xff] }
 0x4d2   :  { %5138 = vmatpush.msrb.mxu2 %v4845_v34  ;;  %5220 = vperm.xlu2 %5649, %v10937_v47   ;;  %v4883_v47 = vld [vmem:[%s11153_s2 + $0x798] sm:$0xff] }
 0x4d3   :  { %5157 = vmatpush.msrb.mxu3 %v4862_v12  ;;  %5177 = vmatpush.msra.mxu0 %v4878_v37  ;;  %v4885_v37 = vld [vmem:[%s11153_s2 + $0x7a8] sm:$0xff] }
 0x4d4   :  { %5139 = vmatpush.msrb.mxu2 %v4844_v36  ;;  %v4884_v36 = vld [vmem:[%s11153_s2 + $0x7a0] sm:$0xff] }
 0x4d5   :  { %5158 = vmatpush.msrb.mxu3 %v4861_v24  ;;  %5178 = vmatpush.msra.mxu0 %v4877_v18  ;;  %v4882_v24 = vld [vmem:[%s11153_s2 + $0x790] sm:$0xff]  ;;  %v4881_v18 = vld [vmem:[%s11153_s2 + $0x788] sm:$0xff] }
 0x4d6   :  { %5140 = vmatpush.msrb.mxu2 %v4843_v44 }
 0x4d7   :  { %5159 = vmatpush.msrb.mxu3 %v4860_v55  ;;  %5179 = vmatpush.msra.mxu0 %v4876_v28  ;;  %v4880_v55 = vld [vmem:[%s11153_s2 + $0x780] sm:$0xff]  ;;  %v4625_v28 = vrot.slane %v10825_v20, 7 }
 0x4d8   :  { %5141 = vmatpush.msrb.mxu2 %v4842_v3 }
 0x4d9   :  { %5160 = vmatpush.msrb.mxu3 %v4859_v33  ;;  %5180 = vmatpush.msra.mxu0 %v4875_v56 }
 0x4da   :  { %5142 = vmatpush.msrb.mxu2 %v4841_v51 }
 0x4db   :  { %5161 = vmatpush.msrb.mxu3 %v4858_v15  ;;  %5181 = vmatpush.msra.mxu0 %v4874_v43 }
 0x4dc   :  { %5143 = vmatpush.msrb.mxu2 %v4840_v5 }
 0x4dd   :  { %5162 = vmatpush.msrb.mxu3 %v4857_v48  ;;  %5182 = vmatpush.msra.mxu0 %v4873_v21 }
 0x4de   :  { %5144 = vmatpush.msrb.mxu2 %v4839_v13  ;;  %v4598_v13 = vld [vmem:[#allocation4 + $0x8] sm:$0xff] }
 0x4df   :  { %5163 = vmatpush.msrb.mxu3 %v4856_v60  ;;  %5183 = vmatpush.msra.mxu0 %v4872_v45  ;;  %v4600_v20 = vmul.f32 %v10530_v38, %v4598_v13 }
 0x4e0   :  { %5145 = vmatpush.msrb.mxu2 %v4838_v63 }
 0x4e1   :  { %5164 = vmatpush.msrb.mxu3 %v4855_v6  ;;  %5184 = vmatpush.msra.mxu0 %v4871_v1 }
 0x4e2   :  { %5146 = vmatpush.msrb.mxu2 %v4837_v10 }
 0x4e3   :  { %5165 = vmatpush.msrb.mxu3 %v4854_v41  ;;  %5185 = vmatpush.msra.mxu0 %v4870_v52 }
 0x4e4   :  { %5147 = vmatpush.msrb.mxu2 %v4836_v46 }
 0x4e5   :  { %5166 = vmatpush.msrb.mxu3 %v4853_v30  ;;  %5186 = vmatpush.msra.mxu0 %v4869_v0 }
 0x4e6   :  { %5148 = vmatpush.msrb.mxu2 %v4835_v7 }
 0x4e7   :  { %5167 = vmatpush.msrb.mxu3 %v4852_v54  ;;  %5187 = vmatpush.msra.mxu0 %v4868_v16 }
 0x4e8   :  { %5149 = vmatpush.msrb.mxu2 %v4834_v22  ;;  %v5216_v22 = vld [vmem:[#allocation5] sm:$0xff] }
 0x4e9   :  { %5168 = vmatpush.msrb.mxu3 %v4851_v53  ;;  %5188 = vmatpush.msra.mxu0 %v4867_v57 }
 0x4ea   :  { %5150 = vmatpush.msrb.mxu2 %v4833_v29 }
 0x4eb   :  { %5169 = vmatpush.msrb.mxu3 %v4850_v62  ;;  %5189 = vmatpush.msra.mxu0 %v4866_v8 }
 0x4ec   :  { %5151 = vmatpush.msrb.mxu2 %v4832_v35 }
 0x4ed   :  { %5170 = vmatpush.msrb.mxu3 %v4849_v49  ;;  %5190 = vmatpush.msra.mxu0 %v4865_v31  ;;  %v5226_v49 = vpop.permute.xlu1 %5225 }
 0x4ee   :  { %5152 = vmatmul.f32.vlgmr.msrb.gmra.mxu2 %v4622_v14 }
 0x4ef   :  { %5196 = vmatpush.msra.mxu2 %v4895_v32  ;;  %5171 = vmatpush.msrb.mxu3 %v4848_v25 }
 0x4f0   :  { %5191 = vmatpush.msra.mxu0 %v4864_v42  ;;  %5172 = vmatmul.f32.vlgmr.msrb.gmra.mxu3 %v4623_v4  ;;  %v5327_v4 = vld [vmem:[%s11151_s0] sm:$0xff] }
 0x4f1   :  { %5192 = vmatmul.f32.vlgmr.msra.gmra.mxu0 %v4624_v58  ;;  %5197 = vmatpush.msra.mxu2 %v4894_v27 }
 0x4f3   :  { %5198 = vmatpush.msra.mxu2 %v4893_v39 }
 0x4f5   :  { %5199 = vmatpush.msra.mxu2 %v4892_v11  ;;  %v5296_v31 = vpop.permute.xlu1 %5295 }
 0x4f6   :  { %v5303_v14 = vsub.f32 %v10104_v61, %v5296_v31 }
 0x4f7   :  { %5200 = vmatpush.msra.mxu2 %v4891_v50 }
 0x4f8   :  { %v5305_v32 = vmul.f32 1.442695, %v5303_v14 }
 0x4f9   :  { %5201 = vmatpush.msra.mxu2 %v4890_v26 }
 0x4fb   :  { %5202 = vmatpush.msra.mxu2 %v4889_v40 }
 0x4fd   :  { %5203 = vmatpush.msra.mxu2 %v4888_v23 }
 0x4fe   :  { %v4602_v34 = vpop.xlane.xlu2 %4601 }
 0x4ff   :  { %5204 = vmatpush.msra.mxu2 %v4887_v2  ;;  %v4605_v12 = vadd.f32 %v4602_v34, %v4599_v17 }
 0x501   :  { %5205 = vmatpush.msra.mxu2 %v4886_v19  ;;  %4608 = vst.msk [vmem:[#allocation4] sm:$0xff] %vm80_vm3, %v4605_v12 }
 0x503   :  { %5206 = vmatpush.msra.mxu2 %v4885_v37 }
 0x505   :  { %5207 = vmatpush.msra.mxu2 %v4884_v36 }
 0x507   :  { %5208 = vmatpush.msra.mxu2 %v4883_v47 }
 0x508   :  { %v5285_v44 = vld [vmem:[#allocation4] sm:$0xff] }
 0x509   :  { %5209 = vmatpush.msra.mxu2 %v4882_v24  ;;  %6172 = vrcp.f32 %v5285_v44  ;;  %v5217_v44 = vld [vmem:[#allocation5 + $0x8] sm:$0xff] }
 0x50a   :  { %v4953_v51 = vpop.f32.mrf.mxu0 }
 0x50b   :  { %5210 = vmatpush.msra.mxu2 %v4881_v18  ;;  %v5248_v60 = vrot.slane %v4953_v51, 6 }
 0x50d   :  { %5211 = vmatpush.msra.mxu2 %v4880_v55 }
 0x50e   :  { %5212 = vmatmul.f32.vlgmr.msra.gmra.mxu2 %v4625_v28  ;;  %v4913_v33 = vpop.f32.mrf.mxu2 }
 0x50f   :  { %v6173_v3 = vpop.eup %6172 }
 0x510   :  { %5311 = vperm.xlu2 %5649, %v6173_v3   ;;  %v4933_v56 = vpop.f32.mrf.mxu3 }
 0x511   :  { %v5246_v15 = vrot.slane %v4933_v56, 7  ;;  %v5229_v56 = vmul.f32 %v5226_v49, %v5217_v44 }
 0x513   :  { %v5247_v5 = vsel %vm11462_vm14, %v5246_v15, %v4913_v33  ;;  %v5013_v10 = vpop.f32.mrf.mxu0 }
 0x514   :  { %v5249_v45 = vsel %vm11463_vm15, %v5248_v60, %v5247_v5  ;;  %v5254_v0 = vrot.slane %v5013_v10, 3  ;;  %v5301_v5 = vpop.permute.xlu0 %5300 }
 0x516   :  { %v4973_v43 = vpop.f32.mrf.mxu2 }
 0x517   :  { %v5250_v48 = vrot.slane %v4973_v43, 5 }
 0x518   :  { %v4993_v21 = vpop.f32.mrf.mxu3 }
 0x519   :  { %v5252_v63 = vrot.slane %v4993_v21, 4  ;;  %v5251_v6 = vsel %vm4541_vm0, %v5250_v48, %v5249_v45  ;;  %v5304_v48 = vsub.f32 %v10380_v59, %v5301_v5  ;;  %v5328_v59 = vld [vmem:[%s11151_s0 + $0x8] sm:$0xff] }
 0x51b   :  { %v5253_v46 = vsel %vm11464_vm1, %v5252_v63, %v5251_v6  ;;  %v5307_v21 = vmul.f32 1.442695, %v5304_v48 }
 0x51c   :  { %v5255_v54 = vsel %vm11465_vm2, %v5254_v0, %v5253_v46 }
 0x52d   :  { %v4604_v1 = vpop.xlane.xlu2 %4603 }
 0x52e   :  { %v4606_v41 = vadd.f32 %v4604_v1, %v4600_v20 }
 0x52f   :  { %v5033_v52 = vpop.f32.mrf.mxu2 }
 0x530   :  { %v5256_v30 = vrot.slane %v5033_v52, 2  ;;  %4609 = vst.msk [vmem:[#allocation4 + $0x8] sm:$0xff] %vm80_vm3, %v4606_v41  ;;  %vm11468_vm3 = vmmov %vm11467_vm10 }
 0x531   :  { %v5053_v7 = vpop.f32.mrf.mxu3  ;;  %vm11471_vm12 = vmmov %vm11468_vm3 }
 0x532   :  { %v5258_v16 = vrot.slane %v5053_v7, 1  ;;  %v5257_v53 = vsel %vm11466_vm9, %v5256_v30, %v5255_v54 }
 0x534   :  { %v5259_v29 = vsel %vm4549_vm7, %v5258_v16, %v5257_v53 }
 0x535   :  { %v5221_v38 = vpop.permute.xlu2 %5220 }
 0x536   :  { %v5228_v57 = vmul.f32 %v5221_v38, %v5216_v22 }
 0x537   :  { %v5286_v62 = vld [vmem:[#allocation4 + $0x8] sm:$0xff] }
 0x538   :  { %v5276_v8 = vadd.f32 %v5259_v29, %v5228_v57  ;;  %6174 = vrcp.f32 %v5286_v62 }
 0x539   :  { %6176 = vpow2.f32 %v5305_v32 }
 0x53a   :  { %5278 = vst.msk [vmem:[#allocation5] sm:$0xff] %vm11467_vm10, %v5276_v8  ;;  %6178 = vpow2.f32 %v5307_v21 }
 0x53c   :  { %v5073_v50 = vpop.f32.mrf.mxu0 }
 0x53e   :  { %v6175_v35 = vpop.eup %6174 }
 0x53f   :  { %5316 = vperm.xlu1 %5648, %v6175_v35   ;;  %v6177_v25 = vpop.eup %6176 }
 0x540   :  { %v6179_v13 = vpop.eup %6178 }
 0x541   :  { %v5323_v42 = vld [vmem:[#allocation5] sm:$0xff] }
 0x54d   :  { %v5133_v9 = vpop.f32.mrf.mxu0 }
 0x54e   :  { %v5264_v37 = vrot.slane %v5133_v9, 5 }
 0x550   :  { %v5093_v26 = vpop.f32.mrf.mxu2 }
 0x551   :  { %v5260_v23 = vrot.slane %v5093_v26, 7 }
 0x552   :  { %v5113_v40 = vpop.f32.mrf.mxu3 }
 0x553   :  { %v5262_v61 = vrot.slane %v5113_v40, 6  ;;  %v5261_v2 = vsel %vm11453_vm4, %v5260_v23, %v5073_v50 }
 0x555   :  { %v5263_v19 = vsel %vm11455_vm5, %v5262_v61, %v5261_v2 }
 0x556   :  { %v5265_v36 = vsel %vm4541_vm0, %v5264_v37, %v5263_v19  ;;  %vm11472_vm0 = vmmov %vm11468_vm3 }
 0x56a   :  { %v5312_v27 = vpop.permute.xlu2 %5311 }
 0x56b   :  { %v5319_v58 = vmul.f32 %v6177_v25, %v5312_v27  ;;  %v5325_v39 = vmul.f32 %v5323_v42, %v5312_v27 }
 0x56d   :  { %5321 = vst [vmem:[#allocation9] sm:$0xff] %v5319_v58  ;;  %v5329_v11 = vadd.f32 %v5327_v4, %v5325_v39 }
 0x56e   :  { %v5193_v18 = vpop.f32.mrf.mxu0 }
 0x56f   :  { %5331 = vst.msk [vmem:[#allocation7] sm:$0xff] %vm11468_vm3, %v5329_v11  ;;  %v5270_v28 = vrot.slane %v5193_v18, 2 }
 0x571   :  { %v5153_v17 = vpop.f32.mrf.mxu2 }
 0x572   :  { %v5266_v34 = vrot.slane %v5153_v17, 4 }
 0x573   :  { %v5173_v12 = vpop.f32.mrf.mxu3 }
 0x574   :  { %v5268_v47 = vrot.slane %v5173_v12, 3  ;;  %v5267_v24 = vsel %vm11469_vm11, %v5266_v34, %v5265_v36 }
 0x576   :  { %v5269_v55 = vsel %vm11470_vm6, %v5268_v47, %v5267_v24 }
 0x577   :  { %v5271_v51 = vsel %vm11459_vm8, %v5270_v28, %v5269_v55 }
 0x591   :  { %v5213_v3 = vpop.f32.mrf.mxu2 }
 0x592   :  { %v5272_v33 = vrot.slane %v5213_v3, 1 }
 0x594   :  { %v5273_v15 = vsel %vm4549_vm7, %v5272_v33, %v5271_v51 }
 0x595   :  { %v5277_v43 = vadd.f32 %v5273_v15, %v5229_v56 }
 0x597   :  { %5279 = vst.msk [vmem:[#allocation5 + $0x8] sm:$0xff] %vm11471_vm12, %v5277_v43 }
 0x59e   :  { %v5324_v60 = vld [vmem:[#allocation5 + $0x8] sm:$0xff] }
 0x5b1   :  { %v5317_v45 = vpop.permute.xlu1 %5316 }
 0x5b2   :  { %v5320_v63 = vmul.f32 %v6179_v13, %v5317_v45  ;;  %v5326_v20 = vmul.f32 %v5324_v60, %v5317_v45 }
 0x5b4   :  { %5322 = vst [vmem:[#allocation9 + $0x8] sm:$0xff] %v5320_v63  ;;  %v5330_v6 = vadd.f32 %v5328_v59, %v5326_v20 }
 0x5b5   :  { %5358 = dma.vmem_to_hbm [thread:$0]  %s5351_s10, 256, %s5353_s13, [#allocation10], %s6248_s9, %s6248_s9, %s6249_s19  }
 0x5b6   :  { %5332 = vst.msk [vmem:[#allocation7 + $0x8] sm:$0xff] %vm11472_vm0, %v5330_v6 }
 0x5b7   :  { %5345 = dma.vmem_to_hbm [thread:$0]  %s5338_s7, 256, %s5340_s16, [#allocation8], %s6248_s9, %s6248_s9, %s6249_s19  }
 0x5b8   :  { %6239 = dma.done.wait [#allocation8], 256  }
 0x5b9   :  { %6240 = vsyncadd [#allocation8], 4294967040 }
 0x5ba   :  { %6241 = dma.done.wait [#allocation10], 256  }
 0x5bb   :  { %6242 = vsyncadd [#allocation10], 4294967040 }
 0x5bc   :  { %5367 = vsyncpa [#allocation8], 1 }
 0x5bd   :  { %5368 = vsyncpa [#allocation10], 1 }

</bundles_post_ra>
